<compile_context>
chip_gen: v6e
topology: v6e:2x2x1
jax: 0.10.0
libtpu: 0.0.40
codegen_flags: <defaults>
</compile_context>

<pallas_src>
import functools

import jax
import jax.numpy as jnp
from jax.experimental import pallas as pl
from jax.experimental.pallas import tpu as pltpu

NEG_SLOPE = 0.2


def _lrelu(x):
    return jnp.where(x >= 0, x, NEG_SLOPE * x)


def _vmem_limit_bytes(default_cap=64 * 1024 * 1024):
    # Derive the scoped-VMEM limit from the actual chip (review feedback)
    # instead of hard-coding: ~3/4 of physical leaves headroom for the
    # compiler's own scratch while using v5e/v6e's full 128 MiB budget.
    try:
        cap = int(getattr(pltpu.get_tpu_info(), "vmem_capacity_bytes",
                          default_cap))
    except Exception:
        cap = default_cap
    return max(32 * 1024 * 1024, (cap * 3) // 4)


# ----------------------------- fused Pallas kernel ---------------------------


def _aab_kernel(x_ref, w1t_ref, wadm1_ref, wadm2t_ref, wg_ref, wk2t_ref,
                bk2_ref, wk4_ref, wlt_ref, o_ref, xp_ref, dense_ref,
                *, D, H, W, t):
    """Full AAB forward for one batch element, channels-first (C, spatial).

    x_ref    : (1, C, DHW) f32    original input (conv_first input + residual)
    w1t_ref  : (C, C)      bf16   conv_first weight, transposed (Cout, Cin)
    wadm1_ref: (C, R)      f32    ADM linear 1
    wadm2t_ref:(K, R)      f32    ADM linear 2, transposed
    wg_ref   : (27, 3C, C) bf16   per-tap transposed weights of k1 | k3 | na
    wk2t_ref : (C, C)      bf16   k2 (1x1x1) weight, transposed
    bk2_ref  : (C, 1)      f32    k2 bias
    wk4_ref  : (27, C, C)  bf16   per-tap transposed k4 weights
    wlt_ref  : (C, C)      bf16   conv_last weight, transposed
    xp_ref   : VMEM (C, Ltot) bf16   flat zero-padded halo scratch
    dense_ref: VMEM (C, DHW)  bf16   dense compaction scratch
    """
    C = w1t_ref.shape[0]
    Wp, Hp = W + 2, H + 2
    HWp = Hp * Wp
    HW = H * W
    DHW = D * HW
    Lacc = D * HWp              # conv accumulator length (valid data + junk
                                # at the intra-plane pad rows/cols, never read)

    # ---- conv_first (1x1x1) + LeakyReLU ------------------------------------
    x_cm = x_ref[0]                                              # (C, DHW) f32
    x1 = _lrelu(jnp.dot(w1t_ref[...], x_cm.astype(jnp.bfloat16),
                        preferred_element_type=jnp.float32))     # (C, DHW) f32

    # ---- global average pool (lane reduce) + ADM + softmax(./t) ------------
    pooled = jnp.sum(x1, axis=1, keepdims=True) * (1.0 / DHW)    # (C, 1)
    hid = jnp.maximum(
        jnp.sum(wadm1_ref[...] * pooled, axis=0, keepdims=True), 0.0)  # (1, R)
    logits = jnp.sum(wadm2t_ref[...] * hid, axis=1,
                     keepdims=True) * (1.0 / t)                  # (K, 1)
    e = jnp.exp(logits - jnp.max(logits, axis=0, keepdims=True))
    ax = e / jnp.sum(e, axis=0, keepdims=True)                   # (K, 1)
    a0 = ax[0:1, 0:1]                                            # (1, 1)
    a1 = ax[1:2, 0:1]                                            # (1, 1)

    # ---- flat halo-buffer helpers -------------------------------------------
    def fill_interior(vol, plane_stride, row_stride):
        # Copy the valid (D, H, W) region of `vol` (channels-first, flattened
        # spatial with the given strides) into the interior of the flat
        # zero-padded buffer.  D*H small contiguous row copies; the halo /
        # pad positions keep the zeros written below.
        v = vol.astype(xp_ref.dtype)
        for d in range(D):
            for hh in range(H):
                src = d * plane_stride + hh * row_stride
                dst = (d + 1) * HWp + (hh + 1) * Wp + 1
                xp_ref[:, dst:dst + W] = v[:, src:src + W]

    def conv27(w_ref):
        # 3x3x3 SAME conv as 27 shifted contiguous-slice matmuls:
        #   acc(Co, Lacc) += Wk^T(Co, C) @ xp[:, off : off + Lacc]
        co = w_ref.shape[1]
        acc = jnp.zeros((co, Lacc), jnp.float32)
        for kd in range(3):
            for kh in range(3):
                for kw in range(3):
                    k = (kd * 3 + kh) * 3 + kw
                    off = kd * HWp + kh * Wp + kw
                    win = xp_ref[:, off:off + Lacc]          # (C, Lacc) bf16
                    acc = acc + jnp.dot(w_ref[k], win,
                                        preferred_element_type=jnp.float32)
        return acc

    # Zero once per grid step (unconditional -> megacore-safe).  In the flat
    # channels-first layout the whole buffer is only a few vregs, and both
    # conv passes reuse the same zeroed halo (only interior positions are
    # ever overwritten).
    xp_ref[...] = jnp.zeros(xp_ref.shape, xp_ref.dtype)

    # ---- k1 | k3 | non_attention: one halo fill, one stacked weight --------
    fill_interior(x1, HW, W)
    grp = conv27(wg_ref)                                     # (3C, Lacc) f32
    y1, k3x, yna = grp[:C], grp[C:2 * C], grp[2 * C:]

    # gate = sigmoid(k2(lrelu(k1(x1))) + b)   (1x1x1 conv = one matmul)
    gate = jax.nn.sigmoid(
        jnp.dot(wk2t_ref[...], _lrelu(y1).astype(jnp.bfloat16),
                preferred_element_type=jnp.float32) + bk2_ref[...])
    gated = k3x * gate                                       # (C, Lacc) f32

    # ---- k4 on the gated volume: reuse the halo buffer ----------------------
    fill_interior(gated, HWp, Wp)
    att = conv27(wk4_ref)                                    # (C, Lacc) f32

    # ---- ADM mixture + lrelu -------------------------------------------------
    comb = _lrelu(att * a0 + yna * a1)                       # (C, Lacc) f32

    # ---- compact to dense (C, DHW), conv_last, residual, lane-dense store ---
    cb = comb.astype(dense_ref.dtype)
    for d in range(D):
        for hh in range(H):
            src = d * HWp + hh * Wp
            dst = d * HW + hh * W
            dense_ref[:, dst:dst + W] = cb[:, src:src + W]
    out = jnp.dot(wlt_ref[...], dense_ref[...],
                  preferred_element_type=jnp.float32)        # (C, DHW) f32
    o_ref[0] = (out + x_cm).astype(o_ref.dtype)


# ------------------------------ wrapper --------------------------------------


def aab_forward(x_ncdhw, p, t=30.0):
    N, C, D, H, W = x_ncdhw.shape
    HW, DHW = H * W, D * H * W
    Wp, Hp = W + 2, H + 2
    HWp = Hp * Wp
    Lacc = D * HWp
    off_max = 2 * HWp + 2 * Wp + 2
    Ltot = ((Lacc + off_max + 127) // 128) * 128     # lane-dense flat halo len

    x_cm = x_ncdhw.reshape(N, C, DHW)                # free reshape, chan-first
    bf16, f32 = jnp.bfloat16, jnp.float32

    def taps_t(w):                                   # (3,3,3,Ci,Co)->(27,Co,Ci)
        return jnp.transpose(w.reshape(27, C, C), (0, 2, 1)).astype(bf16)

    w1t = p["w_first"].T.astype(bf16)                # (Cout, Cin)
    wadm1 = p["w_adm1"].astype(f32)                  # (C, R)
    wadm2t = p["w_adm2"].T.astype(f32)               # (K, R)
    wg = jnp.concatenate([taps_t(p["w_k1"]), taps_t(p["w_k3"]),
                          taps_t(p["w_na"])], axis=1)        # (27, 3C, C)
    wk2t = p["w_k2"].T.astype(bf16)                  # (Cout, Cin)
    bk2 = p["b_k2"].reshape(C, 1).astype(f32)
    wk4 = taps_t(p["w_k4"])                          # (27, C, C)
    wlt = p["w_last"].T.astype(bf16)                 # (Cout, Cin)

    R = wadm1.shape[1]
    K = wadm2t.shape[0]

    kern = functools.partial(_aab_kernel, D=D, H=H, W=W, t=t)
    const2 = lambda n: (0, 0)
    const3 = lambda n: (0, 0, 0)

    out_cm = pl.pallas_call(
        kern,
        out_shape=jax.ShapeDtypeStruct((N, C, DHW), x_cm.dtype),
        grid=(N,),
        in_specs=[
            pl.BlockSpec((1, C, DHW), lambda n: (n, 0, 0)),   # x / residual
            pl.BlockSpec((C, C), const2),                     # conv_first^T
            pl.BlockSpec((C, R), const2),                     # ADM linear 1
            pl.BlockSpec((K, R), const2),                     # ADM linear 2^T
            pl.BlockSpec((27, 3 * C, C), const3),             # k1|k3|na taps^T
            pl.BlockSpec((C, C), const2),                     # k2^T
            pl.BlockSpec((C, 1), const2),                     # k2 bias
            pl.BlockSpec((27, C, C), const3),                 # k4 taps^T
            pl.BlockSpec((C, C), const2),                     # conv_last^T
        ],
        out_specs=pl.BlockSpec((1, C, DHW), lambda n: (n, 0, 0)),
        scratch_shapes=[
            pltpu.VMEM((C, Ltot), bf16),                      # flat halo buffer
            pltpu.VMEM((C, DHW), bf16),                       # dense compaction
        ],
        compiler_params=pltpu.CompilerParams(
            dimension_semantics=("parallel",),
            vmem_limit_bytes=_vmem_limit_bytes()),
    )(x_cm, w1t, wadm1, wadm2t, wg, wk2t, bk2, wk4, wlt)
    return out_cm.reshape(N, C, D, H, W)


# ------------------------------ pure-JAX reference ---------------------------


def _conv3d_ref(x, w, bias=None):
    out = jax.lax.conv_general_dilated(
        x, w, window_strides=(1, 1, 1), padding="SAME",
        dimension_numbers=("NDHWC", "DHWIO", "NDHWC"))
    if bias is not None:
        out = out + bias
    return out


def aab_ref(x_ncdhw, p, t=30.0):
    x = jnp.transpose(x_ncdhw, (0, 2, 3, 4, 1))
    C = x.shape[-1]
    residual = x
    x1 = _lrelu(_conv3d_ref(x, p["w_first"].reshape(1, 1, 1, C, C)))
    pooled = jnp.mean(x1, axis=(1, 2, 3))
    h = jnp.maximum(pooled @ p["w_adm1"], 0.0)
    ax = jax.nn.softmax((h @ p["w_adm2"]) / t, axis=1)
    y = _lrelu(_conv3d_ref(x1, p["w_k1"]))
    y = jax.nn.sigmoid(
        _conv3d_ref(y, p["w_k2"].reshape(1, 1, 1, C, C), bias=p["b_k2"]))
    k3 = _conv3d_ref(x1, p["w_k3"])
    att = _conv3d_ref(k3 * y, p["w_k4"])
    natt = _conv3d_ref(x1, p["w_na"])
    xo = _lrelu(att * ax[:, 0].reshape(-1, 1, 1, 1, 1)
                + natt * ax[:, 1].reshape(-1, 1, 1, 1, 1))
    out = _conv3d_ref(xo, p["w_last"].reshape(1, 1, 1, C, C)) + residual
    return jnp.transpose(out, (0, 4, 1, 2, 3))


# ------------------------------ params / main --------------------------------


def init_params(key, nf, reduction=4, K=2):
    keys = jax.random.split(key, 10)
    s = 0.1

    def w2d(k, i, o):
        return jax.random.normal(k, (i, o), jnp.float32) * s

    def w3d(k, c):
        return jax.random.normal(k, (3, 3, 3, c, c), jnp.float32) * s

    return {
        "w_first": w2d(keys[0], nf, nf),             # conv_first (1x1x1, no bias)
        "w_adm1":  w2d(keys[1], nf, nf // reduction),
        "w_adm2":  w2d(keys[2], nf // reduction, K),
        "w_k1":    w3d(keys[3], nf),                 # 3x3x3, no bias
        "w_k2":    w2d(keys[4], nf, nf),             # 1x1x1, with bias
        "b_k2":    jax.random.normal(keys[5], (nf,), jnp.float32) * s,
        "w_k3":    w3d(keys[6], nf),
        "w_k4":    w3d(keys[7], nf),
        "w_na":    w3d(keys[8], nf),                 # non_attention 3x3x3
        "w_last":  w2d(keys[9], nf, nf),             # conv_last (1x1x1, no bias)
    }


if __name__ == "__main__":
    key = jax.random.PRNGKey(0)
    kx, kp = jax.random.split(key)

    N, C, D, H, W = 2, 8, 4, 8, 8          # NCDHW, matching PyTorch Conv3d inputs
    x = jax.random.normal(kx, (N, C, D, H, W), jnp.float32)
    params = init_params(kp, C, reduction=4, K=2)

    out = jax.jit(functools.partial(aab_forward, t=30.0))(x, params)
    out = jax.block_until_ready(out)

    ref = aab_ref(x, params, t=30.0)
    assert out.shape == (N, C, D, H, W)
    err = float(jnp.max(jnp.abs(out - ref)))
    # bf16 MXU operands vs. the f32 reference -> slightly looser tolerance
    # (accumulation stays f32 via preferred_element_type), per the review.
    if not jnp.allclose(out, ref, atol=2e-2, rtol=2e-2):
        raise AssertionError(f"Pallas output mismatch vs reference, max abs err={err}")
    print("KERNEL_OK")
</pallas_src>

<mosaic_0001>
module attributes {stable_mosaic.version = 11 : i64} {
  func.func @_aab_kernel(%arg0: i32, %arg1: memref<1x8x256xf32, #tpu.memory_space<vmem>>, %arg2: memref<8x8xbf16, #tpu.memory_space<vmem>>, %arg3: memref<8x2xf32, #tpu.memory_space<vmem>>, %arg4: memref<2x2xf32, #tpu.memory_space<vmem>>, %arg5: memref<27x24x8xbf16, #tpu.memory_space<vmem>>, %arg6: memref<8x8xbf16, #tpu.memory_space<vmem>>, %arg7: memref<8x1xf32, #tpu.memory_space<vmem>>, %arg8: memref<27x8x8xbf16, #tpu.memory_space<vmem>>, %arg9: memref<8x8xbf16, #tpu.memory_space<vmem>>, %arg10: memref<1x8x256xf32, #tpu.memory_space<vmem>>, %arg11: memref<8x640xbf16, #tpu.memory_space<vmem>>, %arg12: memref<8x256xbf16, #tpu.memory_space<vmem>>) attributes {dimension_semantics = [#tpu.dimension_semantics<parallel>], iteration_bounds = array<i64: 2>, scalar_prefetch = 0 : i64, scratch_operands = 2 : i64, tpu.core_type = #tpu.core_type<tc>, window_params = [{transform_indices = @transform_0, window_bounds = array<i64: 1, 8, 256>}, {pipeline_mode = #tpu.pipeline_mode<synchronous>, transform_indices = @transform_1, window_bounds = array<i64: 8, 8>}, {pipeline_mode = #tpu.pipeline_mode<synchronous>, transform_indices = @transform_2, window_bounds = array<i64: 8, 2>}, {pipeline_mode = #tpu.pipeline_mode<synchronous>, transform_indices = @transform_3, window_bounds = array<i64: 2, 2>}, {pipeline_mode = #tpu.pipeline_mode<synchronous>, transform_indices = @transform_4, window_bounds = array<i64: 27, 24, 8>}, {pipeline_mode = #tpu.pipeline_mode<synchronous>, transform_indices = @transform_5, window_bounds = array<i64: 8, 8>}, {pipeline_mode = #tpu.pipeline_mode<synchronous>, transform_indices = @transform_6, window_bounds = array<i64: 8, 1>}, {pipeline_mode = #tpu.pipeline_mode<synchronous>, transform_indices = @transform_7, window_bounds = array<i64: 27, 8, 8>}, {pipeline_mode = #tpu.pipeline_mode<synchronous>, transform_indices = @transform_8, window_bounds = array<i64: 8, 8>}, {transform_indices = @transform_9, window_bounds = array<i64: 1, 8, 256>}]} {
    %c0 = arith.constant 0 : index
    %c0_0 = arith.constant 0 : index
    %c0_1 = arith.constant 0 : index
    %0 = vector.load %arg1[%c0, %c0_0, %c0_1] : memref<1x8x256xf32, #tpu.memory_space<vmem>>, vector<1x8x256xf32>
    %1 = vector.shape_cast %0 : vector<1x8x256xf32> to vector<8x256xf32>
    %c0_2 = arith.constant 0 : index
    %c0_3 = arith.constant 0 : index
    %2 = vector.load %arg2[%c0_2, %c0_3] : memref<8x8xbf16, #tpu.memory_space<vmem>>, vector<8x8xbf16>
    %3 = arith.truncf %1 : vector<8x256xf32> to vector<8x256xbf16>
    %cst = arith.constant dense<0.000000e+00> : vector<8x256xf32>
    %4 = tpu.matmul %2, %3, %cst {dimension_numbers = #tpu.dot_dimension_numbers<[1], [0], [0], [1], [0, 0, 1, 1], [], []>} : vector<8x8xbf16>, vector<8x256xbf16>, vector<8x256xf32> -> vector<8x256xf32>
    %cst_4 = arith.constant 0.000000e+00 : f32
    %5 = vector.broadcast %cst_4 : f32 to vector<8x256xf32>
    %6 = arith.cmpf oge, %4, %5 : vector<8x256xf32>
    %cst_5 = arith.constant 2.000000e-01 : f32
    %7 = vector.broadcast %cst_5 : f32 to vector<8x256xf32>
    %8 = arith.mulf %7, %4 : vector<8x256xf32>
    %9 = arith.select %6, %4, %8 : vector<8x256xi1>, vector<8x256xf32>
    %cst_6 = arith.constant dense<0.000000e+00> : vector<8xf32>
    %10 = vector.multi_reduction <add>, %9, %cst_6 [1] : vector<8x256xf32> to vector<8xf32>
    %11 = vector.shape_cast %10 : vector<8xf32> to vector<8x1xf32>
    %cst_7 = arith.constant 3.906250e-03 : f32
    %12 = vector.broadcast %cst_7 : f32 to vector<8x1xf32>
    %13 = arith.mulf %11, %12 : vector<8x1xf32>
    %c0_8 = arith.constant 0 : index
    %c0_9 = arith.constant 0 : index
    %14 = vector.load %arg3[%c0_8, %c0_9] : memref<8x2xf32, #tpu.memory_space<vmem>>, vector<8x2xf32>
    %15 = vector.broadcast %13 : vector<8x1xf32> to vector<8x2xf32>
    %16 = arith.mulf %14, %15 : vector<8x2xf32>
    %cst_10 = arith.constant dense<0.000000e+00> : vector<2xf32>
    %17 = vector.multi_reduction <add>, %16, %cst_10 [0] : vector<8x2xf32> to vector<2xf32>
    %18 = vector.shape_cast %17 : vector<2xf32> to vector<1x2xf32>
    %cst_11 = arith.constant 0.000000e+00 : f32
    %19 = vector.broadcast %cst_11 : f32 to vector<1x2xf32>
    %20 = arith.maximumf %18, %19 : vector<1x2xf32>
    %c0_12 = arith.constant 0 : index
    %c0_13 = arith.constant 0 : index
    %21 = vector.load %arg4[%c0_12, %c0_13] : memref<2x2xf32, #tpu.memory_space<vmem>>, vector<2x2xf32>
    %22 = vector.broadcast %20 : vector<1x2xf32> to vector<2x2xf32>
    %23 = arith.mulf %21, %22 : vector<2x2xf32>
    %cst_14 = arith.constant dense<0.000000e+00> : vector<2xf32>
    %24 = vector.multi_reduction <add>, %23, %cst_14 [1] : vector<2x2xf32> to vector<2xf32>
    %25 = vector.shape_cast %24 : vector<2xf32> to vector<2x1xf32>
    %cst_15 = arith.constant 0.0333333351 : f32
    %26 = vector.broadcast %cst_15 : f32 to vector<2x1xf32>
    %27 = arith.mulf %25, %26 : vector<2x1xf32>
    %cst_16 = arith.constant dense<0xFF800000> : vector<1xf32>
    %28 = vector.multi_reduction <maximumf>, %27, %cst_16 [0] : vector<2x1xf32> to vector<1xf32>
    %29 = vector.shape_cast %28 : vector<1xf32> to vector<1x1xf32>
    %30 = vector.broadcast %29 : vector<1x1xf32> to vector<2x1xf32>
    %31 = arith.subf %27, %30 : vector<2x1xf32>
    %32 = math.exp %31 : vector<2x1xf32>
    %cst_17 = arith.constant dense<0.000000e+00> : vector<1xf32>
    %33 = vector.multi_reduction <add>, %32, %cst_17 [0] : vector<2x1xf32> to vector<1xf32>
    %34 = vector.shape_cast %33 : vector<1xf32> to vector<1x1xf32>
    %35 = vector.broadcast %34 : vector<1x1xf32> to vector<2x1xf32>
    %36 = arith.divf %32, %35 : vector<2x1xf32>
    %37 = vector.extract_strided_slice %36 {offsets = [0, 0], sizes = [1, 1], strides = [1, 1]} : vector<2x1xf32> to vector<1x1xf32>
    %38 = vector.extract_strided_slice %36 {offsets = [1, 0], sizes = [1, 1], strides = [1, 1]} : vector<2x1xf32> to vector<1x1xf32>
    %cst_18 = arith.constant 0.000000e+00 : bf16
    %39 = vector.broadcast %cst_18 : bf16 to vector<8x640xbf16>
    %c0_19 = arith.constant 0 : index
    %c0_20 = arith.constant 0 : index
    %40 = vector.load %arg11[%c0_19, %c0_20] : memref<8x640xbf16, #tpu.memory_space<vmem>>, vector<8x640xbf16>
    tpu.vector_store %arg11[%c0_19, %c0_20], %39 {strides = array<i32>} : memref<8x640xbf16, #tpu.memory_space<vmem>>, vector<8x640xbf16>,
    %41 = arith.truncf %9 : vector<8x256xf32> to vector<8x256xbf16>
    %42 = vector.extract_strided_slice %41 {offsets = [0, 0], sizes = [8, 8], strides = [1, 1]} : vector<8x256xbf16> to vector<8x8xbf16>
    %c0_21 = arith.constant 0 : index
    %c111 = arith.constant 111 : index
    %43 = vector.load %arg11[%c0_21, %c111] : memref<8x640xbf16, #tpu.memory_space<vmem>>, vector<8x8xbf16>
    tpu.vector_store %arg11[%c0_21, %c111], %42 {strides = array<i32>} : memref<8x640xbf16, #tpu.memory_space<vmem>>, vector<8x8xbf16>,
    %44 = vector.extract_strided_slice %41 {offsets = [0, 8], sizes = [8, 8], strides = [1, 1]} : vector<8x256xbf16> to vector<8x8xbf16>
    %c0_22 = arith.constant 0 : index
    %c121 = arith.constant 121 : index
    %45 = vector.load %arg11[%c0_22, %c121] : memref<8x640xbf16, #tpu.memory_space<vmem>>, vector<8x8xbf16>
    tpu.vector_store %arg11[%c0_22, %c121], %44 {strides = array<i32>} : memref<8x640xbf16, #tpu.memory_space<vmem>>, vector<8x8xbf16>,
    %46 = vector.extract_strided_slice %41 {offsets = [0, 16], sizes = [8, 8], strides = [1, 1]} : vector<8x256xbf16> to vector<8x8xbf16>
    %c0_23 = arith.constant 0 : index
    %c131 = arith.constant 131 : index
    %47 = vector.load %arg11[%c0_23, %c131] : memref<8x640xbf16, #tpu.memory_space<vmem>>, vector<8x8xbf16>
    tpu.vector_store %arg11[%c0_23, %c131], %46 {strides = array<i32>} : memref<8x640xbf16, #tpu.memory_space<vmem>>, vector<8x8xbf16>,
    %48 = vector.extract_strided_slice %41 {offsets = [0, 24], sizes = [8, 8], strides = [1, 1]} : vector<8x256xbf16> to vector<8x8xbf16>
    %c0_24 = arith.constant 0 : index
    %c141 = arith.constant 141 : index
    %49 = vector.load %arg11[%c0_24, %c141] : memref<8x640xbf16, #tpu.memory_space<vmem>>, vector<8x8xbf16>
    tpu.vector_store %arg11[%c0_24, %c141], %48 {strides = array<i32>} : memref<8x640xbf16, #tpu.memory_space<vmem>>, vector<8x8xbf16>,
    %50 = vector.extract_strided_slice %41 {offsets = [0, 32], sizes = [8, 8], strides = [1, 1]} : vector<8x256xbf16> to vector<8x8xbf16>
    %c0_25 = arith.constant 0 : index
    %c151 = arith.constant 151 : index
    %51 = vector.load %arg11[%c0_25, %c151] : memref<8x640xbf16, #tpu.memory_space<vmem>>, vector<8x8xbf16>
    tpu.vector_store %arg11[%c0_25, %c151], %50 {strides = array<i32>} : memref<8x640xbf16, #tpu.memory_space<vmem>>, vector<8x8xbf16>,
    %52 = vector.extract_strided_slice %41 {offsets = [0, 40], sizes = [8, 8], strides = [1, 1]} : vector<8x256xbf16> to vector<8x8xbf16>
    %c0_26 = arith.constant 0 : index
    %c161 = arith.constant 161 : index
    %53 = vector.load %arg11[%c0_26, %c161] : memref<8x640xbf16, #tpu.memory_space<vmem>>, vector<8x8xbf16>
    tpu.vector_store %arg11[%c0_26, %c161], %52 {strides = array<i32>} : memref<8x640xbf16, #tpu.memory_space<vmem>>, vector<8x8xbf16>,
    %54 = vector.extract_strided_slice %41 {offsets = [0, 48], sizes = [8, 8], strides = [1, 1]} : vector<8x256xbf16> to vector<8x8xbf16>
    %c0_27 = arith.constant 0 : index
    %c171 = arith.constant 171 : index
    %55 = vector.load %arg11[%c0_27, %c171] : memref<8x640xbf16, #tpu.memory_space<vmem>>, vector<8x8xbf16>
    tpu.vector_store %arg11[%c0_27, %c171], %54 {strides = array<i32>} : memref<8x640xbf16, #tpu.memory_space<vmem>>, vector<8x8xbf16>,
    %56 = vector.extract_strided_slice %41 {offsets = [0, 56], sizes = [8, 8], strides = [1, 1]} : vector<8x256xbf16> to vector<8x8xbf16>
    %c0_28 = arith.constant 0 : index
    %c181 = arith.constant 181 : index
    %57 = vector.load %arg11[%c0_28, %c181] : memref<8x640xbf16, #tpu.memory_space<vmem>>, vector<8x8xbf16>
    tpu.vector_store %arg11[%c0_28, %c181], %56 {strides = array<i32>} : memref<8x640xbf16, #tpu.memory_space<vmem>>, vector<8x8xbf16>,
    %58 = vector.extract_strided_slice %41 {offsets = [0, 64], sizes = [8, 8], strides = [1, 1]} : vector<8x256xbf16> to vector<8x8xbf16>
    %c0_29 = arith.constant 0 : index
    %c211 = arith.constant 211 : index
    %59 = vector.load %arg11[%c0_29, %c211] : memref<8x640xbf16, #tpu.memory_space<vmem>>, vector<8x8xbf16>
    tpu.vector_store %arg11[%c0_29, %c211], %58 {strides = array<i32>} : memref<8x640xbf16, #tpu.memory_space<vmem>>, vector<8x8xbf16>,
    %60 = vector.extract_strided_slice %41 {offsets = [0, 72], sizes = [8, 8], strides = [1, 1]} : vector<8x256xbf16> to vector<8x8xbf16>
    %c0_30 = arith.constant 0 : index
    %c221 = arith.constant 221 : index
    %61 = vector.load %arg11[%c0_30, %c221] : memref<8x640xbf16, #tpu.memory_space<vmem>>, vector<8x8xbf16>
    tpu.vector_store %arg11[%c0_30, %c221], %60 {strides = array<i32>} : memref<8x640xbf16, #tpu.memory_space<vmem>>, vector<8x8xbf16>,
    %62 = vector.extract_strided_slice %41 {offsets = [0, 80], sizes = [8, 8], strides = [1, 1]} : vector<8x256xbf16> to vector<8x8xbf16>
    %c0_31 = arith.constant 0 : index
    %c231 = arith.constant 231 : index
    %63 = vector.load %arg11[%c0_31, %c231] : memref<8x640xbf16, #tpu.memory_space<vmem>>, vector<8x8xbf16>
    tpu.vector_store %arg11[%c0_31, %c231], %62 {strides = array<i32>} : memref<8x640xbf16, #tpu.memory_space<vmem>>, vector<8x8xbf16>,
    %64 = vector.extract_strided_slice %41 {offsets = [0, 88], sizes = [8, 8], strides = [1, 1]} : vector<8x256xbf16> to vector<8x8xbf16>
    %c0_32 = arith.constant 0 : index
    %c241 = arith.constant 241 : index
    %65 = vector.load %arg11[%c0_32, %c241] : memref<8x640xbf16, #tpu.memory_space<vmem>>, vector<8x8xbf16>
    tpu.vector_store %arg11[%c0_32, %c241], %64 {strides = array<i32>} : memref<8x640xbf16, #tpu.memory_space<vmem>>, vector<8x8xbf16>,
    %66 = vector.extract_strided_slice %41 {offsets = [0, 96], sizes = [8, 8], strides = [1, 1]} : vector<8x256xbf16> to vector<8x8xbf16>
    %c0_33 = arith.constant 0 : index
    %c251 = arith.constant 251 : index
    %67 = vector.load %arg11[%c0_33, %c251] : memref<8x640xbf16, #tpu.memory_space<vmem>>, vector<8x8xbf16>
    tpu.vector_store %arg11[%c0_33, %c251], %66 {strides = array<i32>} : memref<8x640xbf16, #tpu.memory_space<vmem>>, vector<8x8xbf16>,
    %68 = vector.extract_strided_slice %41 {offsets = [0, 104], sizes = [8, 8], strides = [1, 1]} : vector<8x256xbf16> to vector<8x8xbf16>
    %c0_34 = arith.constant 0 : index
    %c261 = arith.constant 261 : index
    %69 = vector.load %arg11[%c0_34, %c261] : memref<8x640xbf16, #tpu.memory_space<vmem>>, vector<8x8xbf16>
    tpu.vector_store %arg11[%c0_34, %c261], %68 {strides = array<i32>} : memref<8x640xbf16, #tpu.memory_space<vmem>>, vector<8x8xbf16>,
    %70 = vector.extract_strided_slice %41 {offsets = [0, 112], sizes = [8, 8], strides = [1, 1]} : vector<8x256xbf16> to vector<8x8xbf16>
    %c0_35 = arith.constant 0 : index
    %c271 = arith.constant 271 : index
    %71 = vector.load %arg11[%c0_35, %c271] : memref<8x640xbf16, #tpu.memory_space<vmem>>, vector<8x8xbf16>
    tpu.vector_store %arg11[%c0_35, %c271], %70 {strides = array<i32>} : memref<8x640xbf16, #tpu.memory_space<vmem>>, vector<8x8xbf16>,
    %72 = vector.extract_strided_slice %41 {offsets = [0, 120], sizes = [8, 8], strides = [1, 1]} : vector<8x256xbf16> to vector<8x8xbf16>
    %c0_36 = arith.constant 0 : index
    %c281 = arith.constant 281 : index
    %73 = vector.load %arg11[%c0_36, %c281] : memref<8x640xbf16, #tpu.memory_space<vmem>>, vector<8x8xbf16>
    tpu.vector_store %arg11[%c0_36, %c281], %72 {strides = array<i32>} : memref<8x640xbf16, #tpu.memory_space<vmem>>, vector<8x8xbf16>,
    %74 = vector.extract_strided_slice %41 {offsets = [0, 128], sizes = [8, 8], strides = [1, 1]} : vector<8x256xbf16> to vector<8x8xbf16>
    %c0_37 = arith.constant 0 : index
    %c311 = arith.constant 311 : index
    %75 = vector.load %arg11[%c0_37, %c311] : memref<8x640xbf16, #tpu.memory_space<vmem>>, vector<8x8xbf16>
    tpu.vector_store %arg11[%c0_37, %c311], %74 {strides = array<i32>} : memref<8x640xbf16, #tpu.memory_space<vmem>>, vector<8x8xbf16>,
    %76 = vector.extract_strided_slice %41 {offsets = [0, 136], sizes = [8, 8], strides = [1, 1]} : vector<8x256xbf16> to vector<8x8xbf16>
    %c0_38 = arith.constant 0 : index
    %c321 = arith.constant 321 : index
    %77 = vector.load %arg11[%c0_38, %c321] : memref<8x640xbf16, #tpu.memory_space<vmem>>, vector<8x8xbf16>
    tpu.vector_store %arg11[%c0_38, %c321], %76 {strides = array<i32>} : memref<8x640xbf16, #tpu.memory_space<vmem>>, vector<8x8xbf16>,
    %78 = vector.extract_strided_slice %41 {offsets = [0, 144], sizes = [8, 8], strides = [1, 1]} : vector<8x256xbf16> to vector<8x8xbf16>
    %c0_39 = arith.constant 0 : index
    %c331 = arith.constant 331 : index
    %79 = vector.load %arg11[%c0_39, %c331] : memref<8x640xbf16, #tpu.memory_space<vmem>>, vector<8x8xbf16>
    tpu.vector_store %arg11[%c0_39, %c331], %78 {strides = array<i32>} : memref<8x640xbf16, #tpu.memory_space<vmem>>, vector<8x8xbf16>,
    %80 = vector.extract_strided_slice %41 {offsets = [0, 152], sizes = [8, 8], strides = [1, 1]} : vector<8x256xbf16> to vector<8x8xbf16>
    %c0_40 = arith.constant 0 : index
    %c341 = arith.constant 341 : index
    %81 = vector.load %arg11[%c0_40, %c341] : memref<8x640xbf16, #tpu.memory_space<vmem>>, vector<8x8xbf16>
    tpu.vector_store %arg11[%c0_40, %c341], %80 {strides = array<i32>} : memref<8x640xbf16, #tpu.memory_space<vmem>>, vector<8x8xbf16>,
    %82 = vector.extract_strided_slice %41 {offsets = [0, 160], sizes = [8, 8], strides = [1, 1]} : vector<8x256xbf16> to vector<8x8xbf16>
    %c0_41 = arith.constant 0 : index
    %c351 = arith.constant 351 : index
    %83 = vector.load %arg11[%c0_41, %c351] : memref<8x640xbf16, #tpu.memory_space<vmem>>, vector<8x8xbf16>
    tpu.vector_store %arg11[%c0_41, %c351], %82 {strides = array<i32>} : memref<8x640xbf16, #tpu.memory_space<vmem>>, vector<8x8xbf16>,
    %84 = vector.extract_strided_slice %41 {offsets = [0, 168], sizes = [8, 8], strides = [1, 1]} : vector<8x256xbf16> to vector<8x8xbf16>
    %c0_42 = arith.constant 0 : index
    %c361 = arith.constant 361 : index
    %85 = vector.load %arg11[%c0_42, %c361] : memref<8x640xbf16, #tpu.memory_space<vmem>>, vector<8x8xbf16>
    tpu.vector_store %arg11[%c0_42, %c361], %84 {strides = array<i32>} : memref<8x640xbf16, #tpu.memory_space<vmem>>, vector<8x8xbf16>,
    %86 = vector.extract_strided_slice %41 {offsets = [0, 176], sizes = [8, 8], strides = [1, 1]} : vector<8x256xbf16> to vector<8x8xbf16>
    %c0_43 = arith.constant 0 : index
    %c371 = arith.constant 371 : index
    %87 = vector.load %arg11[%c0_43, %c371] : memref<8x640xbf16, #tpu.memory_space<vmem>>, vector<8x8xbf16>
    tpu.vector_store %arg11[%c0_43, %c371], %86 {strides = array<i32>} : memref<8x640xbf16, #tpu.memory_space<vmem>>, vector<8x8xbf16>,
    %88 = vector.extract_strided_slice %41 {offsets = [0, 184], sizes = [8, 8], strides = [1, 1]} : vector<8x256xbf16> to vector<8x8xbf16>
    %c0_44 = arith.constant 0 : index
    %c381 = arith.constant 381 : index
    %89 = vector.load %arg11[%c0_44, %c381] : memref<8x640xbf16, #tpu.memory_space<vmem>>, vector<8x8xbf16>
    tpu.vector_store %arg11[%c0_44, %c381], %88 {strides = array<i32>} : memref<8x640xbf16, #tpu.memory_space<vmem>>, vector<8x8xbf16>,
    %90 = vector.extract_strided_slice %41 {offsets = [0, 192], sizes = [8, 8], strides = [1, 1]} : vector<8x256xbf16> to vector<8x8xbf16>
    %c0_45 = arith.constant 0 : index
    %c411 = arith.constant 411 : index
    %91 = vector.load %arg11[%c0_45, %c411] : memref<8x640xbf16, #tpu.memory_space<vmem>>, vector<8x8xbf16>
    tpu.vector_store %arg11[%c0_45, %c411], %90 {strides = array<i32>} : memref<8x640xbf16, #tpu.memory_space<vmem>>, vector<8x8xbf16>,
    %92 = vector.extract_strided_slice %41 {offsets = [0, 200], sizes = [8, 8], strides = [1, 1]} : vector<8x256xbf16> to vector<8x8xbf16>
    %c0_46 = arith.constant 0 : index
    %c421 = arith.constant 421 : index
    %93 = vector.load %arg11[%c0_46, %c421] : memref<8x640xbf16, #tpu.memory_space<vmem>>, vector<8x8xbf16>
    tpu.vector_store %arg11[%c0_46, %c421], %92 {strides = array<i32>} : memref<8x640xbf16, #tpu.memory_space<vmem>>, vector<8x8xbf16>,
    %94 = vector.extract_strided_slice %41 {offsets = [0, 208], sizes = [8, 8], strides = [1, 1]} : vector<8x256xbf16> to vector<8x8xbf16>
    %c0_47 = arith.constant 0 : index
    %c431 = arith.constant 431 : index
    %95 = vector.load %arg11[%c0_47, %c431] : memref<8x640xbf16, #tpu.memory_space<vmem>>, vector<8x8xbf16>
    tpu.vector_store %arg11[%c0_47, %c431], %94 {strides = array<i32>} : memref<8x640xbf16, #tpu.memory_space<vmem>>, vector<8x8xbf16>,
    %96 = vector.extract_strided_slice %41 {offsets = [0, 216], sizes = [8, 8], strides = [1, 1]} : vector<8x256xbf16> to vector<8x8xbf16>
    %c0_48 = arith.constant 0 : index
    %c441 = arith.constant 441 : index
    %97 = vector.load %arg11[%c0_48, %c441] : memref<8x640xbf16, #tpu.memory_space<vmem>>, vector<8x8xbf16>
    tpu.vector_store %arg11[%c0_48, %c441], %96 {strides = array<i32>} : memref<8x640xbf16, #tpu.memory_space<vmem>>, vector<8x8xbf16>,
    %98 = vector.extract_strided_slice %41 {offsets = [0, 224], sizes = [8, 8], strides = [1, 1]} : vector<8x256xbf16> to vector<8x8xbf16>
    %c0_49 = arith.constant 0 : index
    %c451 = arith.constant 451 : index
    %99 = vector.load %arg11[%c0_49, %c451] : memref<8x640xbf16, #tpu.memory_space<vmem>>, vector<8x8xbf16>
    tpu.vector_store %arg11[%c0_49, %c451], %98 {strides = array<i32>} : memref<8x640xbf16, #tpu.memory_space<vmem>>, vector<8x8xbf16>,
    %100 = vector.extract_strided_slice %41 {offsets = [0, 232], sizes = [8, 8], strides = [1, 1]} : vector<8x256xbf16> to vector<8x8xbf16>
    %c0_50 = arith.constant 0 : index
    %c461 = arith.constant 461 : index
    %101 = vector.load %arg11[%c0_50, %c461] : memref<8x640xbf16, #tpu.memory_space<vmem>>, vector<8x8xbf16>
    tpu.vector_store %arg11[%c0_50, %c461], %100 {strides = array<i32>} : memref<8x640xbf16, #tpu.memory_space<vmem>>, vector<8x8xbf16>,
    %102 = vector.extract_strided_slice %41 {offsets = [0, 240], sizes = [8, 8], strides = [1, 1]} : vector<8x256xbf16> to vector<8x8xbf16>
    %c0_51 = arith.constant 0 : index
    %c471 = arith.constant 471 : index
    %103 = vector.load %arg11[%c0_51, %c471] : memref<8x640xbf16, #tpu.memory_space<vmem>>, vector<8x8xbf16>
    tpu.vector_store %arg11[%c0_51, %c471], %102 {strides = array<i32>} : memref<8x640xbf16, #tpu.memory_space<vmem>>, vector<8x8xbf16>,
    %104 = vector.extract_strided_slice %41 {offsets = [0, 248], sizes = [8, 8], strides = [1, 1]} : vector<8x256xbf16> to vector<8x8xbf16>
    %c0_52 = arith.constant 0 : index
    %c481 = arith.constant 481 : index
    %105 = vector.load %arg11[%c0_52, %c481] : memref<8x640xbf16, #tpu.memory_space<vmem>>, vector<8x8xbf16>
    tpu.vector_store %arg11[%c0_52, %c481], %104 {strides = array<i32>} : memref<8x640xbf16, #tpu.memory_space<vmem>>, vector<8x8xbf16>,
    %cst_53 = arith.constant 0.000000e+00 : f32
    %106 = vector.broadcast %cst_53 : f32 to vector<24x400xf32>
    %c0_54 = arith.constant 0 : index
    %c0_55 = arith.constant 0 : index
    %107 = vector.load %arg11[%c0_54, %c0_55] : memref<8x640xbf16, #tpu.memory_space<vmem>>, vector<8x400xbf16>
    %c0_56 = arith.constant 0 : index
    %c0_57 = arith.constant 0 : index
    %c0_58 = arith.constant 0 : index
    %108 = vector.load %arg5[%c0_56, %c0_57, %c0_58] : memref<27x24x8xbf16, #tpu.memory_space<vmem>>, vector<1x24x8xbf16>
    %109 = vector.shape_cast %108 : vector<1x24x8xbf16> to vector<24x8xbf16>
    %cst_59 = arith.constant dense<0.000000e+00> : vector<24x400xf32>
    %110 = tpu.matmul %109, %107, %cst_59 {dimension_numbers = #tpu.dot_dimension_numbers<[1], [0], [0], [1], [0, 0, 1, 1], [], []>} : vector<24x8xbf16>, vector<8x400xbf16>, vector<24x400xf32> -> vector<24x400xf32>
    %111 = arith.addf %106, %110 : vector<24x400xf32>
    %c0_60 = arith.constant 0 : index
    %c1 = arith.constant 1 : index
    %112 = vector.load %arg11[%c0_60, %c1] : memref<8x640xbf16, #tpu.memory_space<vmem>>, vector<8x400xbf16>
    %c1_61 = arith.constant 1 : index
    %c0_62 = arith.constant 0 : index
    %c0_63 = arith.constant 0 : index
    %113 = vector.load %arg5[%c1_61, %c0_62, %c0_63] : memref<27x24x8xbf16, #tpu.memory_space<vmem>>, vector<1x24x8xbf16>
    %114 = vector.shape_cast %113 : vector<1x24x8xbf16> to vector<24x8xbf16>
    %cst_64 = arith.constant dense<0.000000e+00> : vector<24x400xf32>
    %115 = tpu.matmul %114, %112, %cst_64 {dimension_numbers = #tpu.dot_dimension_numbers<[1], [0], [0], [1], [0, 0, 1, 1], [], []>} : vector<24x8xbf16>, vector<8x400xbf16>, vector<24x400xf32> -> vector<24x400xf32>
    %116 = arith.addf %111, %115 : vector<24x400xf32>
    %c0_65 = arith.constant 0 : index
    %c2 = arith.constant 2 : index
    %117 = vector.load %arg11[%c0_65, %c2] : memref<8x640xbf16, #tpu.memory_space<vmem>>, vector<8x400xbf16>
    %c2_66 = arith.constant 2 : index
    %c0_67 = arith.constant 0 : index
    %c0_68 = arith.constant 0 : index
    %118 = vector.load %arg5[%c2_66, %c0_67, %c0_68] : memref<27x24x8xbf16, #tpu.memory_space<vmem>>, vector<1x24x8xbf16>
    %119 = vector.shape_cast %118 : vector<1x24x8xbf16> to vector<24x8xbf16>
    %cst_69 = arith.constant dense<0.000000e+00> : vector<24x400xf32>
    %120 = tpu.matmul %119, %117, %cst_69 {dimension_numbers = #tpu.dot_dimension_numbers<[1], [0], [0], [1], [0, 0, 1, 1], [], []>} : vector<24x8xbf16>, vector<8x400xbf16>, vector<24x400xf32> -> vector<24x400xf32>
    %121 = arith.addf %116, %120 : vector<24x400xf32>
    %c0_70 = arith.constant 0 : index
    %c10 = arith.constant 10 : index
    %122 = vector.load %arg11[%c0_70, %c10] : memref<8x640xbf16, #tpu.memory_space<vmem>>, vector<8x400xbf16>
    %c3 = arith.constant 3 : index
    %c0_71 = arith.constant 0 : index
    %c0_72 = arith.constant 0 : index
    %123 = vector.load %arg5[%c3, %c0_71, %c0_72] : memref<27x24x8xbf16, #tpu.memory_space<vmem>>, vector<1x24x8xbf16>
    %124 = vector.shape_cast %123 : vector<1x24x8xbf16> to vector<24x8xbf16>
    %cst_73 = arith.constant dense<0.000000e+00> : vector<24x400xf32>
    %125 = tpu.matmul %124, %122, %cst_73 {dimension_numbers = #tpu.dot_dimension_numbers<[1], [0], [0], [1], [0, 0, 1, 1], [], []>} : vector<24x8xbf16>, vector<8x400xbf16>, vector<24x400xf32> -> vector<24x400xf32>
    %126 = arith.addf %121, %125 : vector<24x400xf32>
    %c0_74 = arith.constant 0 : index
    %c11 = arith.constant 11 : index
    %127 = vector.load %arg11[%c0_74, %c11] : memref<8x640xbf16, #tpu.memory_space<vmem>>, vector<8x400xbf16>
    %c4 = arith.constant 4 : index
    %c0_75 = arith.constant 0 : index
    %c0_76 = arith.constant 0 : index
    %128 = vector.load %arg5[%c4, %c0_75, %c0_76] : memref<27x24x8xbf16, #tpu.memory_space<vmem>>, vector<1x24x8xbf16>
    %129 = vector.shape_cast %128 : vector<1x24x8xbf16> to vector<24x8xbf16>
    %cst_77 = arith.constant dense<0.000000e+00> : vector<24x400xf32>
    %130 = tpu.matmul %129, %127, %cst_77 {dimension_numbers = #tpu.dot_dimension_numbers<[1], [0], [0], [1], [0, 0, 1, 1], [], []>} : vector<24x8xbf16>, vector<8x400xbf16>, vector<24x400xf32> -> vector<24x400xf32>
    %131 = arith.addf %126, %130 : vector<24x400xf32>
    %c0_78 = arith.constant 0 : index
    %c12 = arith.constant 12 : index
    %132 = vector.load %arg11[%c0_78, %c12] : memref<8x640xbf16, #tpu.memory_space<vmem>>, vector<8x400xbf16>
    %c5 = arith.constant 5 : index
    %c0_79 = arith.constant 0 : index
    %c0_80 = arith.constant 0 : index
    %133 = vector.load %arg5[%c5, %c0_79, %c0_80] : memref<27x24x8xbf16, #tpu.memory_space<vmem>>, vector<1x24x8xbf16>
    %134 = vector.shape_cast %133 : vector<1x24x8xbf16> to vector<24x8xbf16>
    %cst_81 = arith.constant dense<0.000000e+00> : vector<24x400xf32>
    %135 = tpu.matmul %134, %132, %cst_81 {dimension_numbers = #tpu.dot_dimension_numbers<[1], [0], [0], [1], [0, 0, 1, 1], [], []>} : vector<24x8xbf16>, vector<8x400xbf16>, vector<24x400xf32> -> vector<24x400xf32>
    %136 = arith.addf %131, %135 : vector<24x400xf32>
    %c0_82 = arith.constant 0 : index
    %c20 = arith.constant 20 : index
    %137 = vector.load %arg11[%c0_82, %c20] : memref<8x640xbf16, #tpu.memory_space<vmem>>, vector<8x400xbf16>
    %c6 = arith.constant 6 : index
    %c0_83 = arith.constant 0 : index
    %c0_84 = arith.constant 0 : index
    %138 = vector.load %arg5[%c6, %c0_83, %c0_84] : memref<27x24x8xbf16, #tpu.memory_space<vmem>>, vector<1x24x8xbf16>
    %139 = vector.shape_cast %138 : vector<1x24x8xbf16> to vector<24x8xbf16>
    %cst_85 = arith.constant dense<0.000000e+00> : vector<24x400xf32>
    %140 = tpu.matmul %139, %137, %cst_85 {dimension_numbers = #tpu.dot_dimension_numbers<[1], [0], [0], [1], [0, 0, 1, 1], [], []>} : vector<24x8xbf16>, vector<8x400xbf16>, vector<24x400xf32> -> vector<24x400xf32>
    %141 = arith.addf %136, %140 : vector<24x400xf32>
    %c0_86 = arith.constant 0 : index
    %c21 = arith.constant 21 : index
    %142 = vector.load %arg11[%c0_86, %c21] : memref<8x640xbf16, #tpu.memory_space<vmem>>, vector<8x400xbf16>
    %c7 = arith.constant 7 : index
    %c0_87 = arith.constant 0 : index
    %c0_88 = arith.constant 0 : index
    %143 = vector.load %arg5[%c7, %c0_87, %c0_88] : memref<27x24x8xbf16, #tpu.memory_space<vmem>>, vector<1x24x8xbf16>
    %144 = vector.shape_cast %143 : vector<1x24x8xbf16> to vector<24x8xbf16>
    %cst_89 = arith.constant dense<0.000000e+00> : vector<24x400xf32>
    %145 = tpu.matmul %144, %142, %cst_89 {dimension_numbers = #tpu.dot_dimension_numbers<[1], [0], [0], [1], [0, 0, 1, 1], [], []>} : vector<24x8xbf16>, vector<8x400xbf16>, vector<24x400xf32> -> vector<24x400xf32>
    %146 = arith.addf %141, %145 : vector<24x400xf32>
    %c0_90 = arith.constant 0 : index
    %c22 = arith.constant 22 : index
    %147 = vector.load %arg11[%c0_90, %c22] : memref<8x640xbf16, #tpu.memory_space<vmem>>, vector<8x400xbf16>
    %c8 = arith.constant 8 : index
    %c0_91 = arith.constant 0 : index
    %c0_92 = arith.constant 0 : index
    %148 = vector.load %arg5[%c8, %c0_91, %c0_92] : memref<27x24x8xbf16, #tpu.memory_space<vmem>>, vector<1x24x8xbf16>
    %149 = vector.shape_cast %148 : vector<1x24x8xbf16> to vector<24x8xbf16>
    %cst_93 = arith.constant dense<0.000000e+00> : vector<24x400xf32>
    %150 = tpu.matmul %149, %147, %cst_93 {dimension_numbers = #tpu.dot_dimension_numbers<[1], [0], [0], [1], [0, 0, 1, 1], [], []>} : vector<24x8xbf16>, vector<8x400xbf16>, vector<24x400xf32> -> vector<24x400xf32>
    %151 = arith.addf %146, %150 : vector<24x400xf32>
    %c0_94 = arith.constant 0 : index
    %c100 = arith.constant 100 : index
    %152 = vector.load %arg11[%c0_94, %c100] : memref<8x640xbf16, #tpu.memory_space<vmem>>, vector<8x400xbf16>
    %c9 = arith.constant 9 : index
    %c0_95 = arith.constant 0 : index
    %c0_96 = arith.constant 0 : index
    %153 = vector.load %arg5[%c9, %c0_95, %c0_96] : memref<27x24x8xbf16, #tpu.memory_space<vmem>>, vector<1x24x8xbf16>
    %154 = vector.shape_cast %153 : vector<1x24x8xbf16> to vector<24x8xbf16>
    %cst_97 = arith.constant dense<0.000000e+00> : vector<24x400xf32>
    %155 = tpu.matmul %154, %152, %cst_97 {dimension_numbers = #tpu.dot_dimension_numbers<[1], [0], [0], [1], [0, 0, 1, 1], [], []>} : vector<24x8xbf16>, vector<8x400xbf16>, vector<24x400xf32> -> vector<24x400xf32>
    %156 = arith.addf %151, %155 : vector<24x400xf32>
    %c0_98 = arith.constant 0 : index
    %c101 = arith.constant 101 : index
    %157 = vector.load %arg11[%c0_98, %c101] : memref<8x640xbf16, #tpu.memory_space<vmem>>, vector<8x400xbf16>
    %c10_99 = arith.constant 10 : index
    %c0_100 = arith.constant 0 : index
    %c0_101 = arith.constant 0 : index
    %158 = vector.load %arg5[%c10_99, %c0_100, %c0_101] : memref<27x24x8xbf16, #tpu.memory_space<vmem>>, vector<1x24x8xbf16>
    %159 = vector.shape_cast %158 : vector<1x24x8xbf16> to vector<24x8xbf16>
    %cst_102 = arith.constant dense<0.000000e+00> : vector<24x400xf32>
    %160 = tpu.matmul %159, %157, %cst_102 {dimension_numbers = #tpu.dot_dimension_numbers<[1], [0], [0], [1], [0, 0, 1, 1], [], []>} : vector<24x8xbf16>, vector<8x400xbf16>, vector<24x400xf32> -> vector<24x400xf32>
    %161 = arith.addf %156, %160 : vector<24x400xf32>
    %c0_103 = arith.constant 0 : index
    %c102 = arith.constant 102 : index
    %162 = vector.load %arg11[%c0_103, %c102] : memref<8x640xbf16, #tpu.memory_space<vmem>>, vector<8x400xbf16>
    %c11_104 = arith.constant 11 : index
    %c0_105 = arith.constant 0 : index
    %c0_106 = arith.constant 0 : index
    %163 = vector.load %arg5[%c11_104, %c0_105, %c0_106] : memref<27x24x8xbf16, #tpu.memory_space<vmem>>, vector<1x24x8xbf16>
    %164 = vector.shape_cast %163 : vector<1x24x8xbf16> to vector<24x8xbf16>
    %cst_107 = arith.constant dense<0.000000e+00> : vector<24x400xf32>
    %165 = tpu.matmul %164, %162, %cst_107 {dimension_numbers = #tpu.dot_dimension_numbers<[1], [0], [0], [1], [0, 0, 1, 1], [], []>} : vector<24x8xbf16>, vector<8x400xbf16>, vector<24x400xf32> -> vector<24x400xf32>
    %166 = arith.addf %161, %165 : vector<24x400xf32>
    %c0_108 = arith.constant 0 : index
    %c110 = arith.constant 110 : index
    %167 = vector.load %arg11[%c0_108, %c110] : memref<8x640xbf16, #tpu.memory_space<vmem>>, vector<8x400xbf16>
    %c12_109 = arith.constant 12 : index
    %c0_110 = arith.constant 0 : index
    %c0_111 = arith.constant 0 : index
    %168 = vector.load %arg5[%c12_109, %c0_110, %c0_111] : memref<27x24x8xbf16, #tpu.memory_space<vmem>>, vector<1x24x8xbf16>
    %169 = vector.shape_cast %168 : vector<1x24x8xbf16> to vector<24x8xbf16>
    %cst_112 = arith.constant dense<0.000000e+00> : vector<24x400xf32>
    %170 = tpu.matmul %169, %167, %cst_112 {dimension_numbers = #tpu.dot_dimension_numbers<[1], [0], [0], [1], [0, 0, 1, 1], [], []>} : vector<24x8xbf16>, vector<8x400xbf16>, vector<24x400xf32> -> vector<24x400xf32>
    %171 = arith.addf %166, %170 : vector<24x400xf32>
    %c0_113 = arith.constant 0 : index
    %c111_114 = arith.constant 111 : index
    %172 = vector.load %arg11[%c0_113, %c111_114] : memref<8x640xbf16, #tpu.memory_space<vmem>>, vector<8x400xbf16>
    %c13 = arith.constant 13 : index
    %c0_115 = arith.constant 0 : index
    %c0_116 = arith.constant 0 : index
    %173 = vector.load %arg5[%c13, %c0_115, %c0_116] : memref<27x24x8xbf16, #tpu.memory_space<vmem>>, vector<1x24x8xbf16>
    %174 = vector.shape_cast %173 : vector<1x24x8xbf16> to vector<24x8xbf16>
    %cst_117 = arith.constant dense<0.000000e+00> : vector<24x400xf32>
    %175 = tpu.matmul %174, %172, %cst_117 {dimension_numbers = #tpu.dot_dimension_numbers<[1], [0], [0], [1], [0, 0, 1, 1], [], []>} : vector<24x8xbf16>, vector<8x400xbf16>, vector<24x400xf32> -> vector<24x400xf32>
    %176 = arith.addf %171, %175 : vector<24x400xf32>
    %c0_118 = arith.constant 0 : index
    %c112 = arith.constant 112 : index
    %177 = vector.load %arg11[%c0_118, %c112] : memref<8x640xbf16, #tpu.memory_space<vmem>>, vector<8x400xbf16>
    %c14 = arith.constant 14 : index
    %c0_119 = arith.constant 0 : index
    %c0_120 = arith.constant 0 : index
    %178 = vector.load %arg5[%c14, %c0_119, %c0_120] : memref<27x24x8xbf16, #tpu.memory_space<vmem>>, vector<1x24x8xbf16>
    %179 = vector.shape_cast %178 : vector<1x24x8xbf16> to vector<24x8xbf16>
    %cst_121 = arith.constant dense<0.000000e+00> : vector<24x400xf32>
    %180 = tpu.matmul %179, %177, %cst_121 {dimension_numbers = #tpu.dot_dimension_numbers<[1], [0], [0], [1], [0, 0, 1, 1], [], []>} : vector<24x8xbf16>, vector<8x400xbf16>, vector<24x400xf32> -> vector<24x400xf32>
    %181 = arith.addf %176, %180 : vector<24x400xf32>
    %c0_122 = arith.constant 0 : index
    %c120 = arith.constant 120 : index
    %182 = vector.load %arg11[%c0_122, %c120] : memref<8x640xbf16, #tpu.memory_space<vmem>>, vector<8x400xbf16>
    %c15 = arith.constant 15 : index
    %c0_123 = arith.constant 0 : index
    %c0_124 = arith.constant 0 : index
    %183 = vector.load %arg5[%c15, %c0_123, %c0_124] : memref<27x24x8xbf16, #tpu.memory_space<vmem>>, vector<1x24x8xbf16>
    %184 = vector.shape_cast %183 : vector<1x24x8xbf16> to vector<24x8xbf16>
    %cst_125 = arith.constant dense<0.000000e+00> : vector<24x400xf32>
    %185 = tpu.matmul %184, %182, %cst_125 {dimension_numbers = #tpu.dot_dimension_numbers<[1], [0], [0], [1], [0, 0, 1, 1], [], []>} : vector<24x8xbf16>, vector<8x400xbf16>, vector<24x400xf32> -> vector<24x400xf32>
    %186 = arith.addf %181, %185 : vector<24x400xf32>
    %c0_126 = arith.constant 0 : index
    %c121_127 = arith.constant 121 : index
    %187 = vector.load %arg11[%c0_126, %c121_127] : memref<8x640xbf16, #tpu.memory_space<vmem>>, vector<8x400xbf16>
    %c16 = arith.constant 16 : index
    %c0_128 = arith.constant 0 : index
    %c0_129 = arith.constant 0 : index
    %188 = vector.load %arg5[%c16, %c0_128, %c0_129] : memref<27x24x8xbf16, #tpu.memory_space<vmem>>, vector<1x24x8xbf16>
    %189 = vector.shape_cast %188 : vector<1x24x8xbf16> to vector<24x8xbf16>
    %cst_130 = arith.constant dense<0.000000e+00> : vector<24x400xf32>
    %190 = tpu.matmul %189, %187, %cst_130 {dimension_numbers = #tpu.dot_dimension_numbers<[1], [0], [0], [1], [0, 0, 1, 1], [], []>} : vector<24x8xbf16>, vector<8x400xbf16>, vector<24x400xf32> -> vector<24x400xf32>
    %191 = arith.addf %186, %190 : vector<24x400xf32>
    %c0_131 = arith.constant 0 : index
    %c122 = arith.constant 122 : index
    %192 = vector.load %arg11[%c0_131, %c122] : memref<8x640xbf16, #tpu.memory_space<vmem>>, vector<8x400xbf16>
    %c17 = arith.constant 17 : index
    %c0_132 = arith.constant 0 : index
    %c0_133 = arith.constant 0 : index
    %193 = vector.load %arg5[%c17, %c0_132, %c0_133] : memref<27x24x8xbf16, #tpu.memory_space<vmem>>, vector<1x24x8xbf16>
    %194 = vector.shape_cast %193 : vector<1x24x8xbf16> to vector<24x8xbf16>
    %cst_134 = arith.constant dense<0.000000e+00> : vector<24x400xf32>
    %195 = tpu.matmul %194, %192, %cst_134 {dimension_numbers = #tpu.dot_dimension_numbers<[1], [0], [0], [1], [0, 0, 1, 1], [], []>} : vector<24x8xbf16>, vector<8x400xbf16>, vector<24x400xf32> -> vector<24x400xf32>
    %196 = arith.addf %191, %195 : vector<24x400xf32>
    %c0_135 = arith.constant 0 : index
    %c200 = arith.constant 200 : index
    %197 = vector.load %arg11[%c0_135, %c200] : memref<8x640xbf16, #tpu.memory_space<vmem>>, vector<8x400xbf16>
    %c18 = arith.constant 18 : index
    %c0_136 = arith.constant 0 : index
    %c0_137 = arith.constant 0 : index
    %198 = vector.load %arg5[%c18, %c0_136, %c0_137] : memref<27x24x8xbf16, #tpu.memory_space<vmem>>, vector<1x24x8xbf16>
    %199 = vector.shape_cast %198 : vector<1x24x8xbf16> to vector<24x8xbf16>
    %cst_138 = arith.constant dense<0.000000e+00> : vector<24x400xf32>
    %200 = tpu.matmul %199, %197, %cst_138 {dimension_numbers = #tpu.dot_dimension_numbers<[1], [0], [0], [1], [0, 0, 1, 1], [], []>} : vector<24x8xbf16>, vector<8x400xbf16>, vector<24x400xf32> -> vector<24x400xf32>
    %201 = arith.addf %196, %200 : vector<24x400xf32>
    %c0_139 = arith.constant 0 : index
    %c201 = arith.constant 201 : index
    %202 = vector.load %arg11[%c0_139, %c201] : memref<8x640xbf16, #tpu.memory_space<vmem>>, vector<8x400xbf16>
    %c19 = arith.constant 19 : index
    %c0_140 = arith.constant 0 : index
    %c0_141 = arith.constant 0 : index
    %203 = vector.load %arg5[%c19, %c0_140, %c0_141] : memref<27x24x8xbf16, #tpu.memory_space<vmem>>, vector<1x24x8xbf16>
    %204 = vector.shape_cast %203 : vector<1x24x8xbf16> to vector<24x8xbf16>
    %cst_142 = arith.constant dense<0.000000e+00> : vector<24x400xf32>
    %205 = tpu.matmul %204, %202, %cst_142 {dimension_numbers = #tpu.dot_dimension_numbers<[1], [0], [0], [1], [0, 0, 1, 1], [], []>} : vector<24x8xbf16>, vector<8x400xbf16>, vector<24x400xf32> -> vector<24x400xf32>
    %206 = arith.addf %201, %205 : vector<24x400xf32>
    %c0_143 = arith.constant 0 : index
    %c202 = arith.constant 202 : index
    %207 = vector.load %arg11[%c0_143, %c202] : memref<8x640xbf16, #tpu.memory_space<vmem>>, vector<8x400xbf16>
    %c20_144 = arith.constant 20 : index
    %c0_145 = arith.constant 0 : index
    %c0_146 = arith.constant 0 : index
    %208 = vector.load %arg5[%c20_144, %c0_145, %c0_146] : memref<27x24x8xbf16, #tpu.memory_space<vmem>>, vector<1x24x8xbf16>
    %209 = vector.shape_cast %208 : vector<1x24x8xbf16> to vector<24x8xbf16>
    %cst_147 = arith.constant dense<0.000000e+00> : vector<24x400xf32>
    %210 = tpu.matmul %209, %207, %cst_147 {dimension_numbers = #tpu.dot_dimension_numbers<[1], [0], [0], [1], [0, 0, 1, 1], [], []>} : vector<24x8xbf16>, vector<8x400xbf16>, vector<24x400xf32> -> vector<24x400xf32>
    %211 = arith.addf %206, %210 : vector<24x400xf32>
    %c0_148 = arith.constant 0 : index
    %c210 = arith.constant 210 : index
    %212 = vector.load %arg11[%c0_148, %c210] : memref<8x640xbf16, #tpu.memory_space<vmem>>, vector<8x400xbf16>
    %c21_149 = arith.constant 21 : index
    %c0_150 = arith.constant 0 : index
    %c0_151 = arith.constant 0 : index
    %213 = vector.load %arg5[%c21_149, %c0_150, %c0_151] : memref<27x24x8xbf16, #tpu.memory_space<vmem>>, vector<1x24x8xbf16>
    %214 = vector.shape_cast %213 : vector<1x24x8xbf16> to vector<24x8xbf16>
    %cst_152 = arith.constant dense<0.000000e+00> : vector<24x400xf32>
    %215 = tpu.matmul %214, %212, %cst_152 {dimension_numbers = #tpu.dot_dimension_numbers<[1], [0], [0], [1], [0, 0, 1, 1], [], []>} : vector<24x8xbf16>, vector<8x400xbf16>, vector<24x400xf32> -> vector<24x400xf32>
    %216 = arith.addf %211, %215 : vector<24x400xf32>
    %c0_153 = arith.constant 0 : index
    %c211_154 = arith.constant 211 : index
    %217 = vector.load %arg11[%c0_153, %c211_154] : memref<8x640xbf16, #tpu.memory_space<vmem>>, vector<8x400xbf16>
    %c22_155 = arith.constant 22 : index
    %c0_156 = arith.constant 0 : index
    %c0_157 = arith.constant 0 : index
    %218 = vector.load %arg5[%c22_155, %c0_156, %c0_157] : memref<27x24x8xbf16, #tpu.memory_space<vmem>>, vector<1x24x8xbf16>
    %219 = vector.shape_cast %218 : vector<1x24x8xbf16> to vector<24x8xbf16>
    %cst_158 = arith.constant dense<0.000000e+00> : vector<24x400xf32>
    %220 = tpu.matmul %219, %217, %cst_158 {dimension_numbers = #tpu.dot_dimension_numbers<[1], [0], [0], [1], [0, 0, 1, 1], [], []>} : vector<24x8xbf16>, vector<8x400xbf16>, vector<24x400xf32> -> vector<24x400xf32>
    %221 = arith.addf %216, %220 : vector<24x400xf32>
    %c0_159 = arith.constant 0 : index
    %c212 = arith.constant 212 : index
    %222 = vector.load %arg11[%c0_159, %c212] : memref<8x640xbf16, #tpu.memory_space<vmem>>, vector<8x400xbf16>
    %c23 = arith.constant 23 : index
    %c0_160 = arith.constant 0 : index
    %c0_161 = arith.constant 0 : index
    %223 = vector.load %arg5[%c23, %c0_160, %c0_161] : memref<27x24x8xbf16, #tpu.memory_space<vmem>>, vector<1x24x8xbf16>
    %224 = vector.shape_cast %223 : vector<1x24x8xbf16> to vector<24x8xbf16>
    %cst_162 = arith.constant dense<0.000000e+00> : vector<24x400xf32>
    %225 = tpu.matmul %224, %222, %cst_162 {dimension_numbers = #tpu.dot_dimension_numbers<[1], [0], [0], [1], [0, 0, 1, 1], [], []>} : vector<24x8xbf16>, vector<8x400xbf16>, vector<24x400xf32> -> vector<24x400xf32>
    %226 = arith.addf %221, %225 : vector<24x400xf32>
    %c0_163 = arith.constant 0 : index
    %c220 = arith.constant 220 : index
    %227 = vector.load %arg11[%c0_163, %c220] : memref<8x640xbf16, #tpu.memory_space<vmem>>, vector<8x400xbf16>
    %c24 = arith.constant 24 : index
    %c0_164 = arith.constant 0 : index
    %c0_165 = arith.constant 0 : index
    %228 = vector.load %arg5[%c24, %c0_164, %c0_165] : memref<27x24x8xbf16, #tpu.memory_space<vmem>>, vector<1x24x8xbf16>
    %229 = vector.shape_cast %228 : vector<1x24x8xbf16> to vector<24x8xbf16>
    %cst_166 = arith.constant dense<0.000000e+00> : vector<24x400xf32>
    %230 = tpu.matmul %229, %227, %cst_166 {dimension_numbers = #tpu.dot_dimension_numbers<[1], [0], [0], [1], [0, 0, 1, 1], [], []>} : vector<24x8xbf16>, vector<8x400xbf16>, vector<24x400xf32> -> vector<24x400xf32>
    %231 = arith.addf %226, %230 : vector<24x400xf32>
    %c0_167 = arith.constant 0 : index
    %c221_168 = arith.constant 221 : index
    %232 = vector.load %arg11[%c0_167, %c221_168] : memref<8x640xbf16, #tpu.memory_space<vmem>>, vector<8x400xbf16>
    %c25 = arith.constant 25 : index
    %c0_169 = arith.constant 0 : index
    %c0_170 = arith.constant 0 : index
    %233 = vector.load %arg5[%c25, %c0_169, %c0_170] : memref<27x24x8xbf16, #tpu.memory_space<vmem>>, vector<1x24x8xbf16>
    %234 = vector.shape_cast %233 : vector<1x24x8xbf16> to vector<24x8xbf16>
    %cst_171 = arith.constant dense<0.000000e+00> : vector<24x400xf32>
    %235 = tpu.matmul %234, %232, %cst_171 {dimension_numbers = #tpu.dot_dimension_numbers<[1], [0], [0], [1], [0, 0, 1, 1], [], []>} : vector<24x8xbf16>, vector<8x400xbf16>, vector<24x400xf32> -> vector<24x400xf32>
    %236 = arith.addf %231, %235 : vector<24x400xf32>
    %c0_172 = arith.constant 0 : index
    %c222 = arith.constant 222 : index
    %237 = vector.load %arg11[%c0_172, %c222] : memref<8x640xbf16, #tpu.memory_space<vmem>>, vector<8x400xbf16>
    %c26 = arith.constant 26 : index
    %c0_173 = arith.constant 0 : index
    %c0_174 = arith.constant 0 : index
    %238 = vector.load %arg5[%c26, %c0_173, %c0_174] : memref<27x24x8xbf16, #tpu.memory_space<vmem>>, vector<1x24x8xbf16>
    %239 = vector.shape_cast %238 : vector<1x24x8xbf16> to vector<24x8xbf16>
    %cst_175 = arith.constant dense<0.000000e+00> : vector<24x400xf32>
    %240 = tpu.matmul %239, %237, %cst_175 {dimension_numbers = #tpu.dot_dimension_numbers<[1], [0], [0], [1], [0, 0, 1, 1], [], []>} : vector<24x8xbf16>, vector<8x400xbf16>, vector<24x400xf32> -> vector<24x400xf32>
    %241 = arith.addf %236, %240 : vector<24x400xf32>
    %242 = vector.extract_strided_slice %241 {offsets = [0, 0], sizes = [8, 400], strides = [1, 1]} : vector<24x400xf32> to vector<8x400xf32>
    %243 = vector.extract_strided_slice %241 {offsets = [8, 0], sizes = [8, 400], strides = [1, 1]} : vector<24x400xf32> to vector<8x400xf32>
    %244 = vector.extract_strided_slice %241 {offsets = [16, 0], sizes = [8, 400], strides = [1, 1]} : vector<24x400xf32> to vector<8x400xf32>
    %c0_176 = arith.constant 0 : index
    %c0_177 = arith.constant 0 : index
    %245 = vector.load %arg6[%c0_176, %c0_177] : memref<8x8xbf16, #tpu.memory_space<vmem>>, vector<8x8xbf16>
    %cst_178 = arith.constant 0.000000e+00 : f32
    %246 = vector.broadcast %cst_178 : f32 to vector<8x400xf32>
    %247 = arith.cmpf oge, %242, %246 : vector<8x400xf32>
    %cst_179 = arith.constant 2.000000e-01 : f32
    %248 = vector.broadcast %cst_179 : f32 to vector<8x400xf32>
    %249 = arith.mulf %248, %242 : vector<8x400xf32>
    %250 = arith.select %247, %242, %249 : vector<8x400xi1>, vector<8x400xf32>
    %251 = arith.truncf %250 : vector<8x400xf32> to vector<8x400xbf16>
    %cst_180 = arith.constant dense<0.000000e+00> : vector<8x400xf32>
    %252 = tpu.matmul %245, %251, %cst_180 {dimension_numbers = #tpu.dot_dimension_numbers<[1], [0], [0], [1], [0, 0, 1, 1], [], []>} : vector<8x8xbf16>, vector<8x400xbf16>, vector<8x400xf32> -> vector<8x400xf32>
    %c0_181 = arith.constant 0 : index
    %c0_182 = arith.constant 0 : index
    %253 = vector.load %arg7[%c0_181, %c0_182] : memref<8x1xf32, #tpu.memory_space<vmem>>, vector<8x1xf32>
    %254 = vector.broadcast %253 : vector<8x1xf32> to vector<8x400xf32>
    %255 = arith.addf %252, %254 : vector<8x400xf32>
    %256 = arith.negf %255 : vector<8x400xf32>
    %257 = math.exp %256 : vector<8x400xf32>
    %cst_183 = arith.constant 1.000000e+00 : f32
    %258 = vector.broadcast %cst_183 : f32 to vector<8x400xf32>
    %259 = arith.addf %258, %257 : vector<8x400xf32>
    %260 = arith.divf %258, %259 : vector<8x400xf32>
    %261 = arith.mulf %243, %260 : vector<8x400xf32>
    %262 = arith.truncf %261 : vector<8x400xf32> to vector<8x400xbf16>
    %263 = vector.extract_strided_slice %262 {offsets = [0, 0], sizes = [8, 8], strides = [1, 1]} : vector<8x400xbf16> to vector<8x8xbf16>
    %c0_184 = arith.constant 0 : index
    %c111_185 = arith.constant 111 : index
    %264 = vector.load %arg11[%c0_184, %c111_185] : memref<8x640xbf16, #tpu.memory_space<vmem>>, vector<8x8xbf16>
    tpu.vector_store %arg11[%c0_184, %c111_185], %263 {strides = array<i32>} : memref<8x640xbf16, #tpu.memory_space<vmem>>, vector<8x8xbf16>,
    %265 = vector.extract_strided_slice %262 {offsets = [0, 10], sizes = [8, 8], strides = [1, 1]} : vector<8x400xbf16> to vector<8x8xbf16>
    %c0_186 = arith.constant 0 : index
    %c121_187 = arith.constant 121 : index
    %266 = vector.load %arg11[%c0_186, %c121_187] : memref<8x640xbf16, #tpu.memory_space<vmem>>, vector<8x8xbf16>
    tpu.vector_store %arg11[%c0_186, %c121_187], %265 {strides = array<i32>} : memref<8x640xbf16, #tpu.memory_space<vmem>>, vector<8x8xbf16>,
    %267 = vector.extract_strided_slice %262 {offsets = [0, 20], sizes = [8, 8], strides = [1, 1]} : vector<8x400xbf16> to vector<8x8xbf16>
    %c0_188 = arith.constant 0 : index
    %c131_189 = arith.constant 131 : index
    %268 = vector.load %arg11[%c0_188, %c131_189] : memref<8x640xbf16, #tpu.memory_space<vmem>>, vector<8x8xbf16>
    tpu.vector_store %arg11[%c0_188, %c131_189], %267 {strides = array<i32>} : memref<8x640xbf16, #tpu.memory_space<vmem>>, vector<8x8xbf16>,
    %269 = vector.extract_strided_slice %262 {offsets = [0, 30], sizes = [8, 8], strides = [1, 1]} : vector<8x400xbf16> to vector<8x8xbf16>
    %c0_190 = arith.constant 0 : index
    %c141_191 = arith.constant 141 : index
    %270 = vector.load %arg11[%c0_190, %c141_191] : memref<8x640xbf16, #tpu.memory_space<vmem>>, vector<8x8xbf16>
    tpu.vector_store %arg11[%c0_190, %c141_191], %269 {strides = array<i32>} : memref<8x640xbf16, #tpu.memory_space<vmem>>, vector<8x8xbf16>,
    %271 = vector.extract_strided_slice %262 {offsets = [0, 40], sizes = [8, 8], strides = [1, 1]} : vector<8x400xbf16> to vector<8x8xbf16>
    %c0_192 = arith.constant 0 : index
    %c151_193 = arith.constant 151 : index
    %272 = vector.load %arg11[%c0_192, %c151_193] : memref<8x640xbf16, #tpu.memory_space<vmem>>, vector<8x8xbf16>
    tpu.vector_store %arg11[%c0_192, %c151_193], %271 {strides = array<i32>} : memref<8x640xbf16, #tpu.memory_space<vmem>>, vector<8x8xbf16>,
    %273 = vector.extract_strided_slice %262 {offsets = [0, 50], sizes = [8, 8], strides = [1, 1]} : vector<8x400xbf16> to vector<8x8xbf16>
    %c0_194 = arith.constant 0 : index
    %c161_195 = arith.constant 161 : index
    %274 = vector.load %arg11[%c0_194, %c161_195] : memref<8x640xbf16, #tpu.memory_space<vmem>>, vector<8x8xbf16>
    tpu.vector_store %arg11[%c0_194, %c161_195], %273 {strides = array<i32>} : memref<8x640xbf16, #tpu.memory_space<vmem>>, vector<8x8xbf16>,
    %275 = vector.extract_strided_slice %262 {offsets = [0, 60], sizes = [8, 8], strides = [1, 1]} : vector<8x400xbf16> to vector<8x8xbf16>
    %c0_196 = arith.constant 0 : index
    %c171_197 = arith.constant 171 : index
    %276 = vector.load %arg11[%c0_196, %c171_197] : memref<8x640xbf16, #tpu.memory_space<vmem>>, vector<8x8xbf16>
    tpu.vector_store %arg11[%c0_196, %c171_197], %275 {strides = array<i32>} : memref<8x640xbf16, #tpu.memory_space<vmem>>, vector<8x8xbf16>,
    %277 = vector.extract_strided_slice %262 {offsets = [0, 70], sizes = [8, 8], strides = [1, 1]} : vector<8x400xbf16> to vector<8x8xbf16>
    %c0_198 = arith.constant 0 : index
    %c181_199 = arith.constant 181 : index
    %278 = vector.load %arg11[%c0_198, %c181_199] : memref<8x640xbf16, #tpu.memory_space<vmem>>, vector<8x8xbf16>
    tpu.vector_store %arg11[%c0_198, %c181_199], %277 {strides = array<i32>} : memref<8x640xbf16, #tpu.memory_space<vmem>>, vector<8x8xbf16>,
    %279 = vector.extract_strided_slice %262 {offsets = [0, 100], sizes = [8, 8], strides = [1, 1]} : vector<8x400xbf16> to vector<8x8xbf16>
    %c0_200 = arith.constant 0 : index
    %c211_201 = arith.constant 211 : index
    %280 = vector.load %arg11[%c0_200, %c211_201] : memref<8x640xbf16, #tpu.memory_space<vmem>>, vector<8x8xbf16>
    tpu.vector_store %arg11[%c0_200, %c211_201], %279 {strides = array<i32>} : memref<8x640xbf16, #tpu.memory_space<vmem>>, vector<8x8xbf16>,
    %281 = vector.extract_strided_slice %262 {offsets = [0, 110], sizes = [8, 8], strides = [1, 1]} : vector<8x400xbf16> to vector<8x8xbf16>
    %c0_202 = arith.constant 0 : index
    %c221_203 = arith.constant 221 : index
    %282 = vector.load %arg11[%c0_202, %c221_203] : memref<8x640xbf16, #tpu.memory_space<vmem>>, vector<8x8xbf16>
    tpu.vector_store %arg11[%c0_202, %c221_203], %281 {strides = array<i32>} : memref<8x640xbf16, #tpu.memory_space<vmem>>, vector<8x8xbf16>,
    %283 = vector.extract_strided_slice %262 {offsets = [0, 120], sizes = [8, 8], strides = [1, 1]} : vector<8x400xbf16> to vector<8x8xbf16>
    %c0_204 = arith.constant 0 : index
    %c231_205 = arith.constant 231 : index
    %284 = vector.load %arg11[%c0_204, %c231_205] : memref<8x640xbf16, #tpu.memory_space<vmem>>, vector<8x8xbf16>
    tpu.vector_store %arg11[%c0_204, %c231_205], %283 {strides = array<i32>} : memref<8x640xbf16, #tpu.memory_space<vmem>>, vector<8x8xbf16>,
    %285 = vector.extract_strided_slice %262 {offsets = [0, 130], sizes = [8, 8], strides = [1, 1]} : vector<8x400xbf16> to vector<8x8xbf16>
    %c0_206 = arith.constant 0 : index
    %c241_207 = arith.constant 241 : index
    %286 = vector.load %arg11[%c0_206, %c241_207] : memref<8x640xbf16, #tpu.memory_space<vmem>>, vector<8x8xbf16>
    tpu.vector_store %arg11[%c0_206, %c241_207], %285 {strides = array<i32>} : memref<8x640xbf16, #tpu.memory_space<vmem>>, vector<8x8xbf16>,
    %287 = vector.extract_strided_slice %262 {offsets = [0, 140], sizes = [8, 8], strides = [1, 1]} : vector<8x400xbf16> to vector<8x8xbf16>
    %c0_208 = arith.constant 0 : index
    %c251_209 = arith.constant 251 : index
    %288 = vector.load %arg11[%c0_208, %c251_209] : memref<8x640xbf16, #tpu.memory_space<vmem>>, vector<8x8xbf16>
    tpu.vector_store %arg11[%c0_208, %c251_209], %287 {strides = array<i32>} : memref<8x640xbf16, #tpu.memory_space<vmem>>, vector<8x8xbf16>,
    %289 = vector.extract_strided_slice %262 {offsets = [0, 150], sizes = [8, 8], strides = [1, 1]} : vector<8x400xbf16> to vector<8x8xbf16>
    %c0_210 = arith.constant 0 : index
    %c261_211 = arith.constant 261 : index
    %290 = vector.load %arg11[%c0_210, %c261_211] : memref<8x640xbf16, #tpu.memory_space<vmem>>, vector<8x8xbf16>
    tpu.vector_store %arg11[%c0_210, %c261_211], %289 {strides = array<i32>} : memref<8x640xbf16, #tpu.memory_space<vmem>>, vector<8x8xbf16>,
    %291 = vector.extract_strided_slice %262 {offsets = [0, 160], sizes = [8, 8], strides = [1, 1]} : vector<8x400xbf16> to vector<8x8xbf16>
    %c0_212 = arith.constant 0 : index
    %c271_213 = arith.constant 271 : index
    %292 = vector.load %arg11[%c0_212, %c271_213] : memref<8x640xbf16, #tpu.memory_space<vmem>>, vector<8x8xbf16>
    tpu.vector_store %arg11[%c0_212, %c271_213], %291 {strides = array<i32>} : memref<8x640xbf16, #tpu.memory_space<vmem>>, vector<8x8xbf16>,
    %293 = vector.extract_strided_slice %262 {offsets = [0, 170], sizes = [8, 8], strides = [1, 1]} : vector<8x400xbf16> to vector<8x8xbf16>
    %c0_214 = arith.constant 0 : index
    %c281_215 = arith.constant 281 : index
    %294 = vector.load %arg11[%c0_214, %c281_215] : memref<8x640xbf16, #tpu.memory_space<vmem>>, vector<8x8xbf16>
    tpu.vector_store %arg11[%c0_214, %c281_215], %293 {strides = array<i32>} : memref<8x640xbf16, #tpu.memory_space<vmem>>, vector<8x8xbf16>,
    %295 = vector.extract_strided_slice %262 {offsets = [0, 200], sizes = [8, 8], strides = [1, 1]} : vector<8x400xbf16> to vector<8x8xbf16>
    %c0_216 = arith.constant 0 : index
    %c311_217 = arith.constant 311 : index
    %296 = vector.load %arg11[%c0_216, %c311_217] : memref<8x640xbf16, #tpu.memory_space<vmem>>, vector<8x8xbf16>
    tpu.vector_store %arg11[%c0_216, %c311_217], %295 {strides = array<i32>} : memref<8x640xbf16, #tpu.memory_space<vmem>>, vector<8x8xbf16>,
    %297 = vector.extract_strided_slice %262 {offsets = [0, 210], sizes = [8, 8], strides = [1, 1]} : vector<8x400xbf16> to vector<8x8xbf16>
    %c0_218 = arith.constant 0 : index
    %c321_219 = arith.constant 321 : index
    %298 = vector.load %arg11[%c0_218, %c321_219] : memref<8x640xbf16, #tpu.memory_space<vmem>>, vector<8x8xbf16>
    tpu.vector_store %arg11[%c0_218, %c321_219], %297 {strides = array<i32>} : memref<8x640xbf16, #tpu.memory_space<vmem>>, vector<8x8xbf16>,
    %299 = vector.extract_strided_slice %262 {offsets = [0, 220], sizes = [8, 8], strides = [1, 1]} : vector<8x400xbf16> to vector<8x8xbf16>
    %c0_220 = arith.constant 0 : index
    %c331_221 = arith.constant 331 : index
    %300 = vector.load %arg11[%c0_220, %c331_221] : memref<8x640xbf16, #tpu.memory_space<vmem>>, vector<8x8xbf16>
    tpu.vector_store %arg11[%c0_220, %c331_221], %299 {strides = array<i32>} : memref<8x640xbf16, #tpu.memory_space<vmem>>, vector<8x8xbf16>,
    %301 = vector.extract_strided_slice %262 {offsets = [0, 230], sizes = [8, 8], strides = [1, 1]} : vector<8x400xbf16> to vector<8x8xbf16>
    %c0_222 = arith.constant 0 : index
    %c341_223 = arith.constant 341 : index
    %302 = vector.load %arg11[%c0_222, %c341_223] : memref<8x640xbf16, #tpu.memory_space<vmem>>, vector<8x8xbf16>
    tpu.vector_store %arg11[%c0_222, %c341_223], %301 {strides = array<i32>} : memref<8x640xbf16, #tpu.memory_space<vmem>>, vector<8x8xbf16>,
    %303 = vector.extract_strided_slice %262 {offsets = [0, 240], sizes = [8, 8], strides = [1, 1]} : vector<8x400xbf16> to vector<8x8xbf16>
    %c0_224 = arith.constant 0 : index
    %c351_225 = arith.constant 351 : index
    %304 = vector.load %arg11[%c0_224, %c351_225] : memref<8x640xbf16, #tpu.memory_space<vmem>>, vector<8x8xbf16>
    tpu.vector_store %arg11[%c0_224, %c351_225], %303 {strides = array<i32>} : memref<8x640xbf16, #tpu.memory_space<vmem>>, vector<8x8xbf16>,
    %305 = vector.extract_strided_slice %262 {offsets = [0, 250], sizes = [8, 8], strides = [1, 1]} : vector<8x400xbf16> to vector<8x8xbf16>
    %c0_226 = arith.constant 0 : index
    %c361_227 = arith.constant 361 : index
    %306 = vector.load %arg11[%c0_226, %c361_227] : memref<8x640xbf16, #tpu.memory_space<vmem>>, vector<8x8xbf16>
    tpu.vector_store %arg11[%c0_226, %c361_227], %305 {strides = array<i32>} : memref<8x640xbf16, #tpu.memory_space<vmem>>, vector<8x8xbf16>,
    %307 = vector.extract_strided_slice %262 {offsets = [0, 260], sizes = [8, 8], strides = [1, 1]} : vector<8x400xbf16> to vector<8x8xbf16>
    %c0_228 = arith.constant 0 : index
    %c371_229 = arith.constant 371 : index
    %308 = vector.load %arg11[%c0_228, %c371_229] : memref<8x640xbf16, #tpu.memory_space<vmem>>, vector<8x8xbf16>
    tpu.vector_store %arg11[%c0_228, %c371_229], %307 {strides = array<i32>} : memref<8x640xbf16, #tpu.memory_space<vmem>>, vector<8x8xbf16>,
    %309 = vector.extract_strided_slice %262 {offsets = [0, 270], sizes = [8, 8], strides = [1, 1]} : vector<8x400xbf16> to vector<8x8xbf16>
    %c0_230 = arith.constant 0 : index
    %c381_231 = arith.constant 381 : index
    %310 = vector.load %arg11[%c0_230, %c381_231] : memref<8x640xbf16, #tpu.memory_space<vmem>>, vector<8x8xbf16>
    tpu.vector_store %arg11[%c0_230, %c381_231], %309 {strides = array<i32>} : memref<8x640xbf16, #tpu.memory_space<vmem>>, vector<8x8xbf16>,
    %311 = vector.extract_strided_slice %262 {offsets = [0, 300], sizes = [8, 8], strides = [1, 1]} : vector<8x400xbf16> to vector<8x8xbf16>
    %c0_232 = arith.constant 0 : index
    %c411_233 = arith.constant 411 : index
    %312 = vector.load %arg11[%c0_232, %c411_233] : memref<8x640xbf16, #tpu.memory_space<vmem>>, vector<8x8xbf16>
    tpu.vector_store %arg11[%c0_232, %c411_233], %311 {strides = array<i32>} : memref<8x640xbf16, #tpu.memory_space<vmem>>, vector<8x8xbf16>,
    %313 = vector.extract_strided_slice %262 {offsets = [0, 310], sizes = [8, 8], strides = [1, 1]} : vector<8x400xbf16> to vector<8x8xbf16>
    %c0_234 = arith.constant 0 : index
    %c421_235 = arith.constant 421 : index
    %314 = vector.load %arg11[%c0_234, %c421_235] : memref<8x640xbf16, #tpu.memory_space<vmem>>, vector<8x8xbf16>
    tpu.vector_store %arg11[%c0_234, %c421_235], %313 {strides = array<i32>} : memref<8x640xbf16, #tpu.memory_space<vmem>>, vector<8x8xbf16>,
    %315 = vector.extract_strided_slice %262 {offsets = [0, 320], sizes = [8, 8], strides = [1, 1]} : vector<8x400xbf16> to vector<8x8xbf16>
    %c0_236 = arith.constant 0 : index
    %c431_237 = arith.constant 431 : index
    %316 = vector.load %arg11[%c0_236, %c431_237] : memref<8x640xbf16, #tpu.memory_space<vmem>>, vector<8x8xbf16>
    tpu.vector_store %arg11[%c0_236, %c431_237], %315 {strides = array<i32>} : memref<8x640xbf16, #tpu.memory_space<vmem>>, vector<8x8xbf16>,
    %317 = vector.extract_strided_slice %262 {offsets = [0, 330], sizes = [8, 8], strides = [1, 1]} : vector<8x400xbf16> to vector<8x8xbf16>
    %c0_238 = arith.constant 0 : index
    %c441_239 = arith.constant 441 : index
    %318 = vector.load %arg11[%c0_238, %c441_239] : memref<8x640xbf16, #tpu.memory_space<vmem>>, vector<8x8xbf16>
    tpu.vector_store %arg11[%c0_238, %c441_239], %317 {strides = array<i32>} : memref<8x640xbf16, #tpu.memory_space<vmem>>, vector<8x8xbf16>,
    %319 = vector.extract_strided_slice %262 {offsets = [0, 340], sizes = [8, 8], strides = [1, 1]} : vector<8x400xbf16> to vector<8x8xbf16>
    %c0_240 = arith.constant 0 : index
    %c451_241 = arith.constant 451 : index
    %320 = vector.load %arg11[%c0_240, %c451_241] : memref<8x640xbf16, #tpu.memory_space<vmem>>, vector<8x8xbf16>
    tpu.vector_store %arg11[%c0_240, %c451_241], %319 {strides = array<i32>} : memref<8x640xbf16, #tpu.memory_space<vmem>>, vector<8x8xbf16>,
    %321 = vector.extract_strided_slice %262 {offsets = [0, 350], sizes = [8, 8], strides = [1, 1]} : vector<8x400xbf16> to vector<8x8xbf16>
    %c0_242 = arith.constant 0 : index
    %c461_243 = arith.constant 461 : index
    %322 = vector.load %arg11[%c0_242, %c461_243] : memref<8x640xbf16, #tpu.memory_space<vmem>>, vector<8x8xbf16>
    tpu.vector_store %arg11[%c0_242, %c461_243], %321 {strides = array<i32>} : memref<8x640xbf16, #tpu.memory_space<vmem>>, vector<8x8xbf16>,
    %323 = vector.extract_strided_slice %262 {offsets = [0, 360], sizes = [8, 8], strides = [1, 1]} : vector<8x400xbf16> to vector<8x8xbf16>
    %c0_244 = arith.constant 0 : index
    %c471_245 = arith.constant 471 : index
    %324 = vector.load %arg11[%c0_244, %c471_245] : memref<8x640xbf16, #tpu.memory_space<vmem>>, vector<8x8xbf16>
    tpu.vector_store %arg11[%c0_244, %c471_245], %323 {strides = array<i32>} : memref<8x640xbf16, #tpu.memory_space<vmem>>, vector<8x8xbf16>,
    %325 = vector.extract_strided_slice %262 {offsets = [0, 370], sizes = [8, 8], strides = [1, 1]} : vector<8x400xbf16> to vector<8x8xbf16>
    %c0_246 = arith.constant 0 : index
    %c481_247 = arith.constant 481 : index
    %326 = vector.load %arg11[%c0_246, %c481_247] : memref<8x640xbf16, #tpu.memory_space<vmem>>, vector<8x8xbf16>
    tpu.vector_store %arg11[%c0_246, %c481_247], %325 {strides = array<i32>} : memref<8x640xbf16, #tpu.memory_space<vmem>>, vector<8x8xbf16>,
    %cst_248 = arith.constant 0.000000e+00 : f32
    %327 = vector.broadcast %cst_248 : f32 to vector<8x400xf32>
    %c0_249 = arith.constant 0 : index
    %c0_250 = arith.constant 0 : index
    %328 = vector.load %arg11[%c0_249, %c0_250] : memref<8x640xbf16, #tpu.memory_space<vmem>>, vector<8x400xbf16>
    %c0_251 = arith.constant 0 : index
    %c0_252 = arith.constant 0 : index
    %c0_253 = arith.constant 0 : index
    %329 = vector.load %arg8[%c0_251, %c0_252, %c0_253] : memref<27x8x8xbf16, #tpu.memory_space<vmem>>, vector<1x8x8xbf16>
    %330 = vector.shape_cast %329 : vector<1x8x8xbf16> to vector<8x8xbf16>
    %cst_254 = arith.constant dense<0.000000e+00> : vector<8x400xf32>
    %331 = tpu.matmul %330, %328, %cst_254 {dimension_numbers = #tpu.dot_dimension_numbers<[1], [0], [0], [1], [0, 0, 1, 1], [], []>} : vector<8x8xbf16>, vector<8x400xbf16>, vector<8x400xf32> -> vector<8x400xf32>
    %332 = arith.addf %327, %331 : vector<8x400xf32>
    %c0_255 = arith.constant 0 : index
    %c1_256 = arith.constant 1 : index
    %333 = vector.load %arg11[%c0_255, %c1_256] : memref<8x640xbf16, #tpu.memory_space<vmem>>, vector<8x400xbf16>
    %c1_257 = arith.constant 1 : index
    %c0_258 = arith.constant 0 : index
    %c0_259 = arith.constant 0 : index
    %334 = vector.load %arg8[%c1_257, %c0_258, %c0_259] : memref<27x8x8xbf16, #tpu.memory_space<vmem>>, vector<1x8x8xbf16>
    %335 = vector.shape_cast %334 : vector<1x8x8xbf16> to vector<8x8xbf16>
    %cst_260 = arith.constant dense<0.000000e+00> : vector<8x400xf32>
    %336 = tpu.matmul %335, %333, %cst_260 {dimension_numbers = #tpu.dot_dimension_numbers<[1], [0], [0], [1], [0, 0, 1, 1], [], []>} : vector<8x8xbf16>, vector<8x400xbf16>, vector<8x400xf32> -> vector<8x400xf32>
    %337 = arith.addf %332, %336 : vector<8x400xf32>
    %c0_261 = arith.constant 0 : index
    %c2_262 = arith.constant 2 : index
    %338 = vector.load %arg11[%c0_261, %c2_262] : memref<8x640xbf16, #tpu.memory_space<vmem>>, vector<8x400xbf16>
    %c2_263 = arith.constant 2 : index
    %c0_264 = arith.constant 0 : index
    %c0_265 = arith.constant 0 : index
    %339 = vector.load %arg8[%c2_263, %c0_264, %c0_265] : memref<27x8x8xbf16, #tpu.memory_space<vmem>>, vector<1x8x8xbf16>
    %340 = vector.shape_cast %339 : vector<1x8x8xbf16> to vector<8x8xbf16>
    %cst_266 = arith.constant dense<0.000000e+00> : vector<8x400xf32>
    %341 = tpu.matmul %340, %338, %cst_266 {dimension_numbers = #tpu.dot_dimension_numbers<[1], [0], [0], [1], [0, 0, 1, 1], [], []>} : vector<8x8xbf16>, vector<8x400xbf16>, vector<8x400xf32> -> vector<8x400xf32>
    %342 = arith.addf %337, %341 : vector<8x400xf32>
    %c0_267 = arith.constant 0 : index
    %c10_268 = arith.constant 10 : index
    %343 = vector.load %arg11[%c0_267, %c10_268] : memref<8x640xbf16, #tpu.memory_space<vmem>>, vector<8x400xbf16>
    %c3_269 = arith.constant 3 : index
    %c0_270 = arith.constant 0 : index
    %c0_271 = arith.constant 0 : index
    %344 = vector.load %arg8[%c3_269, %c0_270, %c0_271] : memref<27x8x8xbf16, #tpu.memory_space<vmem>>, vector<1x8x8xbf16>
    %345 = vector.shape_cast %344 : vector<1x8x8xbf16> to vector<8x8xbf16>
    %cst_272 = arith.constant dense<0.000000e+00> : vector<8x400xf32>
    %346 = tpu.matmul %345, %343, %cst_272 {dimension_numbers = #tpu.dot_dimension_numbers<[1], [0], [0], [1], [0, 0, 1, 1], [], []>} : vector<8x8xbf16>, vector<8x400xbf16>, vector<8x400xf32> -> vector<8x400xf32>
    %347 = arith.addf %342, %346 : vector<8x400xf32>
    %c0_273 = arith.constant 0 : index
    %c11_274 = arith.constant 11 : index
    %348 = vector.load %arg11[%c0_273, %c11_274] : memref<8x640xbf16, #tpu.memory_space<vmem>>, vector<8x400xbf16>
    %c4_275 = arith.constant 4 : index
    %c0_276 = arith.constant 0 : index
    %c0_277 = arith.constant 0 : index
    %349 = vector.load %arg8[%c4_275, %c0_276, %c0_277] : memref<27x8x8xbf16, #tpu.memory_space<vmem>>, vector<1x8x8xbf16>
    %350 = vector.shape_cast %349 : vector<1x8x8xbf16> to vector<8x8xbf16>
    %cst_278 = arith.constant dense<0.000000e+00> : vector<8x400xf32>
    %351 = tpu.matmul %350, %348, %cst_278 {dimension_numbers = #tpu.dot_dimension_numbers<[1], [0], [0], [1], [0, 0, 1, 1], [], []>} : vector<8x8xbf16>, vector<8x400xbf16>, vector<8x400xf32> -> vector<8x400xf32>
    %352 = arith.addf %347, %351 : vector<8x400xf32>
    %c0_279 = arith.constant 0 : index
    %c12_280 = arith.constant 12 : index
    %353 = vector.load %arg11[%c0_279, %c12_280] : memref<8x640xbf16, #tpu.memory_space<vmem>>, vector<8x400xbf16>
    %c5_281 = arith.constant 5 : index
    %c0_282 = arith.constant 0 : index
    %c0_283 = arith.constant 0 : index
    %354 = vector.load %arg8[%c5_281, %c0_282, %c0_283] : memref<27x8x8xbf16, #tpu.memory_space<vmem>>, vector<1x8x8xbf16>
    %355 = vector.shape_cast %354 : vector<1x8x8xbf16> to vector<8x8xbf16>
    %cst_284 = arith.constant dense<0.000000e+00> : vector<8x400xf32>
    %356 = tpu.matmul %355, %353, %cst_284 {dimension_numbers = #tpu.dot_dimension_numbers<[1], [0], [0], [1], [0, 0, 1, 1], [], []>} : vector<8x8xbf16>, vector<8x400xbf16>, vector<8x400xf32> -> vector<8x400xf32>
    %357 = arith.addf %352, %356 : vector<8x400xf32>
    %c0_285 = arith.constant 0 : index
    %c20_286 = arith.constant 20 : index
    %358 = vector.load %arg11[%c0_285, %c20_286] : memref<8x640xbf16, #tpu.memory_space<vmem>>, vector<8x400xbf16>
    %c6_287 = arith.constant 6 : index
    %c0_288 = arith.constant 0 : index
    %c0_289 = arith.constant 0 : index
    %359 = vector.load %arg8[%c6_287, %c0_288, %c0_289] : memref<27x8x8xbf16, #tpu.memory_space<vmem>>, vector<1x8x8xbf16>
    %360 = vector.shape_cast %359 : vector<1x8x8xbf16> to vector<8x8xbf16>
    %cst_290 = arith.constant dense<0.000000e+00> : vector<8x400xf32>
    %361 = tpu.matmul %360, %358, %cst_290 {dimension_numbers = #tpu.dot_dimension_numbers<[1], [0], [0], [1], [0, 0, 1, 1], [], []>} : vector<8x8xbf16>, vector<8x400xbf16>, vector<8x400xf32> -> vector<8x400xf32>
    %362 = arith.addf %357, %361 : vector<8x400xf32>
    %c0_291 = arith.constant 0 : index
    %c21_292 = arith.constant 21 : index
    %363 = vector.load %arg11[%c0_291, %c21_292] : memref<8x640xbf16, #tpu.memory_space<vmem>>, vector<8x400xbf16>
    %c7_293 = arith.constant 7 : index
    %c0_294 = arith.constant 0 : index
    %c0_295 = arith.constant 0 : index
    %364 = vector.load %arg8[%c7_293, %c0_294, %c0_295] : memref<27x8x8xbf16, #tpu.memory_space<vmem>>, vector<1x8x8xbf16>
    %365 = vector.shape_cast %364 : vector<1x8x8xbf16> to vector<8x8xbf16>
    %cst_296 = arith.constant dense<0.000000e+00> : vector<8x400xf32>
    %366 = tpu.matmul %365, %363, %cst_296 {dimension_numbers = #tpu.dot_dimension_numbers<[1], [0], [0], [1], [0, 0, 1, 1], [], []>} : vector<8x8xbf16>, vector<8x400xbf16>, vector<8x400xf32> -> vector<8x400xf32>
    %367 = arith.addf %362, %366 : vector<8x400xf32>
    %c0_297 = arith.constant 0 : index
    %c22_298 = arith.constant 22 : index
    %368 = vector.load %arg11[%c0_297, %c22_298] : memref<8x640xbf16, #tpu.memory_space<vmem>>, vector<8x400xbf16>
    %c8_299 = arith.constant 8 : index
    %c0_300 = arith.constant 0 : index
    %c0_301 = arith.constant 0 : index
    %369 = vector.load %arg8[%c8_299, %c0_300, %c0_301] : memref<27x8x8xbf16, #tpu.memory_space<vmem>>, vector<1x8x8xbf16>
    %370 = vector.shape_cast %369 : vector<1x8x8xbf16> to vector<8x8xbf16>
    %cst_302 = arith.constant dense<0.000000e+00> : vector<8x400xf32>
    %371 = tpu.matmul %370, %368, %cst_302 {dimension_numbers = #tpu.dot_dimension_numbers<[1], [0], [0], [1], [0, 0, 1, 1], [], []>} : vector<8x8xbf16>, vector<8x400xbf16>, vector<8x400xf32> -> vector<8x400xf32>
    %372 = arith.addf %367, %371 : vector<8x400xf32>
    %c0_303 = arith.constant 0 : index
    %c100_304 = arith.constant 100 : index
    %373 = vector.load %arg11[%c0_303, %c100_304] : memref<8x640xbf16, #tpu.memory_space<vmem>>, vector<8x400xbf16>
    %c9_305 = arith.constant 9 : index
    %c0_306 = arith.constant 0 : index
    %c0_307 = arith.constant 0 : index
    %374 = vector.load %arg8[%c9_305, %c0_306, %c0_307] : memref<27x8x8xbf16, #tpu.memory_space<vmem>>, vector<1x8x8xbf16>
    %375 = vector.shape_cast %374 : vector<1x8x8xbf16> to vector<8x8xbf16>
    %cst_308 = arith.constant dense<0.000000e+00> : vector<8x400xf32>
    %376 = tpu.matmul %375, %373, %cst_308 {dimension_numbers = #tpu.dot_dimension_numbers<[1], [0], [0], [1], [0, 0, 1, 1], [], []>} : vector<8x8xbf16>, vector<8x400xbf16>, vector<8x400xf32> -> vector<8x400xf32>
    %377 = arith.addf %372, %376 : vector<8x400xf32>
    %c0_309 = arith.constant 0 : index
    %c101_310 = arith.constant 101 : index
    %378 = vector.load %arg11[%c0_309, %c101_310] : memref<8x640xbf16, #tpu.memory_space<vmem>>, vector<8x400xbf16>
    %c10_311 = arith.constant 10 : index
    %c0_312 = arith.constant 0 : index
    %c0_313 = arith.constant 0 : index
    %379 = vector.load %arg8[%c10_311, %c0_312, %c0_313] : memref<27x8x8xbf16, #tpu.memory_space<vmem>>, vector<1x8x8xbf16>
    %380 = vector.shape_cast %379 : vector<1x8x8xbf16> to vector<8x8xbf16>
    %cst_314 = arith.constant dense<0.000000e+00> : vector<8x400xf32>
    %381 = tpu.matmul %380, %378, %cst_314 {dimension_numbers = #tpu.dot_dimension_numbers<[1], [0], [0], [1], [0, 0, 1, 1], [], []>} : vector<8x8xbf16>, vector<8x400xbf16>, vector<8x400xf32> -> vector<8x400xf32>
    %382 = arith.addf %377, %381 : vector<8x400xf32>
    %c0_315 = arith.constant 0 : index
    %c102_316 = arith.constant 102 : index
    %383 = vector.load %arg11[%c0_315, %c102_316] : memref<8x640xbf16, #tpu.memory_space<vmem>>, vector<8x400xbf16>
    %c11_317 = arith.constant 11 : index
    %c0_318 = arith.constant 0 : index
    %c0_319 = arith.constant 0 : index
    %384 = vector.load %arg8[%c11_317, %c0_318, %c0_319] : memref<27x8x8xbf16, #tpu.memory_space<vmem>>, vector<1x8x8xbf16>
    %385 = vector.shape_cast %384 : vector<1x8x8xbf16> to vector<8x8xbf16>
    %cst_320 = arith.constant dense<0.000000e+00> : vector<8x400xf32>
    %386 = tpu.matmul %385, %383, %cst_320 {dimension_numbers = #tpu.dot_dimension_numbers<[1], [0], [0], [1], [0, 0, 1, 1], [], []>} : vector<8x8xbf16>, vector<8x400xbf16>, vector<8x400xf32> -> vector<8x400xf32>
    %387 = arith.addf %382, %386 : vector<8x400xf32>
    %c0_321 = arith.constant 0 : index
    %c110_322 = arith.constant 110 : index
    %388 = vector.load %arg11[%c0_321, %c110_322] : memref<8x640xbf16, #tpu.memory_space<vmem>>, vector<8x400xbf16>
    %c12_323 = arith.constant 12 : index
    %c0_324 = arith.constant 0 : index
    %c0_325 = arith.constant 0 : index
    %389 = vector.load %arg8[%c12_323, %c0_324, %c0_325] : memref<27x8x8xbf16, #tpu.memory_space<vmem>>, vector<1x8x8xbf16>
    %390 = vector.shape_cast %389 : vector<1x8x8xbf16> to vector<8x8xbf16>
    %cst_326 = arith.constant dense<0.000000e+00> : vector<8x400xf32>
    %391 = tpu.matmul %390, %388, %cst_326 {dimension_numbers = #tpu.dot_dimension_numbers<[1], [0], [0], [1], [0, 0, 1, 1], [], []>} : vector<8x8xbf16>, vector<8x400xbf16>, vector<8x400xf32> -> vector<8x400xf32>
    %392 = arith.addf %387, %391 : vector<8x400xf32>
    %c0_327 = arith.constant 0 : index
    %c111_328 = arith.constant 111 : index
    %393 = vector.load %arg11[%c0_327, %c111_328] : memref<8x640xbf16, #tpu.memory_space<vmem>>, vector<8x400xbf16>
    %c13_329 = arith.constant 13 : index
    %c0_330 = arith.constant 0 : index
    %c0_331 = arith.constant 0 : index
    %394 = vector.load %arg8[%c13_329, %c0_330, %c0_331] : memref<27x8x8xbf16, #tpu.memory_space<vmem>>, vector<1x8x8xbf16>
    %395 = vector.shape_cast %394 : vector<1x8x8xbf16> to vector<8x8xbf16>
    %cst_332 = arith.constant dense<0.000000e+00> : vector<8x400xf32>
    %396 = tpu.matmul %395, %393, %cst_332 {dimension_numbers = #tpu.dot_dimension_numbers<[1], [0], [0], [1], [0, 0, 1, 1], [], []>} : vector<8x8xbf16>, vector<8x400xbf16>, vector<8x400xf32> -> vector<8x400xf32>
    %397 = arith.addf %392, %396 : vector<8x400xf32>
    %c0_333 = arith.constant 0 : index
    %c112_334 = arith.constant 112 : index
    %398 = vector.load %arg11[%c0_333, %c112_334] : memref<8x640xbf16, #tpu.memory_space<vmem>>, vector<8x400xbf16>
    %c14_335 = arith.constant 14 : index
    %c0_336 = arith.constant 0 : index
    %c0_337 = arith.constant 0 : index
    %399 = vector.load %arg8[%c14_335, %c0_336, %c0_337] : memref<27x8x8xbf16, #tpu.memory_space<vmem>>, vector<1x8x8xbf16>
    %400 = vector.shape_cast %399 : vector<1x8x8xbf16> to vector<8x8xbf16>
    %cst_338 = arith.constant dense<0.000000e+00> : vector<8x400xf32>
    %401 = tpu.matmul %400, %398, %cst_338 {dimension_numbers = #tpu.dot_dimension_numbers<[1], [0], [0], [1], [0, 0, 1, 1], [], []>} : vector<8x8xbf16>, vector<8x400xbf16>, vector<8x400xf32> -> vector<8x400xf32>
    %402 = arith.addf %397, %401 : vector<8x400xf32>
    %c0_339 = arith.constant 0 : index
    %c120_340 = arith.constant 120 : index
    %403 = vector.load %arg11[%c0_339, %c120_340] : memref<8x640xbf16, #tpu.memory_space<vmem>>, vector<8x400xbf16>
    %c15_341 = arith.constant 15 : index
    %c0_342 = arith.constant 0 : index
    %c0_343 = arith.constant 0 : index
    %404 = vector.load %arg8[%c15_341, %c0_342, %c0_343] : memref<27x8x8xbf16, #tpu.memory_space<vmem>>, vector<1x8x8xbf16>
    %405 = vector.shape_cast %404 : vector<1x8x8xbf16> to vector<8x8xbf16>
    %cst_344 = arith.constant dense<0.000000e+00> : vector<8x400xf32>
    %406 = tpu.matmul %405, %403, %cst_344 {dimension_numbers = #tpu.dot_dimension_numbers<[1], [0], [0], [1], [0, 0, 1, 1], [], []>} : vector<8x8xbf16>, vector<8x400xbf16>, vector<8x400xf32> -> vector<8x400xf32>
    %407 = arith.addf %402, %406 : vector<8x400xf32>
    %c0_345 = arith.constant 0 : index
    %c121_346 = arith.constant 121 : index
    %408 = vector.load %arg11[%c0_345, %c121_346] : memref<8x640xbf16, #tpu.memory_space<vmem>>, vector<8x400xbf16>
    %c16_347 = arith.constant 16 : index
    %c0_348 = arith.constant 0 : index
    %c0_349 = arith.constant 0 : index
    %409 = vector.load %arg8[%c16_347, %c0_348, %c0_349] : memref<27x8x8xbf16, #tpu.memory_space<vmem>>, vector<1x8x8xbf16>
    %410 = vector.shape_cast %409 : vector<1x8x8xbf16> to vector<8x8xbf16>
    %cst_350 = arith.constant dense<0.000000e+00> : vector<8x400xf32>
    %411 = tpu.matmul %410, %408, %cst_350 {dimension_numbers = #tpu.dot_dimension_numbers<[1], [0], [0], [1], [0, 0, 1, 1], [], []>} : vector<8x8xbf16>, vector<8x400xbf16>, vector<8x400xf32> -> vector<8x400xf32>
    %412 = arith.addf %407, %411 : vector<8x400xf32>
    %c0_351 = arith.constant 0 : index
    %c122_352 = arith.constant 122 : index
    %413 = vector.load %arg11[%c0_351, %c122_352] : memref<8x640xbf16, #tpu.memory_space<vmem>>, vector<8x400xbf16>
    %c17_353 = arith.constant 17 : index
    %c0_354 = arith.constant 0 : index
    %c0_355 = arith.constant 0 : index
    %414 = vector.load %arg8[%c17_353, %c0_354, %c0_355] : memref<27x8x8xbf16, #tpu.memory_space<vmem>>, vector<1x8x8xbf16>
    %415 = vector.shape_cast %414 : vector<1x8x8xbf16> to vector<8x8xbf16>
    %cst_356 = arith.constant dense<0.000000e+00> : vector<8x400xf32>
    %416 = tpu.matmul %415, %413, %cst_356 {dimension_numbers = #tpu.dot_dimension_numbers<[1], [0], [0], [1], [0, 0, 1, 1], [], []>} : vector<8x8xbf16>, vector<8x400xbf16>, vector<8x400xf32> -> vector<8x400xf32>
    %417 = arith.addf %412, %416 : vector<8x400xf32>
    %c0_357 = arith.constant 0 : index
    %c200_358 = arith.constant 200 : index
    %418 = vector.load %arg11[%c0_357, %c200_358] : memref<8x640xbf16, #tpu.memory_space<vmem>>, vector<8x400xbf16>
    %c18_359 = arith.constant 18 : index
    %c0_360 = arith.constant 0 : index
    %c0_361 = arith.constant 0 : index
    %419 = vector.load %arg8[%c18_359, %c0_360, %c0_361] : memref<27x8x8xbf16, #tpu.memory_space<vmem>>, vector<1x8x8xbf16>
    %420 = vector.shape_cast %419 : vector<1x8x8xbf16> to vector<8x8xbf16>
    %cst_362 = arith.constant dense<0.000000e+00> : vector<8x400xf32>
    %421 = tpu.matmul %420, %418, %cst_362 {dimension_numbers = #tpu.dot_dimension_numbers<[1], [0], [0], [1], [0, 0, 1, 1], [], []>} : vector<8x8xbf16>, vector<8x400xbf16>, vector<8x400xf32> -> vector<8x400xf32>
    %422 = arith.addf %417, %421 : vector<8x400xf32>
    %c0_363 = arith.constant 0 : index
    %c201_364 = arith.constant 201 : index
    %423 = vector.load %arg11[%c0_363, %c201_364] : memref<8x640xbf16, #tpu.memory_space<vmem>>, vector<8x400xbf16>
    %c19_365 = arith.constant 19 : index
    %c0_366 = arith.constant 0 : index
    %c0_367 = arith.constant 0 : index
    %424 = vector.load %arg8[%c19_365, %c0_366, %c0_367] : memref<27x8x8xbf16, #tpu.memory_space<vmem>>, vector<1x8x8xbf16>
    %425 = vector.shape_cast %424 : vector<1x8x8xbf16> to vector<8x8xbf16>
    %cst_368 = arith.constant dense<0.000000e+00> : vector<8x400xf32>
    %426 = tpu.matmul %425, %423, %cst_368 {dimension_numbers = #tpu.dot_dimension_numbers<[1], [0], [0], [1], [0, 0, 1, 1], [], []>} : vector<8x8xbf16>, vector<8x400xbf16>, vector<8x400xf32> -> vector<8x400xf32>
    %427 = arith.addf %422, %426 : vector<8x400xf32>
    %c0_369 = arith.constant 0 : index
    %c202_370 = arith.constant 202 : index
    %428 = vector.load %arg11[%c0_369, %c202_370] : memref<8x640xbf16, #tpu.memory_space<vmem>>, vector<8x400xbf16>
    %c20_371 = arith.constant 20 : index
    %c0_372 = arith.constant 0 : index
    %c0_373 = arith.constant 0 : index
    %429 = vector.load %arg8[%c20_371, %c0_372, %c0_373] : memref<27x8x8xbf16, #tpu.memory_space<vmem>>, vector<1x8x8xbf16>
    %430 = vector.shape_cast %429 : vector<1x8x8xbf16> to vector<8x8xbf16>
    %cst_374 = arith.constant dense<0.000000e+00> : vector<8x400xf32>
    %431 = tpu.matmul %430, %428, %cst_374 {dimension_numbers = #tpu.dot_dimension_numbers<[1], [0], [0], [1], [0, 0, 1, 1], [], []>} : vector<8x8xbf16>, vector<8x400xbf16>, vector<8x400xf32> -> vector<8x400xf32>
    %432 = arith.addf %427, %431 : vector<8x400xf32>
    %c0_375 = arith.constant 0 : index
    %c210_376 = arith.constant 210 : index
    %433 = vector.load %arg11[%c0_375, %c210_376] : memref<8x640xbf16, #tpu.memory_space<vmem>>, vector<8x400xbf16>
    %c21_377 = arith.constant 21 : index
    %c0_378 = arith.constant 0 : index
    %c0_379 = arith.constant 0 : index
    %434 = vector.load %arg8[%c21_377, %c0_378, %c0_379] : memref<27x8x8xbf16, #tpu.memory_space<vmem>>, vector<1x8x8xbf16>
    %435 = vector.shape_cast %434 : vector<1x8x8xbf16> to vector<8x8xbf16>
    %cst_380 = arith.constant dense<0.000000e+00> : vector<8x400xf32>
    %436 = tpu.matmul %435, %433, %cst_380 {dimension_numbers = #tpu.dot_dimension_numbers<[1], [0], [0], [1], [0, 0, 1, 1], [], []>} : vector<8x8xbf16>, vector<8x400xbf16>, vector<8x400xf32> -> vector<8x400xf32>
    %437 = arith.addf %432, %436 : vector<8x400xf32>
    %c0_381 = arith.constant 0 : index
    %c211_382 = arith.constant 211 : index
    %438 = vector.load %arg11[%c0_381, %c211_382] : memref<8x640xbf16, #tpu.memory_space<vmem>>, vector<8x400xbf16>
    %c22_383 = arith.constant 22 : index
    %c0_384 = arith.constant 0 : index
    %c0_385 = arith.constant 0 : index
    %439 = vector.load %arg8[%c22_383, %c0_384, %c0_385] : memref<27x8x8xbf16, #tpu.memory_space<vmem>>, vector<1x8x8xbf16>
    %440 = vector.shape_cast %439 : vector<1x8x8xbf16> to vector<8x8xbf16>
    %cst_386 = arith.constant dense<0.000000e+00> : vector<8x400xf32>
    %441 = tpu.matmul %440, %438, %cst_386 {dimension_numbers = #tpu.dot_dimension_numbers<[1], [0], [0], [1], [0, 0, 1, 1], [], []>} : vector<8x8xbf16>, vector<8x400xbf16>, vector<8x400xf32> -> vector<8x400xf32>
    %442 = arith.addf %437, %441 : vector<8x400xf32>
    %c0_387 = arith.constant 0 : index
    %c212_388 = arith.constant 212 : index
    %443 = vector.load %arg11[%c0_387, %c212_388] : memref<8x640xbf16, #tpu.memory_space<vmem>>, vector<8x400xbf16>
    %c23_389 = arith.constant 23 : index
    %c0_390 = arith.constant 0 : index
    %c0_391 = arith.constant 0 : index
    %444 = vector.load %arg8[%c23_389, %c0_390, %c0_391] : memref<27x8x8xbf16, #tpu.memory_space<vmem>>, vector<1x8x8xbf16>
    %445 = vector.shape_cast %444 : vector<1x8x8xbf16> to vector<8x8xbf16>
    %cst_392 = arith.constant dense<0.000000e+00> : vector<8x400xf32>
    %446 = tpu.matmul %445, %443, %cst_392 {dimension_numbers = #tpu.dot_dimension_numbers<[1], [0], [0], [1], [0, 0, 1, 1], [], []>} : vector<8x8xbf16>, vector<8x400xbf16>, vector<8x400xf32> -> vector<8x400xf32>
    %447 = arith.addf %442, %446 : vector<8x400xf32>
    %c0_393 = arith.constant 0 : index
    %c220_394 = arith.constant 220 : index
    %448 = vector.load %arg11[%c0_393, %c220_394] : memref<8x640xbf16, #tpu.memory_space<vmem>>, vector<8x400xbf16>
    %c24_395 = arith.constant 24 : index
    %c0_396 = arith.constant 0 : index
    %c0_397 = arith.constant 0 : index
    %449 = vector.load %arg8[%c24_395, %c0_396, %c0_397] : memref<27x8x8xbf16, #tpu.memory_space<vmem>>, vector<1x8x8xbf16>
    %450 = vector.shape_cast %449 : vector<1x8x8xbf16> to vector<8x8xbf16>
    %cst_398 = arith.constant dense<0.000000e+00> : vector<8x400xf32>
    %451 = tpu.matmul %450, %448, %cst_398 {dimension_numbers = #tpu.dot_dimension_numbers<[1], [0], [0], [1], [0, 0, 1, 1], [], []>} : vector<8x8xbf16>, vector<8x400xbf16>, vector<8x400xf32> -> vector<8x400xf32>
    %452 = arith.addf %447, %451 : vector<8x400xf32>
    %c0_399 = arith.constant 0 : index
    %c221_400 = arith.constant 221 : index
    %453 = vector.load %arg11[%c0_399, %c221_400] : memref<8x640xbf16, #tpu.memory_space<vmem>>, vector<8x400xbf16>
    %c25_401 = arith.constant 25 : index
    %c0_402 = arith.constant 0 : index
    %c0_403 = arith.constant 0 : index
    %454 = vector.load %arg8[%c25_401, %c0_402, %c0_403] : memref<27x8x8xbf16, #tpu.memory_space<vmem>>, vector<1x8x8xbf16>
    %455 = vector.shape_cast %454 : vector<1x8x8xbf16> to vector<8x8xbf16>
    %cst_404 = arith.constant dense<0.000000e+00> : vector<8x400xf32>
    %456 = tpu.matmul %455, %453, %cst_404 {dimension_numbers = #tpu.dot_dimension_numbers<[1], [0], [0], [1], [0, 0, 1, 1], [], []>} : vector<8x8xbf16>, vector<8x400xbf16>, vector<8x400xf32> -> vector<8x400xf32>
    %457 = arith.addf %452, %456 : vector<8x400xf32>
    %c0_405 = arith.constant 0 : index
    %c222_406 = arith.constant 222 : index
    %458 = vector.load %arg11[%c0_405, %c222_406] : memref<8x640xbf16, #tpu.memory_space<vmem>>, vector<8x400xbf16>
    %c26_407 = arith.constant 26 : index
    %c0_408 = arith.constant 0 : index
    %c0_409 = arith.constant 0 : index
    %459 = vector.load %arg8[%c26_407, %c0_408, %c0_409] : memref<27x8x8xbf16, #tpu.memory_space<vmem>>, vector<1x8x8xbf16>
    %460 = vector.shape_cast %459 : vector<1x8x8xbf16> to vector<8x8xbf16>
    %cst_410 = arith.constant dense<0.000000e+00> : vector<8x400xf32>
    %461 = tpu.matmul %460, %458, %cst_410 {dimension_numbers = #tpu.dot_dimension_numbers<[1], [0], [0], [1], [0, 0, 1, 1], [], []>} : vector<8x8xbf16>, vector<8x400xbf16>, vector<8x400xf32> -> vector<8x400xf32>
    %462 = arith.addf %457, %461 : vector<8x400xf32>
    %463 = vector.broadcast %37 : vector<1x1xf32> to vector<8x400xf32>
    %464 = arith.mulf %462, %463 : vector<8x400xf32>
    %465 = vector.broadcast %38 : vector<1x1xf32> to vector<8x400xf32>
    %466 = arith.mulf %244, %465 : vector<8x400xf32>
    %467 = arith.addf %464, %466 : vector<8x400xf32>
    %cst_411 = arith.constant 0.000000e+00 : f32
    %468 = vector.broadcast %cst_411 : f32 to vector<8x400xf32>
    %469 = arith.cmpf oge, %467, %468 : vector<8x400xf32>
    %cst_412 = arith.constant 2.000000e-01 : f32
    %470 = vector.broadcast %cst_412 : f32 to vector<8x400xf32>
    %471 = arith.mulf %470, %467 : vector<8x400xf32>
    %472 = arith.select %469, %467, %471 : vector<8x400xi1>, vector<8x400xf32>
    %473 = arith.truncf %472 : vector<8x400xf32> to vector<8x400xbf16>
    %474 = vector.extract_strided_slice %473 {offsets = [0, 0], sizes = [8, 8], strides = [1, 1]} : vector<8x400xbf16> to vector<8x8xbf16>
    %c0_413 = arith.constant 0 : index
    %c0_414 = arith.constant 0 : index
    %475 = vector.load %arg12[%c0_413, %c0_414] : memref<8x256xbf16, #tpu.memory_space<vmem>>, vector<8x8xbf16>
    tpu.vector_store %arg12[%c0_413, %c0_414], %474 {strides = array<i32>} : memref<8x256xbf16, #tpu.memory_space<vmem>>, vector<8x8xbf16>,
    %476 = vector.extract_strided_slice %473 {offsets = [0, 10], sizes = [8, 8], strides = [1, 1]} : vector<8x400xbf16> to vector<8x8xbf16>
    %c0_415 = arith.constant 0 : index
    %c8_416 = arith.constant 8 : index
    %477 = vector.load %arg12[%c0_415, %c8_416] : memref<8x256xbf16, #tpu.memory_space<vmem>>, vector<8x8xbf16>
    tpu.vector_store %arg12[%c0_415, %c8_416], %476 {strides = array<i32>} : memref<8x256xbf16, #tpu.memory_space<vmem>>, vector<8x8xbf16>,
    %478 = vector.extract_strided_slice %473 {offsets = [0, 20], sizes = [8, 8], strides = [1, 1]} : vector<8x400xbf16> to vector<8x8xbf16>
    %c0_417 = arith.constant 0 : index
    %c16_418 = arith.constant 16 : index
    %479 = vector.load %arg12[%c0_417, %c16_418] : memref<8x256xbf16, #tpu.memory_space<vmem>>, vector<8x8xbf16>
    tpu.vector_store %arg12[%c0_417, %c16_418], %478 {strides = array<i32>} : memref<8x256xbf16, #tpu.memory_space<vmem>>, vector<8x8xbf16>,
    %480 = vector.extract_strided_slice %473 {offsets = [0, 30], sizes = [8, 8], strides = [1, 1]} : vector<8x400xbf16> to vector<8x8xbf16>
    %c0_419 = arith.constant 0 : index
    %c24_420 = arith.constant 24 : index
    %481 = vector.load %arg12[%c0_419, %c24_420] : memref<8x256xbf16, #tpu.memory_space<vmem>>, vector<8x8xbf16>
    tpu.vector_store %arg12[%c0_419, %c24_420], %480 {strides = array<i32>} : memref<8x256xbf16, #tpu.memory_space<vmem>>, vector<8x8xbf16>,
    %482 = vector.extract_strided_slice %473 {offsets = [0, 40], sizes = [8, 8], strides = [1, 1]} : vector<8x400xbf16> to vector<8x8xbf16>
    %c0_421 = arith.constant 0 : index
    %c32 = arith.constant 32 : index
    %483 = vector.load %arg12[%c0_421, %c32] : memref<8x256xbf16, #tpu.memory_space<vmem>>, vector<8x8xbf16>
    tpu.vector_store %arg12[%c0_421, %c32], %482 {strides = array<i32>} : memref<8x256xbf16, #tpu.memory_space<vmem>>, vector<8x8xbf16>,
    %484 = vector.extract_strided_slice %473 {offsets = [0, 50], sizes = [8, 8], strides = [1, 1]} : vector<8x400xbf16> to vector<8x8xbf16>
    %c0_422 = arith.constant 0 : index
    %c40 = arith.constant 40 : index
    %485 = vector.load %arg12[%c0_422, %c40] : memref<8x256xbf16, #tpu.memory_space<vmem>>, vector<8x8xbf16>
    tpu.vector_store %arg12[%c0_422, %c40], %484 {strides = array<i32>} : memref<8x256xbf16, #tpu.memory_space<vmem>>, vector<8x8xbf16>,
    %486 = vector.extract_strided_slice %473 {offsets = [0, 60], sizes = [8, 8], strides = [1, 1]} : vector<8x400xbf16> to vector<8x8xbf16>
    %c0_423 = arith.constant 0 : index
    %c48 = arith.constant 48 : index
    %487 = vector.load %arg12[%c0_423, %c48] : memref<8x256xbf16, #tpu.memory_space<vmem>>, vector<8x8xbf16>
    tpu.vector_store %arg12[%c0_423, %c48], %486 {strides = array<i32>} : memref<8x256xbf16, #tpu.memory_space<vmem>>, vector<8x8xbf16>,
    %488 = vector.extract_strided_slice %473 {offsets = [0, 70], sizes = [8, 8], strides = [1, 1]} : vector<8x400xbf16> to vector<8x8xbf16>
    %c0_424 = arith.constant 0 : index
    %c56 = arith.constant 56 : index
    %489 = vector.load %arg12[%c0_424, %c56] : memref<8x256xbf16, #tpu.memory_space<vmem>>, vector<8x8xbf16>
    tpu.vector_store %arg12[%c0_424, %c56], %488 {strides = array<i32>} : memref<8x256xbf16, #tpu.memory_space<vmem>>, vector<8x8xbf16>,
    %490 = vector.extract_strided_slice %473 {offsets = [0, 100], sizes = [8, 8], strides = [1, 1]} : vector<8x400xbf16> to vector<8x8xbf16>
    %c0_425 = arith.constant 0 : index
    %c64 = arith.constant 64 : index
    %491 = vector.load %arg12[%c0_425, %c64] : memref<8x256xbf16, #tpu.memory_space<vmem>>, vector<8x8xbf16>
    tpu.vector_store %arg12[%c0_425, %c64], %490 {strides = array<i32>} : memref<8x256xbf16, #tpu.memory_space<vmem>>, vector<8x8xbf16>,
    %492 = vector.extract_strided_slice %473 {offsets = [0, 110], sizes = [8, 8], strides = [1, 1]} : vector<8x400xbf16> to vector<8x8xbf16>
    %c0_426 = arith.constant 0 : index
    %c72 = arith.constant 72 : index
    %493 = vector.load %arg12[%c0_426, %c72] : memref<8x256xbf16, #tpu.memory_space<vmem>>, vector<8x8xbf16>
    tpu.vector_store %arg12[%c0_426, %c72], %492 {strides = array<i32>} : memref<8x256xbf16, #tpu.memory_space<vmem>>, vector<8x8xbf16>,
    %494 = vector.extract_strided_slice %473 {offsets = [0, 120], sizes = [8, 8], strides = [1, 1]} : vector<8x400xbf16> to vector<8x8xbf16>
    %c0_427 = arith.constant 0 : index
    %c80 = arith.constant 80 : index
    %495 = vector.load %arg12[%c0_427, %c80] : memref<8x256xbf16, #tpu.memory_space<vmem>>, vector<8x8xbf16>
    tpu.vector_store %arg12[%c0_427, %c80], %494 {strides = array<i32>} : memref<8x256xbf16, #tpu.memory_space<vmem>>, vector<8x8xbf16>,
    %496 = vector.extract_strided_slice %473 {offsets = [0, 130], sizes = [8, 8], strides = [1, 1]} : vector<8x400xbf16> to vector<8x8xbf16>
    %c0_428 = arith.constant 0 : index
    %c88 = arith.constant 88 : index
    %497 = vector.load %arg12[%c0_428, %c88] : memref<8x256xbf16, #tpu.memory_space<vmem>>, vector<8x8xbf16>
    tpu.vector_store %arg12[%c0_428, %c88], %496 {strides = array<i32>} : memref<8x256xbf16, #tpu.memory_space<vmem>>, vector<8x8xbf16>,
    %498 = vector.extract_strided_slice %473 {offsets = [0, 140], sizes = [8, 8], strides = [1, 1]} : vector<8x400xbf16> to vector<8x8xbf16>
    %c0_429 = arith.constant 0 : index
    %c96 = arith.constant 96 : index
    %499 = vector.load %arg12[%c0_429, %c96] : memref<8x256xbf16, #tpu.memory_space<vmem>>, vector<8x8xbf16>
    tpu.vector_store %arg12[%c0_429, %c96], %498 {strides = array<i32>} : memref<8x256xbf16, #tpu.memory_space<vmem>>, vector<8x8xbf16>,
    %500 = vector.extract_strided_slice %473 {offsets = [0, 150], sizes = [8, 8], strides = [1, 1]} : vector<8x400xbf16> to vector<8x8xbf16>
    %c0_430 = arith.constant 0 : index
    %c104 = arith.constant 104 : index
    %501 = vector.load %arg12[%c0_430, %c104] : memref<8x256xbf16, #tpu.memory_space<vmem>>, vector<8x8xbf16>
    tpu.vector_store %arg12[%c0_430, %c104], %500 {strides = array<i32>} : memref<8x256xbf16, #tpu.memory_space<vmem>>, vector<8x8xbf16>,
    %502 = vector.extract_strided_slice %473 {offsets = [0, 160], sizes = [8, 8], strides = [1, 1]} : vector<8x400xbf16> to vector<8x8xbf16>
    %c0_431 = arith.constant 0 : index
    %c112_432 = arith.constant 112 : index
    %503 = vector.load %arg12[%c0_431, %c112_432] : memref<8x256xbf16, #tpu.memory_space<vmem>>, vector<8x8xbf16>
    tpu.vector_store %arg12[%c0_431, %c112_432], %502 {strides = array<i32>} : memref<8x256xbf16, #tpu.memory_space<vmem>>, vector<8x8xbf16>,
    %504 = vector.extract_strided_slice %473 {offsets = [0, 170], sizes = [8, 8], strides = [1, 1]} : vector<8x400xbf16> to vector<8x8xbf16>
    %c0_433 = arith.constant 0 : index
    %c120_434 = arith.constant 120 : index
    %505 = vector.load %arg12[%c0_433, %c120_434] : memref<8x256xbf16, #tpu.memory_space<vmem>>, vector<8x8xbf16>
    tpu.vector_store %arg12[%c0_433, %c120_434], %504 {strides = array<i32>} : memref<8x256xbf16, #tpu.memory_space<vmem>>, vector<8x8xbf16>,
    %506 = vector.extract_strided_slice %473 {offsets = [0, 200], sizes = [8, 8], strides = [1, 1]} : vector<8x400xbf16> to vector<8x8xbf16>
    %c0_435 = arith.constant 0 : index
    %c128 = arith.constant 128 : index
    %507 = vector.load %arg12[%c0_435, %c128] : memref<8x256xbf16, #tpu.memory_space<vmem>>, vector<8x8xbf16>
    tpu.vector_store %arg12[%c0_435, %c128], %506 {strides = array<i32>} : memref<8x256xbf16, #tpu.memory_space<vmem>>, vector<8x8xbf16>,
    %508 = vector.extract_strided_slice %473 {offsets = [0, 210], sizes = [8, 8], strides = [1, 1]} : vector<8x400xbf16> to vector<8x8xbf16>
    %c0_436 = arith.constant 0 : index
    %c136 = arith.constant 136 : index
    %509 = vector.load %arg12[%c0_436, %c136] : memref<8x256xbf16, #tpu.memory_space<vmem>>, vector<8x8xbf16>
    tpu.vector_store %arg12[%c0_436, %c136], %508 {strides = array<i32>} : memref<8x256xbf16, #tpu.memory_space<vmem>>, vector<8x8xbf16>,
    %510 = vector.extract_strided_slice %473 {offsets = [0, 220], sizes = [8, 8], strides = [1, 1]} : vector<8x400xbf16> to vector<8x8xbf16>
    %c0_437 = arith.constant 0 : index
    %c144 = arith.constant 144 : index
    %511 = vector.load %arg12[%c0_437, %c144] : memref<8x256xbf16, #tpu.memory_space<vmem>>, vector<8x8xbf16>
    tpu.vector_store %arg12[%c0_437, %c144], %510 {strides = array<i32>} : memref<8x256xbf16, #tpu.memory_space<vmem>>, vector<8x8xbf16>,
    %512 = vector.extract_strided_slice %473 {offsets = [0, 230], sizes = [8, 8], strides = [1, 1]} : vector<8x400xbf16> to vector<8x8xbf16>
    %c0_438 = arith.constant 0 : index
    %c152 = arith.constant 152 : index
    %513 = vector.load %arg12[%c0_438, %c152] : memref<8x256xbf16, #tpu.memory_space<vmem>>, vector<8x8xbf16>
    tpu.vector_store %arg12[%c0_438, %c152], %512 {strides = array<i32>} : memref<8x256xbf16, #tpu.memory_space<vmem>>, vector<8x8xbf16>,
    %514 = vector.extract_strided_slice %473 {offsets = [0, 240], sizes = [8, 8], strides = [1, 1]} : vector<8x400xbf16> to vector<8x8xbf16>
    %c0_439 = arith.constant 0 : index
    %c160 = arith.constant 160 : index
    %515 = vector.load %arg12[%c0_439, %c160] : memref<8x256xbf16, #tpu.memory_space<vmem>>, vector<8x8xbf16>
    tpu.vector_store %arg12[%c0_439, %c160], %514 {strides = array<i32>} : memref<8x256xbf16, #tpu.memory_space<vmem>>, vector<8x8xbf16>,
    %516 = vector.extract_strided_slice %473 {offsets = [0, 250], sizes = [8, 8], strides = [1, 1]} : vector<8x400xbf16> to vector<8x8xbf16>
    %c0_440 = arith.constant 0 : index
    %c168 = arith.constant 168 : index
    %517 = vector.load %arg12[%c0_440, %c168] : memref<8x256xbf16, #tpu.memory_space<vmem>>, vector<8x8xbf16>
    tpu.vector_store %arg12[%c0_440, %c168], %516 {strides = array<i32>} : memref<8x256xbf16, #tpu.memory_space<vmem>>, vector<8x8xbf16>,
    %518 = vector.extract_strided_slice %473 {offsets = [0, 260], sizes = [8, 8], strides = [1, 1]} : vector<8x400xbf16> to vector<8x8xbf16>
    %c0_441 = arith.constant 0 : index
    %c176 = arith.constant 176 : index
    %519 = vector.load %arg12[%c0_441, %c176] : memref<8x256xbf16, #tpu.memory_space<vmem>>, vector<8x8xbf16>
    tpu.vector_store %arg12[%c0_441, %c176], %518 {strides = array<i32>} : memref<8x256xbf16, #tpu.memory_space<vmem>>, vector<8x8xbf16>,
    %520 = vector.extract_strided_slice %473 {offsets = [0, 270], sizes = [8, 8], strides = [1, 1]} : vector<8x400xbf16> to vector<8x8xbf16>
    %c0_442 = arith.constant 0 : index
    %c184 = arith.constant 184 : index
    %521 = vector.load %arg12[%c0_442, %c184] : memref<8x256xbf16, #tpu.memory_space<vmem>>, vector<8x8xbf16>
    tpu.vector_store %arg12[%c0_442, %c184], %520 {strides = array<i32>} : memref<8x256xbf16, #tpu.memory_space<vmem>>, vector<8x8xbf16>,
    %522 = vector.extract_strided_slice %473 {offsets = [0, 300], sizes = [8, 8], strides = [1, 1]} : vector<8x400xbf16> to vector<8x8xbf16>
    %c0_443 = arith.constant 0 : index
    %c192 = arith.constant 192 : index
    %523 = vector.load %arg12[%c0_443, %c192] : memref<8x256xbf16, #tpu.memory_space<vmem>>, vector<8x8xbf16>
    tpu.vector_store %arg12[%c0_443, %c192], %522 {strides = array<i32>} : memref<8x256xbf16, #tpu.memory_space<vmem>>, vector<8x8xbf16>,
    %524 = vector.extract_strided_slice %473 {offsets = [0, 310], sizes = [8, 8], strides = [1, 1]} : vector<8x400xbf16> to vector<8x8xbf16>
    %c0_444 = arith.constant 0 : index
    %c200_445 = arith.constant 200 : index
    %525 = vector.load %arg12[%c0_444, %c200_445] : memref<8x256xbf16, #tpu.memory_space<vmem>>, vector<8x8xbf16>
    tpu.vector_store %arg12[%c0_444, %c200_445], %524 {strides = array<i32>} : memref<8x256xbf16, #tpu.memory_space<vmem>>, vector<8x8xbf16>,
    %526 = vector.extract_strided_slice %473 {offsets = [0, 320], sizes = [8, 8], strides = [1, 1]} : vector<8x400xbf16> to vector<8x8xbf16>
    %c0_446 = arith.constant 0 : index
    %c208 = arith.constant 208 : index
    %527 = vector.load %arg12[%c0_446, %c208] : memref<8x256xbf16, #tpu.memory_space<vmem>>, vector<8x8xbf16>
    tpu.vector_store %arg12[%c0_446, %c208], %526 {strides = array<i32>} : memref<8x256xbf16, #tpu.memory_space<vmem>>, vector<8x8xbf16>,
    %528 = vector.extract_strided_slice %473 {offsets = [0, 330], sizes = [8, 8], strides = [1, 1]} : vector<8x400xbf16> to vector<8x8xbf16>
    %c0_447 = arith.constant 0 : index
    %c216 = arith.constant 216 : index
    %529 = vector.load %arg12[%c0_447, %c216] : memref<8x256xbf16, #tpu.memory_space<vmem>>, vector<8x8xbf16>
    tpu.vector_store %arg12[%c0_447, %c216], %528 {strides = array<i32>} : memref<8x256xbf16, #tpu.memory_space<vmem>>, vector<8x8xbf16>,
    %530 = vector.extract_strided_slice %473 {offsets = [0, 340], sizes = [8, 8], strides = [1, 1]} : vector<8x400xbf16> to vector<8x8xbf16>
    %c0_448 = arith.constant 0 : index
    %c224 = arith.constant 224 : index
    %531 = vector.load %arg12[%c0_448, %c224] : memref<8x256xbf16, #tpu.memory_space<vmem>>, vector<8x8xbf16>
    tpu.vector_store %arg12[%c0_448, %c224], %530 {strides = array<i32>} : memref<8x256xbf16, #tpu.memory_space<vmem>>, vector<8x8xbf16>,
    %532 = vector.extract_strided_slice %473 {offsets = [0, 350], sizes = [8, 8], strides = [1, 1]} : vector<8x400xbf16> to vector<8x8xbf16>
    %c0_449 = arith.constant 0 : index
    %c232 = arith.constant 232 : index
    %533 = vector.load %arg12[%c0_449, %c232] : memref<8x256xbf16, #tpu.memory_space<vmem>>, vector<8x8xbf16>
    tpu.vector_store %arg12[%c0_449, %c232], %532 {strides = array<i32>} : memref<8x256xbf16, #tpu.memory_space<vmem>>, vector<8x8xbf16>,
    %534 = vector.extract_strided_slice %473 {offsets = [0, 360], sizes = [8, 8], strides = [1, 1]} : vector<8x400xbf16> to vector<8x8xbf16>
    %c0_450 = arith.constant 0 : index
    %c240 = arith.constant 240 : index
    %535 = vector.load %arg12[%c0_450, %c240] : memref<8x256xbf16, #tpu.memory_space<vmem>>, vector<8x8xbf16>
    tpu.vector_store %arg12[%c0_450, %c240], %534 {strides = array<i32>} : memref<8x256xbf16, #tpu.memory_space<vmem>>, vector<8x8xbf16>,
    %536 = vector.extract_strided_slice %473 {offsets = [0, 370], sizes = [8, 8], strides = [1, 1]} : vector<8x400xbf16> to vector<8x8xbf16>
    %c0_451 = arith.constant 0 : index
    %c248 = arith.constant 248 : index
    %537 = vector.load %arg12[%c0_451, %c248] : memref<8x256xbf16, #tpu.memory_space<vmem>>, vector<8x8xbf16>
    tpu.vector_store %arg12[%c0_451, %c248], %536 {strides = array<i32>} : memref<8x256xbf16, #tpu.memory_space<vmem>>, vector<8x8xbf16>,
    %c0_452 = arith.constant 0 : index
    %c0_453 = arith.constant 0 : index
    %538 = vector.load %arg9[%c0_452, %c0_453] : memref<8x8xbf16, #tpu.memory_space<vmem>>, vector<8x8xbf16>
    %c0_454 = arith.constant 0 : index
    %c0_455 = arith.constant 0 : index
    %539 = vector.load %arg12[%c0_454, %c0_455] : memref<8x256xbf16, #tpu.memory_space<vmem>>, vector<8x256xbf16>
    %cst_456 = arith.constant dense<0.000000e+00> : vector<8x256xf32>
    %540 = tpu.matmul %538, %539, %cst_456 {dimension_numbers = #tpu.dot_dimension_numbers<[1], [0], [0], [1], [0, 0, 1, 1], [], []>} : vector<8x8xbf16>, vector<8x256xbf16>, vector<8x256xf32> -> vector<8x256xf32>
    %541 = arith.addf %540, %1 : vector<8x256xf32>
    %c0_457 = arith.constant 0 : index
    %c0_458 = arith.constant 0 : index
    %c0_459 = arith.constant 0 : index
    %542 = vector.load %arg10[%c0_457, %c0_458, %c0_459] : memref<1x8x256xf32, #tpu.memory_space<vmem>>, vector<1x8x256xf32>
    %543 = vector.shape_cast %542 : vector<1x8x256xf32> to vector<8x256xf32>
    %544 = vector.shape_cast %541 : vector<8x256xf32> to vector<1x8x256xf32>
    tpu.vector_store %arg10[%c0_457, %c0_458, %c0_459], %544 {strides = array<i32>} : memref<1x8x256xf32, #tpu.memory_space<vmem>>, vector<1x8x256xf32>,
    return
  }
  func.func @transform_0(%arg0: i32) -> (i32, i32, i32) {
    %c0_i32 = arith.constant 0 : i32
    %c0_i32_0 = arith.constant 0 : i32
    %c0_i32_1 = arith.constant 0 : i32
    return %arg0, %c0_i32, %c0_i32_0 : i32, i32, i32
  }
  func.func @transform_1(%arg0: i32) -> (i32, i32) {
    %c0_i32 = arith.constant 0 : i32
    %c0_i32_0 = arith.constant 0 : i32
    %c0_i32_1 = arith.constant 0 : i32
    return %c0_i32, %c0_i32_0 : i32, i32
  }
  func.func @transform_2(%arg0: i32) -> (i32, i32) {
    %c0_i32 = arith.constant 0 : i32
    %c0_i32_0 = arith.constant 0 : i32
    %c0_i32_1 = arith.constant 0 : i32
    return %c0_i32, %c0_i32_0 : i32, i32
  }
  func.func @transform_3(%arg0: i32) -> (i32, i32) {
    %c0_i32 = arith.constant 0 : i32
    %c0_i32_0 = arith.constant 0 : i32
    %c0_i32_1 = arith.constant 0 : i32
    return %c0_i32, %c0_i32_0 : i32, i32
  }
  func.func @transform_4(%arg0: i32) -> (i32, i32, i32) {
    %c0_i32 = arith.constant 0 : i32
    %c0_i32_0 = arith.constant 0 : i32
    %c0_i32_1 = arith.constant 0 : i32
    %c0_i32_2 = arith.constant 0 : i32
    return %c0_i32, %c0_i32_0, %c0_i32_1 : i32, i32, i32
  }
  func.func @transform_5(%arg0: i32) -> (i32, i32) {
    %c0_i32 = arith.constant 0 : i32
    %c0_i32_0 = arith.constant 0 : i32
    %c0_i32_1 = arith.constant 0 : i32
    return %c0_i32, %c0_i32_0 : i32, i32
  }
  func.func @transform_6(%arg0: i32) -> (i32, i32) {
    %c0_i32 = arith.constant 0 : i32
    %c0_i32_0 = arith.constant 0 : i32
    %c0_i32_1 = arith.constant 0 : i32
    return %c0_i32, %c0_i32_0 : i32, i32
  }
  func.func @transform_7(%arg0: i32) -> (i32, i32, i32) {
    %c0_i32 = arith.constant 0 : i32
    %c0_i32_0 = arith.constant 0 : i32
    %c0_i32_1 = arith.constant 0 : i32
    %c0_i32_2 = arith.constant 0 : i32
    return %c0_i32, %c0_i32_0, %c0_i32_1 : i32, i32, i32
  }
  func.func @transform_8(%arg0: i32) -> (i32, i32) {
    %c0_i32 = arith.constant 0 : i32
    %c0_i32_0 = arith.constant 0 : i32
    %c0_i32_1 = arith.constant 0 : i32
    return %c0_i32, %c0_i32_0 : i32, i32
  }
  func.func @transform_9(%arg0: i32) -> (i32, i32, i32) {
    %c0_i32 = arith.constant 0 : i32
    %c0_i32_0 = arith.constant 0 : i32
    %c0_i32_1 = arith.constant 0 : i32
    return %arg0, %c0_i32, %c0_i32_0 : i32, i32, i32
  }
}

</mosaic_0001>

<bundles_post_ra>
// kernel: aab_forward.1
= control target key start
LH: loop header
LB: loop body
LE: loop exit
PB: predicated region body
PF: predicated region fallthrough
CT: control target
= control target key end

     0   :  { %s9114_s30 = smov 0   ;;  %s10955_s0 = inlined_call_operand.vmem [shape: f32[2,8,256], index: 0, kind: input, shape index: {}]   ;;  %s10956_s1 = inlined_call_operand.vmem [shape: bf16[8,8], index: 1, kind: input, shape index: {}]   ;;  %s10957_s2 = inlined_call_operand.vmem [shape: f32[8,2], index: 2, kind: input, shape index: {}]   ;;  %s10958_s3 = inlined_call_operand.vmem [shape: f32[2,2], index: 3, kind: input, shape index: {}]   ;;  %s10959_s4 = inlined_call_operand.vmem [shape: bf16[27,24,8], index: 4, kind: input, shape index: {}]   ;;  %s10960_s5 = inlined_call_operand.vmem [shape: bf16[8,8], index: 5, kind: input, shape index: {}]   ;;  %s10961_s6 = inlined_call_operand.vmem [shape: f32[8,1], index: 6, kind: input, shape index: {}]   ;;  %s10962_s7 = inlined_call_operand.vmem [shape: bf16[27,8,8], index: 7, kind: input, shape index: {}]   ;;  %s10963_s8 = inlined_call_operand.vmem [shape: bf16[8,8], index: 8, kind: input, shape index: {}]   ;;  %s10964_s9 = inlined_call_operand.vmem [shape: f32[2,8,256], index: 9, kind: output, shape index: {}]  }
   0x1 LB: > { %s8304_s10 = sadd.s32 4294967295, %s8986_s30   ;;  %p8308_p0 = scmp.ge.s32.totalorder %s8986_s30, 1  ;;  %s8986_s30 = sphi %s9114_s30, %s19_s30  }
   0x2   : > { %p287_p1 = scmp.lt.s32.totalorder %s8986_s30, 3 }
   0x4   : > { %p288_p2 = pnand %p8308_p0, %p287_p1 }
   0x5   : > { %p323_p3 = scmp.lt.s32.totalorder (!%p288_p2), %s8304_s10, 1  ;;  %s8989_s17 = smov (!%p288_p2), 115  }
   0x6   : > { %291 = sbr.rel (%p288_p2) target bundleno = 2539 (0x9eb), region = 56  ;;  %s8990_s18 = smov (!%p288_p2), 113  }
   0x7   : > { %s8991_s19 = smov (!%p288_p2), 117   ;;  %s8992_s20 = smov (!%p288_p2), 111  }
   0x8   : > { %s8993_s21 = smov (!%p288_p2), 121   ;;  %s8994_s22 = smov (!%p288_p2), 119  }
   0x9   : > { %s8995_s23 = smov (!%p288_p2), 125   ;;  %s8996_s24 = smov (!%p288_p2), 123  }
   0xa   : > { %s8997_s25 = smov (!%p288_p2), 21   ;;  %s8998_s26 = smov (!%p288_p2), 19  }
   0xb   : > { %v8988_v0 = vmov 0   ;;  %s11331_s10 = smov (!%p323_p3, %s8304_s10), 1  ;;  %vm11040_vm0 = vcmask 1043456   ;;  %v336_v5 = vld [vmem:[%s10956_s1] sm:$0xf]  ;;  %vm11039_vm1 = vcmask 64512  }
   0xc   : > { %382 = vmatprep.mubr.bf16.mxu0 %v8988_v0  ;;  %439 = vst [vmem:[#allocation2] sm:$0xff] %v8988_v0  ;;  %440 = vst [vmem:[#allocation2 + $0x8] sm:$0xff] %v8988_v0  ;;  %714 = vmatprep.mubr.bf16.mxu1 %v8988_v0  ;;  %s10985_s11 = sshll.u32 %s11331_s10, 4  ;;  %s8999_s27 = smov 23   ;;  %vm458_vm4 = vcmask 1044424   ;;  %vm459_vm5 = vcmask 7172  }
   0xd   : > { %441 = vst [vmem:[#allocation2 + $0x10] sm:$0xf] %v8988_v0  ;;  %8888 = vset.pattern.permute.xlu1 %v8988_v0  ;;  %8889 = vset.pattern.permute.xlu0 %v8988_v0  ;;  %s9137_s14 = scalar_lea.vmem %s10955_s0, %s10985_s11  ;;  %s9000_s28 = smov 27   ;;  %vm455_vm6 = vcmask 924672   ;;  %vm450_vm7 = vcmask 970616   ;;  %vm9154_vm8 = vmor %vm459_vm5, %vm458_vm4  ;;  %vm465_vm9 = vcmask 85016  }
   0xe   : > { %v335_v1 = vld [vmem:[%s9137_s14 + $0x8] sm:$0xff]  ;;  %v334_v2 = vld [vmem:[%s9137_s14] sm:$0xff]  ;;  %s9001_s29 = smov 29   ;;  %s9002_s12 = smov 25   ;;  %vm10978_vm10 = vcmask 167016   ;;  %vm10977_vm11 = vcmask 249016  }
   0xf   : > { %v338_v3 = vpack.c.bf16 %v335_v1, %v335_v1  ;;  %v337_v4 = vpack.c.bf16 %v334_v2, %v334_v2  ;;  %s9003_s13 = smov 33   ;;  %s9004_s15 = smov 31   ;;  %vm10966_vm12 = vcmask 331016   ;;  %vm10965_vm13 = vcmask 413016  }
  0x10   : > { %s9005_s16 = smov 57   ;;  %vm10967_vm14 = vcmask 495016   ;;  %vm10976_vm15 = vcmask 741016   ;;  %vm518_vm4 = vcmask 1044440   ;;  %vm519_vm5 = vcmask 23556   ;;  %s9034_s11 = smov 7  }
  0x11   : > { %8313 = vmatprep.subr.msk.bf16.mxu0 %vm11040_vm0, %v338_v3  ;;  %v345_v6 = vsel %vm11040_vm0, %v337_v4, 0 }
  0x12   : > { %365 = vmatpush1.bf16.msra.mxu0 %v345_v6 }
  0x15   : > { %8314 = vmatmul.mubr.msk.bf16.vlgmr.msra.gmra.mxu0 %vm11039_vm1, %v336_v5 }
  0x16   : > { %765 = vmatprep.mubr.bf16.mxu0 %v8988_v0 }
  0xd5   : > { %v384_v7 = vpop.f32.mrf.mxu0 }
  0xd6   : > { %vm391_vm2 = vcmp.ge.f32.partialorder %v384_v7, 0.0  ;;  %v393_v8 = vmul.f32 0.2, %v384_v7 }
  0xd7   : > { %v386_v9 = vpop.f32.mrf.mxu0 }
  0xd8   : > { %v395_v10 = vsel %vm391_vm2, %v384_v7, %v393_v8  ;;  %vm392_vm3 = vcmp.ge.f32.partialorder %v386_v9, 0.0  ;;  %v394_v11 = vmul.f32 0.2, %v386_v9  ;;  %vm10968_vm2 = vcmask 823016  }
  0xd9   : > { %v8794_v12 = vpack.c.bf16 %v395_v10, %v395_v10  ;;  %v388_v13 = vpop.f32.mrf.mxu0 }
  0xda   : > { %v396_v14 = vsel %vm392_vm3, %v386_v9, %v394_v11  ;;  %vm10969_vm3 = vcmask 905016  }
  0xdb   : > { %462 = vrot.lane.b32.xlu1 %v8794_v12, %s8989_s17  ;;  %452 = vrot.lane.b32.xlu0 %v8794_v12, %s8990_s18  ;;  %v389_v15 = vpop.f32.mrf.mxu0  ;;  %v9148_v16 = vadd.f32 %v396_v14, %v395_v10  ;;  %v8795_v17 = vpack.c.bf16 %v396_v14, %v396_v14  ;;  %s11002_s17 = smov 55   ;;  %s9007_s18 = smov 61   ;;  %v9339_v10 = vld [vmem:[#allocation2 + $0x10] ss:$0 sps:$4 sm:$0xff]  }
  0xdf   : > { %467 = vrot.lane.b32.xlu1 %v8794_v12, %s8991_s19  ;;  %447 = vrot.lane.b32.xlu0 %v8794_v12, %s8992_s20 }
  0xe3   : > { %477 = vrot.lane.b32.xlu1 %v8794_v12, %s8993_s21  ;;  %472 = vrot.lane.b32.xlu0 %v8794_v12, %s8994_s22  ;;  %s9008_s21 = smov 59   ;;  %s9009_s22 = smov 69  }
  0xe7   : > { %487 = vrot.lane.b32.xlu1 %v8794_v12, %s8995_s23  ;;  %482 = vrot.lane.b32.xlu0 %v8794_v12, %s8996_s24  ;;  %s9010_s23 = smov 63   ;;  %s9011_s24 = smov 67  }
  0xeb   : > { %497 = vrot.lane.b32.xlu1 %v8794_v12, %s8997_s25  ;;  %492 = vrot.lane.b32.xlu0 %v8794_v12, %s8998_s26  ;;  %s9012_s25 = smov 65   ;;  %s9013_s26 = smov 93  }
  0xef   : > { %502 = vrot.lane.b32.xlu1 %v8794_v12, %s8999_s27  ;;  %512 = vrot.lane.b32.xlu0 %v8794_v12, %s9000_s28  ;;  %s9014_s27 = smov 91  }
  0xf3   : > { %522 = vrot.lane.b32.xlu1 %v8794_v12, %s9001_s29  ;;  %507 = vrot.lane.b32.xlu0 %v8794_v12, %s9002_s12  ;;  %s9015_s29 = smov 97   ;;  %s9016_s12 = smov 95  }
  0xf7   : > { %532 = vrot.lane.b32.xlu1 %v8794_v12, %s9003_s13  ;;  %527 = vrot.lane.b32.xlu0 %v8794_v12, %s9004_s15  ;;  %s9017_s13 = smov 101   ;;  %s9018_s15 = smov 99   ;;  %v8895_v12 = vld [vmem:[%s10959_s4 + $0xc] sm:$0xff]  }
  0xfb   : > { %545 = vrot.lane.b32.xlu1 %v8795_v17, %s9005_s16  ;;  %540 = vrot.lane.b32.xlu0 %v8795_v17, %s11002_s17  ;;  %s9019_s16 = smov 105  }
  0xff   : > { %555 = vrot.lane.b32.xlu1 %v8795_v17, %s9007_s18  ;;  %550 = vrot.lane.b32.xlu0 %v8795_v17, %s9008_s21  ;;  %s9020_s18 = smov 103   ;;  %s9021_s21 = smov 127  }
 0x103   : > { %575 = vrot.lane.b32.xlu1 %v8795_v17, %s9009_s22  ;;  %560 = vrot.lane.b32.xlu0 %v8795_v17, %s9010_s23  ;;  %s9022_s22 = smov 126   ;;  %s9023_s23 = smov 118  }
 0x107   : > { %570 = vrot.lane.b32.xlu1 %v8795_v17, %s9011_s24  ;;  %565 = vrot.lane.b32.xlu0 %v8795_v17, %s9012_s25  ;;  %s9024_s24 = smov 116   ;;  %s9025_s25 = smov 108  }
 0x10b   : > { %590 = vrot.lane.b32.xlu1 %v8795_v17, %s9013_s26  ;;  %585 = vrot.lane.b32.xlu0 %v8795_v17, %s9014_s27  ;;  %s9026_s26 = smov 107   ;;  %s9027_s27 = smov 106  }
 0x10f   : > { %600 = vrot.lane.b32.xlu1 %v8795_v17, %s9015_s29  ;;  %595 = vrot.lane.b32.xlu0 %v8795_v17, %s9016_s12  ;;  %s9028_s29 = smov 28   ;;  %s9029_s12 = smov 26  }
 0x113   : > { %610 = vrot.lane.b32.xlu1 %v8795_v17, %s9017_s13  ;;  %605 = vrot.lane.b32.xlu0 %v8795_v17, %s9018_s15  ;;  %s10993_s13 = smov 18   ;;  %s10988_s15 = smov 17  }
 0x117   : > { %620 = vrot.lane.b32.xlu1 %v8795_v17, %s9019_s16  ;;  %615 = vrot.lane.b32.xlu0 %v8795_v17, %s9020_s18  ;;  %s10986_s16 = smov 16   ;;  %s10991_s18 = smov 8  }
 0x14d   : > { %v463_v18 = vpop.permute.xlu1 %462  ;;  %v453_v19 = vpop.permute.xlu0 %452 }
 0x14e   : > { %v454_v20 = vrot.slane %v453_v19, 4 }
 0x150   : > { %v456_v24 = vsel %vm455_vm6, %v454_v20, %v453_v19  ;;  %vm11021_vm6 = vcmask 220160   ;;  %v8896_v20 = vld [vmem:[%s10959_s4 + $0x14] ss:$0 sps:$4 sm:$0xff]  }
 0x151   : > { %v468_v22 = vpop.permute.xlu1 %467  ;;  %v448_v23 = vpop.permute.xlu0 %447 }
 0x152   : > { %451 = vst.msk [vmem:[#allocation2] sm:$0xf] %vm450_vm7, %v448_v23 }
 0x153   : > { %461 = vst.msk [vmem:[#allocation2] sm:$0xff] %vm9154_vm8, %v456_v24 }
 0x154   : > { %466 = vst.msk [vmem:[#allocation2 + $0x4] sm:$0xf] %vm465_vm9, %v463_v18 }
 0x155   : > { %v478_v25 = vpop.permute.xlu1 %477  ;;  %471 = vst.msk [vmem:[#allocation2 + $0x4] sm:$0xf] %vm10978_vm10, %v468_v22  ;;  %v473_v26 = vpop.permute.xlu0 %472 }
 0x156   : > { %476 = vst.msk [vmem:[#allocation2 + $0x4] sm:$0xf] %vm10977_vm11, %v473_v26  ;;  %vm10981_vm11 = vcmask 1003416  }
 0x157   : > { %481 = vst.msk [vmem:[#allocation2 + $0x4] sm:$0xf] %vm10966_vm12, %v478_v25  ;;  %vm9170_vm12 = vmor %vm519_vm5, %vm518_vm4  ;;  %vm10972_vm4 = vcmask 511416   ;;  %vm10973_vm5 = vcmask 593416  }
 0x159   : > { %v488_v27 = vpop.permute.xlu1 %487  ;;  %v483_v28 = vpop.permute.xlu0 %482 }
 0x15a   : > { %486 = vst.msk [vmem:[#allocation2 + $0x4] sm:$0xf] %vm10965_vm13, %v483_v28  ;;  %vm10971_vm13 = vcmask 987016   ;;  %v8898_v28 = vld [vmem:[%s10959_s4] sm:$0xff]  }
 0x15b   : > { %491 = vst.msk [vmem:[#allocation2 + $0x4] sm:$0xf] %vm10967_vm14, %v488_v27  ;;  %vm10970_vm14 = vcmask 101416  }
 0x15d   : > { %v498_v29 = vpop.permute.xlu1 %497  ;;  %v493_v30 = vpop.permute.xlu0 %492 }
 0x15e   : > { %496 = vst.msk [vmem:[#allocation2 + $0x4] sm:$0xf] %vm10976_vm15, %v493_v30  ;;  %vm578_vm15 = vcmask 564224  }
 0x15f   : > { %501 = vst.msk [vmem:[#allocation2 + $0x4] sm:$0xf] %vm10968_vm2, %v498_v29  ;;  %vm10975_vm2 = vcmask 183416  }
 0x161   : > { %v503_v31 = vpop.permute.xlu1 %502  ;;  %v513_v32 = vpop.permute.xlu0 %512 }
 0x162   : > { %506 = vst.msk [vmem:[#allocation2 + $0x4] sm:$0xf] %vm10969_vm3, %v503_v31  ;;  %v514_v33 = vrot.slane %v513_v32, 4  ;;  %vm10974_vm3 = vcmask 265416  }
 0x164   : > { %v516_v37 = vsel %vm11021_vm6, %v514_v33, %v513_v32 }
 0x165   : > { %v523_v35 = vpop.permute.xlu1 %522  ;;  %v508_v36 = vpop.permute.xlu0 %507 }
 0x166   : > { %511 = vst.msk [vmem:[#allocation2 + $0x4] sm:$0xf] %vm10971_vm13, %v508_v36  ;;  %vm10979_vm13 = vcmask 757416  }
 0x167   : > { %521 = vst.msk [vmem:[#allocation2 + $0x4] sm:$0xff] %vm9170_vm12, %v516_v37 }
 0x168   : > { %526 = vst.msk [vmem:[#allocation2 + $0x8] sm:$0xf] %vm10970_vm14, %v523_v35  ;;  %vm553_vm14 = vcmask 675416  }
 0x169   : > { %v533_v38 = vpop.permute.xlu1 %532  ;;  %v528_v39 = vpop.permute.xlu0 %527 }
 0x16a   : > { %531 = vst.msk [vmem:[#allocation2 + $0x8] sm:$0xf] %vm10975_vm2, %v528_v39  ;;  %vm10982_vm2 = vcmask 921416  }
 0x16b   : > { %536 = vst.msk [vmem:[#allocation2 + $0x8] sm:$0xf] %vm10974_vm3, %v533_v38  ;;  %vm582_vm3 = vcmask 39940  }
 0x16d   : > { %v546_v40 = vpop.permute.xlu1 %545  ;;  %v541_v41 = vpop.permute.xlu0 %540 }
 0x16e   : > { %v625_v42 = vld [vmem:[#allocation2] sm:$0xff]  ;;  %544 = vst.msk [vmem:[#allocation2 + $0x8] sm:$0xf] %vm10972_vm4, %v541_v41  ;;  %vm10980_vm4 = vcmask 839416  }
 0x16f   : > { %v9182_v43 = vcombine.low %v625_v42, %v625_v42  ;;  %v9184_v44 = vcombine.high %v625_v42, %v625_v42  ;;  %549 = vst.msk [vmem:[#allocation2 + $0x8] sm:$0xf] %vm10973_vm5, %v546_v40  ;;  %vm581_vm5 = vcmask 1044456   ;;  %v8899_v40 = vld [vmem:[%s10959_s4 + $0x8] ss:$0 sps:$4 sm:$0xff]  }
 0x170   : > { %vm9194_vm10 = vmor %vm582_vm3, %vm581_vm5  ;;  %vm598_vm3 = vcmask 445816   ;;  %vm11042_vm5 = vcmask 527816  }
 0x171   : > { %654 = vrot.lane.b32.xlu1 %v9184_v44, %s9021_s21  ;;  %v556_v45 = vpop.permute.xlu1 %555  ;;  %652 = vrot.lane.b32.xlu0 %v9182_v43, %s9021_s21  ;;  %v551_v46 = vpop.permute.xlu0 %550  ;;  %v797_v14 = vsel %vm11040_vm0, %v9182_v43, 0 }
 0x172   : > { %554 = vst.msk [vmem:[#allocation2 + $0x8] sm:$0xf] %vm553_vm14, %v551_v46 }
 0x173   : > { %559 = vst.msk [vmem:[#allocation2 + $0x8] sm:$0xf] %vm10979_vm13, %v556_v45  ;;  %vm10983_vm13 = vcmask 281816  }
 0x175   : > { %v576_v47 = vpop.permute.xlu1 %575  ;;  %v561_v48 = vpop.permute.xlu0 %560 }
 0x176   : > { %564 = vst.msk [vmem:[#allocation2 + $0x8] sm:$0xf] %vm10980_vm4, %v561_v48  ;;  %v577_v49 = vrot.slane %v576_v47, 4  ;;  %vm593_vm4 = vcmask 363816  }
 0x178   : > { %v579_v53 = vsel %vm578_vm15, %v577_v49, %v576_v47  ;;  %vm11041_vm15 = vcmask 609816  }
 0x179   : > { %v571_v50 = vpop.permute.xlu1 %570  ;;  %v566_v51 = vpop.permute.xlu0 %565 }
 0x17a   : > { %569 = vst.msk [vmem:[#allocation2 + $0x8] sm:$0xf] %vm10982_vm2, %v566_v51  ;;  %vm10995_vm2 = vcmask 773816  }
 0x17b   : > { %574 = vst.msk [vmem:[#allocation2 + $0x8] sm:$0xf] %vm10981_vm11, %v571_v50  ;;  %vm11038_vm11 = vcmask 691816  }
 0x17c   : > { %584 = vst.msk [vmem:[#allocation2 + $0x8] sm:$0xff] %vm9194_vm10, %v579_v53  ;;  %v8902_v53 = vld [vmem:[%s10959_s4 + $0x20] ss:$0 sps:$4 sm:$0xff]  }
 0x17d   : > { %v591_v54 = vpop.permute.xlu1 %590  ;;  %v586_v55 = vpop.permute.xlu0 %585 }
 0x17e   : > { %589 = vst.msk [vmem:[#allocation2 + $0xc] sm:$0xf] %vm10983_vm13, %v586_v55  ;;  %vm10984_vm13 = vcmask 855816  }
 0x17f   : > { %594 = vst.msk [vmem:[#allocation2 + $0xc] sm:$0xf] %vm593_vm4, %v591_v54 }
 0x181   : > { %v601_v56 = vpop.permute.xlu1 %600  ;;  %v596_v57 = vpop.permute.xlu0 %595 }
 0x182   : > { %599 = vst.msk [vmem:[#allocation2 + $0xc] sm:$0xf] %vm598_vm3, %v596_v57 }
 0x183   : > { %604 = vst.msk [vmem:[#allocation2 + $0xc] sm:$0xf] %vm11042_vm5, %v601_v56  ;;  %v3364_v23 = vld [vmem:[#allocation2 + $0x4] sm:$0xff]  ;;  %vm11056_vm5 = vcmask 905016  }
 0x184   : > { %v9377_v26 = vcombine.low %v3364_v23, %v3364_v23  ;;  %v9395_v33 = vcombine.high %v3364_v23, %v3364_v23  ;;  %v8903_v56 = vld [vmem:[%s10959_s4 + $0x24] sm:$0xff]  }
 0x185   : > { %v611_v58 = vpop.permute.xlu1 %610  ;;  %v606_v59 = vpop.permute.xlu0 %605 }
 0x186   : > { %609 = vst.msk [vmem:[#allocation2 + $0xc] sm:$0xf] %vm11041_vm15, %v606_v59  ;;  %vm11055_vm15 = vcmask 823016  }
 0x187   : > { %614 = vst.msk [vmem:[#allocation2 + $0xc] sm:$0xf] %vm11038_vm11, %v611_v58 }
 0x189   : > { %v621_v60 = vpop.permute.xlu1 %620  ;;  %v616_v61 = vpop.permute.xlu0 %615 }
 0x18a   : > { %619 = vst.msk [vmem:[#allocation2 + $0xc] sm:$0xf] %vm10995_vm2, %v616_v61  ;;  %vm11001_vm2 = vcmask 965632  }
 0x18b   : > { %624 = vst.msk [vmem:[#allocation2 + $0xc] sm:$0xf] %vm10984_vm13, %v621_v60  ;;  %vm10990_vm13 = vcmask 1039360  }
 0x192   : > { %v626_v62 = vld [vmem:[#allocation2 + $0x8] sm:$0xff] }
 0x193   : > { %v9210_v63 = vcombine.low %v626_v62, %v626_v62  ;;  %v9212_v1 = vcombine.high %v626_v62, %v626_v62  ;;  %v3365_v27 = vld [vmem:[#allocation2 + $0xc] sm:$0xff] }
 0x194   : > { %v9393_v32 = vcombine.low %v3365_v27, %v3365_v27  ;;  %v9423_v42 = vcombine.high %v3365_v27, %v3365_v27 }
 0x195   : > { %658 = vrot.lane.b32.xlu1 %v9212_v1, %s9021_s21  ;;  %656 = vrot.lane.b32.xlu0 %v9210_v63, %s9021_s21  ;;  %v803_v15 = vsel %vm11040_vm0, %v9210_v63, 0 }
 0x199   : > { %922 = vrot.lane.b32.xlu1 %v9184_v44, %s9022_s22  ;;  %920 = vrot.lane.b32.xlu0 %v9182_v43, %s9022_s22 }
 0x19d   : > { %1072 = vrot.lane.b32.xlu1 %v9182_v43, %s9023_s23  ;;  %924 = vrot.lane.b32.xlu0 %v9210_v63, %s9022_s22 }
 0x1a1   : > { %1076 = vrot.lane.b32.xlu1 %v9210_v63, %s9023_s23  ;;  %1074 = vrot.lane.b32.xlu0 %v9184_v44, %s9023_s23 }
 0x1a5   : > { %1224 = vrot.lane.b32.xlu1 %v9182_v43, %s8991_s19  ;;  %926 = vrot.lane.b32.xlu0 %v9212_v1, %s9022_s22 }
 0x1a9   : > { %1228 = vrot.lane.b32.xlu1 %v9210_v63, %s8991_s19  ;;  %1226 = vrot.lane.b32.xlu0 %v9184_v44, %s8991_s19 }
 0x1ad   : > { %1376 = vrot.lane.b32.xlu1 %v9182_v43, %s9024_s24  ;;  %1078 = vrot.lane.b32.xlu0 %v9212_v1, %s9023_s23 }
 0x1b1   : > { %1380 = vrot.lane.b32.xlu1 %v9210_v63, %s9024_s24  ;;  %1378 = vrot.lane.b32.xlu0 %v9184_v44, %s9024_s24 }
 0x1b5   : > { %1528 = vrot.lane.b32.xlu1 %v9182_v43, %s9025_s25  ;;  %1230 = vrot.lane.b32.xlu0 %v9212_v1, %s8991_s19 }
 0x1b9   : > { %1532 = vrot.lane.b32.xlu1 %v9210_v63, %s9025_s25  ;;  %1530 = vrot.lane.b32.xlu0 %v9184_v44, %s9025_s25 }
 0x1bd   : > { %1680 = vrot.lane.b32.xlu1 %v9182_v43, %s9026_s26  ;;  %1382 = vrot.lane.b32.xlu0 %v9212_v1, %s9024_s24 }
 0x1c1   : > { %1684 = vrot.lane.b32.xlu1 %v9210_v63, %s9026_s26  ;;  %1682 = vrot.lane.b32.xlu0 %v9184_v44, %s9026_s26 }
 0x1c5   : > { %1832 = vrot.lane.b32.xlu1 %v9182_v43, %s9027_s27  ;;  %1534 = vrot.lane.b32.xlu0 %v9212_v1, %s9025_s25 }
 0x1c9   : > { %1836 = vrot.lane.b32.xlu1 %v9210_v63, %s9027_s27  ;;  %1834 = vrot.lane.b32.xlu0 %v9184_v44, %s9027_s27 }
 0x1cd   : > { %1984 = vrot.lane.b32.xlu1 %v9182_v43, %s9028_s29  ;;  %1686 = vrot.lane.b32.xlu0 %v9212_v1, %s9026_s26 }
 0x1d1   : > { %1988 = vrot.lane.b32.xlu1 %v9210_v63, %s9028_s29  ;;  %1986 = vrot.lane.b32.xlu0 %v9184_v44, %s9028_s29 }
 0x1d5   : > { %2136 = vrot.lane.b32.xlu1 %v9182_v43, %s9000_s28  ;;  %1838 = vrot.lane.b32.xlu0 %v9212_v1, %s9027_s27 }
 0x1d9   : > { %2140 = vrot.lane.b32.xlu1 %v9210_v63, %s9000_s28  ;;  %2138 = vrot.lane.b32.xlu0 %v9184_v44, %s9000_s28 }
 0x1dd   : > { %2287 = vrot.lane.b32.xlu1 %v9182_v43, %s9029_s12  ;;  %1990 = vrot.lane.b32.xlu0 %v9212_v1, %s9028_s29 }
 0x1e1   : > { %2291 = vrot.lane.b32.xlu1 %v9210_v63, %s9029_s12  ;;  %2289 = vrot.lane.b32.xlu0 %v9184_v44, %s9029_s12 }
 0x1e3   : > { %v655_v2 = vpop.permute.xlu1 %654  ;;  %v653_v3 = vpop.permute.xlu0 %652 }
 0x1e4   : > { %v661_v6 = vsel %vm10990_vm13, %v653_v3, %v655_v2 }
 0x1e5   : > { %2439 = vrot.lane.b32.xlu1 %v9182_v43, %s10993_s13  ;;  %2142 = vrot.lane.b32.xlu0 %v9212_v1, %s9000_s28  ;;  %v671_v11 = vsel %vm11040_vm0, %v661_v6, 0 }
 0x1e9   : > { %2443 = vrot.lane.b32.xlu1 %v9210_v63, %s10993_s13  ;;  %2441 = vrot.lane.b32.xlu0 %v9184_v44, %s10993_s13 }
 0x1ed   : > { %2591 = vrot.lane.b32.xlu1 %v9182_v43, %s10988_s15  ;;  %2293 = vrot.lane.b32.xlu0 %v9212_v1, %s9029_s12 }
 0x1f1   : > { %2595 = vrot.lane.b32.xlu1 %v9210_v63, %s10988_s15  ;;  %2593 = vrot.lane.b32.xlu0 %v9184_v44, %s10988_s15 }
 0x1f5   : > { %2743 = vrot.lane.b32.xlu1 %v9182_v43, %s10986_s16  ;;  %2445 = vrot.lane.b32.xlu0 %v9212_v1, %s10993_s13  ;;  %s9048_s13 = smov 92  }
 0x1f9   : > { %2747 = vrot.lane.b32.xlu1 %v9210_v63, %s10986_s16  ;;  %2745 = vrot.lane.b32.xlu0 %v9184_v44, %s10986_s16 }
 0x1fd   : > { %2911 = vrot.lane.b32.xlu1 %v9182_v43, %s10991_s18  ;;  %2597 = vrot.lane.b32.xlu0 %v9212_v1, %s10988_s15  ;;  %s10997_s15 = smov 6  }
 0x201   : > { %2915 = vrot.lane.b32.xlu1 %v9210_v63, %s10991_s18  ;;  %2913 = vrot.lane.b32.xlu0 %v9184_v44, %s10991_s18 }
 0x205   : > { %3066 = vrot.lane.b32.xlu1 %v9182_v43, %s9034_s11  ;;  %2749 = vrot.lane.b32.xlu0 %v9212_v1, %s10986_s16  ;;  %s11132_s16 = smov 46  }
 0x207   : > { %v659_v4 = vpop.permute.xlu1 %658  ;;  %v657_v5 = vpop.permute.xlu0 %656 }
 0x208   : > { %v663_v7 = vsel %vm10990_vm13, %v657_v5, %v659_v4  ;;  %8329 = vmatprep.subr.msk.bf16.mxu0 %vm11040_vm0, %v659_v4  ;;  %v662_v8 = vsel %vm10990_vm13, %v655_v2, %v657_v5  ;;  %vm10996_vm13 = vcmask 1031168   ;;  %v8905_v4 = vld [vmem:[%s10959_s4 + $0x30] sm:$0xff]  }
 0x209   : > { %3070 = vrot.lane.b32.xlu1 %v9210_v63, %s9034_s11  ;;  %3068 = vrot.lane.b32.xlu0 %v9184_v44, %s9034_s11  ;;  %v677_v9 = vsel %vm11040_vm0, %v663_v7, 0 }
 0x20a   : > { %8326 = vmatprep.subr.msk.bf16.mxu1 %vm11040_vm0, %v662_v8  ;;  %748 = vmatpush1.bf16.msra.mxu0 %v677_v9 }
 0x20b   : > { %697 = vmatpush1.bf16.msra.mxu1 %v671_v11  ;;  %8337 = vmatprep.subr.msk.bf16.mxu0 %vm11040_vm0, %v9212_v1  ;;  %v921_v13 = vpop.permute.xlu0 %920  ;;  %v923_v17 = vpop.permute.xlu1 %922 }
 0x20c   : > { %8334 = vmatprep.subr.msk.bf16.mxu1 %vm11040_vm0, %v9184_v44  ;;  %v929_v29 = vsel %vm10996_vm13, %v921_v13, %v923_v17 }
 0x20d   : > { %2919 = vrot.lane.b32.xlu1 %v9339_v10, %s10991_s18  ;;  %2917 = vrot.lane.b32.xlu0 %v9212_v1, %s10991_s18  ;;  %s10999_s18 = smov 56   ;;  %v939_v36 = vsel %vm11040_vm0, %v929_v29, 0 }
 0x20e   : > { %8327 = vmatmul.mubr.msk.bf16.vlgmr.msra.gmra.mxu1 %vm11039_vm1, %v8895_v12  ;;  %8330 = vmatmul.mubr.msk.bf16.vlgmr.msra.gmra.mxu0 %vm11039_vm1, %v8895_v12  ;;  %v8906_v12 = vld [vmem:[%s10959_s4 + $0x38] ss:$0 sps:$4 sm:$0xff]  }
 0x20f   : > { %823 = vmatpush1.bf16.msra.mxu1 %v797_v14  ;;  %874 = vmatpush1.bf16.msra.mxu0 %v803_v15  ;;  %v925_v18 = vpop.permute.xlu0 %924  ;;  %v1073_v24 = vpop.permute.xlu1 %1072  ;;  %v8907_v15 = vld [vmem:[%s10959_s4 + $0x3c] sm:$0xff]  }
 0x210   : > { %v930_v19 = vsel %vm10996_vm13, %v923_v17, %v925_v18  ;;  %724 = vmatprep.mubr.bf16.mxu1 %v8988_v0  ;;  %774 = vmatprep.mubr.bf16.mxu0 %v8988_v0 }
 0x211   : > { %3223 = vrot.lane.b32.xlu1 %v9184_v44, %s10997_s15  ;;  %3221 = vrot.lane.b32.xlu0 %v9182_v43, %s10997_s15  ;;  %v8901_v44 = vld [vmem:[%s10959_s4 + $0x18] sm:$0xff]  }
 0x212   : > { %8345 = vmatprep.subr.msk.bf16.mxu1 %vm11040_vm0, %v930_v19 }
 0x213   : > { %v1075_v22 = vpop.permute.xlu0 %1074  ;;  %v1077_v35 = vpop.permute.xlu1 %1076 }
 0x214   : > { %v1082_v38 = vsel %vm11001_vm2, %v1075_v22, %v1077_v35  ;;  %v1081_v45 = vsel %vm11001_vm2, %v1073_v24, %v1075_v22 }
 0x215   : > { %3072 = vrot.lane.b32.xlu1 %v9212_v1, %s9034_s11  ;;  %3225 = vrot.lane.b32.xlu0 %v9210_v63, %s10997_s15  ;;  %v1091_v48 = vsel %vm11040_vm0, %v1081_v45, 0 }
 0x216   : > { %8328 = vmatmul.mubr.msk.bf16.gmra.mxu1 %vm11039_vm1, %v8896_v20  ;;  %8331 = vmatmul.mubr.msk.bf16.gmra.mxu0 %vm11039_vm1, %v8896_v20 }
 0x217   : > { %v927_v25 = vpop.permute.xlu0 %926  ;;  %840 = vmatprep.mubr.bf16.mxu1 %v8988_v0  ;;  %891 = vmatprep.mubr.bf16.mxu0 %v8988_v0  ;;  %v1225_v41 = vpop.permute.xlu1 %1224 }
 0x218   : > { %8348 = vmatprep.subr.msk.bf16.mxu0 %vm11040_vm0, %v927_v25  ;;  %v931_v30 = vsel %vm10996_vm13, %v925_v18, %v927_v25  ;;  %vm11006_vm13 = vcmask 957440   ;;  %v8908_v25 = vld [vmem:[%s10959_s4 + $0x44] ss:$0 sps:$4 sm:$0xff]  }
 0x219   : > { %3388 = vrot.lane.b32.xlu1 %v9377_v26, %s10999_s18  ;;  %3074 = vrot.lane.b32.xlu0 %v9339_v10, %s9034_s11  ;;  %v945_v37 = vsel %vm11040_vm0, %v931_v30, 0 }
 0x21b   : > { %v9391_v31 = vpop.permute.xlu0 %1226  ;;  %v1229_v47 = vpop.permute.xlu1 %1228 }
 0x21c   : > { %v1234_v51 = vsel %vm11006_vm13, %v9391_v31, %v1229_v47  ;;  %v1233_v57 = vsel %vm11006_vm13, %v1225_v41, %v9391_v31 }
 0x21d   : > { %3392 = vrot.lane.b32.xlu1 %v9393_v32, %s10999_s18  ;;  %3390 = vrot.lane.b32.xlu0 %v9395_v33, %s10999_s18  ;;  %v1243_v60 = vsel %vm11040_vm0, %v1233_v57, 0 }
 0x21e   : > { %8335 = vmatmul.mubr.msk.bf16.vlgmr.msra.gmra.mxu1 %vm11039_vm1, %v8898_v28  ;;  %8338 = vmatmul.mubr.msk.bf16.vlgmr.msra.gmra.mxu0 %vm11039_vm1, %v8898_v28  ;;  %v8909_v28 = vld [vmem:[%s10959_s4 + $0x48] sm:$0xff]  }
 0x21f   : > { %965 = vmatpush1.bf16.msra.mxu1 %v939_v36  ;;  %1016 = vmatpush1.bf16.msra.mxu0 %v945_v37  ;;  %v1079_v39 = vpop.permute.xlu0 %1078  ;;  %v1377_v54 = vpop.permute.xlu1 %1376  ;;  %v8910_v37 = vld [vmem:[%s10959_s4 + $0x50] ss:$0 sps:$4 sm:$0xff]  }
 0x220   : > { %8356 = vmatprep.subr.msk.bf16.mxu1 %vm11040_vm0, %v1082_v38  ;;  %8359 = vmatprep.subr.msk.bf16.mxu0 %vm11040_vm0, %v1079_v39  ;;  %v1083_v46 = vsel %vm11001_vm2, %v1077_v35, %v1079_v39  ;;  %vm11011_vm2 = vcmask 949248  }
 0x221   : > { %3229 = vrot.lane.b32.xlu1 %v9339_v10, %s10997_s15  ;;  %3227 = vrot.lane.b32.xlu0 %v9212_v1, %s10997_s15  ;;  %s11004_s15 = smov 54   ;;  %v1097_v49 = vsel %vm11040_vm0, %v1083_v46, 0  ;;  %v8904_v1 = vld [vmem:[%s10959_s4 + $0x2c] ss:$0 sps:$4 sm:$0xff]  }
 0x222   : > { %850 = vmatprep.mubr.bf16.mxu1 %v8988_v0  ;;  %900 = vmatprep.mubr.bf16.mxu0 %v8988_v0 }
 0x223   : > { %v9427_v43 = vpop.permute.xlu0 %1378  ;;  %v1381_v59 = vpop.permute.xlu1 %1380 }
 0x224   : > { %v1386_v63 = vsel %vm11011_vm2, %v9427_v43, %v1381_v59  ;;  %v1385_v5 = vsel %vm11011_vm2, %v1377_v54, %v9427_v43 }
 0x225   : > { %3542 = vrot.lane.b32.xlu1 %v9395_v33, %s11002_s17  ;;  %3540 = vrot.lane.b32.xlu0 %v9377_v26, %s11002_s17  ;;  %v1395_v8 = vsel %vm11040_vm0, %v1385_v5, 0 }
 0x226   : > { %8336 = vmatmul.mubr.msk.bf16.gmra.mxu1 %vm11039_vm1, %v8899_v40  ;;  %8339 = vmatmul.mubr.msk.bf16.gmra.mxu0 %vm11039_vm1, %v8899_v40  ;;  %v8911_v40 = vld [vmem:[%s10959_s4 + $0x54] sm:$0xff]  }
 0x227   : > { %982 = vmatprep.mubr.bf16.mxu1 %v8988_v0  ;;  %1033 = vmatprep.mubr.bf16.mxu0 %v8988_v0  ;;  %v1231_v50 = vpop.permute.xlu0 %1230  ;;  %v1529_v2 = vpop.permute.xlu1 %1528 }
 0x228   : > { %v1235_v58 = vsel %vm11006_vm13, %v1229_v47, %v1231_v50  ;;  %vm11018_vm13 = vcmask 883712  }
 0x229   : > { %3394 = vrot.lane.b32.xlu1 %v9423_v42, %s10999_s18  ;;  %3544 = vrot.lane.b32.xlu0 %v9393_v32, %s11002_s17  ;;  %s11007_s18 = smov 46   ;;  %v1249_v61 = vsel %vm11040_vm0, %v1235_v58, 0 }
 0x22b   : > { %v9467_v55 = vpop.permute.xlu0 %1530  ;;  %v1533_v7 = vpop.permute.xlu1 %1532 }
 0x22c   : > { %v1538_v11 = vsel %vm11018_vm13, %v9467_v55, %v1533_v7  ;;  %v1537_v17 = vsel %vm11018_vm13, %v1529_v2, %v9467_v55 }
 0x22d   : > { %3694 = vrot.lane.b32.xlu1 %v9395_v33, %s11004_s15  ;;  %3692 = vrot.lane.b32.xlu0 %v9377_v26, %s11004_s15  ;;  %v1547_v20 = vsel %vm11040_vm0, %v1537_v17, 0 }
 0x22e   : > { %8346 = vmatmul.mubr.msk.bf16.vlgmr.msra.gmra.mxu1 %vm11039_vm1, %v8901_v44  ;;  %8349 = vmatmul.mubr.msk.bf16.vlgmr.msra.gmra.mxu0 %vm11039_vm1, %v8901_v44 }
 0x22f   : > { %1117 = vmatpush1.bf16.msra.mxu1 %v1091_v48  ;;  %1168 = vmatpush1.bf16.msra.mxu0 %v1097_v49  ;;  %v1383_v62 = vpop.permute.xlu0 %1382  ;;  %v1681_v13 = vpop.permute.xlu1 %1680  ;;  %v8912_v48 = vld [vmem:[%s10959_s4 + $0x5c] ss:$0 sps:$4 sm:$0xff]  }
 0x230   : > { %8367 = vmatprep.subr.msk.bf16.mxu1 %vm11040_vm0, %v1234_v51  ;;  %8370 = vmatprep.subr.msk.bf16.mxu0 %vm11040_vm0, %v1231_v50  ;;  %v1387_v6 = vsel %vm11011_vm2, %v1381_v59, %v1383_v62  ;;  %vm11019_vm2 = vcmask 875520   ;;  %v8913_v51 = vld [vmem:[%s10959_s4 + $0x60] sm:$0xff]  }
 0x231   : > { %3546 = vrot.lane.b32.xlu1 %v9423_v42, %s11002_s17  ;;  %3696 = vrot.lane.b32.xlu0 %v9393_v32, %s11004_s15  ;;  %s11009_s17 = smov 45   ;;  %v1401_v9 = vsel %vm11040_vm0, %v1387_v6, 0 }
 0x232   : > { %992 = vmatprep.mubr.bf16.mxu1 %v8988_v0  ;;  %1042 = vmatprep.mubr.bf16.mxu0 %v8988_v0 }
 0x233   : > { %v9508_v3 = vpop.permute.xlu0 %1682  ;;  %v1685_v19 = vpop.permute.xlu1 %1684 }
 0x234   : > { %v1690_v24 = vsel %vm11019_vm2, %v9508_v3, %v1685_v19  ;;  %v1689_v29 = vsel %vm11019_vm2, %v1681_v13, %v9508_v3 }
 0x235   : > { %3846 = vrot.lane.b32.xlu1 %v9395_v33, %s11007_s18  ;;  %3844 = vrot.lane.b32.xlu0 %v9377_v26, %s11007_s18 }
 0x236   : > { %8347 = vmatmul.mubr.msk.bf16.gmra.mxu1 %vm11039_vm1, %v8902_v53  ;;  %8350 = vmatmul.mubr.msk.bf16.gmra.mxu0 %vm11039_vm1, %v8902_v53 }
 0x237   : > { %1134 = vmatprep.mubr.bf16.mxu1 %v8988_v0  ;;  %1185 = vmatprep.mubr.bf16.mxu0 %v8988_v0  ;;  %v1535_v10 = vpop.permute.xlu0 %1534 }
 0x238   : > { %v1539_v18 = vsel %vm11018_vm13, %v1533_v7, %v1535_v10  ;;  %vm11037_vm13 = vcmask 867328  }
 0x239   : > { %3698 = vrot.lane.b32.xlu1 %v9423_v42, %s11004_s15  ;;  %3848 = vrot.lane.b32.xlu0 %v9393_v32, %s11007_s18  ;;  %s11012_s15 = smov 44   ;;  %v1553_v22 = vsel %vm11040_vm0, %v1539_v18, 0 }
 0x23b   : > { %v1835_v14 = vpop.permute.xlu0 %1834 }
 0x23d   : > { %3998 = vrot.lane.b32.xlu1 %v9395_v33, %s11009_s17  ;;  %3996 = vrot.lane.b32.xlu0 %v9377_v26, %s11009_s17 }
 0x23e   : > { %8357 = vmatmul.mubr.msk.bf16.vlgmr.msra.gmra.mxu1 %vm11039_vm1, %v8903_v56  ;;  %8360 = vmatmul.mubr.msk.bf16.vlgmr.msra.gmra.mxu0 %vm11039_vm1, %v8903_v56 }
 0x23f   : > { %1269 = vmatpush1.bf16.msra.mxu1 %v1243_v60  ;;  %1320 = vmatpush1.bf16.msra.mxu0 %v1249_v61  ;;  %v1687_v23 = vpop.permute.xlu0 %1686  ;;  %v8914_v60 = vld [vmem:[%s10959_s4 + $0x68] ss:$0 sps:$4 sm:$0xff]  }
 0x240   : > { %8378 = vmatprep.subr.msk.bf16.mxu1 %vm11040_vm0, %v1386_v63  ;;  %8381 = vmatprep.subr.msk.bf16.mxu0 %vm11040_vm0, %v1383_v62  ;;  %v1691_v30 = vsel %vm11019_vm2, %v1685_v19, %v1687_v23  ;;  %vm11020_vm2 = vcmask 228352  }
 0x241   : > { %3850 = vrot.lane.b32.xlu1 %v9423_v42, %s11007_s18  ;;  %4000 = vrot.lane.b32.xlu0 %v9393_v32, %s11009_s17  ;;  %s11016_s18 = smov 36  }
 0x242   : > { %1144 = vmatprep.mubr.bf16.mxu1 %v8988_v0  ;;  %1194 = vmatprep.mubr.bf16.mxu0 %v8988_v0 }
 0x243   : > { %v1987_v27 = vpop.permute.xlu0 %1986 }
 0x245   : > { %4150 = vrot.lane.b32.xlu1 %v9395_v33, %s11012_s15  ;;  %4148 = vrot.lane.b32.xlu0 %v9377_v26, %s11012_s15 }
 0x246   : > { %8358 = vmatmul.mubr.msk.bf16.gmra.mxu1 %vm11039_vm1, %v8904_v1  ;;  %8361 = vmatmul.mubr.msk.bf16.gmra.mxu0 %vm11039_vm1, %v8904_v1  ;;  %v8915_v1 = vld [vmem:[%s10959_s4 + $0x6c] sm:$0xff]  }
 0x247   : > { %1286 = vmatprep.mubr.bf16.mxu1 %v8988_v0  ;;  %1337 = vmatprep.mubr.bf16.mxu0 %v8988_v0  ;;  %v1839_v35 = vpop.permute.xlu0 %1838 }
 0x249   : > { %4002 = vrot.lane.b32.xlu1 %v9423_v42, %s11009_s17  ;;  %4152 = vrot.lane.b32.xlu0 %v9393_v32, %s11012_s15  ;;  %s11014_s17 = smov 35  }
 0x24b   : > { %v2139_v39 = vpop.permute.xlu0 %2138 }
 0x24d   : > { %4302 = vrot.lane.b32.xlu1 %v9395_v33, %s11016_s18  ;;  %4300 = vrot.lane.b32.xlu0 %v9377_v26, %s11016_s18 }
 0x24e   : > { %8368 = vmatmul.mubr.msk.bf16.vlgmr.msra.gmra.mxu1 %vm11039_vm1, %v8905_v4  ;;  %8371 = vmatmul.mubr.msk.bf16.vlgmr.msra.gmra.mxu0 %vm11039_vm1, %v8905_v4 }
 0x24f   : > { %1421 = vmatpush1.bf16.msra.mxu1 %v1395_v8  ;;  %1472 = vmatpush1.bf16.msra.mxu0 %v1401_v9  ;;  %v1991_v46 = vpop.permute.xlu0 %1990  ;;  %v8916_v9 = vld [vmem:[%s10959_s4 + $0x74] ss:$0 sps:$4 sm:$0xff]  }
 0x250   : > { %8389 = vmatprep.subr.msk.bf16.mxu1 %vm11040_vm0, %v1538_v11  ;;  %8392 = vmatprep.subr.msk.bf16.mxu0 %vm11040_vm0, %v1535_v10 }
 0x251   : > { %4154 = vrot.lane.b32.xlu1 %v9423_v42, %s11012_s15  ;;  %4304 = vrot.lane.b32.xlu0 %v9393_v32, %s11016_s18  ;;  %s9043_s15 = smov 34  }
 0x252   : > { %1296 = vmatprep.mubr.bf16.mxu1 %v8988_v0  ;;  %1346 = vmatprep.mubr.bf16.mxu0 %v8988_v0 }
 0x253   : > { %v2290_v50 = vpop.permute.xlu0 %2289 }
 0x255   : > { %4454 = vrot.lane.b32.xlu1 %v9395_v33, %s11014_s17  ;;  %4452 = vrot.lane.b32.xlu0 %v9377_v26, %s11014_s17 }
 0x256   : > { %8369 = vmatmul.mubr.msk.bf16.gmra.mxu1 %vm11039_vm1, %v8906_v12  ;;  %8372 = vmatmul.mubr.msk.bf16.gmra.mxu0 %vm11039_vm1, %v8906_v12  ;;  %v8917_v12 = vld [vmem:[%s10959_s4 + $0x78] sm:$0xff]  }
 0x257   : > { %1438 = vmatprep.mubr.bf16.mxu1 %v8988_v0  ;;  %1489 = vmatprep.mubr.bf16.mxu0 %v8988_v0  ;;  %v2143_v58 = vpop.permute.xlu0 %2142 }
 0x259   : > { %4306 = vrot.lane.b32.xlu1 %v9423_v42, %s11016_s18  ;;  %4456 = vrot.lane.b32.xlu0 %v9393_v32, %s11014_s17  ;;  %s11161_s18 = smov 36  }
 0x25b   : > { %v2442_v63 = vpop.permute.xlu0 %2441 }
 0x25d   : > { %4606 = vrot.lane.b32.xlu1 %v9395_v33, %s9043_s15  ;;  %4604 = vrot.lane.b32.xlu0 %v9377_v26, %s9043_s15  ;;  %v1833_v26 = vpop.permute.xlu1 %1832  ;;  %v1705_v33 = vsel %vm11040_vm0, %v1691_v30, 0 }
 0x25e   : > { %8379 = vmatmul.mubr.msk.bf16.vlgmr.msra.gmra.mxu1 %vm11039_vm1, %v8907_v15  ;;  %8382 = vmatmul.mubr.msk.bf16.vlgmr.msra.gmra.mxu0 %vm11039_vm1, %v8907_v15  ;;  %v1841_v41 = vsel %vm11037_vm13, %v1833_v26, %v1835_v14  ;;  %v8919_v26 = vld [vmem:[%s10959_s4 + $0x84] sm:$0xff]  }
 0x25f   : > { %1573 = vmatpush1.bf16.msra.mxu1 %v1547_v20  ;;  %1624 = vmatpush1.bf16.msra.mxu0 %v1553_v22  ;;  %v1851_v44 = vsel %vm11040_vm0, %v1841_v41, 0  ;;  %v2294_v7 = vpop.permute.xlu0 %2293 }
 0x260   : > { %8400 = vmatprep.subr.msk.bf16.mxu1 %vm11040_vm0, %v1690_v24  ;;  %8403 = vmatprep.subr.msk.bf16.mxu0 %vm11040_vm0, %v1687_v23  ;;  %v8918_v23 = vld [vmem:[%s10959_s4 + $0x80] ss:$0 sps:$4 sm:$0xff]  }
 0x261   : > { %4458 = vrot.lane.b32.xlu1 %v9423_v42, %s11014_s17  ;;  %4608 = vrot.lane.b32.xlu0 %v9393_v32, %s9043_s15  ;;  %v1837_v31 = vpop.permute.xlu1 %1836  ;;  %v1699_v32 = vsel %vm11040_vm0, %v1689_v29, 0  ;;  %s9049_s17 = smov 90  }
 0x262   : > { %1448 = vmatprep.mubr.bf16.mxu1 %v8988_v0  ;;  %1498 = vmatprep.mubr.bf16.mxu0 %v8988_v0  ;;  %v1842_v36 = vsel %vm11037_vm13, %v1835_v14, %v1837_v31 }
 0x263   : > { %v2594_v11 = vpop.permute.xlu0 %2593 }
 0x265   : > { %4610 = vrot.lane.b32.xlu0 %v9423_v42, %s9043_s15  ;;  %v1985_v38 = vpop.permute.xlu1 %1984  ;;  %v1843_v42 = vsel %vm11037_vm13, %v1837_v31, %v1839_v35 }
 0x266   : > { %8380 = vmatmul.mubr.msk.bf16.gmra.mxu1 %vm11039_vm1, %v8908_v25  ;;  %8383 = vmatmul.mubr.msk.bf16.gmra.mxu0 %vm11039_vm1, %v8908_v25  ;;  %v1857_v45 = vsel %vm11040_vm0, %v1843_v42, 0  ;;  %v1993_v53 = vsel %vm11020_vm2, %v1985_v38, %v1987_v27 }
 0x267   : > { %1590 = vmatprep.mubr.bf16.mxu1 %v8988_v0  ;;  %1641 = vmatprep.mubr.bf16.mxu0 %v8988_v0  ;;  %v2003_v56 = vsel %vm11040_vm0, %v1993_v53, 0  ;;  %v2446_v19 = vpop.permute.xlu0 %2445 }
 0x269   : > { %v1989_v43 = vpop.permute.xlu1 %1988 }
 0x26a   : > { %v1994_v47 = vsel %vm11020_vm2, %v1987_v27, %v1989_v43  ;;  %v1995_v54 = vsel %vm11020_vm2, %v1989_v43, %v1991_v46  ;;  %vm11022_vm2 = vcmask 211968  }
 0x26b   : > { %v2009_v57 = vsel %vm11040_vm0, %v1995_v54, 0  ;;  %v9694_v25 = vpop.permute.xlu0 %2745  ;;  %v8922_v54 = vld [vmem:[%s10959_s4 + $0x98] ss:$0 sps:$4 sm:$0xff]  }
 0x26d   : > { %v2137_v49 = vpop.permute.xlu1 %2136 }
 0x26e   : > { %8390 = vmatmul.mubr.msk.bf16.vlgmr.msra.gmra.mxu1 %vm11039_vm1, %v8909_v28  ;;  %8393 = vmatmul.mubr.msk.bf16.vlgmr.msra.gmra.mxu0 %vm11039_vm1, %v8909_v28  ;;  %v2144_v2 = vsel %vm11021_vm6, %v2137_v49, %v2139_v39 }
 0x26f   : > { %1725 = vmatpush1.bf16.msra.mxu1 %v1699_v32  ;;  %1776 = vmatpush1.bf16.msra.mxu0 %v1705_v33  ;;  %v2154_v4 = vsel %vm11040_vm0, %v2144_v2, 0  ;;  %v2598_v32 = vpop.permute.xlu0 %2597 }
 0x270   : > { %8411 = vmatprep.subr.msk.bf16.mxu1 %vm11040_vm0, %v1842_v36  ;;  %8414 = vmatprep.subr.msk.bf16.mxu0 %vm11040_vm0, %v1839_v35  ;;  %v8920_v35 = vld [vmem:[%s10959_s4 + $0x8c] ss:$0 sps:$4 sm:$0xff]  }
 0x271   : > { %1600 = vmatprep.mubr.bf16.mxu1 %v8988_v0  ;;  %1650 = vmatprep.mubr.bf16.mxu0 %v8988_v0  ;;  %v2141_v55 = vpop.permute.xlu1 %2140 }
 0x272   : > { %v2145_v59 = vsel %vm11021_vm6, %v2139_v39, %v2141_v55  ;;  %v2146_v3 = vsel %vm11021_vm6, %v2141_v55, %v2143_v58  ;;  %vm11023_vm6 = vcmask 146432   ;;  %v8921_v39 = vld [vmem:[%s10959_s4 + $0x90] sm:$0xff]  }
 0x273   : > { %v2160_v5 = vsel %vm11040_vm0, %v2146_v3, 0  ;;  %v8923_v3 = vld [vmem:[%s10959_s4 + $0x9c] sm:$0xff]  }
 0x275   : > { %v2288_v61 = vpop.permute.xlu1 %2287 }
 0x276   : > { %8391 = vmatmul.mubr.msk.bf16.gmra.mxu1 %vm11039_vm1, %v8910_v37  ;;  %8394 = vmatmul.mubr.msk.bf16.gmra.mxu0 %vm11039_vm1, %v8910_v37  ;;  %v2296_v13 = vsel %vm11022_vm2, %v2288_v61, %v2290_v50  ;;  %v9719_v37 = vpop.permute.xlu0 %2913 }
 0x277   : > { %1742 = vmatprep.mubr.bf16.mxu1 %v8988_v0  ;;  %1793 = vmatprep.mubr.bf16.mxu0 %v8988_v0  ;;  %v2306_v17 = vsel %vm11040_vm0, %v2296_v13, 0 }
 0x279   : > { %v2292_v62 = vpop.permute.xlu1 %2291 }
 0x27a   : > { %v2297_v8 = vsel %vm11022_vm2, %v2290_v50, %v2292_v62  ;;  %v2298_v15 = vsel %vm11022_vm2, %v2292_v62, %v2294_v7  ;;  %vm11025_vm2 = vcmask 138240   ;;  %v2750_v42 = vpop.permute.xlu0 %2749 }
 0x27b   : > { %v2312_v18 = vsel %vm11040_vm0, %v2298_v15, 0 }
 0x27d   : > { %v2440_v6 = vpop.permute.xlu1 %2439 }
 0x27e   : > { %8401 = vmatmul.mubr.msk.bf16.vlgmr.msra.gmra.mxu1 %vm11039_vm1, %v8911_v40  ;;  %8404 = vmatmul.mubr.msk.bf16.vlgmr.msra.gmra.mxu0 %vm11039_vm1, %v8911_v40  ;;  %v2448_v27 = vsel %vm11023_vm6, %v2440_v6, %v2442_v63  ;;  %v9746_v55 = vpop.permute.xlu0 %3068 }
 0x27f   : > { %1877 = vmatpush1.bf16.msra.mxu1 %v1851_v44  ;;  %1928 = vmatpush1.bf16.msra.mxu0 %v1857_v45  ;;  %v2458_v30 = vsel %vm11040_vm0, %v2448_v27, 0 }
 0x280   : > { %8422 = vmatprep.subr.msk.bf16.mxu1 %vm11040_vm0, %v1994_v47  ;;  %8425 = vmatprep.subr.msk.bf16.mxu0 %vm11040_vm0, %v1991_v46 }
 0x281   : > { %1752 = vmatprep.mubr.bf16.mxu1 %v8988_v0  ;;  %1802 = vmatprep.mubr.bf16.mxu0 %v8988_v0  ;;  %v2444_v10 = vpop.permute.xlu1 %2443 }
 0x282   : > { %v2449_v20 = vsel %vm11023_vm6, %v2442_v63, %v2444_v10  ;;  %v2450_v28 = vsel %vm11023_vm6, %v2444_v10, %v2446_v19  ;;  %vm11024_vm6 = vcmask 130048   ;;  %v2918_v63 = vpop.permute.xlu0 %2917 }
 0x283   : > { %v2464_v31 = vsel %vm11040_vm0, %v2450_v28, 0 }
 0x285   : > { %v2592_v14 = vpop.permute.xlu1 %2591 }
 0x286   : > { %8402 = vmatmul.mubr.msk.bf16.gmra.mxu1 %vm11039_vm1, %v8912_v48  ;;  %8405 = vmatmul.mubr.msk.bf16.gmra.mxu0 %vm11039_vm1, %v8912_v48  ;;  %v2600_v40 = vsel %vm11025_vm2, %v2592_v14, %v2594_v11  ;;  %v9769_v14 = vpop.permute.xlu0 %3221 }
 0x287   : > { %1894 = vmatprep.mubr.bf16.mxu1 %v8988_v0  ;;  %1945 = vmatprep.mubr.bf16.mxu0 %v8988_v0  ;;  %v2610_v45 = vsel %vm11040_vm0, %v2600_v40, 0 }
 0x289   : > { %v2596_v22 = vpop.permute.xlu1 %2595 }
 0x28a   : > { %v2601_v33 = vsel %vm11025_vm2, %v2594_v11, %v2596_v22  ;;  %v2602_v41 = vsel %vm11025_vm2, %v2596_v22, %v2598_v32  ;;  %vm11027_vm2 = vcmask 48128  }
 0x28b   : > { %v2616_v46 = vsel %vm11040_vm0, %v2602_v41, 0 }
 0x28d   : > { %v9690_v24 = vpop.permute.xlu1 %2743 }
 0x28e   : > { %8412 = vmatmul.mubr.msk.bf16.vlgmr.msra.gmra.mxu1 %vm11039_vm1, %v8913_v51  ;;  %8415 = vmatmul.mubr.msk.bf16.vlgmr.msra.gmra.mxu0 %vm11039_vm1, %v8913_v51 }
 0x28f   : > { %2029 = vmatpush1.bf16.msra.mxu1 %v2003_v56  ;;  %2080 = vmatpush1.bf16.msra.mxu0 %v2009_v57 }
 0x290   : > { %8433 = vmatprep.subr.msk.bf16.mxu1 %vm11040_vm0, %v2145_v59  ;;  %8436 = vmatprep.subr.msk.bf16.mxu0 %vm11040_vm0, %v2143_v58 }
 0x291   : > { %1904 = vmatprep.mubr.bf16.mxu1 %v8988_v0  ;;  %1954 = vmatprep.mubr.bf16.mxu0 %v8988_v0  ;;  %v9701_v29 = vpop.permute.xlu1 %2747 }
 0x292   : > { %v2753_v48 = vsel %vm11024_vm6, %v9694_v25, %v9701_v29 }
 0x295   : > { %v9715_v36 = vpop.permute.xlu1 %2911 }
 0x296   : > { %8413 = vmatmul.mubr.msk.bf16.gmra.mxu1 %vm11039_vm1, %v8914_v60  ;;  %8416 = vmatmul.mubr.msk.bf16.gmra.mxu0 %vm11039_vm1, %v8914_v60 }
 0x297   : > { %2046 = vmatprep.mubr.bf16.mxu1 %v8988_v0  ;;  %2097 = vmatprep.mubr.bf16.mxu0 %v8988_v0 }
 0x299   : > { %v9723_v38 = vpop.permute.xlu1 %2915 }
 0x29a   : > { %v2923_v13 = vsel %vm11039_vm1, %v9719_v37, %v9723_v38 }
 0x29d   : > { %v9734_v47 = vpop.permute.xlu1 %3066 }
 0x29e   : > { %8423 = vmatmul.mubr.msk.bf16.vlgmr.msra.gmra.mxu1 %vm11039_vm1, %v8915_v1  ;;  %8426 = vmatmul.mubr.msk.bf16.vlgmr.msra.gmra.mxu0 %vm11039_vm1, %v8915_v1 }
 0x29f   : > { %2180 = vmatpush1.bf16.msra.mxu1 %v2154_v4  ;;  %2231 = vmatpush1.bf16.msra.mxu0 %v2160_v5  ;;  %v2752_v4 = vsel %vm11024_vm6, %v9690_v24, %v9694_v25  ;;  %v2754_v5 = vsel %vm11024_vm6, %v9701_v29, %v2750_v42  ;;  %vm11026_vm6 = vcmask 56320  }
 0x2a0   : > { %8444 = vmatprep.subr.msk.bf16.mxu1 %vm11040_vm0, %v2297_v8  ;;  %8447 = vmatprep.subr.msk.bf16.mxu0 %vm11040_vm0, %v2294_v7  ;;  %v2762_v11 = vsel %vm11040_vm0, %v2752_v4, 0 }
 0x2a1   : > { %2056 = vmatprep.mubr.bf16.mxu1 %v8988_v0  ;;  %2106 = vmatprep.mubr.bf16.mxu0 %v8988_v0  ;;  %v9748_v58 = vpop.permute.xlu1 %3070 }
 0x2a5   : > { %v2920_v6 = vpop.permute.xlu1 %2919 }
 0x2a6   : > { %8424 = vmatmul.mubr.msk.bf16.gmra.mxu1 %vm11039_vm1, %v8916_v9  ;;  %8427 = vmatmul.mubr.msk.bf16.gmra.mxu0 %vm11039_vm1, %v8916_v9 }
 0x2a7   : > { %2197 = vmatprep.mubr.bf16.mxu1 %v8988_v0  ;;  %2248 = vmatprep.mubr.bf16.mxu0 %v8988_v0 }
 0x2a9   : > { %v9779_v27 = vpop.permute.xlu1 %3223 }
 0x2ae   : > { %8434 = vmatmul.mubr.msk.bf16.vlgmr.msra.gmra.mxu1 %vm11039_vm1, %v8917_v12  ;;  %8437 = vmatmul.mubr.msk.bf16.vlgmr.msra.gmra.mxu0 %vm11039_vm1, %v8917_v12  ;;  %v2768_v12 = vsel %vm11040_vm0, %v2754_v5, 0 }
 0x2af   : > { %2332 = vmatpush1.bf16.msra.mxu1 %v2306_v17  ;;  %2383 = vmatpush1.bf16.msra.mxu0 %v2312_v18  ;;  %v2925_v18 = vsel %vm11039_vm1, %v2918_v63, %v2920_v6 }
 0x2b0   : > { %8455 = vmatprep.subr.msk.bf16.mxu1 %vm11040_vm0, %v2449_v20  ;;  %8458 = vmatprep.subr.msk.bf16.mxu0 %vm11040_vm0, %v2446_v19 }
 0x2b1   : > { %2207 = vmatprep.mubr.bf16.mxu1 %v8988_v0  ;;  %2257 = vmatprep.mubr.bf16.mxu0 %v8988_v0 }
 0x2b6   : > { %8435 = vmatmul.mubr.msk.bf16.gmra.mxu1 %vm11039_vm1, %v8918_v23  ;;  %8438 = vmatmul.mubr.msk.bf16.gmra.mxu0 %vm11039_vm1, %v8918_v23 }
 0x2b7   : > { %2349 = vmatprep.mubr.bf16.mxu1 %v8988_v0  ;;  %2400 = vmatprep.mubr.bf16.mxu0 %v8988_v0 }
 0x2be   : > { %8445 = vmatmul.mubr.msk.bf16.vlgmr.msra.gmra.mxu1 %vm11039_vm1, %v8919_v26  ;;  %8448 = vmatmul.mubr.msk.bf16.vlgmr.msra.gmra.mxu0 %vm11039_vm1, %v8919_v26  ;;  %v8924_v26 = vld [vmem:[%s10959_s4 + $0xa4] ss:$0 sps:$4 sm:$0xff]  }
 0x2bf   : > { %2484 = vmatpush1.bf16.msra.mxu1 %v2458_v30  ;;  %2535 = vmatpush1.bf16.msra.mxu0 %v2464_v31 }
 0x2c0   : > { %8466 = vmatprep.subr.msk.bf16.mxu1 %vm11040_vm0, %v2601_v33  ;;  %8469 = vmatprep.subr.msk.bf16.mxu0 %vm11040_vm0, %v2598_v32  ;;  %v9781_v32 = vpop.permute.xlu0 %3225 }
 0x2c1   : > { %2359 = vmatprep.mubr.bf16.mxu1 %v8988_v0  ;;  %2409 = vmatprep.mubr.bf16.mxu0 %v8988_v0 }
 0x2c6   : > { %8446 = vmatmul.mubr.msk.bf16.gmra.mxu1 %vm11039_vm1, %v8920_v35  ;;  %8449 = vmatmul.mubr.msk.bf16.gmra.mxu0 %vm11039_vm1, %v8920_v35 }
 0x2c7   : > { %2501 = vmatprep.mubr.bf16.mxu1 %v8988_v0  ;;  %2552 = vmatprep.mubr.bf16.mxu0 %v8988_v0 }
 0x2ce   : > { %v716_v43 = vpop.f32.mrf.mxu1  ;;  %v767_v44 = vpop.f32.mrf.mxu0  ;;  %8456 = vmatmul.mubr.msk.bf16.vlgmr.msra.gmra.mxu1 %vm11039_vm1, %v8921_v39  ;;  %8459 = vmatmul.mubr.msk.bf16.vlgmr.msra.gmra.mxu0 %vm11039_vm1, %v8921_v39 }
 0x2cf   : > { %2636 = vmatpush1.bf16.msra.mxu1 %v2610_v45  ;;  %2687 = vmatpush1.bf16.msra.mxu0 %v2616_v46 }
 0x2d0   : > { %8477 = vmatprep.subr.msk.bf16.mxu1 %vm11040_vm0, %v2753_v48  ;;  %8480 = vmatprep.subr.msk.bf16.mxu0 %vm11040_vm0, %v2750_v42  ;;  %v718_v49 = vpop.f32.mrf.mxu1  ;;  %v769_v50 = vpop.f32.mrf.mxu0 }
 0x2d1   : > { %2511 = vmatprep.mubr.bf16.mxu1 %v8988_v0  ;;  %2561 = vmatprep.mubr.bf16.mxu0 %v8988_v0 }
 0x2d2   : > { %v720_v51 = vpop.f32.mrf.mxu1  ;;  %v771_v53 = vpop.f32.mrf.mxu0 }
 0x2d4   : > { %v722_v56 = vpop.f32.mrf.mxu1  ;;  %v773_v57 = vpop.f32.mrf.mxu0 }
 0x2d6   : > { %v726_v59 = vpop.f32.mrf.mxu1  ;;  %v776_v60 = vpop.f32.mrf.mxu0  ;;  %8457 = vmatmul.mubr.msk.bf16.gmra.mxu1 %vm11039_vm1, %v8922_v54  ;;  %8460 = vmatmul.mubr.msk.bf16.gmra.mxu0 %vm11039_vm1, %v8922_v54 }
 0x2d7   : > { %2653 = vmatprep.mubr.bf16.mxu1 %v8988_v0  ;;  %2704 = vmatprep.mubr.bf16.mxu0 %v8988_v0 }
 0x2d8   : > { %v728_v61 = vpop.f32.mrf.mxu1  ;;  %v778_v62 = vpop.f32.mrf.mxu0 }
 0x2da   : > { %v730_v1 = vpop.f32.mrf.mxu1  ;;  %v779_v2 = vpop.f32.mrf.mxu0 }
 0x2dc   : > { %v731_v7 = vpop.f32.mrf.mxu1  ;;  %v780_v8 = vpop.f32.mrf.mxu0 }
 0x2dd   : > { %v8926_v7 = vld [vmem:[%s10959_s4 + $0xb0] ss:$0 sps:$4 sm:$0xff]  }
 0x2de   : > { %v842_v9 = vpop.f32.mrf.mxu1  ;;  %v893_v10 = vpop.f32.mrf.mxu0  ;;  %8467 = vmatmul.mubr.msk.bf16.vlgmr.msra.gmra.mxu1 %vm11039_vm1, %v8923_v3  ;;  %8470 = vmatmul.mubr.msk.bf16.vlgmr.msra.gmra.mxu0 %vm11039_vm1, %v8923_v3 }
 0x2df   : > { %v843_v15 = vadd.f32 %v842_v9, %v716_v43  ;;  %v894_v17 = vadd.f32 %v893_v10, %v767_v44  ;;  %2788 = vmatpush1.bf16.msra.mxu1 %v2762_v11  ;;  %2839 = vmatpush1.bf16.msra.mxu0 %v2768_v12  ;;  %v3073_v44 = vpop.permute.xlu1 %3072 }
 0x2e0   : > { %8493 = vmatprep.subr.msk.bf16.mxu1 %vm11040_vm0, %v2923_v13  ;;  %8496 = vmatprep.subr.msk.bf16.mxu0 %vm11040_vm0, %v2925_v18  ;;  %v844_v19 = vpop.f32.mrf.mxu1  ;;  %v895_v20 = vpop.f32.mrf.mxu0 }
 0x2e1   : > { %v845_v22 = vadd.f32 %v844_v19, %v718_v49  ;;  %v896_v23 = vadd.f32 %v895_v20, %v769_v50  ;;  %2663 = vmatprep.mubr.bf16.mxu1 %v8988_v0  ;;  %2713 = vmatprep.mubr.bf16.mxu0 %v8988_v0  ;;  %v8925_v49 = vld [vmem:[%s10959_s4 + $0xa8] sm:$0xff]   ;;  %v2922_v50 = vsel %vm11039_vm1, %v9715_v36, %v9719_v37 }
 0x2e2   : > { %v846_v24 = vpop.f32.mrf.mxu1  ;;  %v897_v25 = vpop.f32.mrf.mxu0  ;;  %v3078_v36 = vsel %vm11026_vm6, %v9746_v55, %v9748_v58 }
 0x2e3   : > { %v847_v28 = vadd.f32 %v846_v24, %v720_v51  ;;  %v898_v29 = vadd.f32 %v897_v25, %v771_v53  ;;  %v2924_v51 = vsel %vm11039_vm1, %v9723_v38, %v2918_v63  ;;  %v3075_v53 = vpop.permute.xlu0 %3074  ;;  %v9802_v37 = vpop.permute.xlu1 %3388 }
 0x2e4   : > { %v848_v30 = vpop.f32.mrf.mxu1  ;;  %v899_v31 = vpop.f32.mrf.mxu0  ;;  %v3080_v38 = vsel %vm11026_vm6, %v3073_v44, %v3075_v53  ;;  %v8928_v53 = vld [vmem:[%s10959_s4 + $0xbc] ss:$0 sps:$4 sm:$0xff]  }
 0x2e5   : > { %v849_v33 = vadd.f32 %v848_v30, %v722_v56  ;;  %v3079_v30 = vsel %vm11026_vm6, %v9748_v58, %v3073_v44 }
 0x2e6   : > { %v852_v35 = vpop.f32.mrf.mxu1  ;;  %v902_v39 = vpop.f32.mrf.mxu0  ;;  %8468 = vmatmul.mubr.msk.bf16.gmra.mxu1 %vm11039_vm1, %v8924_v26  ;;  %8471 = vmatmul.mubr.msk.bf16.gmra.mxu0 %vm11039_vm1, %v8924_v26 }
 0x2e7   : > { %v853_v40 = vadd.f32 %v852_v35, %v726_v59  ;;  %v903_v41 = vadd.f32 %v902_v39, %v776_v60  ;;  %2805 = vmatprep.mubr.bf16.mxu1 %v8988_v0  ;;  %2856 = vmatprep.mubr.bf16.mxu0 %v8988_v0  ;;  %v2933_v60 = vsel %vm11040_vm0, %v2922_v50, 0  ;;  %v9812_v12 = vpop.permute.xlu1 %3392  ;;  %v9814_v13 = vpop.permute.xlu0 %3390 }
 0x2e8   : > { %v854_v42 = vpop.f32.mrf.mxu1  ;;  %v904_v43 = vpop.f32.mrf.mxu0 }
 0x2e9   : > { %v855_v45 = vadd.f32 %v854_v42, %v728_v61  ;;  %v2939_v61 = vsel %vm11040_vm0, %v2924_v51, 0  ;;  %v3094_v43 = vsel %vm11040_vm0, %v3079_v30, 0 }
 0x2ea   : > { %v856_v46 = vpop.f32.mrf.mxu1  ;;  %v905_v48 = vpop.f32.mrf.mxu0 }
 0x2eb   : > { %v3230_v31 = vpop.permute.xlu1 %3229 }
 0x2ec   : > { %v857_v54 = vpop.f32.mrf.mxu1  ;;  %v906_v56 = vpop.f32.mrf.mxu0 }
 0x2ee   : > { %v984_v57 = vpop.f32.mrf.mxu1  ;;  %v1035_v59 = vpop.f32.mrf.mxu0  ;;  %8478 = vmatmul.mubr.msk.bf16.vlgmr.msra.gmra.mxu1 %vm11039_vm1, %v8925_v49  ;;  %8481 = vmatmul.mubr.msk.bf16.vlgmr.msra.gmra.mxu0 %vm11039_vm1, %v8925_v49 }
 0x2ef   : > { %v1050_v62 = vadd.f32 %v984_v57, %v843_v15  ;;  %v1052_v63 = vadd.f32 %v1035_v59, %v894_v17  ;;  %2959 = vmatpush1.bf16.msra.mxu1 %v2933_v60  ;;  %3010 = vmatpush1.bf16.msra.mxu0 %v2939_v61 }
 0x2f0   : > { %8504 = vmatprep.subr.msk.bf16.mxu1 %vm11040_vm0, %v3078_v36  ;;  %8507 = vmatprep.subr.msk.bf16.mxu0 %vm11040_vm0, %v3080_v38  ;;  %v986_v1 = vpop.f32.mrf.mxu1  ;;  %v1037_v2 = vpop.f32.mrf.mxu0 }
 0x2f1   : > { %v1051_v3 = vadd.f32 %v986_v1, %v845_v22  ;;  %v1053_v4 = vadd.f32 %v1037_v2, %v896_v23  ;;  %2815 = vmatprep.mubr.bf16.mxu1 %v8988_v0  ;;  %2865 = vmatprep.mubr.bf16.mxu0 %v8988_v0  ;;  %v9847_v2 = vpop.permute.xlu1 %3542 }
 0x2f2   : > { %v988_v5 = vpop.f32.mrf.mxu1  ;;  %v1039_v6 = vpop.f32.mrf.mxu0 }
 0x2f3   : > { %v1054_v8 = vadd.f32 %v988_v5, %v847_v28  ;;  %v1056_v9 = vadd.f32 %v1039_v6, %v898_v29  ;;  %v8927_v28 = vld [vmem:[%s10959_s4 + $0xb4] sm:$0xff]   ;;  %v3077_v29 = vsel %vm11026_vm6, %v9734_v47, %v9746_v55  ;;  %v3233_v47 = vsel %vm11027_vm2, %v9779_v27, %v9781_v32  ;;  %v8929_v6 = vld [vmem:[%s10959_s4 + $0xc0] sm:$0xff]  }
 0x2f4   : > { %v990_v10 = vpop.f32.mrf.mxu1  ;;  %v1041_v11 = vpop.f32.mrf.mxu0  ;;  %v3088_v42 = vsel %vm11040_vm0, %v3077_v29, 0  ;;  %vm11028_vm6 = vcmask 457728  }
 0x2f5   : > { %v1055_v15 = vadd.f32 %v990_v10, %v849_v33  ;;  %v3228_v33 = vpop.permute.xlu0 %3227 }
 0x2f6   : > { %v994_v17 = vpop.f32.mrf.mxu1  ;;  %v1044_v18 = vpop.f32.mrf.mxu0  ;;  %8479 = vmatmul.mubr.msk.bf16.gmra.mxu1 %vm11039_vm1, %v8926_v7  ;;  %8482 = vmatmul.mubr.msk.bf16.gmra.mxu0 %vm11039_vm1, %v8926_v7  ;;  %v3235_v44 = vsel %vm11027_vm2, %v3228_v33, %v3230_v31  ;;  %v3232_v7 = vsel %vm11027_vm2, %v9769_v14, %v9779_v27  ;;  %v3398_v14 = vsel %vm11028_vm6, %v9814_v13, %v9812_v12 }
 0x2f7   : > { %v1057_v19 = vadd.f32 %v994_v17, %v853_v40  ;;  %v1059_v20 = vadd.f32 %v1044_v18, %v903_v41  ;;  %2976 = vmatprep.mubr.bf16.mxu1 %v8988_v0  ;;  %3027 = vmatprep.mubr.bf16.mxu0 %v8988_v0  ;;  %v3243_v11 = vsel %vm11040_vm0, %v3232_v7, 0 }
 0x2f8   : > { %v996_v22 = vpop.f32.mrf.mxu1  ;;  %v1046_v23 = vpop.f32.mrf.mxu0 }
 0x2f9   : > { %v1058_v24 = vadd.f32 %v996_v22, %v855_v45 }
 0x2fa   : > { %v998_v25 = vpop.f32.mrf.mxu1  ;;  %v1047_v26 = vpop.f32.mrf.mxu0 }
 0x2fc   : > { %v999_v35 = vpop.f32.mrf.mxu1  ;;  %v1048_v39 = vpop.f32.mrf.mxu0 }
 0x2fd   : > { %v9871_v35 = vpop.permute.xlu0 %3540 }
 0x2fe   : > { %v1136_v40 = vpop.f32.mrf.mxu1  ;;  %v1187_v41 = vpop.f32.mrf.mxu0  ;;  %8494 = vmatmul.mubr.msk.bf16.vlgmr.msra.gmra.mxu1 %vm11039_vm1, %v8927_v28  ;;  %8497 = vmatmul.mubr.msk.bf16.vlgmr.msra.gmra.mxu0 %vm11039_vm1, %v8927_v28  ;;  %v8930_v28 = vld [vmem:[%s10959_s4 + $0xc8] ss:$0 sps:$4 sm:$0xff]  }
 0x2ff   : > { %v1202_v55 = vadd.f32 %v1136_v40, %v1050_v62  ;;  %v1204_v58 = vadd.f32 %v1187_v41, %v1052_v63  ;;  %3114 = vmatpush1.bf16.msra.mxu1 %v3088_v42  ;;  %3165 = vmatpush1.bf16.msra.mxu0 %v3094_v43 }
 0x300   : > { %8515 = vmatprep.subr.msk.bf16.mxu1 %vm11040_vm0, %v3233_v47  ;;  %8518 = vmatprep.subr.msk.bf16.mxu0 %vm11040_vm0, %v3235_v44  ;;  %v1138_v45 = vpop.f32.mrf.mxu1  ;;  %v1189_v46 = vpop.f32.mrf.mxu0 }
 0x301   : > { %v1203_v48 = vadd.f32 %v1138_v45, %v1051_v3  ;;  %v1205_v49 = vadd.f32 %v1189_v46, %v1053_v4  ;;  %2986 = vmatprep.mubr.bf16.mxu1 %v8988_v0  ;;  %3036 = vmatprep.mubr.bf16.mxu0 %v8988_v0 }
 0x302   : > { %v1140_v50 = vpop.f32.mrf.mxu1  ;;  %v1191_v51 = vpop.f32.mrf.mxu0 }
 0x303   : > { %v1206_v54 = vadd.f32 %v1140_v50, %v1054_v8  ;;  %v1208_v56 = vadd.f32 %v1191_v51, %v1056_v9  ;;  %v3234_v8 = vsel %vm11027_vm2, %v9781_v32, %v3228_v33  ;;  %v3545_v51 = vpop.permute.xlu0 %3544  ;;  %vm11029_vm2 = vcmask 449536  }
 0x304   : > { %v1142_v57 = vpop.f32.mrf.mxu1  ;;  %v1193_v59 = vpop.f32.mrf.mxu0  ;;  %v3249_v18 = vsel %vm11040_vm0, %v3234_v8, 0 }
 0x305   : > { %v1207_v60 = vadd.f32 %v1142_v57, %v1055_v15 }
 0x306   : > { %v1146_v61 = vpop.f32.mrf.mxu1  ;;  %v1196_v36 = vpop.f32.mrf.mxu0  ;;  %8495 = vmatmul.mubr.msk.bf16.gmra.mxu1 %vm11039_vm1, %v8928_v53  ;;  %8498 = vmatmul.mubr.msk.bf16.gmra.mxu0 %vm11039_vm1, %v8928_v53 }
 0x307   : > { %v1209_v38 = vadd.f32 %v1146_v61, %v1057_v19  ;;  %v1211_v62 = vadd.f32 %v1196_v36, %v1059_v20  ;;  %3131 = vmatprep.mubr.bf16.mxu1 %v8988_v0  ;;  %3182 = vmatprep.mubr.bf16.mxu0 %v8988_v0  ;;  %v3395_v19 = vpop.permute.xlu1 %3394 }
 0x308   : > { %v1148_v63 = vpop.f32.mrf.mxu1  ;;  %v1198_v1 = vpop.f32.mrf.mxu0  ;;  %v3399_v50 = vsel %vm11028_vm6, %v9812_v12, %v3395_v19  ;;  %v3550_v12 = vsel %vm11029_vm2, %v9847_v2, %v3545_v51 }
 0x309   : > { %v1210_v3 = vadd.f32 %v1148_v63, %v1058_v24 }
 0x30a   : > { %v1150_v4 = vpop.f32.mrf.mxu1  ;;  %v1199_v5 = vpop.f32.mrf.mxu0 }
 0x30b   : > { %v8932_v4 = vld [vmem:[%s10959_s4 + $0xd4] ss:$0 sps:$4 sm:$0xff]  }
 0x30c   : > { %v1151_v9 = vpop.f32.mrf.mxu1  ;;  %v1200_v10 = vpop.f32.mrf.mxu0 }
 0x30d   : > { %v9900_v9 = vpop.permute.xlu0 %3692 }
 0x30e   : > { %v1288_v15 = vpop.f32.mrf.mxu1  ;;  %v1339_v17 = vpop.f32.mrf.mxu0  ;;  %8505 = vmatmul.mubr.msk.bf16.vlgmr.msra.gmra.mxu1 %vm11039_vm1, %v8929_v6  ;;  %8508 = vmatmul.mubr.msk.bf16.vlgmr.msra.gmra.mxu0 %vm11039_vm1, %v8929_v6 }
 0x30f   : > { %v1354_v20 = vadd.f32 %v1288_v15, %v1202_v55  ;;  %v1356_v22 = vadd.f32 %v1339_v17, %v1204_v58  ;;  %3269 = vmatpush1.bf16.msra.mxu1 %v3243_v11  ;;  %3320 = vmatpush1.bf16.msra.mxu0 %v3249_v18  ;;  %v9877_v58 = vpop.permute.xlu1 %3694 }
 0x310   : > { %8530 = vmatprep.subr.msk.bf16.mxu1 %vm11040_vm0, %v3398_v14  ;;  %8533 = vmatprep.subr.msk.bf16.mxu0 %vm11040_vm0, %v3395_v19  ;;  %v1290_v27 = vpop.f32.mrf.mxu1  ;;  %v1341_v32 = vpop.f32.mrf.mxu0 }
 0x311   : > { %v1355_v23 = vadd.f32 %v1290_v27, %v1203_v48  ;;  %v1357_v24 = vadd.f32 %v1341_v32, %v1205_v49  ;;  %3141 = vmatprep.mubr.bf16.mxu1 %v8988_v0  ;;  %3191 = vmatprep.mubr.bf16.mxu0 %v8988_v0  ;;  %v8931_v48 = vld [vmem:[%s10959_s4 + $0xcc] sm:$0xff]   ;;  %v3397_v49 = vsel %vm11028_vm6, %v9802_v37, %v9814_v13  ;;  %vm11030_vm6 = vcmask 441344  }
 0x312   : > { %v1292_v25 = vpop.f32.mrf.mxu1  ;;  %v1343_v26 = vpop.f32.mrf.mxu0  ;;  %v3407_v59 = vsel %vm11040_vm0, %v3397_v49, 0 }
 0x313   : > { %v1358_v29 = vadd.f32 %v1292_v25, %v1206_v54  ;;  %v1360_v30 = vadd.f32 %v1343_v26, %v1208_v56  ;;  %v3547_v61 = vpop.permute.xlu1 %3546  ;;  %v3697_v26 = vpop.permute.xlu0 %3696 }
 0x314   : > { %v1294_v31 = vpop.f32.mrf.mxu1  ;;  %v1345_v33 = vpop.f32.mrf.mxu0  ;;  %v3551_v25 = vsel %vm11029_vm2, %v3545_v51, %v3547_v61 }
 0x315   : > { %v1359_v39 = vadd.f32 %v1294_v31, %v1207_v60  ;;  %v3413_v60 = vsel %vm11040_vm0, %v3399_v50, 0 }
 0x316   : > { %v1298_v40 = vpop.f32.mrf.mxu1  ;;  %v1348_v41 = vpop.f32.mrf.mxu0  ;;  %8506 = vmatmul.mubr.msk.bf16.gmra.mxu1 %vm11039_vm1, %v8930_v28  ;;  %8509 = vmatmul.mubr.msk.bf16.gmra.mxu0 %vm11039_vm1, %v8930_v28 }
 0x317   : > { %v1361_v42 = vadd.f32 %v1298_v40, %v1209_v38  ;;  %v1363_v43 = vadd.f32 %v1348_v41, %v1211_v62  ;;  %3286 = vmatprep.mubr.bf16.mxu1 %v8988_v0  ;;  %3337 = vmatprep.mubr.bf16.mxu0 %v8988_v0 }
 0x318   : > { %v1300_v47 = vpop.f32.mrf.mxu1  ;;  %v1350_v55 = vpop.f32.mrf.mxu0 }
 0x319   : > { %v1362_v44 = vadd.f32 %v1300_v47, %v1210_v3 }
 0x31a   : > { %v1302_v45 = vpop.f32.mrf.mxu1  ;;  %v1351_v46 = vpop.f32.mrf.mxu0 }
 0x31b   : > { %v8934_v46 = vld [vmem:[%s10959_s4 + $0xe0] ss:$0 sps:$4 sm:$0xff]  }
 0x31c   : > { %v1303_v53 = vpop.f32.mrf.mxu1  ;;  %v1352_v54 = vpop.f32.mrf.mxu0 }
 0x31d   : > { %v9928_v53 = vpop.permute.xlu0 %3844 }
 0x31e   : > { %v1440_v56 = vpop.f32.mrf.mxu1  ;;  %v1491_v57 = vpop.f32.mrf.mxu0  ;;  %8516 = vmatmul.mubr.msk.bf16.vlgmr.msra.gmra.mxu1 %vm11039_vm1, %v8931_v48  ;;  %8519 = vmatmul.mubr.msk.bf16.vlgmr.msra.gmra.mxu0 %vm11039_vm1, %v8931_v48 }
 0x31f   : > { %v1506_v36 = vadd.f32 %v1440_v56, %v1354_v20  ;;  %v1508_v37 = vadd.f32 %v1491_v57, %v1356_v22  ;;  %3433 = vmatpush1.bf16.msra.mxu1 %v3407_v59  ;;  %3484 = vmatpush1.bf16.msra.mxu0 %v3413_v60  ;;  %v9906_v22 = vpop.permute.xlu1 %3846 }
 0x320   : > { %8541 = vmatprep.subr.msk.bf16.mxu1 %vm11040_vm0, %v3550_v12  ;;  %8544 = vmatprep.subr.msk.bf16.mxu0 %vm11040_vm0, %v3547_v61  ;;  %v1442_v13 = vpop.f32.mrf.mxu1  ;;  %v1493_v38 = vpop.f32.mrf.mxu0 }
 0x321   : > { %v1507_v62 = vadd.f32 %v1442_v13, %v1355_v23  ;;  %v1509_v63 = vadd.f32 %v1493_v38, %v1357_v24  ;;  %3296 = vmatprep.mubr.bf16.mxu1 %v8988_v0  ;;  %3346 = vmatprep.mubr.bf16.mxu0 %v8988_v0  ;;  %v8933_v23 = vld [vmem:[%s10959_s4 + $0xd8] sm:$0xff]   ;;  %v3549_v24 = vsel %vm11029_vm2, %v9871_v35, %v9847_v2  ;;  %vm11031_vm2 = vcmask 375808  }
 0x322   : > { %v1444_v1 = vpop.f32.mrf.mxu1  ;;  %v1495_v3 = vpop.f32.mrf.mxu0  ;;  %v3702_v2 = vsel %vm11030_vm6, %v9877_v58, %v3697_v26 }
 0x323   : > { %v1510_v5 = vadd.f32 %v1444_v1, %v1358_v29  ;;  %v1512_v6 = vadd.f32 %v1495_v3, %v1360_v30  ;;  %v3559_v30 = vsel %vm11040_vm0, %v3549_v24, 0  ;;  %v3699_v40 = vpop.permute.xlu1 %3698  ;;  %v3849_v3 = vpop.permute.xlu0 %3848 }
 0x324   : > { %v1446_v7 = vpop.f32.mrf.mxu1  ;;  %v1497_v8 = vpop.f32.mrf.mxu0  ;;  %v3703_v1 = vsel %vm11030_vm6, %v3697_v26, %v3699_v40 }
 0x325   : > { %v1511_v10 = vadd.f32 %v1446_v7, %v1359_v39  ;;  %v3565_v39 = vsel %vm11040_vm0, %v3551_v25, 0 }
 0x326   : > { %v1450_v11 = vpop.f32.mrf.mxu1  ;;  %v1500_v15 = vpop.f32.mrf.mxu0  ;;  %8517 = vmatmul.mubr.msk.bf16.gmra.mxu1 %vm11039_vm1, %v8932_v4  ;;  %8520 = vmatmul.mubr.msk.bf16.gmra.mxu0 %vm11039_vm1, %v8932_v4 }
 0x327   : > { %v1513_v17 = vadd.f32 %v1450_v11, %v1361_v42  ;;  %v1515_v18 = vadd.f32 %v1500_v15, %v1363_v43  ;;  %3450 = vmatprep.mubr.bf16.mxu1 %v8988_v0  ;;  %3501 = vmatprep.mubr.bf16.mxu0 %v8988_v0 }
 0x328   : > { %v1452_v19 = vpop.f32.mrf.mxu1  ;;  %v1502_v20 = vpop.f32.mrf.mxu0 }
 0x329   : > { %v1514_v14 = vadd.f32 %v1452_v19, %v1362_v44 }
 0x32a   : > { %v1454_v27 = vpop.f32.mrf.mxu1  ;;  %v1503_v32 = vpop.f32.mrf.mxu0 }
 0x32b   : > { %v8936_v32 = vld [vmem:[%s10959_s4 + $0xec] ss:$0 sps:$4 sm:$0xff]  }
 0x32c   : > { %v1455_v28 = vpop.f32.mrf.mxu1  ;;  %v1504_v29 = vpop.f32.mrf.mxu0 }
 0x32d   : > { %v9956_v28 = vpop.permute.xlu0 %3996 }
 0x32e   : > { %v1592_v31 = vpop.f32.mrf.mxu1  ;;  %v1643_v33 = vpop.f32.mrf.mxu0  ;;  %8531 = vmatmul.mubr.msk.bf16.vlgmr.msra.gmra.mxu1 %vm11039_vm1, %v8933_v23  ;;  %8534 = vmatmul.mubr.msk.bf16.vlgmr.msra.gmra.mxu0 %vm11039_vm1, %v8933_v23 }
 0x32f   : > { %v1658_v41 = vadd.f32 %v1592_v31, %v1506_v36  ;;  %v1660_v42 = vadd.f32 %v1643_v33, %v1508_v37  ;;  %3585 = vmatpush1.bf16.msra.mxu1 %v3559_v30  ;;  %3636 = vmatpush1.bf16.msra.mxu0 %v3565_v39  ;;  %v9934_v37 = vpop.permute.xlu1 %3998 }
 0x330   : > { %8552 = vmatprep.subr.msk.bf16.mxu1 %vm11040_vm0, %v3702_v2  ;;  %8555 = vmatprep.subr.msk.bf16.mxu0 %vm11040_vm0, %v3699_v40  ;;  %v1594_v35 = vpop.f32.mrf.mxu1  ;;  %v1645_v43 = vpop.f32.mrf.mxu0 }
 0x331   : > { %v1659_v47 = vadd.f32 %v1594_v35, %v1507_v62  ;;  %v1661_v55 = vadd.f32 %v1645_v43, %v1509_v63  ;;  %3460 = vmatprep.mubr.bf16.mxu1 %v8988_v0  ;;  %3510 = vmatprep.mubr.bf16.mxu0 %v8988_v0  ;;  %v8935_v62 = vld [vmem:[%s10959_s4 + $0xe4] sm:$0xff]   ;;  %v3701_v63 = vsel %vm11030_vm6, %v9900_v9, %v9877_v58  ;;  %vm11032_vm6 = vcmask 367616  }
 0x332   : > { %v1596_v44 = vpop.f32.mrf.mxu1  ;;  %v1647_v45 = vpop.f32.mrf.mxu0  ;;  %v3854_v58 = vsel %vm11031_vm2, %v9906_v22, %v3849_v3 }
 0x333   : > { %v1662_v48 = vadd.f32 %v1596_v44, %v1510_v5  ;;  %v1664_v49 = vadd.f32 %v1647_v45, %v1512_v6  ;;  %v3711_v6 = vsel %vm11040_vm0, %v3701_v63, 0  ;;  %v3851_v11 = vpop.permute.xlu1 %3850  ;;  %v4001_v45 = vpop.permute.xlu0 %4000 }
 0x334   : > { %v1598_v50 = vpop.f32.mrf.mxu1  ;;  %v1649_v51 = vpop.f32.mrf.mxu0  ;;  %v3855_v44 = vsel %vm11031_vm2, %v3849_v3, %v3851_v11 }
 0x335   : > { %v1663_v54 = vadd.f32 %v1598_v50, %v1511_v10  ;;  %v3717_v10 = vsel %vm11040_vm0, %v3703_v1, 0 }
 0x336   : > { %v1602_v56 = vpop.f32.mrf.mxu1  ;;  %v1652_v57 = vpop.f32.mrf.mxu0  ;;  %8532 = vmatmul.mubr.msk.bf16.gmra.mxu1 %vm11039_vm1, %v8934_v46  ;;  %8535 = vmatmul.mubr.msk.bf16.gmra.mxu0 %vm11039_vm1, %v8934_v46 }
 0x337   : > { %v1665_v59 = vadd.f32 %v1602_v56, %v1513_v17  ;;  %v1667_v60 = vadd.f32 %v1652_v57, %v1515_v18  ;;  %3602 = vmatprep.mubr.bf16.mxu1 %v8988_v0  ;;  %3653 = vmatprep.mubr.bf16.mxu0 %v8988_v0 }
 0x338   : > { %v1604_v61 = vpop.f32.mrf.mxu1  ;;  %v1654_v36 = vpop.f32.mrf.mxu0 }
 0x339   : > { %v1666_v12 = vadd.f32 %v1604_v61, %v1514_v14 }
 0x33a   : > { %v1606_v13 = vpop.f32.mrf.mxu1  ;;  %v1655_v38 = vpop.f32.mrf.mxu0 }
 0x33b   : > { %v8938_v38 = vld [vmem:[%s10959_s4 + $0xf8] ss:$0 sps:$4 sm:$0xff]  }
 0x33c   : > { %v1607_v4 = vpop.f32.mrf.mxu1  ;;  %v1656_v5 = vpop.f32.mrf.mxu0 }
 0x33d   : > { %v9984_v4 = vpop.permute.xlu0 %4148 }
 0x33e   : > { %v1744_v7 = vpop.f32.mrf.mxu1  ;;  %v1795_v8 = vpop.f32.mrf.mxu0  ;;  %8542 = vmatmul.mubr.msk.bf16.vlgmr.msra.gmra.mxu1 %vm11039_vm1, %v8935_v62  ;;  %8545 = vmatmul.mubr.msk.bf16.vlgmr.msra.gmra.mxu0 %vm11039_vm1, %v8935_v62 }
 0x33f   : > { %v1810_v15 = vadd.f32 %v1744_v7, %v1658_v41  ;;  %v1812_v17 = vadd.f32 %v1795_v8, %v1660_v42  ;;  %3737 = vmatpush1.bf16.msra.mxu1 %v3711_v6  ;;  %3788 = vmatpush1.bf16.msra.mxu0 %v3717_v10  ;;  %v9962_v42 = vpop.permute.xlu1 %4150 }
 0x340   : > { %8563 = vmatprep.subr.msk.bf16.mxu1 %vm11040_vm0, %v3854_v58  ;;  %8566 = vmatprep.subr.msk.bf16.mxu0 %vm11040_vm0, %v3851_v11  ;;  %v1746_v9 = vpop.f32.mrf.mxu1  ;;  %v1797_v18 = vpop.f32.mrf.mxu0 }
 0x341   : > { %v1811_v19 = vadd.f32 %v1746_v9, %v1659_v47  ;;  %v1813_v20 = vadd.f32 %v1797_v18, %v1661_v55  ;;  %3612 = vmatprep.mubr.bf16.mxu1 %v8988_v0  ;;  %3662 = vmatprep.mubr.bf16.mxu0 %v8988_v0  ;;  %v8937_v47 = vld [vmem:[%s10959_s4 + $0xf0] sm:$0xff]   ;;  %v3853_v55 = vsel %vm11031_vm2, %v9928_v53, %v9906_v22  ;;  %vm11033_vm2 = vcmask 359424  }
 0x342   : > { %v1748_v14 = vpop.f32.mrf.mxu1  ;;  %v1799_v27 = vpop.f32.mrf.mxu0  ;;  %v4006_v22 = vsel %vm11032_vm6, %v9934_v37, %v4001_v45 }
 0x343   : > { %v1814_v23 = vadd.f32 %v1748_v14, %v1662_v48  ;;  %v1816_v24 = vadd.f32 %v1799_v27, %v1664_v49  ;;  %v3863_v49 = vsel %vm11040_vm0, %v3853_v55, 0  ;;  %v4003_v56 = vpop.permute.xlu1 %4002  ;;  %v4153_v27 = vpop.permute.xlu0 %4152 }
 0x344   : > { %v1750_v25 = vpop.f32.mrf.mxu1  ;;  %v1801_v26 = vpop.f32.mrf.mxu0  ;;  %v4007_v14 = vsel %vm11032_vm6, %v4001_v45, %v4003_v56 }
 0x345   : > { %v1815_v29 = vadd.f32 %v1750_v25, %v1663_v54  ;;  %v3869_v54 = vsel %vm11040_vm0, %v3855_v44, 0 }
 0x346   : > { %v1754_v30 = vpop.f32.mrf.mxu1  ;;  %v1804_v31 = vpop.f32.mrf.mxu0  ;;  %8543 = vmatmul.mubr.msk.bf16.gmra.mxu1 %vm11039_vm1, %v8936_v32  ;;  %8546 = vmatmul.mubr.msk.bf16.gmra.mxu0 %vm11039_vm1, %v8936_v32 }
 0x347   : > { %v1817_v33 = vadd.f32 %v1754_v30, %v1665_v59  ;;  %v1819_v39 = vadd.f32 %v1804_v31, %v1667_v60  ;;  %3754 = vmatprep.mubr.bf16.mxu1 %v8988_v0  ;;  %3805 = vmatprep.mubr.bf16.mxu0 %v8988_v0 }
 0x348   : > { %v1756_v40 = vpop.f32.mrf.mxu1  ;;  %v1806_v41 = vpop.f32.mrf.mxu0 }
 0x349   : > { %v1818_v2 = vadd.f32 %v1756_v40, %v1666_v12 }
 0x34a   : > { %v1758_v35 = vpop.f32.mrf.mxu1  ;;  %v1807_v43 = vpop.f32.mrf.mxu0 }
 0x34b   : > { %v8940_v43 = vld [vmem:[%s10959_s4 + $0x104] ss:$0 sps:$4 sm:$0xff]  }
 0x34c   : > { %v1759_v46 = vpop.f32.mrf.mxu1  ;;  %v1808_v48 = vpop.f32.mrf.mxu0 }
 0x34d   : > { %v10012_v46 = vpop.permute.xlu0 %4300 }
 0x34e   : > { %v1896_v50 = vpop.f32.mrf.mxu1  ;;  %v1947_v51 = vpop.f32.mrf.mxu0  ;;  %8553 = vmatmul.mubr.msk.bf16.vlgmr.msra.gmra.mxu1 %vm11039_vm1, %v8937_v47  ;;  %8556 = vmatmul.mubr.msk.bf16.vlgmr.msra.gmra.mxu0 %vm11039_vm1, %v8937_v47 }
 0x34f   : > { %v1962_v57 = vadd.f32 %v1896_v50, %v1810_v15  ;;  %v1964_v59 = vadd.f32 %v1947_v51, %v1812_v17  ;;  %3889 = vmatpush1.bf16.msra.mxu1 %v3863_v49  ;;  %3940 = vmatpush1.bf16.msra.mxu0 %v3869_v54  ;;  %v9990_v17 = vpop.permute.xlu1 %4302 }
 0x350   : > { %8574 = vmatprep.subr.msk.bf16.mxu1 %vm11040_vm0, %v4006_v22  ;;  %8577 = vmatprep.subr.msk.bf16.mxu0 %vm11040_vm0, %v4003_v56  ;;  %v1898_v53 = vpop.f32.mrf.mxu1  ;;  %v1949_v60 = vpop.f32.mrf.mxu0 }
 0x351   : > { %v1963_v61 = vadd.f32 %v1898_v53, %v1811_v19  ;;  %v1965_v36 = vadd.f32 %v1949_v60, %v1813_v20  ;;  %3764 = vmatprep.mubr.bf16.mxu1 %v8988_v0  ;;  %3814 = vmatprep.mubr.bf16.mxu0 %v8988_v0  ;;  %v8939_v19 = vld [vmem:[%s10959_s4 + $0xfc] sm:$0xff]   ;;  %v4005_v20 = vsel %vm11032_vm6, %v9956_v28, %v9934_v37  ;;  %vm11034_vm6 = vcmask 293888  }
 0x352   : > { %v1900_v12 = vpop.f32.mrf.mxu1  ;;  %v1951_v13 = vpop.f32.mrf.mxu0  ;;  %v4158_v37 = vsel %vm11033_vm2, %v9962_v42, %v4153_v27 }
 0x353   : > { %v1966_v62 = vadd.f32 %v1900_v12, %v1814_v23  ;;  %v1968_v63 = vadd.f32 %v1951_v13, %v1816_v24  ;;  %v4015_v24 = vsel %vm11040_vm0, %v4005_v20, 0  ;;  %v4155_v30 = vpop.permute.xlu1 %4154  ;;  %v4305_v13 = vpop.permute.xlu0 %4304 }
 0x354   : > { %v1902_v1 = vpop.f32.mrf.mxu1  ;;  %v1953_v3 = vpop.f32.mrf.mxu0  ;;  %v4159_v12 = vsel %vm11033_vm2, %v4153_v27, %v4155_v30 }
 0x355   : > { %v1967_v5 = vadd.f32 %v1902_v1, %v1815_v29  ;;  %v4021_v29 = vsel %vm11040_vm0, %v4007_v14, 0 }
 0x356   : > { %v1906_v6 = vpop.f32.mrf.mxu1  ;;  %v1956_v7 = vpop.f32.mrf.mxu0  ;;  %8554 = vmatmul.mubr.msk.bf16.gmra.mxu1 %vm11039_vm1, %v8938_v38  ;;  %8557 = vmatmul.mubr.msk.bf16.gmra.mxu0 %vm11039_vm1, %v8938_v38 }
 0x357   : > { %v1969_v8 = vadd.f32 %v1906_v6, %v1817_v33  ;;  %v1971_v10 = vadd.f32 %v1956_v7, %v1819_v39  ;;  %3906 = vmatprep.mubr.bf16.mxu1 %v8988_v0  ;;  %3957 = vmatprep.mubr.bf16.mxu0 %v8988_v0 }
 0x358   : > { %v1908_v11 = vpop.f32.mrf.mxu1  ;;  %v1958_v15 = vpop.f32.mrf.mxu0 }
 0x359   : > { %v1970_v58 = vadd.f32 %v1908_v11, %v1818_v2 }
 0x35a   : > { %v1910_v9 = vpop.f32.mrf.mxu1  ;;  %v1959_v18 = vpop.f32.mrf.mxu0 }
 0x35b   : > { %v8942_v18 = vld [vmem:[%s10959_s4 + $0x110] ss:$0 sps:$4 sm:$0xff]  }
 0x35c   : > { %v1911_v32 = vpop.f32.mrf.mxu1  ;;  %v1960_v23 = vpop.f32.mrf.mxu0 }
 0x35d   : > { %v10040_v32 = vpop.permute.xlu0 %4452 }
 0x35e   : > { %v2048_v25 = vpop.f32.mrf.mxu1  ;;  %v2099_v26 = vpop.f32.mrf.mxu0  ;;  %8564 = vmatmul.mubr.msk.bf16.vlgmr.msra.gmra.mxu1 %vm11039_vm1, %v8939_v19  ;;  %8567 = vmatmul.mubr.msk.bf16.vlgmr.msra.gmra.mxu0 %vm11039_vm1, %v8939_v19 }
 0x35f   : > { %v2114_v31 = vadd.f32 %v2048_v25, %v1962_v57  ;;  %v2116_v33 = vadd.f32 %v2099_v26, %v1964_v59  ;;  %4041 = vmatpush1.bf16.msra.mxu1 %v4015_v24  ;;  %4092 = vmatpush1.bf16.msra.mxu0 %v4021_v29  ;;  %v10018_v59 = vpop.permute.xlu1 %4454 }
 0x360   : > { %8585 = vmatprep.subr.msk.bf16.mxu1 %vm11040_vm0, %v4158_v37  ;;  %8588 = vmatprep.subr.msk.bf16.mxu0 %vm11040_vm0, %v4155_v30  ;;  %v2050_v28 = vpop.f32.mrf.mxu1  ;;  %v2101_v39 = vpop.f32.mrf.mxu0 }
 0x361   : > { %v2115_v40 = vadd.f32 %v2050_v28, %v1963_v61  ;;  %v2117_v41 = vadd.f32 %v2101_v39, %v1965_v36  ;;  %3916 = vmatprep.mubr.bf16.mxu1 %v8988_v0  ;;  %3966 = vmatprep.mubr.bf16.mxu0 %v8988_v0  ;;  %v8941_v61 = vld [vmem:[%s10959_s4 + $0x108] sm:$0xff]   ;;  %v4157_v36 = vsel %vm11033_vm2, %v9984_v4, %v9962_v42  ;;  %vm11036_vm2 = vcmask 285696  }
 0x362   : > { %v2052_v2 = vpop.f32.mrf.mxu1  ;;  %v2103_v35 = vpop.f32.mrf.mxu0  ;;  %v4310_v42 = vsel %vm11034_vm6, %v9990_v17, %v4305_v13 }
 0x363   : > { %v2118_v47 = vadd.f32 %v2052_v2, %v1966_v62  ;;  %v2120_v55 = vadd.f32 %v2103_v35, %v1968_v63  ;;  %v4167_v63 = vsel %vm11040_vm0, %v4157_v36, 0  ;;  %v4307_v6 = vpop.permute.xlu1 %4306  ;;  %v4457_v35 = vpop.permute.xlu0 %4456 }
 0x364   : > { %v2054_v44 = vpop.f32.mrf.mxu1  ;;  %v2105_v45 = vpop.f32.mrf.mxu0  ;;  %v4311_v2 = vsel %vm11034_vm6, %v4305_v13, %v4307_v6 }
 0x365   : > { %v2119_v48 = vadd.f32 %v2054_v44, %v1967_v5  ;;  %v4173_v5 = vsel %vm11040_vm0, %v4159_v12, 0 }
 0x366   : > { %v2058_v49 = vpop.f32.mrf.mxu1  ;;  %v2108_v50 = vpop.f32.mrf.mxu0  ;;  %8565 = vmatmul.mubr.msk.bf16.gmra.mxu1 %vm11039_vm1, %v8940_v43  ;;  %8568 = vmatmul.mubr.msk.bf16.gmra.mxu0 %vm11039_vm1, %v8940_v43 }
 0x367   : > { %v2121_v51 = vadd.f32 %v2058_v49, %v1969_v8  ;;  %v2123_v54 = vadd.f32 %v2108_v50, %v1971_v10  ;;  %4058 = vmatprep.mubr.bf16.mxu1 %v8988_v0  ;;  %4109 = vmatprep.mubr.bf16.mxu0 %v8988_v0 }
 0x368   : > { %v2060_v56 = vpop.f32.mrf.mxu1  ;;  %v2110_v57 = vpop.f32.mrf.mxu0 }
 0x369   : > { %v2122_v22 = vadd.f32 %v2060_v56, %v1970_v58 }
 0x36a   : > { %v2062_v53 = vpop.f32.mrf.mxu1  ;;  %v2111_v60 = vpop.f32.mrf.mxu0 }
 0x36b   : > { %v8944_v60 = vld [vmem:[%s10959_s4 + $0x11c] ss:$0 sps:$4 sm:$0xff]  }
 0x36c   : > { %v2063_v38 = vpop.f32.mrf.mxu1  ;;  %v2112_v62 = vpop.f32.mrf.mxu0 }
 0x36e   : > { %v2199_v1 = vpop.f32.mrf.mxu1  ;;  %v2250_v3 = vpop.f32.mrf.mxu0  ;;  %8575 = vmatmul.mubr.msk.bf16.vlgmr.msra.gmra.mxu1 %vm11039_vm1, %v8941_v61  ;;  %8578 = vmatmul.mubr.msk.bf16.vlgmr.msra.gmra.mxu0 %vm11039_vm1, %v8941_v61 }
 0x36f   : > { %v2265_v7 = vadd.f32 %v2199_v1, %v2114_v31  ;;  %v2267_v8 = vadd.f32 %v2250_v3, %v2116_v33  ;;  %4193 = vmatpush1.bf16.msra.mxu1 %v4167_v63  ;;  %4244 = vmatpush1.bf16.msra.mxu0 %v4173_v5  ;;  %v10046_v33 = vpop.permute.xlu1 %4606  ;;  %v10068_v61 = vpop.permute.xlu0 %4604 }
 0x370   : > { %8596 = vmatprep.subr.msk.bf16.mxu1 %vm11040_vm0, %v4310_v42  ;;  %8599 = vmatprep.subr.msk.bf16.mxu0 %vm11040_vm0, %v4307_v6  ;;  %v2201_v4 = vpop.f32.mrf.mxu1  ;;  %v2252_v10 = vpop.f32.mrf.mxu0 }
 0x371   : > { %v2266_v11 = vadd.f32 %v2201_v4, %v2115_v40  ;;  %v2268_v15 = vadd.f32 %v2252_v10, %v2117_v41  ;;  %4068 = vmatprep.mubr.bf16.mxu1 %v8988_v0  ;;  %4118 = vmatprep.mubr.bf16.mxu0 %v8988_v0  ;;  %v8943_v40 = vld [vmem:[%s10959_s4 + $0x114] sm:$0xff]   ;;  %v4309_v41 = vsel %vm11034_vm6, %v10012_v46, %v9990_v17  ;;  %vm11035_vm6 = vcmask 277504  }
 0x372   : > { %v2203_v58 = vpop.f32.mrf.mxu1  ;;  %v2254_v9 = vpop.f32.mrf.mxu0  ;;  %v4462_v17 = vsel %vm11036_vm2, %v10018_v59, %v4457_v35 }
 0x373   : > { %v2269_v19 = vadd.f32 %v2203_v58, %v2118_v47  ;;  %v2271_v20 = vadd.f32 %v2254_v9, %v2120_v55  ;;  %v4319_v55 = vsel %vm11040_vm0, %v4309_v41, 0  ;;  %v4459_v49 = vpop.permute.xlu1 %4458 }
 0x374   : > { %v2205_v14 = vpop.f32.mrf.mxu1  ;;  %v2256_v27 = vpop.f32.mrf.mxu0  ;;  %v4463_v58 = vsel %vm11036_vm2, %v4457_v35, %v4459_v49 }
 0x375   : > { %v2270_v23 = vadd.f32 %v2205_v14, %v2119_v48  ;;  %v4325_v48 = vsel %vm11040_vm0, %v4311_v2, 0  ;;  %v4477_v27 = vsel %vm11040_vm0, %v4463_v58, 0 }
 0x376   : > { %v2209_v24 = vpop.f32.mrf.mxu1  ;;  %v2259_v25 = vpop.f32.mrf.mxu0  ;;  %8576 = vmatmul.mubr.msk.bf16.gmra.mxu1 %vm11039_vm1, %v8942_v18  ;;  %8579 = vmatmul.mubr.msk.bf16.gmra.mxu0 %vm11039_vm1, %v8942_v18 }
 0x377   : > { %v2272_v26 = vadd.f32 %v2209_v24, %v2121_v51  ;;  %v2274_v29 = vadd.f32 %v2259_v25, %v2123_v54  ;;  %4210 = vmatprep.mubr.bf16.mxu1 %v8988_v0  ;;  %4261 = vmatprep.mubr.bf16.mxu0 %v8988_v0 }
 0x378   : > { %v2211_v30 = vpop.f32.mrf.mxu1  ;;  %v2261_v31 = vpop.f32.mrf.mxu0 }
 0x379   : > { %v2273_v37 = vadd.f32 %v2211_v30, %v2122_v22 }
 0x37a   : > { %v2213_v28 = vpop.f32.mrf.mxu1  ;;  %v2262_v39 = vpop.f32.mrf.mxu0 }
 0x37b   : > { %v8946_v28 = vld [vmem:[%s10959_s4 + $0x128] ss:$0 sps:$4 sm:$0xff]  }
 0x37c   : > { %v2214_v43 = vpop.f32.mrf.mxu1  ;;  %v2263_v47 = vpop.f32.mrf.mxu0 }
 0x37e   : > { %v2351_v44 = vpop.f32.mrf.mxu1  ;;  %v2402_v45 = vpop.f32.mrf.mxu0  ;;  %8586 = vmatmul.mubr.msk.bf16.vlgmr.msra.gmra.mxu1 %vm11039_vm1, %v8943_v40  ;;  %8589 = vmatmul.mubr.msk.bf16.vlgmr.msra.gmra.mxu0 %vm11039_vm1, %v8943_v40 }
 0x37f   : > { %v2417_v50 = vadd.f32 %v2351_v44, %v2265_v7  ;;  %v2419_v51 = vadd.f32 %v2402_v45, %v2267_v8  ;;  %4345 = vmatpush1.bf16.msra.mxu1 %v4319_v55  ;;  %4396 = vmatpush1.bf16.msra.mxu0 %v4325_v48  ;;  %v4609_v8 = vpop.permute.xlu0 %4608 }
 0x380   : > { %8607 = vmatprep.subr.msk.bf16.mxu1 %vm11040_vm0, %v4462_v17  ;;  %8610 = vmatprep.subr.msk.bf16.mxu0 %vm11040_vm0, %v4459_v49  ;;  %v2353_v46 = vpop.f32.mrf.mxu1  ;;  %v2404_v54 = vpop.f32.mrf.mxu0  ;;  %v8947_v17 = vld [vmem:[%s10959_s4 + $0x12c] sm:$0xff]  }
 0x381   : > { %v2418_v56 = vadd.f32 %v2353_v46, %v2266_v11  ;;  %v2420_v57 = vadd.f32 %v2404_v54, %v2268_v15  ;;  %4220 = vmatprep.mubr.bf16.mxu1 %v8988_v0  ;;  %4270 = vmatprep.mubr.bf16.mxu0 %v8988_v0  ;;  %v8945_v11 = vld [vmem:[%s10959_s4 + $0x120] sm:$0xff]   ;;  %v4461_v15 = vsel %vm11036_vm2, %v10040_v32, %v10018_v59 }
 0x382   : > { %v2355_v22 = vpop.f32.mrf.mxu1  ;;  %v2406_v53 = vpop.f32.mrf.mxu0  ;;  %v4614_v59 = vsel %vm11035_vm6, %v10046_v33, %v4609_v8  ;;  %v4613_v46 = vsel %vm11035_vm6, %v10068_v61, %v10046_v33 }
 0x383   : > { %v2421_v36 = vadd.f32 %v2355_v22, %v2269_v19  ;;  %v2423_v12 = vadd.f32 %v2406_v53, %v2271_v20  ;;  %v4471_v19 = vsel %vm11040_vm0, %v4461_v15, 0  ;;  %v4623_v22 = vsel %vm11040_vm0, %v4613_v46, 0 }
 0x384   : > { %v2357_v13 = vpop.f32.mrf.mxu1  ;;  %v2408_v38 = vpop.f32.mrf.mxu0 }
 0x385   : > { %v2422_v62 = vadd.f32 %v2357_v13, %v2270_v23  ;;  %v4611_v23 = vpop.permute.xlu0 %4610 }
 0x386   : > { %v2361_v63 = vpop.f32.mrf.mxu1  ;;  %v2411_v1 = vpop.f32.mrf.mxu0  ;;  %8587 = vmatmul.mubr.msk.bf16.gmra.mxu1 %vm11039_vm1, %v8944_v60  ;;  %8590 = vmatmul.mubr.msk.bf16.gmra.mxu0 %vm11039_vm1, %v8944_v60  ;;  %v4615_v54 = vsel %vm11035_vm6, %v4609_v8, %v4611_v23 }
 0x387   : > { %v2424_v3 = vadd.f32 %v2361_v63, %v2272_v26  ;;  %v2426_v5 = vadd.f32 %v2411_v1, %v2274_v29  ;;  %4362 = vmatprep.mubr.bf16.mxu1 %v8988_v0  ;;  %4413 = vmatprep.mubr.bf16.mxu0 %v8988_v0 }
 0x388   : > { %v2363_v6 = vpop.f32.mrf.mxu1  ;;  %v2413_v7 = vpop.f32.mrf.mxu0 }
 0x389   : > { %v2425_v42 = vadd.f32 %v2363_v6, %v2273_v37 }
 0x38a   : > { %v2365_v4 = vpop.f32.mrf.mxu1  ;;  %v2414_v10 = vpop.f32.mrf.mxu0 }
 0x38c   : > { %v2366_v9 = vpop.f32.mrf.mxu1  ;;  %v2415_v18 = vpop.f32.mrf.mxu0 }
 0x38e   : > { %v2503_v20 = vpop.f32.mrf.mxu1  ;;  %v2554_v14 = vpop.f32.mrf.mxu0  ;;  %8597 = vmatmul.mubr.msk.bf16.vlgmr.msra.gmra.mxu1 %vm11039_vm1, %v8945_v11  ;;  %8600 = vmatmul.mubr.msk.bf16.vlgmr.msra.gmra.mxu0 %vm11039_vm1, %v8945_v11 }
 0x38f   : > { %v2569_v24 = vadd.f32 %v2503_v20, %v2417_v50  ;;  %v2571_v25 = vadd.f32 %v2554_v14, %v2419_v51  ;;  %4497 = vmatpush1.bf16.msra.mxu1 %v4471_v19  ;;  %4548 = vmatpush1.bf16.msra.mxu0 %v4477_v27  ;;  %v8949_v20 = vld [vmem:[%s10959_s4 + $0x138] sm:$0xff]  }
 0x390   : > { %8618 = vmatprep.subr.msk.bf16.mxu1 %vm11040_vm0, %v4614_v59  ;;  %8621 = vmatprep.subr.msk.bf16.mxu0 %vm11040_vm0, %v4611_v23  ;;  %v2505_v32 = vpop.f32.mrf.mxu1  ;;  %v2556_v26 = vpop.f32.mrf.mxu0 }
 0x391   : > { %v2570_v29 = vadd.f32 %v2505_v32, %v2418_v56  ;;  %v2572_v30 = vadd.f32 %v2556_v26, %v2420_v57  ;;  %4372 = vmatprep.mubr.bf16.mxu1 %v8988_v0  ;;  %4422 = vmatprep.mubr.bf16.mxu0 %v8988_v0 }
 0x392   : > { %v2507_v31 = vpop.f32.mrf.mxu1  ;;  %v2558_v37 = vpop.f32.mrf.mxu0 }
 0x393   : > { %v2573_v39 = vadd.f32 %v2507_v31, %v2421_v36  ;;  %v2575_v40 = vadd.f32 %v2558_v37, %v2423_v12  ;;  %v4629_v36 = vsel %vm11040_vm0, %v4615_v54, 0 }
 0x394   : > { %v2509_v41 = vpop.f32.mrf.mxu1  ;;  %v2560_v2 = vpop.f32.mrf.mxu0 }
 0x395   : > { %v10094_v35 = vadd.f32 %v2509_v41, %v2422_v62 }
 0x396   : > { %v2513_v43 = vpop.f32.mrf.mxu1  ;;  %v2563_v47 = vpop.f32.mrf.mxu0  ;;  %8598 = vmatmul.mubr.msk.bf16.gmra.mxu1 %vm11039_vm1, %v8946_v28  ;;  %8601 = vmatmul.mubr.msk.bf16.gmra.mxu0 %vm11039_vm1, %v8946_v28  ;;  %v8950_v28 = vld [vmem:[%s10959_s4 + $0x140] ss:$0 sps:$4 sm:$0xff]  }
 0x397   : > { %v2576_v55 = vadd.f32 %v2513_v43, %v2424_v3  ;;  %v2578_v44 = vadd.f32 %v2563_v47, %v2426_v5  ;;  %4514 = vmatprep.mubr.bf16.mxu1 %v8988_v0  ;;  %4565 = vmatprep.mubr.bf16.mxu0 %v8988_v0  ;;  %v8948_v3 = vld [vmem:[%s10959_s4 + $0x134] ss:$0 sps:$4 sm:$0xff]  }
 0x398   : > { %v2515_v45 = vpop.f32.mrf.mxu1  ;;  %v2565_v48 = vpop.f32.mrf.mxu0 }
 0x399   : > { %v2577_v49 = vadd.f32 %v2515_v45, %v2425_v42 }
 0x39a   : > { %v2517_v50 = vpop.f32.mrf.mxu1  ;;  %v2566_v51 = vpop.f32.mrf.mxu0 }
 0x39c   : > { %v2518_v56 = vpop.f32.mrf.mxu1  ;;  %v2567_v57 = vpop.f32.mrf.mxu0 }
 0x39e   : > { %v2655_v53 = vpop.f32.mrf.mxu1  ;;  %v2706_v60 = vpop.f32.mrf.mxu0  ;;  %8608 = vmatmul.mubr.msk.bf16.vlgmr.msra.gmra.mxu1 %vm11039_vm1, %v8947_v17  ;;  %8611 = vmatmul.mubr.msk.bf16.vlgmr.msra.gmra.mxu0 %vm11039_vm1, %v8947_v17 }
 0x39f   : > { %v2721_v12 = vadd.f32 %v2655_v53, %v2569_v24  ;;  %v2723_v13 = vadd.f32 %v2706_v60, %v2571_v25  ;;  %4649 = vmatpush1.bf16.msra.mxu1 %v4623_v22  ;;  %4700 = vmatpush1.bf16.msra.mxu0 %v4629_v36 }
 0x3a0   : > { %v2657_v38 = vpop.f32.mrf.mxu1  ;;  %v2708_v33 = vpop.f32.mrf.mxu0  ;;  %4524 = vmatprep.mubr.bf16.mxu1 %v8988_v0  ;;  %4574 = vmatprep.mubr.bf16.mxu0 %v8988_v0 }
 0x3a1   : > { %v2722_v61 = vadd.f32 %v2657_v38, %v2570_v29  ;;  %v2724_v62 = vadd.f32 %v2708_v33, %v2572_v30 }
 0x3a2   : > { %v2659_v63 = vpop.f32.mrf.mxu1  ;;  %v2710_v1 = vpop.f32.mrf.mxu0 }
 0x3a3   : > { %v2725_v5 = vadd.f32 %v2659_v63, %v2573_v39  ;;  %v2727_v6 = vadd.f32 %v2710_v1, %v2575_v40 }
 0x3a4   : > { %v10116_v7 = vpop.f32.mrf.mxu1  ;;  %v2712_v8 = vpop.f32.mrf.mxu0 }
 0x3a6   : > { %v2665_v42 = vpop.f32.mrf.mxu1  ;;  %v2715_v4 = vpop.f32.mrf.mxu0  ;;  %8609 = vmatmul.mubr.msk.bf16.gmra.mxu1 %vm11039_vm1, %v8948_v3  ;;  %8612 = vmatmul.mubr.msk.bf16.gmra.mxu0 %vm11039_vm1, %v8948_v3 }
 0x3a7   : > { %v2728_v10 = vadd.f32 %v2665_v42, %v2576_v55  ;;  %v2730_v11 = vadd.f32 %v2715_v4, %v2578_v44  ;;  %4666 = vmatprep.mubr.bf16.mxu1 %v8988_v0  ;;  %4717 = vmatprep.mubr.bf16.mxu0 %v8988_v0 }
 0x3a8   : > { %v2667_v15 = vpop.f32.mrf.mxu1  ;;  %v2717_v58 = vpop.f32.mrf.mxu0 }
 0x3a9   : > { %v2729_v9 = vadd.f32 %v2667_v15, %v2577_v49 }
 0x3aa   : > { %v2669_v18 = vpop.f32.mrf.mxu1  ;;  %v2718_v19 = vpop.f32.mrf.mxu0 }
 0x3ac   : > { %v2670_v14 = vpop.f32.mrf.mxu1  ;;  %v2719_v27 = vpop.f32.mrf.mxu0 }
 0x3ae   : > { %v2807_v23 = vpop.f32.mrf.mxu1  ;;  %v2858_v24 = vpop.f32.mrf.mxu0  ;;  %8619 = vmatmul.mubr.msk.bf16.vlgmr.msra.gmra.mxu1 %vm11039_vm1, %v8949_v20  ;;  %8622 = vmatmul.mubr.msk.bf16.vlgmr.msra.gmra.mxu0 %vm11039_vm1, %v8949_v20 }
 0x3af   : > { %v2873_v25 = vadd.f32 %v2807_v23, %v2721_v12  ;;  %v2875_v59 = vadd.f32 %v2858_v24, %v2723_v13  ;;  %4676 = vmatprep.mubr.bf16.mxu1 %v8988_v0  ;;  %4726 = vmatprep.mubr.bf16.mxu0 %v8988_v0 }
 0x3b0   : > { %v2809_v32 = vpop.f32.mrf.mxu1  ;;  %v2860_v26 = vpop.f32.mrf.mxu0 }
 0x3b1   : > { %v2874_v29 = vadd.f32 %v2809_v32, %v2722_v61  ;;  %v2876_v30 = vadd.f32 %v2860_v26, %v2724_v62 }
 0x3b2   : > { %v2811_v31 = vpop.f32.mrf.mxu1  ;;  %v2862_v37 = vpop.f32.mrf.mxu0 }
 0x3b3   : > { %v2877_v39 = vadd.f32 %v2811_v31, %v2725_v5  ;;  %v2879_v40 = vadd.f32 %v2862_v37, %v2727_v6 }
 0x3b4   : > { %v10132_v41 = vpop.f32.mrf.mxu1  ;;  %v2864_v2 = vpop.f32.mrf.mxu0 }
 0x3b6   : > { %v2817_v43 = vpop.f32.mrf.mxu1  ;;  %v2867_v47 = vpop.f32.mrf.mxu0  ;;  %8620 = vmatmul.mubr.msk.bf16.gmra.mxu1 %vm11039_vm1, %v8950_v28  ;;  %8623 = vmatmul.mubr.msk.bf16.gmra.mxu0 %vm11039_vm1, %v8950_v28 }
 0x3b7   : > { %v2880_v55 = vadd.f32 %v2817_v43, %v2728_v10  ;;  %v2882_v44 = vadd.f32 %v2867_v47, %v2730_v11  ;;  %4814 = vmatprep.mubr.bf16.mxu1 %v8988_v0  ;;  %4855 = vmatprep.mubr.bf16.mxu0 %v8988_v0 }
 0x3b8   : > { %v2819_v45 = vpop.f32.mrf.mxu1  ;;  %v2869_v48 = vpop.f32.mrf.mxu0 }
 0x3b9   : > { %v2881_v49 = vadd.f32 %v2819_v45, %v2729_v9 }
 0x3ba   : > { %v2821_v50 = vpop.f32.mrf.mxu1  ;;  %v2870_v51 = vpop.f32.mrf.mxu0 }
 0x3bc   : > { %v2822_v17 = vpop.f32.mrf.mxu1  ;;  %v2871_v46 = vpop.f32.mrf.mxu0 }
 0x3be   : > { %v2978_v54 = vpop.f32.mrf.mxu1  ;;  %v3029_v56 = vpop.f32.mrf.mxu0 }
 0x3bf   : > { %v3044_v57 = vadd.f32 %v2978_v54, %v2873_v25  ;;  %v3046_v22 = vadd.f32 %v3029_v56, %v2875_v59 }
 0x3c0   : > { %v2980_v53 = vpop.f32.mrf.mxu1  ;;  %v3031_v60 = vpop.f32.mrf.mxu0 }
 0x3c1   : > { %v3045_v36 = vadd.f32 %v2980_v53, %v2874_v29  ;;  %v3047_v12 = vadd.f32 %v3031_v60, %v2876_v30 }
 0x3c2   : > { %v2982_v13 = vpop.f32.mrf.mxu1  ;;  %v3033_v38 = vpop.f32.mrf.mxu0 }
 0x3c3   : > { %v3048_v33 = vadd.f32 %v2982_v13, %v2877_v39  ;;  %v3050_v61 = vadd.f32 %v3033_v38, %v2879_v40 }
 0x3c4   : > { %v10138_v62 = vpop.f32.mrf.mxu1  ;;  %v3035_v63 = vpop.f32.mrf.mxu0 }
 0x3c6   : > { %v2988_v1 = vpop.f32.mrf.mxu1  ;;  %v3038_v3 = vpop.f32.mrf.mxu0 }
 0x3c7   : > { %v3051_v5 = vadd.f32 %v2988_v1, %v2880_v55  ;;  %v3053_v6 = vadd.f32 %v3038_v3, %v2882_v44 }
 0x3c8   : > { %v2990_v8 = vpop.f32.mrf.mxu1  ;;  %v3040_v42 = vpop.f32.mrf.mxu0 }
 0x3c9   : > { %v3052_v4 = vadd.f32 %v2990_v8, %v2881_v49 }
 0x3ca   : > { %v2992_v10 = vpop.f32.mrf.mxu1  ;;  %v3041_v11 = vpop.f32.mrf.mxu0 }
 0x3cc   : > { %v2993_v15 = vpop.f32.mrf.mxu1  ;;  %v3042_v58 = vpop.f32.mrf.mxu0 }
 0x3ce   : > { %v3133_v9 = vpop.f32.mrf.mxu1  ;;  %v3184_v18 = vpop.f32.mrf.mxu0 }
 0x3cf   : > { %v3199_v19 = vadd.f32 %v3133_v9, %v3044_v57  ;;  %v3201_v20 = vadd.f32 %v3184_v18, %v3046_v22 }
 0x3d0   : > { %v3135_v14 = vpop.f32.mrf.mxu1  ;;  %v3186_v27 = vpop.f32.mrf.mxu0 }
 0x3d1   : > { %v3200_v23 = vadd.f32 %v3135_v14, %v3045_v36  ;;  %v3202_v24 = vadd.f32 %v3186_v27, %v3047_v12 }
 0x3d2   : > { %v3137_v25 = vpop.f32.mrf.mxu1  ;;  %v3188_v59 = vpop.f32.mrf.mxu0 }
 0x3d3   : > { %v3203_v32 = vadd.f32 %v3137_v25, %v3048_v33  ;;  %v3205_v26 = vadd.f32 %v3188_v59, %v3050_v61 }
 0x3d4   : > { %v10140_v29 = vpop.f32.mrf.mxu1  ;;  %v3190_v30 = vpop.f32.mrf.mxu0 }
 0x3d6   : > { %v3143_v31 = vpop.f32.mrf.mxu1  ;;  %v3193_v37 = vpop.f32.mrf.mxu0 }
 0x3d7   : > { %v3206_v28 = vadd.f32 %v3143_v31, %v3051_v5  ;;  %v3208_v39 = vadd.f32 %v3193_v37, %v3053_v6 }
 0x3d8   : > { %v3145_v40 = vpop.f32.mrf.mxu1  ;;  %v3195_v2 = vpop.f32.mrf.mxu0 }
 0x3d9   : > { %v3207_v43 = vadd.f32 %v3145_v40, %v3052_v4 }
 0x3da   : > { %v3147_v47 = vpop.f32.mrf.mxu1  ;;  %v3196_v55 = vpop.f32.mrf.mxu0 }
 0x3dc   : > { %v3148_v44 = vpop.f32.mrf.mxu1  ;;  %v3197_v45 = vpop.f32.mrf.mxu0 }
 0x3dd   : > { %v4761_v44 = vld [vmem:[%s10961_s6] sm:$0xff] }
 0x3de   : > { %v3288_v48 = vpop.f32.mrf.mxu1  ;;  %v3339_v49 = vpop.f32.mrf.mxu0  ;;  %4764 = vperm.xlu1 %8888, %v4761_v44  }
 0x3df   : > { %v3354_v50 = vadd.f32 %v3288_v48, %v3199_v19  ;;  %v3356_v51 = vadd.f32 %v3339_v49, %v3201_v20 }
 0x3e0   : > { %v3290_v17 = vpop.f32.mrf.mxu1  ;;  %v3341_v46 = vpop.f32.mrf.mxu0 }
 0x3e1   : > { %v3355_v54 = vadd.f32 %v3290_v17, %v3200_v23  ;;  %v3357_v56 = vadd.f32 %v3341_v46, %v3202_v24 }
 0x3e2   : > { %v3292_v57 = vpop.f32.mrf.mxu1  ;;  %v3343_v22 = vpop.f32.mrf.mxu0 }
 0x3e3   : > { %v3358_v53 = vadd.f32 %v3292_v57, %v3203_v32  ;;  %v3360_v60 = vadd.f32 %v3343_v22, %v3205_v26 }
 0x3e4   : > { %v10142_v36 = vpop.f32.mrf.mxu1  ;;  %v3345_v12 = vpop.f32.mrf.mxu0 }
 0x3e6   : > { %v3298_v13 = vpop.f32.mrf.mxu1  ;;  %v3348_v38 = vpop.f32.mrf.mxu0 }
 0x3e7   : > { %v3361_v33 = vadd.f32 %v3298_v13, %v3206_v28  ;;  %v3363_v61 = vadd.f32 %v3348_v38, %v3208_v39 }
 0x3e8   : > { %v3300_v63 = vpop.f32.mrf.mxu1  ;;  %v3350_v1 = vpop.f32.mrf.mxu0 }
 0x3e9   : > { %v3362_v3 = vadd.f32 %v3300_v63, %v3207_v43 }
 0x3ea   : > { %v3302_v5 = vpop.f32.mrf.mxu1  ;;  %v3351_v6 = vpop.f32.mrf.mxu0 }
 0x3ec   : > { %v3303_v8 = vpop.f32.mrf.mxu1  ;;  %v3352_v42 = vpop.f32.mrf.mxu0 }
 0x3ee   : > { %v3452_v4 = vpop.f32.mrf.mxu1  ;;  %v3503_v10 = vpop.f32.mrf.mxu0 }
 0x3ef   : > { %v3518_v11 = vadd.f32 %v3452_v4, %v3354_v50  ;;  %v3520_v15 = vadd.f32 %v3503_v10, %v3356_v51 }
 0x3f0   : > { %v3454_v58 = vpop.f32.mrf.mxu1  ;;  %v3505_v9 = vpop.f32.mrf.mxu0 }
 0x3f1   : > { %v3519_v18 = vadd.f32 %v3454_v58, %v3355_v54  ;;  %v3521_v19 = vadd.f32 %v3505_v9, %v3357_v56 }
 0x3f2   : > { %v3456_v20 = vpop.f32.mrf.mxu1  ;;  %v3507_v14 = vpop.f32.mrf.mxu0 }
 0x3f3   : > { %v3522_v27 = vadd.f32 %v3456_v20, %v3358_v53  ;;  %v3524_v23 = vadd.f32 %v3507_v14, %v3360_v60 }
 0x3f4   : > { %v10144_v24 = vpop.f32.mrf.mxu1  ;;  %v3509_v25 = vpop.f32.mrf.mxu0 }
 0x3f6   : > { %v3462_v59 = vpop.f32.mrf.mxu1  ;;  %v3512_v32 = vpop.f32.mrf.mxu0 }
 0x3f7   : > { %v3525_v26 = vadd.f32 %v3462_v59, %v3361_v33  ;;  %v3527_v30 = vadd.f32 %v3512_v32, %v3363_v61 }
 0x3f8   : > { %v3464_v31 = vpop.f32.mrf.mxu1  ;;  %v3514_v37 = vpop.f32.mrf.mxu0 }
 0x3f9   : > { %v3526_v28 = vadd.f32 %v3464_v31, %v3362_v3 }
 0x3fa   : > { %v3466_v39 = vpop.f32.mrf.mxu1  ;;  %v3515_v40 = vpop.f32.mrf.mxu0 }
 0x3fc   : > { %v3467_v2 = vpop.f32.mrf.mxu1  ;;  %v3516_v43 = vpop.f32.mrf.mxu0 }
 0x3fe   : > { %v3604_v47 = vpop.f32.mrf.mxu1  ;;  %v3655_v55 = vpop.f32.mrf.mxu0 }
 0x3ff   : > { %v3670_v45 = vadd.f32 %v3604_v47, %v3518_v11  ;;  %v3672_v48 = vadd.f32 %v3655_v55, %v3520_v15 }
 0x400   : > { %v3606_v49 = vpop.f32.mrf.mxu1  ;;  %v3657_v50 = vpop.f32.mrf.mxu0 }
 0x401   : > { %v3671_v51 = vadd.f32 %v3606_v49, %v3519_v18  ;;  %v3673_v17 = vadd.f32 %v3657_v50, %v3521_v19 }
 0x402   : > { %v3608_v46 = vpop.f32.mrf.mxu1  ;;  %v3659_v54 = vpop.f32.mrf.mxu0 }
 0x403   : > { %v3674_v56 = vadd.f32 %v3608_v46, %v3522_v27  ;;  %v3676_v57 = vadd.f32 %v3659_v54, %v3524_v23 }
 0x404   : > { %v10149_v22 = vpop.f32.mrf.mxu1  ;;  %v3661_v53 = vpop.f32.mrf.mxu0 }
 0x406   : > { %v3614_v60 = vpop.f32.mrf.mxu1  ;;  %v3664_v12 = vpop.f32.mrf.mxu0 }
 0x407   : > { %v3677_v13 = vadd.f32 %v3614_v60, %v3525_v26  ;;  %v3679_v38 = vadd.f32 %v3664_v12, %v3527_v30 }
 0x408   : > { %v3616_v33 = vpop.f32.mrf.mxu1  ;;  %v3666_v61 = vpop.f32.mrf.mxu0 }
 0x409   : > { %v3678_v63 = vadd.f32 %v3616_v33, %v3526_v28 }
 0x40a   : > { %v3618_v1 = vpop.f32.mrf.mxu1  ;;  %v3667_v3 = vpop.f32.mrf.mxu0 }
 0x40c   : > { %v3619_v5 = vpop.f32.mrf.mxu1  ;;  %v3668_v6 = vpop.f32.mrf.mxu0 }
 0x40e   : > { %v3756_v8 = vpop.f32.mrf.mxu1  ;;  %v3807_v42 = vpop.f32.mrf.mxu0 }
 0x40f   : > { %v3822_v4 = vadd.f32 %v3756_v8, %v3670_v45  ;;  %v3824_v10 = vadd.f32 %v3807_v42, %v3672_v48 }
 0x410   : > { %v3758_v11 = vpop.f32.mrf.mxu1  ;;  %v3809_v15 = vpop.f32.mrf.mxu0 }
 0x411   : > { %v3823_v58 = vadd.f32 %v3758_v11, %v3671_v51  ;;  %v3825_v9 = vadd.f32 %v3809_v15, %v3673_v17 }
 0x412   : > { %v3760_v18 = vpop.f32.mrf.mxu1  ;;  %v3811_v19 = vpop.f32.mrf.mxu0 }
 0x413   : > { %v3826_v20 = vadd.f32 %v3760_v18, %v3674_v56  ;;  %v3828_v14 = vadd.f32 %v3811_v19, %v3676_v57 }
 0x414   : > { %v10151_v27 = vpop.f32.mrf.mxu1  ;;  %v3813_v23 = vpop.f32.mrf.mxu0 }
 0x416   : > { %v3766_v25 = vpop.f32.mrf.mxu1  ;;  %v3816_v59 = vpop.f32.mrf.mxu0 }
 0x417   : > { %v3829_v32 = vadd.f32 %v3766_v25, %v3677_v13  ;;  %v3831_v26 = vadd.f32 %v3816_v59, %v3679_v38 }
 0x418   : > { %v3768_v30 = vpop.f32.mrf.mxu1  ;;  %v3818_v31 = vpop.f32.mrf.mxu0 }
 0x419   : > { %v3830_v37 = vadd.f32 %v3768_v30, %v3678_v63 }
 0x41a   : > { %v3770_v28 = vpop.f32.mrf.mxu1  ;;  %v3819_v39 = vpop.f32.mrf.mxu0 }
 0x41c   : > { %v3771_v40 = vpop.f32.mrf.mxu1  ;;  %v3820_v2 = vpop.f32.mrf.mxu0 }
 0x41e   : > { %v3908_v43 = vpop.f32.mrf.mxu1  ;;  %v3959_v47 = vpop.f32.mrf.mxu0 }
 0x41f   : > { %v10153_v55 = vadd.f32 %v3908_v43, %v3822_v4  ;;  %v10155_v44 = vadd.f32 %v3959_v47, %v3824_v10 }
 0x420   : > { %v3910_v45 = vpop.f32.mrf.mxu1  ;;  %v3961_v48 = vpop.f32.mrf.mxu0 }
 0x421   : > { %v10157_v49 = vadd.f32 %v3910_v45, %v3823_v58  ;;  %v10159_v50 = vadd.f32 %v3961_v48, %v3825_v9 }
 0x422   : > { %v3912_v51 = vpop.f32.mrf.mxu1  ;;  %v3963_v17 = vpop.f32.mrf.mxu0 }
 0x423   : > { %v3978_v46 = vadd.f32 %v3912_v51, %v3826_v20  ;;  %v3980_v54 = vadd.f32 %v3963_v17, %v3828_v14 }
 0x424   : > { %v10161_v56 = vpop.f32.mrf.mxu1  ;;  %v3965_v57 = vpop.f32.mrf.mxu0 }
 0x426   : > { %v3918_v53 = vpop.f32.mrf.mxu1  ;;  %v3968_v60 = vpop.f32.mrf.mxu0 }
 0x427   : > { %v3981_v12 = vadd.f32 %v3918_v53, %v3829_v32  ;;  %v3983_v13 = vadd.f32 %v3968_v60, %v3831_v26 }
 0x428   : > { %v3920_v38 = vpop.f32.mrf.mxu1  ;;  %v3970_v33 = vpop.f32.mrf.mxu0 }
 0x429   : > { %v3982_v61 = vadd.f32 %v3920_v38, %v3830_v37 }
 0x42a   : > { %v3922_v63 = vpop.f32.mrf.mxu1  ;;  %v3971_v1 = vpop.f32.mrf.mxu0 }
 0x42c   : > { %v3923_v3 = vpop.f32.mrf.mxu1  ;;  %v3972_v5 = vpop.f32.mrf.mxu0 }
 0x42e   : > { %v10163_v6 = vpop.f32.mrf.mxu1  ;;  %v10165_v8 = vpop.f32.mrf.mxu0 }
 0x430   : > { %v10167_v42 = vpop.f32.mrf.mxu1  ;;  %v10169_v4 = vpop.f32.mrf.mxu0 }
 0x432   : > { %v4064_v10 = vpop.f32.mrf.mxu1  ;;  %v4115_v11 = vpop.f32.mrf.mxu0 }
 0x433   : > { %v4130_v15 = vadd.f32 %v4064_v10, %v3978_v46  ;;  %v4132_v58 = vadd.f32 %v4115_v11, %v3980_v54 }
 0x434   : > { %v10171_v9 = vpop.f32.mrf.mxu1  ;;  %v4117_v18 = vpop.f32.mrf.mxu0 }
 0x436   : > { %v4070_v19 = vpop.f32.mrf.mxu1  ;;  %v4120_v20 = vpop.f32.mrf.mxu0 }
 0x437   : > { %v4133_v14 = vadd.f32 %v4070_v19, %v3981_v12  ;;  %v4135_v23 = vadd.f32 %v4120_v20, %v3983_v13 }
 0x438   : > { %v4072_v25 = vpop.f32.mrf.mxu1  ;;  %v4122_v59 = vpop.f32.mrf.mxu0 }
 0x439   : > { %v4134_v32 = vadd.f32 %v4072_v25, %v3982_v61 }
 0x43a   : > { %v4074_v26 = vpop.f32.mrf.mxu1  ;;  %v4123_v30 = vpop.f32.mrf.mxu0 }
 0x43c   : > { %v4075_v31 = vpop.f32.mrf.mxu1  ;;  %v4124_v37 = vpop.f32.mrf.mxu0 }
 0x43e   : > { %v4212_v28 = vpop.f32.mrf.mxu1  ;;  %v4263_v39 = vpop.f32.mrf.mxu0 }
 0x440   : > { %v10173_v40 = vpop.f32.mrf.mxu1  ;;  %v10175_v2 = vpop.f32.mrf.mxu0 }
 0x442   : > { %v4216_v43 = vpop.f32.mrf.mxu1  ;;  %v4267_v47 = vpop.f32.mrf.mxu0 }
 0x443   : > { %v4282_v45 = vadd.f32 %v4216_v43, %v4130_v15  ;;  %v4284_v48 = vadd.f32 %v4267_v47, %v4132_v58 }
 0x444   : > { %v10177_v51 = vpop.f32.mrf.mxu1  ;;  %v4269_v17 = vpop.f32.mrf.mxu0 }
 0x446   : > { %v4222_v46 = vpop.f32.mrf.mxu1  ;;  %v4272_v54 = vpop.f32.mrf.mxu0 }
 0x447   : > { %v4285_v57 = vadd.f32 %v4222_v46, %v4133_v14  ;;  %v4287_v53 = vadd.f32 %v4272_v54, %v4135_v23 }
 0x448   : > { %v4224_v60 = vpop.f32.mrf.mxu1  ;;  %v4274_v12 = vpop.f32.mrf.mxu0 }
 0x449   : > { %v4286_v13 = vadd.f32 %v4224_v60, %v4134_v32 }
 0x44a   : > { %v4226_v38 = vpop.f32.mrf.mxu1  ;;  %v4275_v33 = vpop.f32.mrf.mxu0 }
 0x44c   : > { %v4227_v61 = vpop.f32.mrf.mxu1  ;;  %v4276_v63 = vpop.f32.mrf.mxu0 }
 0x44d   : > { %v4128_v63 = vadd.f32 %v10165_v8, %v10155_v44 }
 0x44e   : > { %v4364_v1 = vpop.f32.mrf.mxu1  ;;  %v4415_v3 = vpop.f32.mrf.mxu0 }
 0x450   : > { %v4366_v5 = vpop.f32.mrf.mxu1  ;;  %v4417_v10 = vpop.f32.mrf.mxu0 }
 0x452   : > { %v4368_v11 = vpop.f32.mrf.mxu1  ;;  %v4419_v15 = vpop.f32.mrf.mxu0 }
 0x453   : > { %v4434_v58 = vadd.f32 %v4368_v11, %v4282_v45  ;;  %v4436_v18 = vadd.f32 %v4419_v15, %v4284_v48 }
 0x454   : > { %v10179_v19 = vpop.f32.mrf.mxu1  ;;  %v4421_v20 = vpop.f32.mrf.mxu0 }
 0x456   : > { %v4374_v14 = vpop.f32.mrf.mxu1  ;;  %v4424_v23 = vpop.f32.mrf.mxu0 }
 0x457   : > { %v4437_v25 = vadd.f32 %v4374_v14, %v4285_v57  ;;  %v4439_v59 = vadd.f32 %v4424_v23, %v4287_v53 }
 0x458   : > { %v4376_v32 = vpop.f32.mrf.mxu1  ;;  %v4426_v26 = vpop.f32.mrf.mxu0 }
 0x459   : > { %v4438_v30 = vadd.f32 %v4376_v32, %v4286_v13  ;;  %v4126_v13 = vadd.f32 %v10163_v6, %v10153_v55  ;;  %v4280_v32 = vadd.f32 %v4263_v39, %v4128_v63 }
 0x45a   : > { %v4378_v31 = vpop.f32.mrf.mxu1  ;;  %v4427_v37 = vpop.f32.mrf.mxu0 }
 0x45b   : > { %v4278_v23 = vadd.f32 %v4212_v28, %v4126_v13  ;;  %v4432_v55 = vadd.f32 %v4415_v3, %v4280_v32 }
 0x45c   : > { %v4379_v43 = vpop.f32.mrf.mxu1  ;;  %v4428_v47 = vpop.f32.mrf.mxu0 }
 0x45d   : > { %v4430_v43 = vadd.f32 %v4364_v1, %v4278_v23 }
 0x45e   : > { %v4516_v17 = vpop.f32.mrf.mxu1  ;;  %v4567_v46 = vpop.f32.mrf.mxu0 }
 0x45f   : > { %v4584_v28 = vadd.f32 %v4567_v46, %v4432_v55 }
 0x460   : > { %v4518_v54 = vpop.f32.mrf.mxu1  ;;  %v4569_v60 = vpop.f32.mrf.mxu0 }
 0x462   : > { %v4520_v45 = vpop.f32.mrf.mxu1  ;;  %v4571_v48 = vpop.f32.mrf.mxu0 }
 0x463   : > { %v4586_v12 = vadd.f32 %v4520_v45, %v4434_v58  ;;  %v4588_v38 = vadd.f32 %v4571_v48, %v4436_v18  ;;  %v4127_v58 = vadd.f32 %v10167_v42, %v10157_v49  ;;  %v4129_v18 = vadd.f32 %v10169_v4, %v10159_v50 }
 0x464   : > { %v10181_v33 = vpop.f32.mrf.mxu1  ;;  %v4573_v61 = vpop.f32.mrf.mxu0 }
 0x465   : > { %v4279_v6 = vadd.f32 %v10173_v40, %v4127_v58  ;;  %v4281_v44 = vadd.f32 %v10175_v2, %v4129_v18 }
 0x466   : > { %v4526_v57 = vpop.f32.mrf.mxu1  ;;  %v4576_v53 = vpop.f32.mrf.mxu0 }
 0x467   : > { %v4589_v11 = vadd.f32 %v4526_v57, %v4437_v25  ;;  %v4591_v15 = vadd.f32 %v4576_v53, %v4439_v59  ;;  %v4582_v59 = vadd.f32 %v4516_v17, %v4430_v43  ;;  %v4431_v39 = vadd.f32 %v4366_v5, %v4279_v6 }
 0x468   : > { %v4528_v20 = vpop.f32.mrf.mxu1  ;;  %v4578_v14 = vpop.f32.mrf.mxu0 }
 0x469   : > { %v4590_v26 = vadd.f32 %v4528_v20, %v4438_v30  ;;  %v4433_v30 = vadd.f32 %v4417_v10, %v4281_v44  ;;  %v4583_v48 = vadd.f32 %v4518_v54, %v4431_v39 }
 0x46a   : > { %v4530_v31 = vpop.f32.mrf.mxu1  ;;  %v4579_v37 = vpop.f32.mrf.mxu0 }
 0x46b   : > { %v4585_v50 = vadd.f32 %v4569_v60, %v4433_v30 }
 0x46c   : > { %v4531_v8 = vpop.f32.mrf.mxu1  ;;  %v4580_v25 = vpop.f32.mrf.mxu0 }
 0x46e   : > { %v4668_v47 = vpop.f32.mrf.mxu1  ;;  %v4719_v45 = vpop.f32.mrf.mxu0 }
 0x46f   : > { %v4734_v49 = vadd.f32 %v4668_v47, %v4582_v59  ;;  %v4736_v42 = vadd.f32 %v4719_v45, %v4584_v28 }
 0x470   : > { %v4670_v4 = vpop.f32.mrf.mxu1  ;;  %v4721_v61 = vpop.f32.mrf.mxu0 }
 0x471   : > { %vm4745_vm6 = vcmp.ge.f32.partialorder %v4734_v49, 0.0  ;;  %v4749_v1 = vmul.f32 0.2, %v4734_v49  ;;  %vm4747_vm2 = vcmp.ge.f32.partialorder %v4736_v42, 0.0  ;;  %v4751_v40 = vmul.f32 0.2, %v4736_v42 }
 0x472   : > { %v4735_v3 = vadd.f32 %v4670_v4, %v4583_v48  ;;  %v4737_v2 = vadd.f32 %v4721_v61, %v4585_v50  ;;  %v4672_v57 = vpop.f32.mrf.mxu1  ;;  %v4723_v53 = vpop.f32.mrf.mxu0 }
 0x473   : > { %v4753_v17 = vsel %vm4745_vm6, %v4734_v49, %v4749_v1  ;;  %v4755_v46 = vsel %vm4747_vm2, %v4736_v42, %v4751_v40  ;;  %v10193_v5 = vadd.f32 %v4672_v57, %v4586_v12  ;;  %v10195_v10 = vadd.f32 %v4723_v53, %v4588_v38 }
 0x474   : > { %vm4746_vm13 = vcmp.ge.f32.partialorder %v4735_v3, 0.0  ;;  %v4750_v13 = vmul.f32 0.2, %v4735_v3  ;;  %v10197_v54 = vpop.f32.mrf.mxu1  ;;  %v4725_v60 = vpop.f32.mrf.mxu0  ;;  %v4757_v63 = vpack.c.bf16 %v4753_v17, %v4753_v17  ;;  %vm4748_vm11 = vcmp.ge.f32.partialorder %v4737_v2, 0.0 }
 0x475   : > { %v4752_v20 = vmul.f32 0.2, %v4737_v2  ;;  %v4759_v14 = vpack.c.bf16 %v4755_v46, %v4755_v46  ;;  %v2726_v57 = vadd.f32 %v10116_v7, %v10094_v35  ;;  %vm11050_vm2 = vcmask 249016  }
 0x476   : > { %v4754_v23 = vsel %vm4746_vm13, %v4735_v3, %v4750_v13  ;;  %v4678_v32 = vpop.f32.mrf.mxu1  ;;  %v4728_v58 = vpop.f32.mrf.mxu0  ;;  %v4771_v44 = vsel %vm11040_vm0, %v4757_v63, 0  ;;  %vm11049_vm13 = vcmask 167016   ;;  %vm11051_vm6 = vcmask 331016  }
 0x477   : > { %v4758_v18 = vpack.c.bf16 %v4754_v23, %v4754_v23  ;;  %v4756_v31 = vsel %vm4748_vm11, %v4737_v2, %v4752_v20  ;;  %v10199_v37 = vadd.f32 %v4678_v32, %v4589_v11  ;;  %v10201_v12 = vadd.f32 %v4728_v58, %v4591_v15  ;;  %v4744_v11 = vld [vmem:[%s10960_s5] sm:$0xf] }
 0x478   : > { %v4760_v38 = vpack.c.bf16 %v4756_v31, %v4756_v31  ;;  %v4680_v43 = vpop.f32.mrf.mxu1  ;;  %v4730_v55 = vpop.f32.mrf.mxu0  ;;  %v4777_v8 = vsel %vm11040_vm0, %v4759_v14, 0  ;;  %v2878_v53 = vadd.f32 %v10132_v41, %v2726_v57  ;;  %vm4895_vm11 = vcmask 908288  }
 0x479   : > { %v10203_v6 = vadd.f32 %v4680_v43, %v4590_v26  ;;  %8624 = vmatprep.subr.msk.bf16.mxu1 %vm11040_vm0, %v4758_v18  ;;  %v4765_v26 = vpop.permute.xlu1 %4764 }
 0x47a   : > { %8626 = vmatprep.subr.msk.bf16.mxu0 %vm11040_vm0, %v4760_v38  ;;  %4797 = vmatpush1.bf16.msra.mxu1 %v4771_v44  ;;  %v4682_v15 = vpop.f32.mrf.mxu1  ;;  %v4731_v25 = vpop.f32.mrf.mxu0  ;;  %v3049_v17 = vadd.f32 %v10138_v62, %v2878_v53  ;;  %vm11053_vm0 = vcmask 495016   ;;  %v8635_v53 = vld [vmem:[%s10962_s7 + $0x4] sm:$0xf] }
 0x47b   : > { %4838 = vmatpush1.bf16.msra.mxu0 %v4777_v8 }
 0x47c   : > { %v4683_v59 = vpop.f32.mrf.mxu1  ;;  %v4732_v28 = vpop.f32.mrf.mxu0  ;;  %v3204_v46 = vadd.f32 %v10140_v29, %v3049_v17 }
 0x47d   : > { %8625 = vmatmul.mubr.msk.bf16.vlgmr.msra.gmra.mxu1 %vm11039_vm1, %v4744_v11 }
 0x47e   : > { %8627 = vmatmul.mubr.msk.bf16.vlgmr.msra.gmra.mxu0 %vm11039_vm1, %v4744_v11  ;;  %5026 = vmatprep.mubr.bf16.mxu1 %v8988_v0  ;;  %v3359_v13 = vadd.f32 %v10142_v36, %v3204_v46  ;;  %vm11052_vm1 = vcmask 413016  }
 0x47f   : > { %5067 = vmatprep.mubr.bf16.mxu0 %v8988_v0 }
 0x480   : > { %v3523_v20 = vadd.f32 %v10144_v24, %v3359_v13 }
 0x482   : > { %v3675_v58 = vadd.f32 %v10149_v22, %v3523_v20 }
 0x484   : > { %v3827_v35 = vadd.f32 %v10151_v27, %v3675_v58 }
 0x486   : > { %v3979_v7 = vadd.f32 %v10161_v56, %v3827_v35 }
 0x488   : > { %v4131_v41 = vadd.f32 %v10171_v9, %v3979_v7 }
 0x48a   : > { %v4283_v62 = vadd.f32 %v10177_v51, %v4131_v41 }
 0x48c   : > { %v4435_v29 = vadd.f32 %v10179_v19, %v4283_v62 }
 0x48e   : > { %v4587_v36 = vadd.f32 %v10181_v33, %v4435_v29 }
 0x490   : > { %v4739_v22 = vadd.f32 %v10197_v54, %v4587_v36 }
 0x53d   : > { %v4816_v39 = vpop.f32.mrf.mxu1 }
 0x53e   : > { %v4817_v30 = vadd.f32 %v4816_v39, %v4765_v26  ;;  %v4857_v47 = vpop.f32.mrf.mxu0 }
 0x53f   : > { %v4858_v45 = vadd.f32 %v4857_v47, %v4765_v26  ;;  %v4818_v49 = vpop.f32.mrf.mxu1 }
 0x540   : > { %v8628_v42 = vmul.f32 -1.442695, %v4817_v30  ;;  %v4819_v48 = vadd.f32 %v4818_v49, %v4765_v26  ;;  %v4859_v50 = vpop.f32.mrf.mxu0 }
 0x541   : > { %v8630_v4 = vmul.f32 -1.442695, %v4858_v45  ;;  %v4820_v61 = vpop.f32.mrf.mxu1  ;;  %v10400_v45 = vld [vmem:[#allocation2 + $0x10] ss:$0 sps:$4 sm:$0xff]  }
 0x542   : > { %8962 = vpow2.f32 %v8628_v42  ;;  %v8629_v1 = vmul.f32 -1.442695, %v4819_v48  ;;  %v4860_v40 = vpop.f32.mrf.mxu0 }
 0x543   : > { %8964 = vpow2.f32 %v8630_v4  ;;  %v4821_v3 = vpop.f32.mrf.mxu1 }
 0x544   : > { %8966 = vpow2.f32 %v8629_v1  ;;  %v4861_v2 = vpop.f32.mrf.mxu0 }
 0x54f   : > { %v8963_v60 = vpop.eup %8962 }
 0x550   : > { %v8965_v63 = vpop.eup %8964  ;;  %v4872_v14 = vadd.f32 1.0, %v8963_v60 }
 0x551   : > { %v8967_v23 = vpop.eup %8966  ;;  %v4874_v32 = vadd.f32 1.0, %v8965_v63 }
 0x552   : > { %8968 = vrcp.f32 %v4872_v14  ;;  %v4873_v18 = vadd.f32 1.0, %v8967_v23  ;;  %v4955_v14 = vld [vmem:[%s10962_s7] sm:$0xf] }
 0x553   : > { %8970 = vrcp.f32 %v4874_v32 }
 0x554   : > { %8972 = vrcp.f32 %v4873_v18 }
 0x55f   : > { %v8969_v24 = vpop.eup %8968 }
 0x560   : > { %v8971_v31 = vpop.eup %8970  ;;  %v4881_v38 = vmul.f32 %v8969_v24, %v10193_v5 }
 0x561   : > { %v8973_v43 = vpop.eup %8972  ;;  %v4883_v44 = vmul.f32 %v8971_v31, %v10195_v10  ;;  %v8648_v31 = vld [vmem:[%s10962_s7 + $0x8] sm:$0xf] }
 0x562   : > { %v8796_v55 = vpack.c.bf16 %v4881_v38, %v4881_v38  ;;  %v4882_v27 = vmul.f32 %v8973_v43, %v4739_v22 }
 0x563   : > { %v8799_v51 = vpack.c.bf16 %v4883_v44, %v4883_v44 }
 0x564   : > { %4890 = vrot.lane.b32.xlu0 %v8796_v55, %s8992_s20  ;;  %v8797_v56 = vpack.c.bf16 %v4882_v27, %v4882_v27  ;;  %v8798_v9 = vpack.c.bf16 %v4883_v44, %v4882_v27 }
 0x566   : > { %4911 = vrot.lane.b32.xlu1 %v8797_v56, %s8992_s20 }
 0x568   : > { %4930 = vrot.lane.b32.xlu0 %v8798_v9, %s8992_s20 }
 0x56a   : > { %4937 = vrot.lane.b32.xlu1 %v8799_v51, %s8992_s20  ;;  %s11074_s20 = smov 17  }
 0x5d6   : > { %v4891_v19 = vpop.permute.xlu0 %4890 }
 0x5d7   : > { %4893 = vst.msk [vmem:[#allocation2] sm:$0xf] %vm450_vm7, %v4891_v19  ;;  %v4894_v33 = vrot.slane %v4891_v19, 4  ;;  %vm11054_vm7 = vcmask 741016  }
 0x5d8   : > { %v4912_v10 = vpop.permute.xlu1 %4911 }
 0x5d9   : > { %v4896_v5 = vsel %vm4895_vm11, %v4894_v33, %v4891_v19  ;;  %v4915_v54 = vrot.slane %v4912_v10, 4 }
 0x5da   : > { %4898 = vst.msk [vmem:[#allocation2] sm:$0xff] %vm9154_vm8, %v4896_v5  ;;  %vm11057_vm8 = vcmask 987016   ;;  %v4931_v8 = vpop.permute.xlu0 %4930 }
 0x5db   : > { %4899 = vst.msk [vmem:[#allocation2 + $0x4] sm:$0xf] %vm465_vm9, %v4891_v19  ;;  %v4916_v21 = vsel %vm4895_vm11, %v4915_v54, %v4912_v10  ;;  %vm11058_vm9 = vcmask 101416   ;;  %v4932_v15 = vrot.slane %v4931_v8, 4  ;;  %v8653_v54 = vld [vmem:[%s10962_s7 + $0xc] sm:$0xf] }
 0x5dc   : > { %4900 = vst.msk [vmem:[#allocation2 + $0x4] sm:$0xf] %vm11049_vm13, %v4891_v19  ;;  %v4938_v11 = vpop.permute.xlu1 %4937  ;;  %vm11061_vm13 = vcmask 511416  }
 0x5dd   : > { %4901 = vst.msk [vmem:[#allocation2 + $0x4] sm:$0xf] %vm11050_vm2, %v4891_v19  ;;  %v4941_v25 = vrot.slane %v4938_v11, 4  ;;  %v4933_v26 = vsel %vm4895_vm11, %v4931_v8, %v4932_v15  ;;  %vm11065_vm2 = vcmask 921416  }
 0x5de   : > { %4902 = vst.msk [vmem:[#allocation2 + $0x4] sm:$0xf] %vm11051_vm6, %v4891_v19  ;;  %vm11066_vm6 = vcmask 1003416  }
 0x5df   : > { %4903 = vst.msk [vmem:[#allocation2 + $0x4] sm:$0xf] %vm11052_vm1, %v4891_v19  ;;  %vm11059_vm1 = vcmask 183416   ;;  %v4942_v39 = vsel %vm4895_vm11, %v4941_v25, %v4938_v11  ;;  %vm11070_vm11 = vcmask 691816  }
 0x5e0   : > { %4904 = vst.msk [vmem:[#allocation2 + $0x4] sm:$0xf] %vm11053_vm0, %v4891_v19  ;;  %vm11060_vm0 = vcmask 265416  }
 0x5e1   : > { %4905 = vst.msk [vmem:[#allocation2 + $0x4] sm:$0xf] %vm11054_vm7, %v4891_v19  ;;  %vm11068_vm7 = vcmask 527816  }
 0x5e2   : > { %4906 = vst.msk [vmem:[#allocation2 + $0x4] sm:$0xf] %vm11055_vm15, %v4891_v19  ;;  %vm11062_vm15 = vcmask 593416  }
 0x5e3   : > { %4907 = vst.msk [vmem:[#allocation2 + $0x4] sm:$0xf] %vm11056_vm5, %v4891_v19  ;;  %vm11063_vm5 = vcmask 757416  }
 0x5e4   : > { %4914 = vst.msk [vmem:[#allocation2 + $0x4] sm:$0xf] %vm11057_vm8, %v4912_v10  ;;  %vm11069_vm8 = vcmask 609816  }
 0x5e5   : > { %4918 = vst.msk [vmem:[#allocation2 + $0x4] sm:$0xff] %vm9170_vm12, %v4916_v21  ;;  %vm11064_vm12 = vcmask 839416  }
 0x5e6   : > { %4919 = vst.msk [vmem:[#allocation2 + $0x8] sm:$0xf] %vm11058_vm9, %v4912_v10  ;;  %vm11071_vm9 = vcmask 773816  }
 0x5e7   : > { %4920 = vst.msk [vmem:[#allocation2 + $0x8] sm:$0xf] %vm11059_vm1, %v4912_v10  ;;  %vm11072_vm1 = vcmask 855816  }
 0x5e8   : > { %4921 = vst.msk [vmem:[#allocation2 + $0x8] sm:$0xf] %vm11060_vm0, %v4912_v10 }
 0x5e9   : > { %4922 = vst.msk [vmem:[#allocation2 + $0x8] sm:$0xf] %vm11061_vm13, %v4912_v10 }
 0x5ea   : > { %4923 = vst.msk [vmem:[#allocation2 + $0x8] sm:$0xf] %vm11062_vm15, %v4912_v10 }
 0x5eb   : > { %4924 = vst.msk [vmem:[#allocation2 + $0x8] sm:$0xf] %vm553_vm14, %v4912_v10  ;;  %vm11067_vm14 = vcmask 281816  }
 0x5ec   : > { %4925 = vst.msk [vmem:[#allocation2 + $0x8] sm:$0xf] %vm11063_vm5, %v4912_v10  ;;  %v4953_v34 = vld [vmem:[#allocation2] sm:$0xff] }
 0x5ed   : > { %4926 = vst.msk [vmem:[#allocation2 + $0x8] sm:$0xf] %vm11064_vm12, %v4912_v10  ;;  %v10262_v59 = vcombine.low %v4953_v34, %v4953_v34  ;;  %v10264_v28 = vcombine.high %v4953_v34, %v4953_v34 }
 0x5ee   : > { %4935 = vst.msk [vmem:[#allocation2 + $0x8] sm:$0xf] %vm11065_vm2, %v4933_v26 }
 0x5ef   : > { %4940 = vst.msk [vmem:[#allocation2 + $0x8] sm:$0xf] %vm11066_vm6, %v4938_v11  ;;  %4970 = vrot.lane.b32.xlu1 %v10264_v28, %s9021_s21  ;;  %4968 = vrot.lane.b32.xlu0 %v10262_v59, %s9021_s21  ;;  %vm11086_vm6 = vcmask 64512  }
 0x5f0   : > { %4944 = vst.msk [vmem:[#allocation2 + $0x8] sm:$0xff] %vm9194_vm10, %v4942_v39  ;;  %vm11077_vm10 = vcmask 1039360   ;;  %v8658_v39 = vld [vmem:[%s10962_s7 + $0x10] sm:$0xf] }
 0x5f1   : > { %4945 = vst.msk [vmem:[#allocation2 + $0xc] sm:$0xf] %vm11067_vm14, %v4938_v11  ;;  %vm11087_vm14 = vmmov %vm11086_vm6 }
 0x5f2   : > { %4946 = vst.msk [vmem:[#allocation2 + $0xc] sm:$0xf] %vm593_vm4, %v4938_v11  ;;  %vm11078_vm4 = vmmov %vm11077_vm10 }
 0x5f3   : > { %4947 = vst.msk [vmem:[#allocation2 + $0xc] sm:$0xf] %vm598_vm3, %v4938_v11  ;;  %vm11079_vm3 = vcmask 1043456   ;;  %vm11080_vm0 = vmmov %vm11078_vm4 }
 0x5f4   : > { %4948 = vst.msk [vmem:[#allocation2 + $0xc] sm:$0xf] %vm11068_vm7, %v4938_v11  ;;  %vm11081_vm13 = vmmov %vm11079_vm3 }
 0x5f5   : > { %4949 = vst.msk [vmem:[#allocation2 + $0xc] sm:$0xf] %vm11069_vm8, %v4938_v11  ;;  %vm11082_vm15 = vmmov %vm11079_vm3 }
 0x5f6   : > { %4950 = vst.msk [vmem:[#allocation2 + $0xc] sm:$0xf] %vm11070_vm11, %v4938_v11  ;;  %vm11083_vm5 = vmmov %vm11079_vm3  ;;  %vm11091_vm11 = vcmask 1031168  }
 0x5f7   : > { %4951 = vst.msk [vmem:[#allocation2 + $0xc] sm:$0xf] %vm11071_vm9, %v4938_v11  ;;  %vm11084_vm12 = vmmov %vm11079_vm3  ;;  %v6988_v58 = vld [vmem:[#allocation2 + $0x4] sm:$0xff] }
 0x5f8   : > { %4952 = vst.msk [vmem:[#allocation2 + $0xc] sm:$0xf] %vm11072_vm1, %v4938_v11  ;;  %vm11085_vm2 = vmmov %vm11079_vm3  ;;  %v10453_v41 = vcombine.low %v6988_v58, %v6988_v58  ;;  %v10479_v9 = vcombine.high %v6988_v58, %v6988_v58 }
 0x5f9   : > { %vm11088_vm7 = vmmov %vm11085_vm2 }
 0x5fa   : > { %v5079_v17 = vsel %vm11088_vm7, %v10262_v59, 0  ;;  %vm11089_vm8 = vmmov %vm11085_vm2 }
 0x5fb   : > { %vm11092_vm9 = vmmov %vm11091_vm11 }
 0x5fc   : > { %vm11093_vm1 = vmmov %vm11086_vm6 }
 0x5ff   : > { %v4954_v30 = vld [vmem:[#allocation2 + $0x8] sm:$0xff] }
 0x600   : > { %v10284_v47 = vcombine.low %v4954_v30, %v4954_v30  ;;  %v10286_v52 = vcombine.high %v4954_v30, %v4954_v30  ;;  %v6989_v43 = vld [vmem:[#allocation2 + $0xc] sm:$0xff] }
 0x601   : > { %v10477_v56 = vcombine.low %v6989_v43, %v6989_v43  ;;  %v10490_v10 = vcombine.high %v6989_v43, %v6989_v43 }
 0x602   : > { %4974 = vrot.lane.b32.xlu1 %v10286_v52, %s9021_s21  ;;  %4972 = vrot.lane.b32.xlu0 %v10284_v47, %s9021_s21  ;;  %s11075_s21 = smov 16   ;;  %v5085_v46 = vsel %vm11089_vm8, %v10284_v47, 0 }
 0x606   : > { %5175 = vrot.lane.b32.xlu1 %v10264_v28, %s9022_s22  ;;  %5173 = vrot.lane.b32.xlu0 %v10262_v59, %s9022_s22 }
 0x60a   : > { %5287 = vrot.lane.b32.xlu1 %v10264_v28, %s9023_s23  ;;  %5285 = vrot.lane.b32.xlu0 %v10262_v59, %s9023_s23 }
 0x60e   : > { %5399 = vrot.lane.b32.xlu1 %v10264_v28, %s8991_s19  ;;  %5177 = vrot.lane.b32.xlu0 %v10284_v47, %s9022_s22 }
 0x612   : > { %5179 = vrot.lane.b32.xlu1 %v10286_v52, %s9022_s22  ;;  %5397 = vrot.lane.b32.xlu0 %v10262_v59, %s8991_s19 }
 0x616   : > { %5511 = vrot.lane.b32.xlu1 %v10264_v28, %s9024_s24  ;;  %5289 = vrot.lane.b32.xlu0 %v10284_v47, %s9023_s23 }
 0x61a   : > { %5291 = vrot.lane.b32.xlu1 %v10286_v52, %s9023_s23  ;;  %5509 = vrot.lane.b32.xlu0 %v10262_v59, %s9024_s24 }
 0x61e   : > { %5623 = vrot.lane.b32.xlu1 %v10264_v28, %s9025_s25  ;;  %5401 = vrot.lane.b32.xlu0 %v10284_v47, %s8991_s19 }
 0x622   : > { %5403 = vrot.lane.b32.xlu1 %v10286_v52, %s8991_s19  ;;  %5621 = vrot.lane.b32.xlu0 %v10262_v59, %s9025_s25  ;;  %s11073_s19 = smov 18  }
 0x626   : > { %5735 = vrot.lane.b32.xlu1 %v10264_v28, %s9026_s26  ;;  %5513 = vrot.lane.b32.xlu0 %v10284_v47, %s9024_s24 }
 0x62a   : > { %5515 = vrot.lane.b32.xlu1 %v10286_v52, %s9024_s24  ;;  %5733 = vrot.lane.b32.xlu0 %v10262_v59, %s9026_s26 }
 0x62e   : > { %5847 = vrot.lane.b32.xlu1 %v10264_v28, %s9027_s27  ;;  %5625 = vrot.lane.b32.xlu0 %v10284_v47, %s9025_s25 }
 0x632   : > { %5627 = vrot.lane.b32.xlu1 %v10286_v52, %s9025_s25  ;;  %5845 = vrot.lane.b32.xlu0 %v10262_v59, %s9027_s27  ;;  %s9046_s25 = smov 114  }
 0x636   : > { %5959 = vrot.lane.b32.xlu1 %v10264_v28, %s9028_s29  ;;  %5737 = vrot.lane.b32.xlu0 %v10284_v47, %s9026_s26 }
 0x63a   : > { %5739 = vrot.lane.b32.xlu1 %v10286_v52, %s9026_s26  ;;  %5957 = vrot.lane.b32.xlu0 %v10262_v59, %s9028_s29  ;;  %s11171_s26 = smov 35  }
 0x63e   : > { %6071 = vrot.lane.b32.xlu1 %v10264_v28, %s9000_s28  ;;  %5849 = vrot.lane.b32.xlu0 %v10284_v47, %s9027_s27 }
 0x642   : > { %5851 = vrot.lane.b32.xlu1 %v10286_v52, %s9027_s27  ;;  %6069 = vrot.lane.b32.xlu0 %v10262_v59, %s9000_s28  ;;  %s11090_s27 = smov 6  }
 0x646   : > { %6183 = vrot.lane.b32.xlu1 %v10264_v28, %s9029_s12  ;;  %5961 = vrot.lane.b32.xlu0 %v10284_v47, %s9028_s29 }
 0x64a   : > { %5963 = vrot.lane.b32.xlu1 %v10286_v52, %s9028_s29  ;;  %6181 = vrot.lane.b32.xlu0 %v10262_v59, %s9029_s12  ;;  %s11122_s29 = smov 54  }
 0x64e   : > { %6295 = vrot.lane.b32.xlu1 %v10264_v28, %s11073_s19  ;;  %6073 = vrot.lane.b32.xlu0 %v10284_v47, %s9000_s28 }
 0x652   : > { %6075 = vrot.lane.b32.xlu1 %v10286_v52, %s9000_s28  ;;  %6293 = vrot.lane.b32.xlu0 %v10262_v59, %s11073_s19  ;;  %s11076_s28 = smov 8  }
 0x656   : > { %6407 = vrot.lane.b32.xlu1 %v10264_v28, %s11074_s20  ;;  %6185 = vrot.lane.b32.xlu0 %v10284_v47, %s9029_s12 }
 0x65a   : > { %6187 = vrot.lane.b32.xlu1 %v10286_v52, %s9029_s12  ;;  %6405 = vrot.lane.b32.xlu0 %v10262_v59, %s11074_s20  ;;  %s11151_s12 = smov 44  }
 0x65e   : > { %6519 = vrot.lane.b32.xlu1 %v10264_v28, %s11075_s21  ;;  %6297 = vrot.lane.b32.xlu0 %v10284_v47, %s11073_s19 }
 0x661   : > { %v4971_v49 = vpop.permute.xlu1 %4970  ;;  %v4969_v42 = vpop.permute.xlu0 %4968 }
 0x662   : > { %6299 = vrot.lane.b32.xlu1 %v10286_v52, %s11073_s19  ;;  %6517 = vrot.lane.b32.xlu0 %v10262_v59, %s11075_s21  ;;  %v4976_v48 = vsel %vm11077_vm10, %v4969_v42, %v4971_v49  ;;  %vm11094_vm10 = vmmov %vm11093_vm1 }
 0x663   : > { %v4983_v3 = vsel %vm11082_vm15, %v4976_v48, 0  ;;  %vm11100_vm15 = vmmov %vm11085_vm2 }
 0x666   : > { %6647 = vrot.lane.b32.xlu1 %v10264_v28, %s11076_s28  ;;  %6409 = vrot.lane.b32.xlu0 %v10284_v47, %s11074_s20 }
 0x66a   : > { %6411 = vrot.lane.b32.xlu1 %v10286_v52, %s11074_s20  ;;  %6645 = vrot.lane.b32.xlu0 %v10262_v59, %s11076_s28  ;;  %s11112_s20 = smov 55  }
 0x66e   : > { %6760 = vrot.lane.b32.xlu1 %v10262_v59, %s9034_s11  ;;  %6521 = vrot.lane.b32.xlu0 %v10284_v47, %s11075_s21 }
 0x672   : > { %6523 = vrot.lane.b32.xlu1 %v10286_v52, %s11075_s21  ;;  %6653 = vrot.lane.b32.xlu0 %v10400_v45, %s11076_s28 }
 0x674   : > { %v4975_v50 = vpop.permute.xlu1 %4974  ;;  %v4973_v4 = vpop.permute.xlu0 %4972 }
 0x675   : > { %v4978_v61 = vsel %vm11078_vm4, %v4973_v4, %v4975_v50  ;;  %8642 = vmatprep.subr.msk.bf16.mxu0 %vm11079_vm3, %v4975_v50  ;;  %v4977_v1 = vsel %vm11080_vm0, %v4971_v49, %v4973_v4  ;;  %vm11095_vm4 = vmmov %vm11085_vm2 }
 0x676   : > { %6768 = vrot.lane.b32.xlu1 %v10400_v45, %s9034_s11  ;;  %6649 = vrot.lane.b32.xlu0 %v10284_v47, %s11076_s28  ;;  %v4989_v40 = vsel %vm11081_vm13, %v4978_v61, 0  ;;  %vm11096_vm3 = vmmov %vm11085_vm2  ;;  %v8663_v61 = vld [vmem:[%s10962_s7 + $0x14] sm:$0xf] }
 0x677   : > { %8640 = vmatprep.subr.msk.bf16.mxu1 %vm11083_vm5, %v4977_v1  ;;  %5050 = vmatpush1.bf16.msra.mxu0 %v4989_v40  ;;  %vm11097_vm0 = vmmov %vm11092_vm9  ;;  %vm11101_vm5 = vcmask 965632  }
 0x678   : > { %5009 = vmatpush1.bf16.msra.mxu1 %v4983_v3  ;;  %v5176_v2 = vpop.permute.xlu1 %5175  ;;  %8646 = vmatprep.subr.msk.bf16.mxu0 %vm11084_vm12, %v10286_v52  ;;  %v5174_v57 = vpop.permute.xlu0 %5173  ;;  %vm11098_vm13 = vmmov %vm11085_vm2 }
 0x679   : > { %8644 = vmatprep.subr.msk.bf16.mxu1 %vm11085_vm2, %v10264_v28  ;;  %v5181_v23 = vsel %vm11091_vm11, %v5174_v57, %v5176_v2  ;;  %vm11102_vm12 = vmmov %vm11101_vm5 }
 0x67a   : > { %6651 = vrot.lane.b32.xlu1 %v10286_v52, %s11076_s28  ;;  %6762 = vrot.lane.b32.xlu0 %v10264_v28, %s9034_s11  ;;  %v5188_v18 = vsel %vm11095_vm4, %v5181_v23, 0  ;;  %vm11103_vm2 = vmmov %vm11093_vm1 }
 0x67b   : > { %8641 = vmatmul.mubr.msk.bf16.vlgmr.msra.gmra.mxu1 %vm11086_vm6, %v8635_v53  ;;  %8643 = vmatmul.mubr.msk.bf16.vlgmr.msra.gmra.mxu0 %vm11087_vm14, %v8635_v53  ;;  %vm11104_vm6 = vmmov %vm11093_vm1 }
 0x67c   : > { %5105 = vmatpush1.bf16.msra.mxu1 %v5079_v17  ;;  %5146 = vmatpush1.bf16.msra.mxu0 %v5085_v46  ;;  %v5288_v13 = vpop.permute.xlu1 %5287  ;;  %v5286_v60 = vpop.permute.xlu0 %5285  ;;  %vm11105_vm14 = vmmov %vm11096_vm3 }
 0x67d   : > { %5122 = vmatprep.mubr.bf16.mxu1 %v8988_v0  ;;  %5163 = vmatprep.mubr.bf16.mxu0 %v8988_v0  ;;  %v5293_v22 = vsel %vm11101_vm5, %v5286_v60, %v5288_v13  ;;  %vm11106_vm7 = vmmov %vm11096_vm3  ;;  %v8668_v60 = vld [vmem:[%s10962_s7 + $0x18] sm:$0xf] }
 0x67e   : > { %6764 = vrot.lane.b32.xlu1 %v10284_v47, %s9034_s11  ;;  %6875 = vrot.lane.b32.xlu0 %v10262_v59, %s11090_s27  ;;  %v5300_v55 = vsel %vm11105_vm14, %v5293_v22, 0  ;;  %vm11107_vm8 = vmmov %vm11101_vm5 }
 0x67f   : > { %vm11108_vm11 = vmmov %vm11096_vm3 }
 0x680   : > { %v5400_v63 = vpop.permute.xlu1 %5399  ;;  %v5178_v20 = vpop.permute.xlu0 %5177  ;;  %vm11113_vm4 = vmmov %vm11103_vm2 }
 0x681   : > { %v5182_v32 = vsel %vm11092_vm9, %v5176_v2, %v5178_v20  ;;  %vm11109_vm9 = vmmov %vm11096_vm3 }
 0x682   : > { %6877 = vrot.lane.b32.xlu1 %v10264_v28, %s11090_s27  ;;  %6766 = vrot.lane.b32.xlu0 %v10286_v52, %s9034_s11  ;;  %s11099_s11 = smov 56  }
 0x683   : > { %8645 = vmatmul.mubr.msk.bf16.vlgmr.msra.gmra.mxu1 %vm11093_vm1, %v4955_v14  ;;  %8647 = vmatmul.mubr.msk.bf16.vlgmr.msra.gmra.mxu0 %vm11094_vm10, %v4955_v14  ;;  %vm11110_vm1 = vcmask 957440  }
 0x684   : > { %8649 = vmatprep.subr.msk.bf16.mxu1 %vm11096_vm3, %v5182_v32  ;;  %v5180_v35 = vpop.permute.xlu1 %5179  ;;  %v5398_v7 = vpop.permute.xlu0 %5397  ;;  %5231 = vmatprep.mubr.bf16.mxu1 %v8988_v0  ;;  %vm11111_vm10 = vmmov %vm11110_vm1 }
 0x685   : > { %5214 = vmatpush1.bf16.msra.mxu1 %v5188_v18  ;;  %v5183_v62 = vsel %vm11097_vm0, %v5178_v20, %v5180_v35  ;;  %8651 = vmatprep.subr.msk.bf16.mxu0 %vm11098_vm13, %v5180_v35  ;;  %v5405_v21 = vsel %vm11110_vm1, %v5398_v7, %v5400_v63  ;;  %vm11114_vm3 = vmmov %vm11103_vm2 }
 0x686   : > { %7002 = vrot.lane.b32.xlu1 %v10453_v41, %s11099_s11  ;;  %6879 = vrot.lane.b32.xlu0 %v10284_v47, %s11090_s27  ;;  %v5194_v29 = vsel %vm11100_vm15, %v5183_v62, 0  ;;  %vm11115_vm0 = vmmov %vm11106_vm7  ;;  %v8673_v62 = vld [vmem:[%s10962_s7 + $0x1c] sm:$0xf] }
 0x687   : > { %5255 = vmatpush1.bf16.msra.mxu0 %v5194_v29  ;;  %5272 = vmatprep.mubr.bf16.mxu0 %v8988_v0  ;;  %v5412_v11 = vsel %vm11115_vm0, %v5405_v21, 0  ;;  %vm11116_vm13 = vmmov %vm11115_vm0 }
 0x688   : > { %v5512_v36 = vpop.permute.xlu1 %5511  ;;  %v5290_v24 = vpop.permute.xlu0 %5289  ;;  %vm11117_vm15 = vmmov %vm11110_vm1 }
 0x689   : > { %v5294_v38 = vsel %vm11102_vm12, %v5288_v13, %v5290_v24  ;;  %vm11118_vm5 = vmmov %vm11115_vm0 }
 0x68a   : > { %6881 = vrot.lane.b32.xlu1 %v10286_v52, %s11090_s27  ;;  %6883 = vrot.lane.b32.xlu0 %v10400_v45, %s11090_s27  ;;  %vm11119_vm12 = vmmov %vm11115_vm0 }
 0x68b   : > { %8650 = vmatmul.mubr.msk.bf16.vlgmr.msra.gmra.mxu1 %vm11103_vm2, %v8648_v31  ;;  %8652 = vmatmul.mubr.msk.bf16.vlgmr.msra.gmra.mxu0 %vm11104_vm6, %v8648_v31  ;;  %vm11120_vm2 = vcmask 949248   ;;  %vm11123_vm14 = vmmov %vm11114_vm3 }
 0x68c   : > { %8654 = vmatprep.subr.msk.bf16.mxu1 %vm11106_vm7, %v5294_v38  ;;  %v5292_v27 = vpop.permute.xlu1 %5291  ;;  %v5510_v44 = vpop.permute.xlu0 %5509  ;;  %5343 = vmatprep.mubr.bf16.mxu1 %v8988_v0  ;;  %vm11121_vm6 = vmmov %vm11120_vm2 }
 0x68d   : > { %5326 = vmatpush1.bf16.msra.mxu1 %v5300_v55  ;;  %v5295_v51 = vsel %vm11107_vm8, %v5290_v24, %v5292_v27  ;;  %8656 = vmatprep.subr.msk.bf16.mxu0 %vm11108_vm11, %v5292_v27  ;;  %v5517_v30 = vsel %vm11120_vm2, %v5510_v44, %v5512_v36  ;;  %vm11124_vm7 = vmmov %vm11114_vm3  ;;  %v8678_v44 = vld [vmem:[%s10962_s7 + $0x20] sm:$0xf] }
 0x68e   : > { %7006 = vrot.lane.b32.xlu1 %v10477_v56, %s11099_s11  ;;  %7004 = vrot.lane.b32.xlu0 %v10479_v9, %s11099_s11  ;;  %v5306_v19 = vsel %vm11109_vm9, %v5295_v51, 0  ;;  %vm11125_vm8 = vmmov %vm11115_vm0 }
 0x68f   : > { %5367 = vmatpush1.bf16.msra.mxu0 %v5306_v19  ;;  %5384 = vmatprep.mubr.bf16.mxu0 %v8988_v0  ;;  %v5524_v52 = vsel %vm11125_vm8, %v5517_v30, 0  ;;  %vm11126_vm11 = vmmov %vm11115_vm0 }
 0x690   : > { %v5624_v33 = vpop.permute.xlu1 %5623  ;;  %v5402_v5 = vpop.permute.xlu0 %5401  ;;  %vm11127_vm9 = vmmov %vm11120_vm2 }
 0x691   : > { %v5406_v8 = vsel %vm11111_vm10, %v5400_v63, %v5402_v5  ;;  %vm11128_vm1 = vmmov %vm11115_vm0 }
 0x692   : > { %7114 = vrot.lane.b32.xlu1 %v10453_v41, %s11112_s20  ;;  %7008 = vrot.lane.b32.xlu0 %v10490_v10, %s11099_s11  ;;  %vm11129_vm10 = vmmov %vm11115_vm0 }
 0x693   : > { %8655 = vmatmul.mubr.msk.bf16.vlgmr.msra.gmra.mxu1 %vm11113_vm4, %v8653_v54  ;;  %8657 = vmatmul.mubr.msk.bf16.vlgmr.msra.gmra.mxu0 %vm11114_vm3, %v8653_v54  ;;  %vm11130_vm4 = vcmask 883712   ;;  %vm11133_vm0 = vmmov %vm11124_vm7 }
 0x694   : > { %8659 = vmatprep.subr.msk.bf16.mxu1 %vm11116_vm13, %v5406_v8  ;;  %v5404_v15 = vpop.permute.xlu1 %5403  ;;  %v5622_v25 = vpop.permute.xlu0 %5621  ;;  %5455 = vmatprep.mubr.bf16.mxu1 %v8988_v0  ;;  %vm11131_vm3 = vmmov %vm11130_vm4 }
 0x695   : > { %5438 = vmatpush1.bf16.msra.mxu1 %v5412_v11  ;;  %v5407_v34 = vsel %vm11117_vm15, %v5402_v5, %v5404_v15  ;;  %8661 = vmatprep.subr.msk.bf16.mxu0 %vm11118_vm5, %v5404_v15  ;;  %v5629_v1 = vsel %vm11130_vm4, %v5622_v25, %v5624_v33  ;;  %vm11134_vm13 = vmmov %vm11133_vm0  ;;  %v8683_v25 = vld [vmem:[%s10962_s7 + $0x24] sm:$0xf] }
 0x696   : > { %7118 = vrot.lane.b32.xlu1 %v10477_v56, %s11112_s20  ;;  %7116 = vrot.lane.b32.xlu0 %v10479_v9, %s11112_s20  ;;  %v5418_v59 = vsel %vm11119_vm12, %v5407_v34, 0  ;;  %vm11135_vm15 = vmmov %vm11128_vm1 }
 0x697   : > { %5479 = vmatpush1.bf16.msra.mxu0 %v5418_v59  ;;  %5496 = vmatprep.mubr.bf16.mxu0 %v8988_v0  ;;  %v5636_v3 = vsel %vm11135_vm15, %v5629_v1, 0  ;;  %vm11136_vm5 = vmmov %vm11128_vm1 }
 0x698   : > { %v5736_v28 = vpop.permute.xlu1 %5735  ;;  %v5514_v26 = vpop.permute.xlu0 %5513  ;;  %vm11137_vm12 = vmmov %vm11131_vm3 }
 0x699   : > { %v5518_v47 = vsel %vm11121_vm6, %v5512_v36, %v5514_v26  ;;  %vm11138_vm2 = vmmov %vm11128_vm1 }
 0x69a   : > { %7226 = vrot.lane.b32.xlu1 %v10453_v41, %s11122_s29  ;;  %7120 = vrot.lane.b32.xlu0 %v10490_v10, %s11112_s20  ;;  %vm11139_vm6 = vmmov %vm11128_vm1  ;;  %s11142_s20 = smov 45  }
 0x69b   : > { %8660 = vmatmul.mubr.msk.bf16.vlgmr.msra.gmra.mxu1 %vm11123_vm14, %v8658_v39  ;;  %8662 = vmatmul.mubr.msk.bf16.vlgmr.msra.gmra.mxu0 %vm11124_vm7, %v8658_v39  ;;  %vm11140_vm14 = vcmask 875520   ;;  %vm11143_vm8 = vmmov %vm11133_vm0 }
 0x69c   : > { %8664 = vmatprep.subr.msk.bf16.mxu1 %vm11126_vm11, %v5518_v47  ;;  %v5516_v45 = vpop.permute.xlu1 %5515  ;;  %v5734_v49 = vpop.permute.xlu0 %5733  ;;  %5567 = vmatprep.mubr.bf16.mxu1 %v8988_v0  ;;  %vm11141_vm7 = vmmov %vm11140_vm14 }
 0x69d   : > { %5550 = vmatpush1.bf16.msra.mxu1 %v5524_v52  ;;  %v5519_v42 = vsel %vm11127_vm9, %v5514_v26, %v5516_v45  ;;  %8666 = vmatprep.subr.msk.bf16.mxu0 %vm11128_vm1, %v5516_v45  ;;  %v5741_v63 = vsel %vm11140_vm14, %v5734_v49, %v5736_v28  ;;  %vm11144_vm11 = vmmov %vm11133_vm0  ;;  %v8688_v49 = vld [vmem:[%s10962_s7 + $0x28] sm:$0xf] }
 0x69e   : > { %7230 = vrot.lane.b32.xlu1 %v10477_v56, %s11122_s29  ;;  %7228 = vrot.lane.b32.xlu0 %v10479_v9, %s11122_s29  ;;  %v5530_v48 = vsel %vm11129_vm10, %v5519_v42, 0  ;;  %vm11145_vm9 = vmmov %vm11128_vm1 }
 0x69f   : > { %5591 = vmatpush1.bf16.msra.mxu0 %v5530_v48  ;;  %5608 = vmatprep.mubr.bf16.mxu0 %v8988_v0  ;;  %v5748_v14 = vsel %vm11145_vm9, %v5741_v63, 0  ;;  %vm11146_vm10 = vmmov %vm11141_vm7 }
 0x6a0   : > { %v5848_v50 = vpop.permute.xlu1 %5847  ;;  %v5626_v4 = vpop.permute.xlu0 %5625  ;;  %vm11147_vm4 = vmmov %vm11128_vm1 }
 0x6a1   : > { %v5630_v40 = vsel %vm11131_vm3, %v5624_v33, %v5626_v4  ;;  %vm11148_vm3 = vmmov %vm11128_vm1 }
 0x6a2   : > { %7338 = vrot.lane.b32.xlu1 %v10453_v41, %s11132_s16  ;;  %7232 = vrot.lane.b32.xlu0 %v10490_v10, %s11122_s29  ;;  %vm11152_vm15 = vmmov %vm11143_vm8 }
 0x6a3   : > { %8665 = vmatmul.mubr.msk.bf16.vlgmr.msra.gmra.mxu1 %vm11133_vm0, %v8663_v61  ;;  %8667 = vmatmul.mubr.msk.bf16.vlgmr.msra.gmra.mxu0 %vm11134_vm13, %v8663_v61  ;;  %vm11149_vm0 = vcmask 867328   ;;  %vm11157_vm14 = vmmov %vm11128_vm1 }
 0x6a4   : > { %8669 = vmatprep.subr.msk.bf16.mxu1 %vm11136_vm5, %v5630_v40  ;;  %v5628_v2 = vpop.permute.xlu1 %5627  ;;  %v5846_v57 = vpop.permute.xlu0 %5845  ;;  %5679 = vmatprep.mubr.bf16.mxu1 %v8988_v0  ;;  %vm11150_vm13 = vmmov %vm11149_vm0 }
 0x6a5   : > { %5662 = vmatpush1.bf16.msra.mxu1 %v5636_v3  ;;  %v5631_v53 = vsel %vm11137_vm12, %v5626_v4, %v5628_v2  ;;  %8671 = vmatprep.subr.msk.bf16.mxu0 %vm11138_vm2, %v5628_v2  ;;  %v5853_v29 = vsel %vm11149_vm0, %v5846_v57, %v5848_v50  ;;  %vm11153_vm5 = vmmov %vm11143_vm8  ;;  %v8693_v57 = vld [vmem:[%s10962_s7 + $0x2c] sm:$0xf] }
 0x6a6   : > { %7342 = vrot.lane.b32.xlu1 %v10477_v56, %s11132_s16  ;;  %7340 = vrot.lane.b32.xlu0 %v10479_v9, %s11132_s16  ;;  %v5642_v17 = vsel %vm11139_vm6, %v5631_v53, 0  ;;  %vm11154_vm12 = vmmov %vm11128_vm1 }
 0x6a7   : > { %5703 = vmatpush1.bf16.msra.mxu0 %v5642_v17  ;;  %5720 = vmatprep.mubr.bf16.mxu0 %v8988_v0  ;;  %v5860_v24 = vsel %vm11154_vm12, %v5853_v29, 0  ;;  %vm11155_vm2 = vmmov %vm11128_vm1 }
 0x6a8   : > { %v5960_v46 = vpop.permute.xlu1 %5959  ;;  %v5738_v13 = vpop.permute.xlu0 %5737  ;;  %vm11156_vm6 = vmmov %vm11149_vm0 }
 0x6a9   : > { %v5742_v20 = vsel %vm11141_vm7, %v5736_v28, %v5738_v13  ;;  %vm11158_vm7 = vmmov %vm11128_vm1 }
 0x6aa   : > { %7450 = vrot.lane.b32.xlu1 %v10453_v41, %s11142_s20  ;;  %7344 = vrot.lane.b32.xlu0 %v10490_v10, %s11132_s16  ;;  %vm11162_vm9 = vmmov %vm11153_vm5 }
 0x6ab   : > { %8670 = vmatmul.mubr.msk.bf16.vlgmr.msra.gmra.mxu1 %vm11143_vm8, %v8668_v60  ;;  %8672 = vmatmul.mubr.msk.bf16.vlgmr.msra.gmra.mxu0 %vm11144_vm11, %v8668_v60  ;;  %vm11159_vm8 = vcmask 228352   ;;  %vm11167_vm0 = vmmov %vm11155_vm2 }
 0x6ac   : > { %8674 = vmatprep.subr.msk.bf16.mxu1 %vm11128_vm1, %v5742_v20  ;;  %v5740_v23 = vpop.permute.xlu1 %5739  ;;  %v5958_v32 = vpop.permute.xlu0 %5957  ;;  %5791 = vmatprep.mubr.bf16.mxu1 %v8988_v0  ;;  %vm11160_vm11 = vmmov %vm11159_vm8  ;;  %v8698_v20 = vld [vmem:[%s10962_s7 + $0x30] sm:$0xf] }
 0x6ad   : > { %5774 = vmatpush1.bf16.msra.mxu1 %v5748_v14  ;;  %v5743_v58 = vsel %vm11146_vm10, %v5738_v13, %v5740_v23  ;;  %8676 = vmatprep.subr.msk.bf16.mxu0 %vm11147_vm4, %v5740_v23  ;;  %v5965_v51 = vsel %vm11159_vm8, %v5958_v32, %v5960_v46  ;;  %vm11163_vm1 = vmmov %vm11153_vm5 }
 0x6ae   : > { %7454 = vrot.lane.b32.xlu1 %v10477_v56, %s11142_s20  ;;  %7452 = vrot.lane.b32.xlu0 %v10479_v9, %s11142_s20  ;;  %v5754_v18 = vsel %vm11148_vm3, %v5743_v58, 0  ;;  %vm11164_vm10 = vmmov %vm11155_vm2 }
 0x6af   : > { %5815 = vmatpush1.bf16.msra.mxu0 %v5754_v18  ;;  %5832 = vmatprep.mubr.bf16.mxu0 %v8988_v0  ;;  %v5972_v33 = vsel %vm11164_vm10, %v5965_v51, 0  ;;  %vm11165_vm4 = vmmov %vm11155_vm2 }
 0x6b0   : > { %v6072_v35 = vpop.permute.xlu1 %6071  ;;  %v5850_v7 = vpop.permute.xlu0 %5849  ;;  %vm11166_vm3 = vmmov %vm11159_vm8 }
 0x6b1   : > { %v5854_v36 = vsel %vm11150_vm13, %v5848_v50, %v5850_v7  ;;  %vm11168_vm13 = vmmov %vm11167_vm0 }
 0x6b2   : > { %7562 = vrot.lane.b32.xlu1 %v10453_v41, %s11151_s12  ;;  %7456 = vrot.lane.b32.xlu0 %v10490_v10, %s11142_s20  ;;  %vm11172_vm12 = vmmov %vm11163_vm1  ;;  %s9044_s20 = smov 124  }
 0x6b3   : > { %8675 = vmatmul.mubr.msk.bf16.vlgmr.msra.gmra.mxu1 %vm11152_vm15, %v8673_v62  ;;  %8677 = vmatmul.mubr.msk.bf16.vlgmr.msra.gmra.mxu0 %vm11153_vm5, %v8673_v62  ;;  %vm11169_vm15 = vcmask 220160   ;;  %vm11177_vm8 = vmmov %vm11167_vm0 }
 0x6b4   : > { %8679 = vmatprep.subr.msk.bf16.mxu1 %vm11155_vm2, %v5854_v36  ;;  %v5852_v31 = vpop.permute.xlu1 %5851  ;;  %v6070_v22 = vpop.permute.xlu0 %6069  ;;  %5903 = vmatprep.mubr.bf16.mxu1 %v8988_v0  ;;  %vm11170_vm5 = vmmov %vm11169_vm15  ;;  %v8703_v36 = vld [vmem:[%s10962_s7 + $0x34] sm:$0xf] }
 0x6b5   : > { %5886 = vmatpush1.bf16.msra.mxu1 %v5860_v24  ;;  %v5855_v38 = vsel %vm11156_vm6, %v5850_v7, %v5852_v31  ;;  %8681 = vmatprep.subr.msk.bf16.mxu0 %vm11157_vm14, %v5852_v31  ;;  %v6077_v34 = vsel %vm11169_vm15, %v6070_v22, %v6072_v35  ;;  %vm11173_vm2 = vmmov %vm11163_vm1 }
 0x6b6   : > { %7566 = vrot.lane.b32.xlu1 %v10477_v56, %s11151_s12  ;;  %7564 = vrot.lane.b32.xlu0 %v10479_v9, %s11151_s12  ;;  %v5866_v43 = vsel %vm11158_vm7, %v5855_v38, 0  ;;  %vm11174_vm6 = vmmov %vm11167_vm0 }
 0x6b7   : > { %5927 = vmatpush1.bf16.msra.mxu0 %v5866_v43  ;;  %5944 = vmatprep.mubr.bf16.mxu0 %v8988_v0  ;;  %v6084_v28 = vsel %vm11174_vm6, %v6077_v34, 0  ;;  %vm11175_vm14 = vmmov %vm11167_vm0 }
 0x6b8   : > { %v6184_v55 = vpop.permute.xlu1 %6183  ;;  %v5962_v27 = vpop.permute.xlu0 %5961  ;;  %vm11176_vm7 = vmmov %vm11170_vm5 }
 0x6b9   : > { %v5966_v19 = vsel %vm11160_vm11, %v5960_v46, %v5962_v27  ;;  %vm11178_vm11 = vmmov %vm11167_vm0 }
 0x6ba   : > { %7674 = vrot.lane.b32.xlu1 %v10453_v41, %s11161_s18  ;;  %7568 = vrot.lane.b32.xlu0 %v10490_v10, %s11151_s12  ;;  %vm11181_vm10 = vmmov %vm11173_vm2 }
 0x6bb   : > { %8680 = vmatmul.mubr.msk.bf16.vlgmr.msra.gmra.mxu1 %vm11162_vm9, %v8678_v44  ;;  %8682 = vmatmul.mubr.msk.bf16.vlgmr.msra.gmra.mxu0 %vm11163_vm1, %v8678_v44  ;;  %vm11179_vm9 = vcmask 211968   ;;  %vm11185_vm15 = vmmov %vm11167_vm0 }
 0x6bc   : > { %8684 = vmatprep.subr.msk.bf16.mxu1 %vm11165_vm4, %v5966_v19  ;;  %v5964_v5 = vpop.permute.xlu1 %5963  ;;  %v6182_v54 = vpop.permute.xlu0 %6181  ;;  %6015 = vmatprep.mubr.bf16.mxu1 %v8988_v0  ;;  %vm11180_vm1 = vmmov %vm11179_vm9  ;;  %v8708_v19 = vld [vmem:[%s10962_s7 + $0x38] sm:$0xf] }
 0x6bd   : > { %5998 = vmatpush1.bf16.msra.mxu1 %v5972_v33  ;;  %v5967_v21 = vsel %vm11166_vm3, %v5962_v27, %v5964_v5  ;;  %8686 = vmatprep.subr.msk.bf16.mxu0 %vm11167_vm0, %v5964_v5  ;;  %v6189_v42 = vsel %vm11179_vm9, %v6182_v54, %v6184_v55  ;;  %vm11182_vm4 = vmmov %vm11173_vm2 }
 0x6be   : > { %7678 = vrot.lane.b32.xlu1 %v10477_v56, %s11161_s18  ;;  %7676 = vrot.lane.b32.xlu0 %v10479_v9, %s11161_s18  ;;  %v5978_v8 = vsel %vm11168_vm13, %v5967_v21, 0  ;;  %vm11183_vm3 = vmmov %vm11167_vm0 }
 0x6bf   : > { %6039 = vmatpush1.bf16.msra.mxu0 %v5978_v8  ;;  %6056 = vmatprep.mubr.bf16.mxu0 %v8988_v0  ;;  %v6196_v50 = vsel %vm11183_vm3, %v6189_v42, 0  ;;  %vm11184_vm13 = vmmov %vm11180_vm1 }
 0x6c0   : > { %v6296_v11 = vpop.permute.xlu1 %6295  ;;  %v6074_v15 = vpop.permute.xlu0 %6073  ;;  %vm11189_vm6 = vmmov %vm11167_vm0 }
 0x6c1   : > { %v6078_v59 = vsel %vm11170_vm5, %v6072_v35, %v6074_v15  ;;  %vm11186_vm5 = vmmov %vm11167_vm0 }
 0x6c2   : > { %7786 = vrot.lane.b32.xlu1 %v10453_v41, %s11171_s26  ;;  %7680 = vrot.lane.b32.xlu0 %v10490_v10, %s11161_s18  ;;  %vm11194_vm9 = vmmov %vm11167_vm0  ;;  %s9051_s18 = smov 42  }
 0x6c3   : > { %8685 = vmatmul.mubr.msk.bf16.vlgmr.msra.gmra.mxu1 %vm11172_vm12, %v8683_v25  ;;  %8687 = vmatmul.mubr.msk.bf16.vlgmr.msra.gmra.mxu0 %vm11173_vm2, %v8683_v25  ;;  %vm11187_vm12 = vcmask 146432   ;;  %vm11198_vm3 = vmmov %vm11167_vm0 }
 0x6c4   : > { %8689 = vmatprep.subr.msk.bf16.mxu1 %vm11175_vm14, %v6078_v59  ;;  %v6076_v26 = vpop.permute.xlu1 %6075  ;;  %v6294_v39 = vpop.permute.xlu0 %6293  ;;  %6127 = vmatprep.mubr.bf16.mxu1 %v8988_v0  ;;  %vm11188_vm2 = vmmov %vm11187_vm12 }
 0x6c5   : > { %6110 = vmatpush1.bf16.msra.mxu1 %v6084_v28  ;;  %v6079_v30 = vsel %vm11176_vm7, %v6074_v15, %v6076_v26  ;;  %8691 = vmatprep.subr.msk.bf16.mxu0 %vm11177_vm8, %v6076_v26  ;;  %v6301_v40 = vsel %vm11187_vm12, %v6294_v39, %v6296_v11  ;;  %vm11190_vm14 = vmmov %vm11167_vm0  ;;  %v8713_v28 = vld [vmem:[%s10962_s7 + $0x3c] sm:$0xf] }
 0x6c6   : > { %v6090_v47 = vsel %vm11178_vm11, %v6079_v30, 0  ;;  %7790 = vrot.lane.b32.xlu1 %v10477_v56, %s11171_s26  ;;  %7788 = vrot.lane.b32.xlu0 %v10479_v9, %s11171_s26  ;;  %vm11191_vm7 = vmmov %vm11182_vm4 }
 0x6c7   : > { %6151 = vmatpush1.bf16.msra.mxu0 %v6090_v47  ;;  %6168 = vmatprep.mubr.bf16.mxu0 %v8988_v0  ;;  %vm11192_vm8 = vmmov %vm11182_vm4 }
 0x6c8   : > { %v6408_v52 = vpop.permute.xlu1 %6407  ;;  %v6186_v45 = vpop.permute.xlu0 %6185  ;;  %vm11193_vm11 = vmmov %vm11188_vm2 }
 0x6c9   : > { %v6190_v48 = vsel %vm11180_vm1, %v6184_v55, %v6186_v45  ;;  %vm11195_vm1 = vmmov %vm11167_vm0 }
 0x6ca   : > { %7898 = vrot.lane.b32.xlu1 %v10453_v41, %s9043_s15  ;;  %7792 = vrot.lane.b32.xlu0 %v10490_v10, %s11171_s26  ;;  %vm11202_vm12 = vmmov %vm11167_vm0  ;;  %s9047_s26 = smov 120  }
 0x6cb   : > { %8690 = vmatmul.mubr.msk.bf16.vlgmr.msra.gmra.mxu1 %vm11181_vm10, %v8688_v49  ;;  %8692 = vmatmul.mubr.msk.bf16.vlgmr.msra.gmra.mxu0 %vm11182_vm4, %v8688_v49  ;;  %vm11196_vm10 = vcmask 138240  }
 0x6cc   : > { %8694 = vmatprep.subr.msk.bf16.mxu1 %vm11167_vm0, %v6190_v48  ;;  %v6188_v4 = vpop.permute.xlu1 %6187  ;;  %v6406_v61 = vpop.permute.xlu0 %6405  ;;  %6239 = vmatprep.mubr.bf16.mxu1 %v8988_v0  ;;  %vm11197_vm4 = vmmov %vm11196_vm10 }
 0x6cd   : > { %6222 = vmatpush1.bf16.msra.mxu1 %v6196_v50  ;;  %v6191_v1 = vsel %vm11184_vm13, %v6186_v45, %v6188_v4  ;;  %8696 = vmatprep.subr.msk.bf16.mxu0 %vm11185_vm15, %v6188_v4  ;;  %v6413_v13 = vsel %vm11196_vm10, %v6406_v61, %v6408_v52  ;;  %vm11199_vm13 = vmmov %vm11191_vm7  ;;  %v8723_v50 = vld [vmem:[%s10962_s7 + $0x40] sm:$0xf] }
 0x6ce   : > { %v6202_v41 = vsel %vm11186_vm5, %v6191_v1, 0  ;;  %7902 = vrot.lane.b32.xlu1 %v10477_v56, %s9043_s15  ;;  %7900 = vrot.lane.b32.xlu0 %v10479_v9, %s9043_s15  ;;  %v6308_v56 = vsel %vm11190_vm14, %v6301_v40, 0  ;;  %v6420_v23 = vsel %vm11167_vm0, %v6413_v13, 0  ;;  %vm11200_vm15 = vmmov %vm11191_vm7 }
 0x6cf   : > { %6263 = vmatpush1.bf16.msra.mxu0 %v6202_v41  ;;  %6280 = vmatprep.mubr.bf16.mxu0 %v8988_v0  ;;  %vm11201_vm5 = vmmov %vm11197_vm4 }
 0x6d0   : > { %v6520_v3 = vpop.permute.xlu1 %6519  ;;  %v6298_v2 = vpop.permute.xlu0 %6297  ;;  %vm11211_vm10 = vmmov %vm11167_vm0 }
 0x6d1   : > { %v6302_v53 = vsel %vm11188_vm2, %v6296_v11, %v6298_v2  ;;  %vm11203_vm2 = vmmov %vm11167_vm0 }
 0x6d2   : > { %7904 = vrot.lane.b32.xlu0 %v10490_v10, %s9043_s15  ;;  %8699 = vmatprep.subr.msk.bf16.mxu1 %vm11189_vm6, %v6302_v53  ;;  %vm11204_vm6 = vcmask 130048   ;;  %s9045_s15 = smov 122  }
 0x6d3   : > { %8695 = vmatmul.mubr.msk.bf16.vlgmr.msra.gmra.mxu1 %vm11191_vm7, %v8693_v57  ;;  %8697 = vmatmul.mubr.msk.bf16.vlgmr.msra.gmra.mxu0 %vm11192_vm8, %v8693_v57  ;;  %vm11205_vm14 = vmmov %vm11204_vm6 }
 0x6d4   : > { %6334 = vmatpush1.bf16.msra.mxu1 %v6308_v56  ;;  %v6300_v9 = vpop.permute.xlu1 %6299  ;;  %v6518_v17 = vpop.permute.xlu0 %6517  ;;  %6351 = vmatprep.mubr.bf16.mxu1 %v8988_v0  ;;  %vm11206_vm7 = vmmov %vm11167_vm0  ;;  %v8728_v56 = vld [vmem:[%s10962_s7 + $0x44] sm:$0xf] }
 0x6d5   : > { %v6303_v46 = vsel %vm11193_vm11, %v6298_v2, %v6300_v9  ;;  %8701 = vmatprep.subr.msk.bf16.mxu0 %vm11194_vm9, %v6300_v9  ;;  %6392 = vmatprep.mubr.bf16.mxu0 %v8988_v0  ;;  %v6525_v7 = vsel %vm11204_vm6, %v6518_v17, %v6520_v3  ;;  %vm11207_vm8 = vmmov %vm11167_vm0 }
 0x6d6   : > { %v6314_v10 = vsel %vm11195_vm1, %v6303_v46, 0  ;;  %v6532_v31 = vsel %vm11207_vm8, %v6525_v7, 0  ;;  %vm11208_vm11 = vmmov %vm11199_vm13  ;;  %vm11223_vm8 = vcmask 56320  }
 0x6d7   : > { %6375 = vmatpush1.bf16.msra.mxu0 %v6314_v10  ;;  %vm11209_vm9 = vmmov %vm11208_vm11 }
 0x6d8   : > { %v6648_v60 = vpop.permute.xlu1 %6647  ;;  %v6410_v63 = vpop.permute.xlu0 %6409  ;;  %vm11210_vm1 = vmmov %vm11204_vm6 }
 0x6d9   : > { %v6414_v14 = vsel %vm11197_vm4, %v6408_v52, %v6410_v63  ;;  %vm11212_vm4 = vmmov %vm11167_vm0 }
 0x6da   : > { %8704 = vmatprep.subr.msk.bf16.mxu1 %vm11198_vm3, %v6414_v14  ;;  %vm11213_vm3 = vmmov %vm11209_vm9 }
 0x6db   : > { %8700 = vmatmul.mubr.msk.bf16.vlgmr.msra.gmra.mxu1 %vm11199_vm13, %v8698_v20  ;;  %8702 = vmatmul.mubr.msk.bf16.vlgmr.msra.gmra.mxu0 %vm11200_vm15, %v8698_v20  ;;  %vm11214_vm0 = vmmov %vm11213_vm3 }
 0x6dc   : > { %6446 = vmatpush1.bf16.msra.mxu1 %v6420_v23  ;;  %v6412_v32 = vpop.permute.xlu1 %6411  ;;  %v6646_v58 = vpop.permute.xlu0 %6645  ;;  %6463 = vmatprep.mubr.bf16.mxu1 %v8988_v0  ;;  %vm11215_vm13 = vmmov %vm11203_vm2  ;;  %v8733_v23 = vld [vmem:[%s10962_s7 + $0x48] sm:$0xf] }
 0x6dd   : > { %v6415_v18 = vsel %vm11201_vm5, %v6410_v63, %v6412_v32  ;;  %8706 = vmatprep.subr.msk.bf16.mxu0 %vm11202_vm12, %v6412_v32  ;;  %6504 = vmatprep.mubr.bf16.mxu0 %v8988_v0  ;;  %v6655_v27 = vsel %vm11213_vm3, %v6646_v58, %v6648_v60  ;;  %vm11216_vm15 = vmmov %vm11203_vm2 }
 0x6de   : > { %v6426_v35 = vsel %vm11203_vm2, %v6415_v18, 0  ;;  %v6663_v5 = vsel %vm11216_vm15, %v6655_v27, 0  ;;  %vm11217_vm5 = vmmov %vm11214_vm0 }
 0x6df   : > { %6487 = vmatpush1.bf16.msra.mxu0 %v6426_v35  ;;  %vm11218_vm12 = vmmov %vm11214_vm0 }
 0x6e0   : > { %v6761_v62 = vpop.permute.xlu1 %6760  ;;  %v6522_v29 = vpop.permute.xlu0 %6521  ;;  %vm11219_vm2 = vmmov %vm11214_vm0 }
 0x6e1   : > { %v6526_v24 = vsel %vm11205_vm14, %v6520_v3, %v6522_v29  ;;  %vm11220_vm6 = vmmov %vm11214_vm0 }
 0x6e2   : > { %8709 = vmatprep.subr.msk.bf16.mxu1 %vm11206_vm7, %v6526_v24  ;;  %vm11221_vm14 = vmmov %vm11212_vm4 }
 0x6e3   : > { %8705 = vmatmul.mubr.msk.bf16.vlgmr.msra.gmra.mxu1 %vm11208_vm11, %v8703_v36  ;;  %8707 = vmatmul.mubr.msk.bf16.vlgmr.msra.gmra.mxu0 %vm11209_vm9, %v8703_v36  ;;  %vm11222_vm7 = vmmov %vm11212_vm4 }
 0x6e4   : > { %6558 = vmatpush1.bf16.msra.mxu1 %v6532_v31  ;;  %v6524_v22 = vpop.permute.xlu1 %6523  ;;  %v6654_v38 = vpop.permute.xlu0 %6653  ;;  %6575 = vmatprep.mubr.bf16.mxu1 %v8988_v0  ;;  %vm11224_vm11 = vmmov %vm11223_vm8  ;;  %v8742_v31 = vld [vmem:[%s10962_s7 + $0x4c] sm:$0xf] }
 0x6e5   : > { %v6527_v43 = vsel %vm11210_vm1, %v6522_v29, %v6524_v22  ;;  %8711 = vmatprep.subr.msk.bf16.mxu0 %vm11211_vm10, %v6524_v22  ;;  %6616 = vmatprep.mubr.bf16.mxu0 %v8988_v0  ;;  %vm11225_vm9 = vmmov %vm11212_vm4 }
 0x6e6   : > { %v6538_v55 = vsel %vm11212_vm4, %v6527_v43, 0  ;;  %vm11226_vm1 = vmmov %vm11212_vm4 }
 0x6e7   : > { %6599 = vmatpush1.bf16.msra.mxu0 %v6538_v55  ;;  %vm11227_vm10 = vmmov %vm11214_vm0 }
 0x6e8   : > { %v6769_v44 = vpop.permute.xlu1 %6768  ;;  %v6650_v51 = vpop.permute.xlu0 %6649  ;;  %vm11228_vm4 = vmmov %vm11214_vm0 }
 0x6e9   : > { %v6656_v33 = vsel %vm11214_vm0, %v6648_v60, %v6650_v51  ;;  %vm11229_vm3 = vmmov %vm11223_vm8 }
 0x6ea   : > { %8719 = vmatprep.subr.msk.bf16.mxu1 %vm11215_vm13, %v6656_v33  ;;  %vm11230_vm0 = vmmov %vm11229_vm3 }
 0x6eb   : > { %8710 = vmatmul.mubr.msk.bf16.vlgmr.msra.gmra.mxu1 %vm11217_vm5, %v8708_v19  ;;  %8712 = vmatmul.mubr.msk.bf16.vlgmr.msra.gmra.mxu0 %vm11218_vm12, %v8708_v19  ;;  %vm11231_vm13 = vmmov %vm11226_vm1  ;;  %vm11233_vm5 = vcmask 48128  }
 0x6ec   : > { %6689 = vmatpush1.bf16.msra.mxu1 %v6663_v5  ;;  %v6652_v54 = vpop.permute.xlu1 %6651  ;;  %v6763_v21 = vpop.permute.xlu0 %6762  ;;  %6706 = vmatprep.mubr.bf16.mxu1 %v8988_v0  ;;  %vm11232_vm15 = vmmov %vm11226_vm1  ;;  %v8747_v5 = vld [vmem:[%s10962_s7 + $0x50] sm:$0xf] }
 0x6ed   : > { %v6657_v8 = vsel %vm11219_vm2, %v6650_v51, %v6652_v54  ;;  %v6658_v11 = vsel %vm11220_vm6, %v6652_v54, %v6654_v38  ;;  %6747 = vmatprep.mubr.bf16.mxu0 %v8988_v0  ;;  %v6770_v25 = vsel %vm11223_vm8, %v6761_v62, %v6763_v21  ;;  %vm11234_vm12 = vmmov %vm11233_vm5 }
 0x6ee   : > { %v6669_v15 = vsel %vm11221_vm14, %v6657_v8, 0  ;;  %8721 = vmatprep.subr.msk.bf16.mxu0 %vm11222_vm7, %v6658_v11  ;;  %v6778_v39 = vsel %vm11226_vm1, %v6770_v25, 0  ;;  %vm11235_vm2 = vmmov %vm11226_vm1 }
 0x6ef   : > { %6730 = vmatpush1.bf16.msra.mxu0 %v6669_v15  ;;  %vm11236_vm6 = vmmov %vm11226_vm1 }
 0x6f0   : > { %v6765_v34 = vpop.permute.xlu1 %6764  ;;  %v6876_v59 = vpop.permute.xlu0 %6875  ;;  %vm11237_vm14 = vmmov %vm11228_vm4 }
 0x6f1   : > { %v6771_v26 = vsel %vm11224_vm11, %v6763_v21, %v6765_v34  ;;  %vm11238_vm7 = vmmov %vm11228_vm4 }
 0x6f2   : > { %398 = vadd.xlane.f32.xlu1 %v9148_v16  ;;  %8724 = vmatprep.subr.msk.bf16.mxu1 %vm11225_vm9, %v6771_v26  ;;  %vm11239_vm8 = vmmov %vm11233_vm5  ;;  %v8752_v26 = vld [vmem:[%s10962_s7 + $0x54] sm:$0xf] }
 0x6f3   : > { %8720 = vmatmul.mubr.msk.bf16.vlgmr.msra.gmra.mxu1 %vm11227_vm10, %v8713_v28  ;;  %8722 = vmatmul.mubr.msk.bf16.vlgmr.msra.gmra.mxu0 %vm11228_vm4, %v8713_v28  ;;  %vm11240_vm11 = vmmov %vm11233_vm5  ;;  %vm11242_vm10 = vcmask 457728  }
 0x6f4   : > { %6804 = vmatpush1.bf16.msra.mxu1 %v6778_v39  ;;  %v6878_v30 = vpop.permute.xlu1 %6877  ;;  %v6767_v47 = vpop.permute.xlu0 %6766  ;;  %6821 = vmatprep.mubr.bf16.mxu1 %v8988_v0  ;;  %vm11241_vm9 = vmmov %vm11226_vm1 }
 0x6f5   : > { %v6772_v52 = vsel %vm11229_vm3, %v6765_v34, %v6767_v47  ;;  %v6773_v45 = vsel %vm11230_vm0, %v6767_v47, %v6769_v44  ;;  %6862 = vmatprep.mubr.bf16.mxu0 %v8988_v0  ;;  %v6885_v49 = vsel %vm11233_vm5, %v6876_v59, %v6878_v30  ;;  %vm11243_vm4 = vmmov %vm11242_vm10 }
 0x6f6   : > { %v6784_v16 = vsel %vm11231_vm13, %v6772_v52, 0  ;;  %8726 = vmatprep.subr.msk.bf16.mxu0 %vm11232_vm15, %v6773_v45  ;;  %v6893_v61 = vsel %vm11236_vm6, %v6885_v49, 0  ;;  %vm11244_vm3 = vmmov %vm11226_vm1  ;;  %vm11251_vm6 = vcmask 449536  }
 0x6f7   : > { %6845 = vmatpush1.bf16.msra.mxu0 %v6784_v16  ;;  %vm11245_vm0 = vmmov %vm11226_vm1 }
 0x6f8   : > { %v7003_v42 = vpop.permute.xlu1 %7002  ;;  %v6880_v48 = vpop.permute.xlu0 %6879  ;;  %vm11246_vm13 = vmmov %vm11238_vm7 }
 0x6f9   : > { %v6886_v4 = vsel %vm11234_vm12, %v6878_v30, %v6880_v48  ;;  %vm11247_vm15 = vmmov %vm11238_vm7 }
 0x6fa   : > { %8729 = vmatprep.subr.msk.bf16.mxu1 %vm11235_vm2, %v6886_v4  ;;  %vm11248_vm5 = vmmov %vm11243_vm4 }
 0x6fb   : > { %8725 = vmatmul.mubr.msk.bf16.vlgmr.msra.gmra.mxu1 %vm11237_vm14, %v8723_v50  ;;  %8727 = vmatmul.mubr.msk.bf16.vlgmr.msra.gmra.mxu0 %vm11238_vm7, %v8723_v50  ;;  %vm11249_vm12 = vmmov %vm11245_vm0  ;;  %v8757_v50 = vld [vmem:[%s10962_s7 + $0x58] sm:$0xf] }
 0x6fc   : > { %6919 = vmatpush1.bf16.msra.mxu1 %v6893_v61  ;;  %v6882_v1 = vpop.permute.xlu1 %6881  ;;  %v6884_v41 = vpop.permute.xlu0 %6883  ;;  %6936 = vmatprep.mubr.bf16.mxu1 %v8988_v0  ;;  %vm11250_vm2 = vmmov %vm11245_vm0 }
 0x6fd   : > { %v6887_v40 = vsel %vm11239_vm8, %v6880_v48, %v6882_v1  ;;  %v6888_v3 = vsel %vm11240_vm11, %v6882_v1, %v6884_v41  ;;  %6977 = vmatprep.mubr.bf16.mxu0 %v8988_v0  ;;  %vm11252_vm14 = vmmov %vm11251_vm6 }
 0x6fe   : > { %v6899_v2 = vsel %vm11241_vm9, %v6887_v40, 0  ;;  %8731 = vmatprep.subr.msk.bf16.mxu0 %vm11226_vm1, %v6888_v3  ;;  %vm11253_vm7 = vmmov %vm11245_vm0 }
 0x6ff   : > { %6960 = vmatpush1.bf16.msra.mxu0 %v6899_v2  ;;  %vm11254_vm8 = vmmov %vm11245_vm0 }
 0x700   : > { %v7007_v57 = vpop.permute.xlu1 %7006  ;;  %v7005_v53 = vpop.permute.xlu0 %7004  ;;  %vm11255_vm11 = vmmov %vm11246_vm13 }
 0x701   : > { %v7010_v9 = vsel %vm11242_vm10, %v7003_v42, %v7005_v53  ;;  %v7011_v17 = vsel %vm11243_vm4, %v7005_v53, %v7007_v57  ;;  %vm11256_vm9 = vmmov %vm11255_vm11 }
 0x702   : > { %v7017_v46 = vsel %vm11244_vm3, %v7010_v9, 0  ;;  %8738 = vmatprep.subr.msk.bf16.mxu1 %vm11245_vm0, %v7011_v17  ;;  %vm11257_vm1 = vmmov %vm11251_vm6  ;;  %vm11260_vm3 = vcmask 441344  }
 0x703   : > { %8730 = vmatmul.mubr.msk.bf16.vlgmr.msra.gmra.mxu1 %vm11246_vm13, %v8728_v56  ;;  %8732 = vmatmul.mubr.msk.bf16.vlgmr.msra.gmra.mxu0 %vm11247_vm15, %v8728_v56  ;;  %vm11258_vm10 = vmmov %vm11245_vm0  ;;  %v8762_v56 = vld [vmem:[%s10962_s7 + $0x5c] sm:$0xf] }
 0x704   : > { %7043 = vmatpush1.bf16.msra.mxu1 %v7017_v46  ;;  %v7115_v10 = vpop.permute.xlu1 %7114  ;;  %v7009_v13 = vpop.permute.xlu0 %7008  ;;  %7060 = vmatprep.mubr.bf16.mxu1 %v8988_v0  ;;  %vm11259_vm4 = vmmov %vm11245_vm0 }
 0x705   : > { %v7012_v60 = vsel %vm11248_vm5, %v7007_v57, %v7009_v13  ;;  %8740 = vmatprep.subr.msk.bf16.mxu0 %vm11249_vm12, %v7009_v13  ;;  %7101 = vmatprep.mubr.bf16.mxu0 %v8988_v0  ;;  %vm11261_vm0 = vmmov %vm11260_vm3 }
 0x706   : > { %v7023_v63 = vsel %vm11250_vm2, %v7012_v60, 0  ;;  %vm11262_vm13 = vmmov %vm11250_vm2 }
 0x707   : > { %7084 = vmatpush1.bf16.msra.mxu0 %v7023_v63  ;;  %vm11263_vm15 = vmmov %vm11250_vm2 }
 0x708   : > { %v7119_v20 = vpop.permute.xlu1 %7118  ;;  %v7117_v14 = vpop.permute.xlu0 %7116  ;;  %vm11264_vm5 = vmmov %vm11256_vm9 }
 0x709   : > { %v7122_v32 = vsel %vm11251_vm6, %v7115_v10, %v7117_v14  ;;  %v7123_v58 = vsel %vm11252_vm14, %v7117_v14, %v7119_v20  ;;  %vm11265_vm12 = vmmov %vm11264_vm5 }
 0x70a   : > { %v7129_v18 = vsel %vm11253_vm7, %v7122_v32, 0  ;;  %8743 = vmatprep.subr.msk.bf16.mxu1 %vm11254_vm8, %v7123_v58  ;;  %vm11266_vm2 = vmmov %vm11261_vm0  ;;  %vm11269_vm7 = vcmask 375808  }
 0x70b   : > { %8739 = vmatmul.mubr.msk.bf16.vlgmr.msra.gmra.mxu1 %vm11255_vm11, %v8733_v23  ;;  %8741 = vmatmul.mubr.msk.bf16.vlgmr.msra.gmra.mxu0 %vm11256_vm9, %v8733_v23  ;;  %vm11267_vm6 = vmmov %vm11259_vm4  ;;  %v8767_v23 = vld [vmem:[%s10962_s7 + $0x60] sm:$0xf] }
 0x70c   : > { %7155 = vmatpush1.bf16.msra.mxu1 %v7129_v18  ;;  %v7227_v35 = vpop.permute.xlu1 %7226  ;;  %v7121_v7 = vpop.permute.xlu0 %7120  ;;  %7172 = vmatprep.mubr.bf16.mxu1 %v8988_v0  ;;  %vm11268_vm14 = vmmov %vm11259_vm4 }
 0x70d   : > { %v7124_v62 = vsel %vm11257_vm1, %v7119_v20, %v7121_v7  ;;  %8745 = vmatprep.subr.msk.bf16.mxu0 %vm11258_vm10, %v7121_v7  ;;  %7213 = vmatprep.mubr.bf16.mxu0 %v8988_v0  ;;  %vm11270_vm8 = vmmov %vm11269_vm7 }
 0x70e   : > { %v7135_v29 = vsel %vm11259_vm4, %v7124_v62, 0  ;;  %vm11271_vm11 = vmmov %vm11259_vm4 }
 0x70f   : > { %7196 = vmatpush1.bf16.msra.mxu0 %v7135_v29  ;;  %vm11272_vm9 = vmmov %vm11259_vm4 }
 0x710   : > { %v7231_v36 = vpop.permute.xlu1 %7230  ;;  %v7229_v24 = vpop.permute.xlu0 %7228  ;;  %vm11273_vm1 = vmmov %vm11264_vm5 }
 0x711   : > { %v7234_v22 = vsel %vm11260_vm3, %v7227_v35, %v7229_v24  ;;  %v7235_v38 = vsel %vm11261_vm0, %v7229_v24, %v7231_v36  ;;  %vm11274_vm10 = vmmov %vm11273_vm1 }
 0x712   : > { %v7241_v43 = vsel %vm11262_vm13, %v7234_v22, 0  ;;  %8748 = vmatprep.subr.msk.bf16.mxu1 %vm11263_vm15, %v7235_v38  ;;  %vm11275_vm4 = vmmov %vm11269_vm7  ;;  %vm11278_vm13 = vcmask 367616  }
 0x713   : > { %8744 = vmatmul.mubr.msk.bf16.vlgmr.msra.gmra.mxu1 %vm11264_vm5, %v8742_v31  ;;  %8746 = vmatmul.mubr.msk.bf16.vlgmr.msra.gmra.mxu0 %vm11265_vm12, %v8742_v31  ;;  %vm11276_vm3 = vmmov %vm11267_vm6 }
 0x714   : > { %7267 = vmatpush1.bf16.msra.mxu1 %v7241_v43  ;;  %v7339_v55 = vpop.permute.xlu1 %7338  ;;  %v7233_v27 = vpop.permute.xlu0 %7232  ;;  %7284 = vmatprep.mubr.bf16.mxu1 %v8988_v0  ;;  %vm11277_vm0 = vmmov %vm11276_vm3 }
 0x715   : > { %v7236_v44 = vsel %vm11266_vm2, %v7231_v36, %v7233_v27  ;;  %8750 = vmatprep.subr.msk.bf16.mxu0 %vm11267_vm6, %v7233_v27  ;;  %7325 = vmatprep.mubr.bf16.mxu0 %v8988_v0  ;;  %vm11279_vm15 = vmmov %vm11278_vm13 }
 0x716   : > { %v7247_v51 = vsel %vm11268_vm14, %v7236_v44, 0  ;;  %vm11280_vm5 = vmmov %vm11277_vm0  ;;  %v8772_v44 = vld [vmem:[%s10962_s7 + $0x64] sm:$0xf] }
 0x717   : > { %7308 = vmatpush1.bf16.msra.mxu0 %v7247_v51  ;;  %vm11281_vm12 = vmmov %vm11277_vm0 }
 0x718   : > { %v7343_v19 = vpop.permute.xlu1 %7342  ;;  %v7341_v33 = vpop.permute.xlu0 %7340  ;;  %vm11282_vm2 = vmmov %vm11273_vm1 }
 0x719   : > { %v7346_v54 = vsel %vm11269_vm7, %v7339_v55, %v7341_v33  ;;  %v7347_v21 = vsel %vm11270_vm8, %v7341_v33, %v7343_v19  ;;  %vm11283_vm6 = vmmov %vm11273_vm1 }
 0x71a   : > { %v7353_v8 = vsel %vm11271_vm11, %v7346_v54, 0  ;;  %8753 = vmatprep.subr.msk.bf16.mxu1 %vm11272_vm9, %v7347_v21  ;;  %vm11284_vm14 = vmmov %vm11278_vm13  ;;  %vm11287_vm11 = vcmask 359424  }
 0x71b   : > { %8749 = vmatmul.mubr.msk.bf16.vlgmr.msra.gmra.mxu1 %vm11273_vm1, %v8747_v5  ;;  %8751 = vmatmul.mubr.msk.bf16.vlgmr.msra.gmra.mxu0 %vm11274_vm10, %v8747_v5  ;;  %vm11285_vm7 = vmmov %vm11277_vm0 }
 0x71c   : > { %7379 = vmatpush1.bf16.msra.mxu1 %v7353_v8  ;;  %v7451_v11 = vpop.permute.xlu1 %7450  ;;  %v7345_v15 = vpop.permute.xlu0 %7344  ;;  %7396 = vmatprep.mubr.bf16.mxu1 %v8988_v0  ;;  %vm11286_vm8 = vmmov %vm11277_vm0 }
 0x71d   : > { %v7348_v25 = vsel %vm11275_vm4, %v7343_v19, %v7345_v15  ;;  %8755 = vmatprep.subr.msk.bf16.mxu0 %vm11276_vm3, %v7345_v15  ;;  %7437 = vmatprep.mubr.bf16.mxu0 %v8988_v0  ;;  %vm11288_vm9 = vmmov %vm11287_vm11 }
 0x71e   : > { %v7359_v34 = vsel %vm11277_vm0, %v7348_v25, 0  ;;  %vm11289_vm1 = vmmov %vm11277_vm0 }
 0x71f   : > { %7420 = vmatpush1.bf16.msra.mxu0 %v7359_v34  ;;  %vm11290_vm10 = vmmov %vm11277_vm0 }
 0x720   : > { %v7455_v59 = vpop.permute.xlu1 %7454  ;;  %v7453_v28 = vpop.permute.xlu0 %7452  ;;  %vm11291_vm4 = vmmov %vm11282_vm2 }
 0x721   : > { %v7458_v39 = vsel %vm11278_vm13, %v7451_v11, %v7453_v28  ;;  %v7459_v30 = vsel %vm11279_vm15, %v7453_v28, %v7455_v59  ;;  %vm11292_vm3 = vmmov %vm11282_vm2 }
 0x722   : > { %v7465_v47 = vsel %vm11280_vm5, %v7458_v39, 0  ;;  %8758 = vmatprep.subr.msk.bf16.mxu1 %vm11281_vm12, %v7459_v30  ;;  %vm11293_vm0 = vmmov %vm11288_vm9  ;;  %vm11296_vm5 = vcmask 293888  }
 0x723   : > { %8754 = vmatmul.mubr.msk.bf16.vlgmr.msra.gmra.mxu1 %vm11282_vm2, %v8752_v26  ;;  %8756 = vmatmul.mubr.msk.bf16.vlgmr.msra.gmra.mxu0 %vm11283_vm6, %v8752_v26  ;;  %vm11294_vm13 = vmmov %vm11289_vm1 }
 0x724   : > { %7491 = vmatpush1.bf16.msra.mxu1 %v7465_v47  ;;  %v7563_v52 = vpop.permute.xlu1 %7562  ;;  %v7457_v45 = vpop.permute.xlu0 %7456  ;;  %7508 = vmatprep.mubr.bf16.mxu1 %v8988_v0  ;;  %vm11295_vm15 = vmmov %vm11289_vm1 }
 0x725   : > { %v7460_v16 = vsel %vm11284_vm14, %v7455_v59, %v7457_v45  ;;  %8760 = vmatprep.subr.msk.bf16.mxu0 %vm11285_vm7, %v7457_v45  ;;  %7549 = vmatprep.mubr.bf16.mxu0 %v8988_v0  ;;  %vm11297_vm12 = vmmov %vm11296_vm5 }
 0x726   : > { %v7471_v49 = vsel %vm11286_vm8, %v7460_v16, 0  ;;  %vm11298_vm2 = vmmov %vm11289_vm1 }
 0x727   : > { %7532 = vmatpush1.bf16.msra.mxu0 %v7471_v49  ;;  %vm11299_vm6 = vmmov %vm11289_vm1 }
 0x728   : > { %v7567_v42 = vpop.permute.xlu1 %7566  ;;  %v7565_v48 = vpop.permute.xlu0 %7564  ;;  %vm11300_vm14 = vmmov %vm11292_vm3 }
 0x729   : > { %v7570_v4 = vsel %vm11287_vm11, %v7563_v52, %v7565_v48  ;;  %v7571_v61 = vsel %vm11288_vm9, %v7565_v48, %v7567_v42  ;;  %vm11301_vm7 = vmmov %vm11292_vm3  ;;  %v8777_v52 = vld [vmem:[%s10962_s7 + $0x68] sm:$0xf] }
 0x72a   : > { %v7577_v1 = vsel %vm11289_vm1, %v7570_v4, 0  ;;  %8763 = vmatprep.subr.msk.bf16.mxu1 %vm11290_vm10, %v7571_v61  ;;  %vm11302_vm8 = vmmov %vm11296_vm5 }
 0x72b   : > { %8759 = vmatmul.mubr.msk.bf16.vlgmr.msra.gmra.mxu1 %vm11291_vm4, %v8757_v50  ;;  %8761 = vmatmul.mubr.msk.bf16.vlgmr.msra.gmra.mxu0 %vm11292_vm3, %v8757_v50  ;;  %vm11303_vm11 = vmmov %vm11289_vm1 }
 0x72c   : > { %7603 = vmatpush1.bf16.msra.mxu1 %v7577_v1  ;;  %v7675_v41 = vpop.permute.xlu1 %7674  ;;  %v7569_v40 = vpop.permute.xlu0 %7568  ;;  %7620 = vmatprep.mubr.bf16.mxu1 %v8988_v0  ;;  %vm11304_vm9 = vmmov %vm11289_vm1  ;;  %vm11305_vm1 = vcmask 285696  }
 0x72d   : > { %v7572_v3 = vsel %vm11293_vm0, %v7567_v42, %v7569_v40  ;;  %8765 = vmatprep.subr.msk.bf16.mxu0 %vm11294_vm13, %v7569_v40  ;;  %7661 = vmatprep.mubr.bf16.mxu0 %v8988_v0  ;;  %vm11306_vm10 = vmmov %vm11305_vm1 }
 0x72e   : > { %v7583_v2 = vsel %vm11295_vm15, %v7572_v3, 0  ;;  %vm11307_vm4 = vmmov %vm11298_vm2 }
 0x72f   : > { %7644 = vmatpush1.bf16.msra.mxu0 %v7583_v2  ;;  %vm11308_vm3 = vmmov %vm11298_vm2 }
 0x730   : > { %v7679_v57 = vpop.permute.xlu1 %7678  ;;  %v7677_v53 = vpop.permute.xlu0 %7676  ;;  %vm11309_vm0 = vmmov %vm11301_vm7 }
 0x731   : > { %v7682_v9 = vsel %vm11296_vm5, %v7675_v41, %v7677_v53  ;;  %v7683_v17 = vsel %vm11297_vm12, %v7677_v53, %v7679_v57  ;;  %vm11310_vm13 = vmmov %vm11309_vm0 }
 0x732   : > { %v7689_v46 = vsel %vm11298_vm2, %v7682_v9, 0  ;;  %8768 = vmatprep.subr.msk.bf16.mxu1 %vm11299_vm6, %v7683_v17  ;;  %vm11311_vm15 = vmmov %vm11305_vm1 }
 0x733   : > { %8764 = vmatmul.mubr.msk.bf16.vlgmr.msra.gmra.mxu1 %vm11300_vm14, %v8762_v56  ;;  %8766 = vmatmul.mubr.msk.bf16.vlgmr.msra.gmra.mxu0 %vm11301_vm7, %v8762_v56  ;;  %vm11312_vm5 = vmmov %vm11298_vm2 }
 0x734   : > { %7715 = vmatpush1.bf16.msra.mxu1 %v7689_v46  ;;  %v7787_v10 = vpop.permute.xlu1 %7786  ;;  %v7681_v13 = vpop.permute.xlu0 %7680  ;;  %7732 = vmatprep.mubr.bf16.mxu1 %v8988_v0  ;;  %vm11313_vm12 = vmmov %vm11298_vm2  ;;  %vm11314_vm2 = vcmask 277504  }
 0x735   : > { %v7684_v60 = vsel %vm11302_vm8, %v7679_v57, %v7681_v13  ;;  %8770 = vmatprep.subr.msk.bf16.mxu0 %vm11303_vm11, %v7681_v13  ;;  %7773 = vmatprep.mubr.bf16.mxu0 %v8988_v0  ;;  %vm11315_vm6 = vmmov %vm11314_vm2 }
 0x736   : > { %v7695_v63 = vsel %vm11304_vm9, %v7684_v60, 0  ;;  %vm11316_vm14 = vmmov %vm11308_vm3 }
 0x737   : > { %7756 = vmatpush1.bf16.msra.mxu0 %v7695_v63  ;;  %vm11317_vm7 = vmmov %vm11308_vm3 }
 0x738   : > { %v7791_v20 = vpop.permute.xlu1 %7790  ;;  %v7789_v14 = vpop.permute.xlu0 %7788  ;;  %vm11318_vm8 = vmmov %vm11309_vm0 }
 0x739   : > { %v7794_v32 = vsel %vm11305_vm1, %v7787_v10, %v7789_v14  ;;  %v7795_v58 = vsel %vm11306_vm10, %v7789_v14, %v7791_v20  ;;  %vm11319_vm11 = vmmov %vm11309_vm0 }
 0x73a   : > { %v7801_v18 = vsel %vm11307_vm4, %v7794_v32, 0  ;;  %8773 = vmatprep.subr.msk.bf16.mxu1 %vm11308_vm3, %v7795_v58  ;;  %vm11320_vm9 = vmmov %vm11314_vm2 }
 0x73b   : > { %v5028_v35 = vpop.f32.mrf.mxu1  ;;  %v5069_v7 = vpop.f32.mrf.mxu0  ;;  %8769 = vmatmul.mubr.msk.bf16.vlgmr.msra.gmra.mxu1 %vm11309_vm0, %v8767_v23  ;;  %8771 = vmatmul.mubr.msk.bf16.vlgmr.msra.gmra.mxu0 %vm11310_vm13, %v8767_v23  ;;  %vm11321_vm1 = vmmov %vm11308_vm3  ;;  %vm414_vm13 = vcmask 9216  }
 0x73c   : > { %7827 = vmatpush1.bf16.msra.mxu1 %v7801_v18  ;;  %v7899_v62 = vpop.permute.xlu1 %7898  ;;  %v7793_v29 = vpop.permute.xlu0 %7792  ;;  %7844 = vmatprep.mubr.bf16.mxu1 %v8988_v0  ;;  %vm11322_vm10 = vmmov %vm11321_vm1 }
 0x73d   : > { %v5030_v36 = vpop.f32.mrf.mxu1  ;;  %v5071_v24 = vpop.f32.mrf.mxu0  ;;  %v7796_v31 = vsel %vm11311_vm15, %v7791_v20, %v7793_v29  ;;  %8775 = vmatprep.subr.msk.bf16.mxu0 %vm11312_vm5, %v7793_v29  ;;  %7885 = vmatprep.mubr.bf16.mxu0 %v8988_v0  ;;  %vm11323_vm4 = vmmov %vm11309_vm0  ;;  %vm419_vm15 = vcmask 1041408  }
 0x73e   : > { %v7807_v22 = vsel %vm11313_vm12, %v7796_v31, 0  ;;  %vm11324_vm3 = vmmov %vm11309_vm0  ;;  %vm403_vm0 = vcmask 15360  }
 0x73f   : > { %v5032_v38 = vpop.f32.mrf.mxu1  ;;  %v5072_v43 = vpop.f32.mrf.mxu0  ;;  %7868 = vmatpush1.bf16.msra.mxu0 %v7807_v22 }
 0x740   : > { %v7903_v55 = vpop.permute.xlu1 %7902  ;;  %v7901_v27 = vpop.permute.xlu0 %7900 }
 0x741   : > { %v5033_v51 = vpop.f32.mrf.mxu1  ;;  %v5073_v19 = vpop.f32.mrf.mxu0  ;;  %v7906_v33 = vsel %vm11314_vm2, %v7899_v62, %v7901_v27  ;;  %v7907_v5 = vsel %vm11315_vm6, %v7901_v27, %v7903_v55  ;;  %vm8037_vm6 = vcmask 60416  }
 0x742   : > { %v7913_v54 = vsel %vm11316_vm14, %v7906_v33, 0  ;;  %8778 = vmatprep.subr.msk.bf16.mxu1 %vm11317_vm7, %v7907_v5  ;;  %vm8045_vm14 = vcmask 126016   ;;  %vm8050_vm7 = vcmask 191616  }
 0x743   : > { %v5124_v21 = vpop.f32.mrf.mxu1  ;;  %v5165_v8 = vpop.f32.mrf.mxu0  ;;  %8774 = vmatmul.mubr.msk.bf16.vlgmr.msra.gmra.mxu1 %vm11318_vm8, %v8772_v44  ;;  %8776 = vmatmul.mubr.msk.bf16.vlgmr.msra.gmra.mxu0 %vm11319_vm11, %v8772_v44  ;;  %vm8055_vm8 = vcmask 257216   ;;  %vm8060_vm11 = vcmask 322816  }
 0x744   : > { %v5125_v11 = vadd.f32 %v5124_v21, %v5028_v35  ;;  %v5166_v15 = vadd.f32 %v5165_v8, %v5069_v7  ;;  %7939 = vmatpush1.bf16.msra.mxu1 %v7913_v54  ;;  %v7905_v25 = vpop.permute.xlu0 %7904  ;;  %7956 = vmatprep.mubr.bf16.mxu1 %v8988_v0 }
 0x745   : > { %v5126_v34 = vpop.f32.mrf.mxu1  ;;  %v5167_v59 = vpop.f32.mrf.mxu0  ;;  %v7908_v28 = vsel %vm11320_vm9, %v7903_v55, %v7905_v25  ;;  %8780 = vmatprep.subr.msk.bf16.mxu0 %vm11321_vm1, %v7905_v25  ;;  %7997 = vmatprep.mubr.bf16.mxu0 %v8988_v0  ;;  %vm8065_vm9 = vcmask 388416   ;;  %vm8070_vm1 = vcmask 454016  }
 0x746   : > { %v5127_v26 = vadd.f32 %v5126_v34, %v5030_v36  ;;  %v7919_v39 = vsel %vm11322_vm10, %v7908_v28, 0  ;;  %vm8075_vm10 = vcmask 519616  }
 0x747   : > { %v5128_v30 = vpop.f32.mrf.mxu1  ;;  %v5168_v47 = vpop.f32.mrf.mxu0  ;;  %7980 = vmatpush1.bf16.msra.mxu0 %v7919_v39 }
 0x749   : > { %v5129_v45 = vpop.f32.mrf.mxu1  ;;  %v5169_v16 = vpop.f32.mrf.mxu0 }
 0x74b   : > { %v5233_v49 = vpop.f32.mrf.mxu1  ;;  %v5274_v42 = vpop.f32.mrf.mxu0  ;;  %8779 = vmatmul.mubr.msk.bf16.vlgmr.msra.gmra.mxu1 %vm11323_vm4, %v8777_v52  ;;  %8781 = vmatmul.mubr.msk.bf16.vlgmr.msra.gmra.mxu0 %vm11324_vm3, %v8777_v52  ;;  %vm8080_vm4 = vcmask 585216   ;;  %vm8085_vm3 = vcmask 650816  }
 0x74c   : > { %v5280_v48 = vadd.f32 %v5233_v49, %v5125_v11  ;;  %v5282_v50 = vadd.f32 %v5274_v42, %v5166_v15  ;;  %8238 = vmatprep.mubr.bf16.mxu1 %v8988_v0 }
 0x74d   : > { %v5235_v4 = vpop.f32.mrf.mxu1  ;;  %v5276_v61 = vpop.f32.mrf.mxu0 }
 0x74e   : > { %v5281_v1 = vadd.f32 %v5235_v4, %v5127_v26 }
 0x74f   : > { %v5237_v41 = vpop.f32.mrf.mxu1  ;;  %v5277_v40 = vpop.f32.mrf.mxu0 }
 0x751   : > { %v5238_v3 = vpop.f32.mrf.mxu1  ;;  %v5278_v2 = vpop.f32.mrf.mxu0 }
 0x752   : > { %v401_v3 = vld [vmem:[%s10957_s2] sm:$0xff] }
 0x753   : > { %v5345_v57 = vpop.f32.mrf.mxu1  ;;  %v5386_v53 = vpop.f32.mrf.mxu0 }
 0x754   : > { %v5392_v56 = vadd.f32 %v5345_v57, %v5280_v48  ;;  %v5394_v9 = vadd.f32 %v5386_v53, %v5282_v50 }
 0x755   : > { %v5347_v17 = vpop.f32.mrf.mxu1  ;;  %v5388_v46 = vpop.f32.mrf.mxu0 }
 0x756   : > { %v5393_v10 = vadd.f32 %v5347_v17, %v5281_v1 }
 0x757   : > { %v5349_v13 = vpop.f32.mrf.mxu1  ;;  %v5389_v60 = vpop.f32.mrf.mxu0 }
 0x759   : > { %v5350_v63 = vpop.f32.mrf.mxu1  ;;  %v5390_v20 = vpop.f32.mrf.mxu0 }
 0x75b   : > { %v5457_v14 = vpop.f32.mrf.mxu1  ;;  %v5498_v0 = vpop.f32.mrf.mxu0 }
 0x75c   : > { %v5504_v23 = vadd.f32 %v5457_v14, %v5392_v56  ;;  %v5506_v32 = vadd.f32 %v5498_v0, %v5394_v9 }
 0x75d   : > { %v5459_v58 = vpop.f32.mrf.mxu1  ;;  %v5500_v18 = vpop.f32.mrf.mxu0 }
 0x75e   : > { %v5505_v35 = vadd.f32 %v5459_v58, %v5393_v10 }
 0x75f   : > { %v5461_v7 = vpop.f32.mrf.mxu1  ;;  %v5501_v62 = vpop.f32.mrf.mxu0 }
 0x761   : > { %v5462_v29 = vpop.f32.mrf.mxu1  ;;  %v5502_v36 = vpop.f32.mrf.mxu0 }
 0x763   : > { %v5569_v24 = vpop.f32.mrf.mxu1  ;;  %v5610_v31 = vpop.f32.mrf.mxu0 }
 0x764   : > { %v5616_v22 = vadd.f32 %v5569_v24, %v5504_v23  ;;  %v5618_v38 = vadd.f32 %v5610_v31, %v5506_v32 }
 0x765   : > { %v5571_v43 = vpop.f32.mrf.mxu1  ;;  %v5612_v55 = vpop.f32.mrf.mxu0 }
 0x766   : > { %v5617_v27 = vadd.f32 %v5571_v43, %v5505_v35 }
 0x767   : > { %v5573_v44 = vpop.f32.mrf.mxu1  ;;  %v5613_v51 = vpop.f32.mrf.mxu0 }
 0x769   : > { %v5574_v19 = vpop.f32.mrf.mxu1  ;;  %v5614_v33 = vpop.f32.mrf.mxu0 }
 0x76b   : > { %v5681_v5 = vpop.f32.mrf.mxu1  ;;  %v5722_v54 = vpop.f32.mrf.mxu0 }
 0x76c   : > { %v5728_v21 = vadd.f32 %v5681_v5, %v5616_v22  ;;  %v5730_v8 = vadd.f32 %v5722_v54, %v5618_v38  ;;  %v412_v5 = vld [vmem:[%s10958_s3] sm:$0x3] }
 0x76d   : > { %v5683_v11 = vpop.f32.mrf.mxu1  ;;  %v5724_v15 = vpop.f32.mrf.mxu0 }
 0x76e   : > { %v5729_v25 = vadd.f32 %v5683_v11, %v5617_v27 }
 0x76f   : > { %v5685_v34 = vpop.f32.mrf.mxu1  ;;  %v5725_v59 = vpop.f32.mrf.mxu0 }
 0x771   : > { %v5686_v28 = vpop.f32.mrf.mxu1  ;;  %v5726_v26 = vpop.f32.mrf.mxu0 }
 0x773   : > { %v5793_v39 = vpop.f32.mrf.mxu1  ;;  %v5834_v30 = vpop.f32.mrf.mxu0 }
 0x774   : > { %v5840_v47 = vadd.f32 %v5793_v39, %v5728_v21  ;;  %v5842_v52 = vadd.f32 %v5834_v30, %v5730_v8 }
 0x775   : > { %v5795_v45 = vpop.f32.mrf.mxu1  ;;  %v5836_v16 = vpop.f32.mrf.mxu0 }
 0x776   : > { %v5841_v49 = vadd.f32 %v5795_v45, %v5729_v25 }
 0x777   : > { %v5797_v42 = vpop.f32.mrf.mxu1  ;;  %v5837_v48 = vpop.f32.mrf.mxu0 }
 0x779   : > { %v5798_v50 = vpop.f32.mrf.mxu1  ;;  %v5838_v4 = vpop.f32.mrf.mxu0 }
 0x77b   : > { %v5905_v61 = vpop.f32.mrf.mxu1  ;;  %v5946_v1 = vpop.f32.mrf.mxu0 }
 0x77c   : > { %v5952_v41 = vadd.f32 %v5905_v61, %v5840_v47  ;;  %v5954_v40 = vadd.f32 %v5946_v1, %v5842_v52  ;;  %v399_v2 = vpop.xlane.xlu1 %398 }
 0x77d   : > { %v400_v57 = vmul.f32 0.00390625, %v399_v2  ;;  %v5907_v53 = vpop.f32.mrf.mxu1  ;;  %v5948_v56 = vpop.f32.mrf.mxu0 }
 0x77e   : > { %v5953_v9 = vadd.f32 %v5907_v53, %v5841_v49 }
 0x77f   : > { %v402_v17 = vmul.f32 %v401_v3, %v400_v57  ;;  %v5909_v46 = vpop.f32.mrf.mxu1  ;;  %v5949_v10 = vpop.f32.mrf.mxu0 }
 0x781   : > { %v404_v13 = vsel %vm403_vm0, %v402_v17, 0.0  ;;  %v5910_v60 = vpop.f32.mrf.mxu1  ;;  %v5950_v63 = vpop.f32.mrf.mxu0  ;;  %vm8090_vm0 = vcmask 716416  }
 0x782   : > { %v405_v20 = vrot.slane %v404_v13, 4 }
 0x783   : > { %v6017_v14 = vpop.f32.mrf.mxu1  ;;  %v6058_v0 = vpop.f32.mrf.mxu0 }
 0x784   : > { %v406_v23 = vadd.f32 %v405_v20, %v404_v13  ;;  %v6064_v32 = vadd.f32 %v6017_v14, %v5952_v41  ;;  %v6066_v58 = vadd.f32 %v6058_v0, %v5954_v40 }
 0x785   : > { %v6019_v18 = vpop.f32.mrf.mxu1  ;;  %v6060_v35 = vpop.f32.mrf.mxu0 }
 0x786   : > { %v407_v7 = vrot.slane %v406_v23, 2  ;;  %v6065_v62 = vadd.f32 %v6019_v18, %v5953_v9 }
 0x787   : > { %v6021_v29 = vpop.f32.mrf.mxu1  ;;  %v6061_v36 = vpop.f32.mrf.mxu0 }
 0x788   : > { %v408_v24 = vadd.f32 %v407_v7, %v406_v23 }
 0x789   : > { %v6022_v31 = vpop.f32.mrf.mxu1  ;;  %v6062_v22 = vpop.f32.mrf.mxu0 }
 0x78a   : > { %v409_v38 = vrot.slane %v408_v24, 1 }
 0x78b   : > { %v6129_v43 = vpop.f32.mrf.mxu1  ;;  %v6170_v55 = vpop.f32.mrf.mxu0 }
 0x78c   : > { %v6176_v27 = vadd.f32 %v6129_v43, %v6064_v32  ;;  %v6178_v44 = vadd.f32 %v6170_v55, %v6066_v58  ;;  %v410_v51 = vadd.f32 %v409_v38, %v408_v24 }
 0x78d   : > { %v6131_v19 = vpop.f32.mrf.mxu1  ;;  %v6172_v33 = vpop.f32.mrf.mxu0 }
 0x78e   : > { %v6177_v54 = vadd.f32 %v6131_v19, %v6065_v62  ;;  %v411_v21 = vmax.f32 %v410_v51, 0.0 }
 0x78f   : > { %v6133_v8 = vpop.f32.mrf.mxu1  ;;  %v6173_v11 = vpop.f32.mrf.mxu0 }
 0x790   : > { %v413_v15 = vmul.f32 %v412_v5, %v411_v21 }
 0x791   : > { %v6134_v25 = vpop.f32.mrf.mxu1  ;;  %v6174_v34 = vpop.f32.mrf.mxu0 }
 0x792   : > { %v415_v59 = vsel %vm414_vm13, %v413_v15, 0.0  ;;  %vm8098_vm13 = vcmask 782016  }
 0x793   : > { %416 = vadd.xlane.f32.xlu0 %v415_v59  ;;  %v6241_v28 = vpop.f32.mrf.mxu1  ;;  %v6282_v26 = vpop.f32.mrf.mxu0 }
 0x794   : > { %v6288_v39 = vadd.f32 %v6241_v28, %v6176_v27  ;;  %v6290_v30 = vadd.f32 %v6282_v26, %v6178_v44 }
 0x795   : > { %v6243_v47 = vpop.f32.mrf.mxu1  ;;  %v6284_v52 = vpop.f32.mrf.mxu0 }
 0x796   : > { %v6289_v45 = vadd.f32 %v6243_v47, %v6177_v54 }
 0x797   : > { %v6245_v16 = vpop.f32.mrf.mxu1  ;;  %v6285_v49 = vpop.f32.mrf.mxu0 }
 0x799   : > { %v6246_v42 = vpop.f32.mrf.mxu1  ;;  %v6286_v48 = vpop.f32.mrf.mxu0 }
 0x79b   : > { %v6353_v50 = vpop.f32.mrf.mxu1  ;;  %v6394_v4 = vpop.f32.mrf.mxu0 }
 0x79c   : > { %v6400_v61 = vadd.f32 %v6353_v50, %v6288_v39  ;;  %v6402_v1 = vadd.f32 %v6394_v4, %v6290_v30 }
 0x79d   : > { %v6355_v41 = vpop.f32.mrf.mxu1  ;;  %v6396_v40 = vpop.f32.mrf.mxu0 }
 0x79e   : > { %v6401_v3 = vadd.f32 %v6355_v41, %v6289_v45 }
 0x79f   : > { %v6357_v2 = vpop.f32.mrf.mxu1  ;;  %v6397_v57 = vpop.f32.mrf.mxu0 }
 0x7a1   : > { %v6358_v53 = vpop.f32.mrf.mxu1  ;;  %v6398_v56 = vpop.f32.mrf.mxu0 }
 0x7a3   : > { %v6465_v9 = vpop.f32.mrf.mxu1  ;;  %v6506_v17 = vpop.f32.mrf.mxu0 }
 0x7a4   : > { %v6512_v46 = vadd.f32 %v6465_v9, %v6400_v61  ;;  %v6514_v10 = vadd.f32 %v6506_v17, %v6402_v1 }
 0x7a5   : > { %v6467_v13 = vpop.f32.mrf.mxu1  ;;  %v6508_v60 = vpop.f32.mrf.mxu0 }
 0x7a6   : > { %v6513_v63 = vadd.f32 %v6467_v13, %v6401_v3 }
 0x7a7   : > { %v6469_v20 = vpop.f32.mrf.mxu1  ;;  %v6509_v14 = vpop.f32.mrf.mxu0 }
 0x7a9   : > { %v6470_v0 = vpop.f32.mrf.mxu1  ;;  %v6510_v23 = vpop.f32.mrf.mxu0 }
 0x7ab   : > { %v6577_v32 = vpop.f32.mrf.mxu1  ;;  %v6618_v58 = vpop.f32.mrf.mxu0 }
 0x7ac   : > { %v6624_v18 = vadd.f32 %v6577_v32, %v6512_v46  ;;  %v6626_v35 = vadd.f32 %v6618_v58, %v6514_v10 }
 0x7ad   : > { %v6579_v7 = vpop.f32.mrf.mxu1  ;;  %v6620_v62 = vpop.f32.mrf.mxu0 }
 0x7ae   : > { %v6625_v29 = vadd.f32 %v6579_v7, %v6513_v63 }
 0x7af   : > { %v6581_v36 = vpop.f32.mrf.mxu1  ;;  %v6621_v24 = vpop.f32.mrf.mxu0 }
 0x7b1   : > { %v6582_v31 = vpop.f32.mrf.mxu1  ;;  %v6622_v22 = vpop.f32.mrf.mxu0 }
 0x7b3   : > { %v6708_v38 = vpop.f32.mrf.mxu1  ;;  %v6749_v43 = vpop.f32.mrf.mxu0 }
 0x7b4   : > { %v6755_v55 = vadd.f32 %v6708_v38, %v6624_v18  ;;  %v6757_v27 = vadd.f32 %v6749_v43, %v6626_v35 }
 0x7b5   : > { %v6710_v44 = vpop.f32.mrf.mxu1  ;;  %v6751_v51 = vpop.f32.mrf.mxu0 }
 0x7b6   : > { %v6756_v19 = vadd.f32 %v6710_v44, %v6625_v29 }
 0x7b7   : > { %v6712_v33 = vpop.f32.mrf.mxu1  ;;  %v6752_v5 = vpop.f32.mrf.mxu0 }
 0x7b9   : > { %v6713_v54 = vpop.f32.mrf.mxu1  ;;  %v6753_v21 = vpop.f32.mrf.mxu0 }
 0x7bb   : > { %v6823_v8 = vpop.f32.mrf.mxu1  ;;  %v6864_v11 = vpop.f32.mrf.mxu0 }
 0x7bc   : > { %v6870_v15 = vadd.f32 %v6823_v8, %v6755_v55  ;;  %v6872_v25 = vadd.f32 %v6864_v11, %v6757_v27 }
 0x7bd   : > { %v6825_v34 = vpop.f32.mrf.mxu1  ;;  %v6866_v59 = vpop.f32.mrf.mxu0 }
 0x7be   : > { %v6871_v28 = vadd.f32 %v6825_v34, %v6756_v19 }
 0x7bf   : > { %v6827_v26 = vpop.f32.mrf.mxu1  ;;  %v6867_v39 = vpop.f32.mrf.mxu0 }
 0x7c1   : > { %v6828_v30 = vpop.f32.mrf.mxu1  ;;  %v6868_v47 = vpop.f32.mrf.mxu0 }
 0x7c3   : > { %v6938_v52 = vpop.f32.mrf.mxu1  ;;  %v6979_v45 = vpop.f32.mrf.mxu0 }
 0x7c4   : > { %v6985_v16 = vadd.f32 %v6938_v52, %v6870_v15  ;;  %v6987_v49 = vadd.f32 %v6979_v45, %v6872_v25 }
 0x7c5   : > { %v6940_v42 = vpop.f32.mrf.mxu1  ;;  %v6981_v48 = vpop.f32.mrf.mxu0 }
 0x7c6   : > { %v6986_v50 = vadd.f32 %v6940_v42, %v6871_v28 }
 0x7c7   : > { %v6942_v4 = vpop.f32.mrf.mxu1  ;;  %v6982_v61 = vpop.f32.mrf.mxu0 }
 0x7c9   : > { %v6943_v1 = vpop.f32.mrf.mxu1  ;;  %v6983_v41 = vpop.f32.mrf.mxu0 }
 0x7cb   : > { %v7062_v40 = vpop.f32.mrf.mxu1  ;;  %v7103_v3 = vpop.f32.mrf.mxu0 }
 0x7cc   : > { %v7109_v2 = vadd.f32 %v7062_v40, %v6985_v16  ;;  %v7111_v57 = vadd.f32 %v7103_v3, %v6987_v49 }
 0x7cd   : > { %v7064_v53 = vpop.f32.mrf.mxu1  ;;  %v7105_v56 = vpop.f32.mrf.mxu0 }
 0x7ce   : > { %v7110_v9 = vadd.f32 %v7064_v53, %v6986_v50 }
 0x7cf   : > { %v7066_v17 = vpop.f32.mrf.mxu1  ;;  %v7106_v46 = vpop.f32.mrf.mxu0 }
 0x7d1   : > { %v7067_v10 = vpop.f32.mrf.mxu1  ;;  %v7107_v13 = vpop.f32.mrf.mxu0 }
 0x7d3   : > { %v7174_v60 = vpop.f32.mrf.mxu1  ;;  %v7215_v63 = vpop.f32.mrf.mxu0 }
 0x7d4   : > { %v7221_v20 = vadd.f32 %v7174_v60, %v7109_v2  ;;  %v7223_v14 = vadd.f32 %v7215_v63, %v7111_v57 }
 0x7d5   : > { %v7176_v0 = vpop.f32.mrf.mxu1  ;;  %v7217_v23 = vpop.f32.mrf.mxu0 }
 0x7d6   : > { %v7222_v32 = vadd.f32 %v7176_v0, %v7110_v9 }
 0x7d7   : > { %v7178_v58 = vpop.f32.mrf.mxu1  ;;  %v7218_v18 = vpop.f32.mrf.mxu0 }
 0x7d9   : > { %v7179_v35 = vpop.f32.mrf.mxu1  ;;  %v7219_v7 = vpop.f32.mrf.mxu0 }
 0x7db   : > { %v7286_v62 = vpop.f32.mrf.mxu1  ;;  %v7327_v29 = vpop.f32.mrf.mxu0 }
 0x7dc   : > { %v7333_v36 = vadd.f32 %v7286_v62, %v7221_v20  ;;  %v7335_v24 = vadd.f32 %v7327_v29, %v7223_v14 }
 0x7dd   : > { %v7288_v31 = vpop.f32.mrf.mxu1  ;;  %v7329_v22 = vpop.f32.mrf.mxu0 }
 0x7de   : > { %v7334_v38 = vadd.f32 %v7288_v31, %v7222_v32 }
 0x7df   : > { %v7290_v43 = vpop.f32.mrf.mxu1  ;;  %v7330_v55 = vpop.f32.mrf.mxu0 }
 0x7e1   : > { %v7291_v27 = vpop.f32.mrf.mxu1  ;;  %v7331_v44 = vpop.f32.mrf.mxu0 }
 0x7e3   : > { %v7398_v51 = vpop.f32.mrf.mxu1  ;;  %v7439_v19 = vpop.f32.mrf.mxu0 }
 0x7e4   : > { %v7445_v33 = vadd.f32 %v7398_v51, %v7333_v36  ;;  %v7447_v5 = vadd.f32 %v7439_v19, %v7335_v24 }
 0x7e5   : > { %v7400_v54 = vpop.f32.mrf.mxu1  ;;  %v7441_v21 = vpop.f32.mrf.mxu0 }
 0x7e6   : > { %v7446_v8 = vadd.f32 %v7400_v54, %v7334_v38 }
 0x7e7   : > { %v7402_v11 = vpop.f32.mrf.mxu1  ;;  %v7442_v15 = vpop.f32.mrf.mxu0 }
 0x7e9   : > { %v7403_v25 = vpop.f32.mrf.mxu1  ;;  %v7443_v34 = vpop.f32.mrf.mxu0 }
 0x7eb   : > { %v7510_v59 = vpop.f32.mrf.mxu1  ;;  %v7551_v28 = vpop.f32.mrf.mxu0 }
 0x7ec   : > { %v7557_v26 = vadd.f32 %v7510_v59, %v7445_v33  ;;  %v7559_v39 = vadd.f32 %v7551_v28, %v7447_v5 }
 0x7ed   : > { %v7512_v30 = vpop.f32.mrf.mxu1  ;;  %v7553_v47 = vpop.f32.mrf.mxu0 }
 0x7ee   : > { %v7558_v52 = vadd.f32 %v7512_v30, %v7446_v8 }
 0x7ef   : > { %v7514_v45 = vpop.f32.mrf.mxu1  ;;  %v7554_v16 = vpop.f32.mrf.mxu0 }
 0x7f1   : > { %v7515_v49 = vpop.f32.mrf.mxu1  ;;  %v7555_v42 = vpop.f32.mrf.mxu0 }
 0x7f3   : > { %v7622_v48 = vpop.f32.mrf.mxu1  ;;  %v7663_v50 = vpop.f32.mrf.mxu0 }
 0x7f4   : > { %v7669_v4 = vadd.f32 %v7622_v48, %v7557_v26  ;;  %v7671_v61 = vadd.f32 %v7663_v50, %v7559_v39 }
 0x7f5   : > { %v7624_v1 = vpop.f32.mrf.mxu1  ;;  %v7665_v41 = vpop.f32.mrf.mxu0 }
 0x7f6   : > { %v7670_v40 = vadd.f32 %v7624_v1, %v7558_v52 }
 0x7f7   : > { %v7626_v3 = vpop.f32.mrf.mxu1  ;;  %v7666_v2 = vpop.f32.mrf.mxu0 }
 0x7f9   : > { %v7627_v57 = vpop.f32.mrf.mxu1  ;;  %v7667_v53 = vpop.f32.mrf.mxu0 }
 0x7fb   : > { %v7734_v56 = vpop.f32.mrf.mxu1  ;;  %v7775_v9 = vpop.f32.mrf.mxu0 }
 0x7fc   : > { %v7781_v17 = vadd.f32 %v7734_v56, %v7669_v4  ;;  %v7783_v46 = vadd.f32 %v7775_v9, %v7671_v61  ;;  %v8008_v4 = vlaneseq }
 0x7fd   : > { %v7736_v10 = vpop.f32.mrf.mxu1  ;;  %v7777_v13 = vpop.f32.mrf.mxu0 }
 0x7fe   : > { %v7782_v60 = vadd.f32 %v7736_v10, %v7670_v40  ;;  %v8009_v61 = vshrl.u32 %v8008_v4, 7  ;;  %v8190_v4 = vld [vmem:[%s10963_s8] sm:$0xf] }
 0x7ff   : > { %v7738_v63 = vpop.f32.mrf.mxu1  ;;  %v7778_v20 = vpop.f32.mrf.mxu0 }
 0x800   : > { %v8010_v1 = vsub.s32 0, %v8009_v61  ;;  %v8017_v41 = vsub.s32 1, %v8009_v61 }
 0x801   : > { %v7739_v14 = vpop.f32.mrf.mxu1  ;;  %v7779_v0 = vpop.f32.mrf.mxu0 }
 0x803   : > { %v7846_v23 = vpop.f32.mrf.mxu1  ;;  %v7887_v32 = vpop.f32.mrf.mxu0 }
 0x804   : > { %v7893_v58 = vadd.f32 %v7846_v23, %v7781_v17  ;;  %v7895_v18 = vadd.f32 %v7887_v32, %v7783_v46 }
 0x805   : > { %v7848_v35 = vpop.f32.mrf.mxu1  ;;  %v7889_v7 = vpop.f32.mrf.mxu0 }
 0x806   : > { %v7894_v62 = vadd.f32 %v7848_v35, %v7782_v60 }
 0x807   : > { %v7850_v29 = vpop.f32.mrf.mxu1  ;;  %v7890_v36 = vpop.f32.mrf.mxu0 }
 0x809   : > { %v7851_v24 = vpop.f32.mrf.mxu1  ;;  %v7891_v31 = vpop.f32.mrf.mxu0 }
 0x80b   : > { %v7958_v22 = vpop.f32.mrf.mxu1  ;;  %v7999_v38 = vpop.f32.mrf.mxu0 }
 0x80c   : > { %v8005_v43 = vadd.f32 %v7958_v22, %v7893_v58  ;;  %v8007_v55 = vadd.f32 %v7999_v38, %v7895_v18 }
 0x80d   : > { %v7960_v27 = vpop.f32.mrf.mxu1  ;;  %v8001_v44 = vpop.f32.mrf.mxu0 }
 0x80e   : > { %v8006_v51 = vadd.f32 %v7960_v27, %v7894_v62 }
 0x80f   : > { %v7962_v19 = vpop.f32.mrf.mxu1  ;;  %v8002_v33 = vpop.f32.mrf.mxu0 }
 0x811   : > { %v7963_v5 = vpop.f32.mrf.mxu1  ;;  %v8003_v54 = vpop.f32.mrf.mxu0 }
 0x81c   : > { %v417_v21 = vpop.xlane.xlu0 %416 }
 0x81d   : > { %v418_v8 = vmul.f32 0.033333335, %v417_v21 }
 0x81f   : > { %v420_v11 = vsel %vm419_vm15, %v418_v8, -inf }
 0x820   : > { %v421_v15 = vrot.slane %v420_v11, 4 }
 0x822   : > { %v422_v25 = vmax.f32 %v420_v11, %v421_v15 }
 0x824   : > { %v423_v34 = vrot.slane %v422_v25, 2 }
 0x826   : > { %v424_v59 = vmax.f32 %v422_v25, %v423_v34 }
 0x828   : > { %v425_v28 = vrot.slane %v424_v59, 1 }
 0x82a   : > { %v426_v26 = vmax.f32 %v424_v59, %v425_v28 }
 0x82c   : > { %v427_v39 = vsub.f32 %v418_v8, %v426_v26 }
 0x82e   : > { %v428_v30 = vmul.f32 1.442695, %v427_v39 }
 0x830   : > { %8974 = vpow2.f32 %v428_v30 }
 0x83d   : > { %v8975_v47 = vpop.eup %8974 }
 0x83e   : > { %v430_v52 = vsel %vm419_vm15, %v8975_v47, 0.0  ;;  %vm8103_vm15 = vcmask 847616  }
 0x83f   : > { %v431_v45 = vrot.slane %v430_v52, 4 }
 0x841   : > { %v432_v16 = vadd.f32 %v431_v45, %v430_v52 }
 0x843   : > { %v433_v49 = vrot.slane %v432_v16, 2 }
 0x845   : > { %v434_v42 = vadd.f32 %v433_v49, %v432_v16 }
 0x847   : > { %v435_v48 = vrot.slane %v434_v42, 1 }
 0x849   : > { %v436_v50 = vadd.f32 %v435_v48, %v434_v42 }
 0x84b   : > { %8976 = vrcp.f32 %v436_v50 }
 0x858   : > { %v8977_v40 = vpop.eup %8976 }
 0x859   : > { %v438_v3 = vmul.f32 %v8977_v40, %v8975_v47 }
 0x85b   : > { %v8011_v2 = vrot.slane %v438_v3, %v8010_v1  ;;  %v8018_v57 = vrot.slane %v438_v3, %v8017_v41  ;;  %v8978_v1 = vld [vmem:[%s9137_s14] sm:$0xff]  ;;  %v8979_v3 = vld [vmem:[%s9137_s14 + $0x8] sm:$0xff] }
 0x85d   : > { %v8012_v53 = vmul.f32 %v8011_v2, %v8005_v43  ;;  %v8013_v56 = vmul.f32 %v8011_v2, %v8006_v51  ;;  %v8014_v9 = vmul.f32 %v8011_v2, %v8007_v55  ;;  %v8019_v17 = vmul.f32 %v8018_v57, %v10199_v37 }
 0x85e   : > { %v8020_v46 = vmul.f32 %v8018_v57, %v10203_v6  ;;  %v8021_v10 = vmul.f32 %v8018_v57, %v10201_v12 }
 0x85f   : > { %v8022_v13 = vadd.f32 %v8019_v17, %v8012_v53 }
 0x860   : > { %v8023_v60 = vadd.f32 %v8020_v46, %v8013_v56  ;;  %v8024_v63 = vadd.f32 %v8021_v10, %v8014_v9 }
 0x861   : > { %vm8025_vm5 = vcmp.ge.f32.partialorder %v8022_v13, 0.0  ;;  %v8028_v20 = vmul.f32 0.2, %v8022_v13 }
 0x862   : > { %vm8026_vm12 = vcmp.ge.f32.partialorder %v8023_v60, 0.0  ;;  %vm8027_vm2 = vcmp.ge.f32.partialorder %v8024_v63, 0.0  ;;  %v8029_v14 = vmul.f32 0.2, %v8023_v60  ;;  %v8030_v0 = vmul.f32 0.2, %v8024_v63 }
 0x863   : > { %v8031_v23 = vsel %vm8025_vm5, %v8022_v13, %v8028_v20  ;;  %vm8108_vm5 = vcmask 913216  }
 0x864   : > { %v8032_v32 = vsel %vm8026_vm12, %v8023_v60, %v8029_v14  ;;  %v8033_v58 = vsel %vm8027_vm2, %v8024_v63, %v8030_v0  ;;  %v8034_v18 = vpack.c.bf16 %v8031_v23, %v8031_v23  ;;  %vm11325_vm12 = vcmask 375808  }
 0x865   : > { %v8802_v35 = vpack.c.bf16 %v8033_v58, %v8032_v32  ;;  %v8803_v37 = vpack.c.bf16 %v8033_v58, %v8033_v58  ;;  %v8801_v12 = vpack.c.bf16 %v8032_v32, %v8032_v32  ;;  %vm8113_vm2 = vcmask 978816  }
 0x866   : > { %8047 = vrot.lane.b32.xlu0 %v8034_v18, %s9044_s20  ;;  %8042 = vrot.lane.b32.xlu1 %v8034_v18, %s9022_s22  ;;  %8038 = vst.msk [vmem:[#allocation3] sm:$0xf] %vm8037_vm6, %v8034_v18  ;;  %s9050_s22 = smov 88   ;;  %s9053_s20 = smov 50  }
 0x86a   : > { %8067 = vrot.lane.b32.xlu0 %v8034_v18, %s9024_s24  ;;  %8052 = vrot.lane.b32.xlu1 %v8034_v18, %s9045_s15  ;;  %s9052_s24 = smov 20   ;;  %s9056_s15 = smov 86  }
 0x86e   : > { %8072 = vrot.lane.b32.xlu0 %v8034_v18, %s9046_s25  ;;  %8057 = vrot.lane.b32.xlu1 %v8034_v18, %s9047_s26  ;;  %s9057_s25 = smov 84   ;;  %s9059_s26 = smov 82  }
 0x872   : > { %8077 = vrot.lane.b32.xlu0 %v8034_v18, %s9048_s13  ;;  %8062 = vrot.lane.b32.xlu1 %v8034_v18, %s9023_s23  ;;  %s9054_s23 = smov 48   ;;  %s9062_s13 = smov 10  }
 0x876   : > { %8082 = vrot.lane.b32.xlu0 %v8034_v18, %s9049_s17  ;;  %8150 = vrot.lane.b32.xlu1 %v8803_v37, %s11151_s12  ;;  %s9055_s12 = smov 14  }
 0x87a   : > { %8087 = vrot.lane.b32.xlu0 %v8034_v18, %s9050_s22  ;;  %8154 = vrot.lane.b32.xlu1 %v8803_v37, %s9051_s18 }
 0x87e   : > { %8120 = vrot.lane.b32.xlu0 %v8801_v12, %s11099_s11  ;;  %8158 = vrot.lane.b32.xlu1 %v8803_v37, %s9052_s24  ;;  %s9058_s11 = smov 52  }
 0x882   : > { %8143 = vrot.lane.b32.xlu0 %v8802_v35, %s11132_s16  ;;  %8162 = vrot.lane.b32.xlu1 %v8803_v37, %s11073_s19  ;;  %s9060_s16 = smov 12   ;;  %s9061_s19 = smov 80  }
 0x886   : > { %8132 = vrot.lane.b32.xlu0 %v8801_v12, %s9053_s20  ;;  %8166 = vrot.lane.b32.xlu1 %v8803_v37, %s11075_s21  ;;  %s9063_s21 = smov 78  }
 0x88a   : > { %8136 = vrot.lane.b32.xlu0 %v8801_v12, %s9054_s23  ;;  %8170 = vrot.lane.b32.xlu1 %v8803_v37, %s9055_s12 }
 0x88e   : > { %8095 = vrot.lane.b32.xlu0 %v8801_v12, %s9056_s15  ;;  %8124 = vrot.lane.b32.xlu1 %v8801_v12, %s11122_s29  ;;  %s11329_s29 = sshll.u32 %s11331_s10, 4 }
 0x88f   : > { %s332_s18 = scalar_lea.vmem %s10964_s9, %s11329_s29 }
 0x892   : > { %8100 = vrot.lane.b32.xlu0 %v8801_v12, %s9057_s25  ;;  %8128 = vrot.lane.b32.xlu1 %v8801_v12, %s9058_s11 }
 0x896   : > { %8105 = vrot.lane.b32.xlu0 %v8801_v12, %s9059_s26  ;;  %8174 = vrot.lane.b32.xlu1 %v8803_v37, %s9060_s16 }
 0x89a   : > { %8110 = vrot.lane.b32.xlu0 %v8801_v12, %s9061_s19  ;;  %8178 = vrot.lane.b32.xlu1 %v8803_v37, %s9062_s13 }
 0x89e   : > { %8115 = vrot.lane.b32.xlu0 %v8801_v12, %s9063_s21  ;;  %8182 = vrot.lane.b32.xlu1 %v8803_v37, %s11076_s28 }
 0x8a2   : > { %8186 = vrot.lane.b32.xlu1 %v8803_v37, %s11090_s27 }
 0x8d8   : > { %v8048_v6 = vpop.permute.xlu0 %8047  ;;  %v8043_v7 = vpop.permute.xlu1 %8042 }
 0x8d9   : > { %8046 = vst.msk [vmem:[#allocation3] sm:$0xf] %vm8045_vm14, %v8043_v7 }
 0x8da   : > { %8051 = vst.msk [vmem:[#allocation3] sm:$0xf] %vm8050_vm7, %v8048_v6 }
 0x8dc   : > { %v8068_v62 = vpop.permute.xlu0 %8067  ;;  %v8053_v29 = vpop.permute.xlu1 %8052 }
 0x8dd   : > { %8056 = vst.msk [vmem:[#allocation3] sm:$0xf] %vm8055_vm8, %v8053_v29 }
 0x8e0   : > { %v8073_v36 = vpop.permute.xlu0 %8072  ;;  %v8058_v24 = vpop.permute.xlu1 %8057 }
 0x8e1   : > { %8061 = vst.msk [vmem:[#allocation3] sm:$0xf] %vm8060_vm11, %v8058_v24 }
 0x8e4   : > { %v8078_v31 = vpop.permute.xlu0 %8077  ;;  %v8063_v22 = vpop.permute.xlu1 %8062 }
 0x8e5   : > { %8066 = vst.msk [vmem:[#allocation3] sm:$0xf] %vm8065_vm9, %v8063_v22 }
 0x8e6   : > { %8071 = vst.msk [vmem:[#allocation3] sm:$0xf] %vm8070_vm1, %v8068_v62 }
 0x8e7   : > { %8076 = vst.msk [vmem:[#allocation3] sm:$0xf] %vm8075_vm10, %v8073_v36 }
 0x8e8   : > { %v8083_v38 = vpop.permute.xlu0 %8082  ;;  %v8151_v43 = vpop.permute.xlu1 %8150  ;;  %8081 = vst.msk [vmem:[#allocation3] sm:$0xf] %vm8080_vm4, %v8078_v31 }
 0x8e9   : > { %8086 = vst.msk [vmem:[#allocation3] sm:$0xf] %vm8085_vm3, %v8083_v38 }
 0x8ec   : > { %v8088_v55 = vpop.permute.xlu0 %8087  ;;  %v8155_v27 = vpop.permute.xlu1 %8154 }
 0x8ed   : > { %8091 = vst.msk [vmem:[#allocation3] sm:$0xf] %vm8090_vm0, %v8088_v55 }
 0x8f0   : > { %v8121_v44 = vpop.permute.xlu0 %8120  ;;  %v8159_v51 = vpop.permute.xlu1 %8158 }
 0x8f1   : > { %8123 = vst.msk [vmem:[#allocation3 + $0x4] sm:$0xf] %vm8037_vm6, %v8121_v44  ;;  %vm8118_vm6 = vcmask 1044416  }
 0x8f4   : > { %v8144_v19 = vpop.permute.xlu0 %8143  ;;  %v8163_v33 = vpop.permute.xlu1 %8162 }
 0x8f5   : > { %v8145_v25 = vrot.slane %v8144_v19, 4 }
 0x8f7   : > { %v8146_v28 = vsel %vm11325_vm12, %v8144_v19, %v8145_v25 }
 0x8f8   : > { %v8133_v5 = vpop.permute.xlu0 %8132  ;;  %v8167_v54 = vpop.permute.xlu1 %8166 }
 0x8fc   : > { %v8137_v21 = vpop.permute.xlu0 %8136  ;;  %v8171_v8 = vpop.permute.xlu1 %8170 }
 0x900   : > { %v8096_v11 = vpop.permute.xlu0 %8095  ;;  %v8125_v15 = vpop.permute.xlu1 %8124 }
 0x901   : > { %8099 = vst.msk [vmem:[#allocation3] sm:$0xf] %vm8098_vm13, %v8096_v11 }
 0x902   : > { %8127 = vst.msk [vmem:[#allocation3 + $0x4] sm:$0xf] %vm8045_vm14, %v8125_v15  ;;  %vm11326_vm14 = vcmask 1043456  }
 0x904   : > { %v8101_v34 = vpop.permute.xlu0 %8100  ;;  %v8129_v59 = vpop.permute.xlu1 %8128 }
 0x905   : > { %8104 = vst.msk [vmem:[#allocation3] sm:$0xf] %vm8103_vm15, %v8101_v34 }
 0x906   : > { %8131 = vst.msk [vmem:[#allocation3 + $0x4] sm:$0xf] %vm8050_vm7, %v8129_v59  ;;  %vm11327_vm7 = vmmov %vm11326_vm14 }
 0x907   : > { %8135 = vst.msk [vmem:[#allocation3 + $0x4] sm:$0xf] %vm8055_vm8, %v8133_v5  ;;  %vm11328_vm8 = vcmask 64512  }
 0x908   : > { %8139 = vst.msk [vmem:[#allocation3 + $0x4] sm:$0xf] %vm8060_vm11, %v8137_v21  ;;  %v8106_v26 = vpop.permute.xlu0 %8105  ;;  %v8175_v39 = vpop.permute.xlu1 %8174 }
 0x909   : > { %8148 = vst.msk [vmem:[#allocation3 + $0x4] sm:$0xf] %vm8065_vm9, %v8146_v28 }
 0x90a   : > { %8153 = vst.msk [vmem:[#allocation3 + $0x4] sm:$0xf] %vm8070_vm1, %v8151_v43 }
 0x90b   : > { %8109 = vst.msk [vmem:[#allocation3] sm:$0xf] %vm8108_vm5, %v8106_v26 }
 0x90c   : > { %8157 = vst.msk [vmem:[#allocation3 + $0x4] sm:$0xf] %vm8075_vm10, %v8155_v27  ;;  %v8111_v30 = vpop.permute.xlu0 %8110  ;;  %v8179_v47 = vpop.permute.xlu1 %8178 }
 0x90d   : > { %8161 = vst.msk [vmem:[#allocation3 + $0x4] sm:$0xf] %vm8080_vm4, %v8159_v51 }
 0x90e   : > { %8165 = vst.msk [vmem:[#allocation3 + $0x4] sm:$0xf] %vm8085_vm3, %v8163_v33 }
 0x90f   : > { %8169 = vst.msk [vmem:[#allocation3 + $0x4] sm:$0xf] %vm8090_vm0, %v8167_v54 }
 0x910   : > { %8114 = vst.msk [vmem:[#allocation3] sm:$0xf] %vm8113_vm2, %v8111_v30  ;;  %v8116_v52 = vpop.permute.xlu0 %8115  ;;  %v8183_v45 = vpop.permute.xlu1 %8182 }
 0x911   : > { %8173 = vst.msk [vmem:[#allocation3 + $0x4] sm:$0xf] %vm8098_vm13, %v8171_v8 }
 0x912   : > { %8177 = vst.msk [vmem:[#allocation3 + $0x4] sm:$0xf] %vm8103_vm15, %v8175_v39 }
 0x913   : > { %8181 = vst.msk [vmem:[#allocation3 + $0x4] sm:$0xf] %vm8108_vm5, %v8179_v47 }
 0x914   : > { %8119 = vst.msk [vmem:[#allocation3] sm:$0xf] %vm8118_vm6, %v8116_v52  ;;  %v8187_v16 = vpop.permute.xlu1 %8186 }
 0x915   : > { %8185 = vst.msk [vmem:[#allocation3 + $0x4] sm:$0xf] %vm8113_vm2, %v8183_v45 }
 0x916   : > { %8189 = vst.msk [vmem:[#allocation3 + $0x4] sm:$0xf] %vm8118_vm6, %v8187_v16 }
 0x91d   : > { %v8191_v49 = vld [vmem:[#allocation3] sm:$0xff] }
 0x91e   : > { %v8787_v42 = vcombine.high %v8191_v49, %v8191_v49  ;;  %v8786_v48 = vcombine.low %v8191_v49, %v8191_v49 }
 0x920   : > { %8788 = vmatprep.subr.msk.bf16.mxu1 %vm11326_vm14, %v8787_v42  ;;  %v8201_v50 = vsel %vm11327_vm7, %v8786_v48, 0 }
 0x921   : > { %8221 = vmatpush1.bf16.msra.mxu1 %v8201_v50 }
 0x924   : > { %8789 = vmatmul.mubr.msk.bf16.vlgmr.msra.gmra.mxu1 %vm11328_vm8, %v8190_v4 }
 0x9e4   : > { %v8240_v61 = vpop.f32.mrf.mxu1 }
 0x9e5   : > { %v8241_v41 = vadd.f32 %v8978_v1, %v8240_v61 }
 0x9e6   : > { %v8242_v40 = vpop.f32.mrf.mxu1 }
 0x9e7   : > { %8247 = vst [vmem:[%s332_s18] sm:$0xff] %v8241_v41  ;;  %v8243_v2 = vadd.f32 %v8979_v3, %v8242_v40 }
 0x9e8   : > { %v8244_v57 = vpop.f32.mrf.mxu1 }
 0x9e9   : > { %8248 = vst [vmem:[%s332_s18 + $0x8] sm:$0xff] %v8243_v2 }
 0x9ea   : > { %v8245_v53 = vpop.f32.mrf.mxu1 }
 0x9eb PF: > { %s19_s30 = sadd.s32 1, %s8986_s30  }
 0x9ec   : > { %p16_p4 = scmp.ge.s32.totalorder %s19_s30, 4  }
 0x9ee   :  { %18 = sbr.rel (!%p16_p4) target bundleno = 1 (0x1), region = 138 }

</bundles_post_ra>
